<compile_context>
chip_gen: v5e
topology: v5e:2x2
jax: 0.10.0
libtpu: 0.0.40
codegen_flags: <defaults>
</compile_context>

<pallas_src>
import jax
import jax.numpy as jnp
import numpy as np
from jax.experimental import pallas as pl
from jax.experimental.pallas import tpu as pltpu


# ----------------------------------------------------------------------------
# wrapper-side weight re-layout and constant matrices (no feature-map-sized
# temporaries ever hit HBM; everything below is tiny and built once per trace)
# ----------------------------------------------------------------------------
def _prep_conv_w(w):
    """torch OIHW (Cout,Cin,kh,kw) -> (kh*kw*Cin, Cout) bf16, K = (ky*kw+kx)*Cin + ci."""
    cout, cin, kh, kw = w.shape
    return jnp.transpose(w, (2, 3, 1, 0)).reshape(kh * kw * cin, cout).astype(jnp.bfloat16)


def _pad_embed_matrix(h, w):
    """0/1 matrix (Mpad, h*w): scatters a row-major (h*w, C) map into a flattened
    zero-padded (h+2, w+2) grid, plus a few trailing zero rows so every 3x3 row-window
    slice of length h*(w+2) stays in bounds.  Applied as one MXU matmul in-kernel, so
    the padded buffer is produced with a single aligned store (no scatter / memset)."""
    wp = w + 2
    rows_needed = (h + 2) * wp + 2                       # last row touched by (dy=2,dx=2)
    mpad = int(np.ceil(rows_needed / 8.0)) * 8
    e = np.zeros((mpad, h * w), np.float32)
    for i in range(h):
        for j in range(w):
            e[(i + 1) * wp + (j + 1), i * w + j] = 1.0
    return e, mpad, wp


def _conv2_pool_matrix(h, w):
    """(9*Po, h*(w+2)) constant folding conv2's 3x3 im2col (incl. its zero padding)
    AND AvgPool2d(2,2):  pooled_tap[k*Po+p] = 0.25 * sum_{2x2 window} c1pad[. + tap_k].
    Tap blocks are contiguous (Po rows) so the per-tap matmuls slice 8-aligned, and the
    two invalid padded-width columns per row always have coefficient 0."""
    ho, wo = h // 2, w // 2
    po = ho * wo
    wp = w + 2
    a = np.zeros((9 * po, h * wp), np.float32)
    for k in range(9):
        ky, kx = divmod(k, 3)
        for yo in range(ho):
            for xo in range(wo):
                p = yo * wo + xo
                for ay in range(2):
                    for ax in range(2):
                        yy = 2 * yo + ay + ky - 1
                        xx = 2 * xo + ax + kx - 1
                        if 0 <= yy < h and 0 <= xx < w:
                            a[k * po + p, yy * wp + xx] += 0.25
    return a, po


def _avgpool2_matrix(h, w):
    """(Po, h*w) 0/0.25 matrix implementing AvgPool2d(2,2) on a row-major map."""
    ho, wo = h // 2, w // 2
    m = np.zeros((ho * wo, h * w), np.float32)
    for yo in range(ho):
        for xo in range(wo):
            for ay in range(2):
                for ax in range(2):
                    m[yo * wo + xo, (2 * yo + ay) * w + (2 * xo + ax)] = 0.25
    return m


def _stem_im2col(x_nhwc):
    """Wrapper-side im2col of the raw input for the 4x4 / stride-2 / pad-1 stem conv:
    (N,H,W,Cin) -> (N, (H/2)*(W/2), 16*Cin) bf16 (one K=16*Cin MXU matmul in-kernel)."""
    n, h, w, cin = x_nhwc.shape
    ho, wo = h // 2, w // 2
    xp = jnp.pad(x_nhwc, ((0, 0), (1, 1), (1, 1), (0, 0)))
    taps = []
    for ky in range(4):
        for kx in range(4):
            taps.append(xp[:, ky:ky + 2 * ho:2, kx:kx + 2 * wo:2, :])   # (N, ho, wo, cin)
    col = jnp.stack(taps, axis=3)                                       # (N, ho, wo, 16, cin)
    return col.reshape(n, ho * wo, 16 * cin).astype(jnp.bfloat16)


def _const_spec(shape):
    """BlockSpec for a constant (grid-invariant) operand: full-extent block, index 0."""
    zeros = (0,) * len(shape)
    return pl.BlockSpec(tuple(shape), lambda i: zeros)


# ----------------------------------------------------------------------------
# fused kernel: stem conv -> ResBlocks -> ReLU/AvgPool(8)/Linear head
# ----------------------------------------------------------------------------
def _build_kernel(blocks_meta):
    nb = len(blocks_meta)

    def kernel(*refs):
        stem_col_ref, w0_ref, b0_ref = refs[0:3]
        pos = 3
        blk_refs = []
        for _ in range(nb):
            blk_refs.append(refs[pos:pos + 9])
            pos += 9
        wfc_ref, bfc_ref = refs[pos:pos + 2]
        o_ref = refs[pos + 2]
        pad_refs = refs[pos + 3:pos + 3 + nb]

        # ---- stem: Conv2d(in, ndf, 4, 2, 1) as a single im2col matmul + bias ----
        x = jnp.dot(stem_col_ref[0], w0_ref[...],
                    preferred_element_type=jnp.float32) + b0_ref[...]     # (H0*W0, ndf) f32

        # ---- ResBlocks (norm_layer=None); all intermediates stay in VMEM ----
        for (h, w, wp, cin, po), brefs, pad_ref in zip(blocks_meta, blk_refs, pad_refs):
            e_ref, w1_ref, b1_ref, a_ref, w2_ref, b2_ref, pp_ref, ws_ref, bs_ref = brefs
            lwin = h * wp

            # inplace ReLU in torch mutates x -> the shortcut also sees relu(x)
            hx = jnp.maximum(x, 0.0).astype(jnp.bfloat16)                 # (h*w, cin)

            # zero-padded flat layout via one constant 0/1 matmul; single bf16 store,
            # border and overhang rows come out exactly zero (no memset / re-zeroing).
            pad_ref[...] = jnp.dot(e_ref[...], hx,
                                   preferred_element_type=jnp.float32).astype(jnp.bfloat16)

            # conv1 (3x3, pad 1, cin->cin): 9 contiguous row-window matmuls over the
            # padded width; the 2 invalid columns per row are ignored downstream by
            # the zero columns of the conv2+pool constant.
            acc1 = None
            for k in range(9):
                dy, dx = divmod(k, 3)
                off = dy * wp + dx
                win = pad_ref[off:off + lwin, :]                          # (lwin, cin) bf16
                d = jnp.dot(win, w1_ref[k * cin:(k + 1) * cin, :],
                            preferred_element_type=jnp.float32)
                acc1 = d if acc1 is None else acc1 + d
            c1 = jnp.maximum(acc1 + b1_ref[...], 0.0).astype(jnp.bfloat16)  # (lwin, cin)

            # conv2 (3x3, pad 1, cin->cout) + AvgPool2d(2,2), pooled BEFORE the conv:
            # pooled_tap = A @ c1 shrinks M 4x (exact: each pool row sums to 1, so b2
            # commutes and is added once afterwards).
            pooled = jnp.dot(a_ref[...], c1,
                             preferred_element_type=jnp.float32).astype(jnp.bfloat16)  # (9*po, cin)
            acc2 = None
            for k in range(9):
                d = jnp.dot(pooled[k * po:(k + 1) * po, :],
                            w2_ref[k * cin:(k + 1) * cin, :],
                            preferred_element_type=jnp.float32)
                acc2 = d if acc2 is None else acc2 + d
            conv_path = acc2 + b2_ref[...]                                 # (po, cout)

            # shortcut: Conv1x1(AvgPool2d(relu(x)))
            hpool = jnp.dot(pp_ref[...], hx,
                            preferred_element_type=jnp.float32).astype(jnp.bfloat16)   # (po, cin)
            shortcut = jnp.dot(hpool, ws_ref[...],
                               preferred_element_type=jnp.float32) + bs_ref[...]

            x = conv_path + shortcut                                       # (po, cout) f32

        # ---- head: ReLU -> AvgPool2d(8) (== full spatial mean of the 8x8 map) -> Linear
        feat = jnp.mean(jnp.maximum(x, 0.0), axis=0, keepdims=True)        # (1, c_last)
        out = jnp.dot(feat.astype(jnp.bfloat16), wfc_ref[...],
                      preferred_element_type=jnp.float32) + bfc_ref[...]   # (1, out_ch)
        o_ref[...] = out.reshape(1, 1, -1)

    return kernel


# ----------------------------------------------------------------------------
# wrapper
# ----------------------------------------------------------------------------
def e_resnet_forward(x_nchw, params):
    """E_ResNet.forward (vaeLike=False): NCHW input -> (N, out_channel)."""
    x = jnp.transpose(x_nchw, (0, 2, 3, 1)).astype(jnp.float32)            # NHWC
    n, hin, win_, _ = x.shape
    w0 = params["w0"]
    ndf = w0.shape[0]
    out_ch = params["wfc"].shape[0]

    # stem operands
    stem_col = _stem_im2col(x)                                             # (n, hw0, 16*cin)
    w0r = _prep_conv_w(w0)
    b0r = params["b0"].reshape(1, ndf).astype(jnp.float32)

    in_arrays = [stem_col, w0r, b0r]
    in_specs = [
        pl.BlockSpec((1,) + stem_col.shape[1:], lambda i: (i, 0, 0)),
        _const_spec(w0r.shape),
        _const_spec(b0r.shape),
    ]

    # per-ResBlock operands / constants
    blocks_meta, scratch_shapes = [], []
    hc, wc = hin // 2, win_ // 2
    c_last = ndf
    for (w1, b1, w2, b2, ws, bs) in params["blocks"]:
        cin, cout = w1.shape[0], w2.shape[0]
        e_np, mpad, wp = _pad_embed_matrix(hc, wc)
        a_np, po = _conv2_pool_matrix(hc, wc)
        p_np = _avgpool2_matrix(hc, wc)
        arrs = [
            jnp.asarray(e_np, jnp.bfloat16),
            _prep_conv_w(w1), b1.reshape(1, cin).astype(jnp.float32),
            jnp.asarray(a_np, jnp.bfloat16),
            _prep_conv_w(w2), b2.reshape(1, cout).astype(jnp.float32),
            jnp.asarray(p_np, jnp.bfloat16),
            _prep_conv_w(ws), bs.reshape(1, cout).astype(jnp.float32),
        ]
        in_arrays += arrs
        in_specs += [_const_spec(a.shape) for a in arrs]
        blocks_meta.append((hc, wc, wp, cin, po))
        scratch_shapes.append(pltpu.VMEM((mpad, cin), jnp.bfloat16))       # padded activations
        hc, wc, c_last = hc // 2, wc // 2, cout

    # The torch module hard-codes AvgPool2d(8) before the Linear head.
    assert hc == 8 and wc == 8, "E_ResNet expects an 8x8 map before AvgPool2d(8)"

    # head operands
    wfcr = jnp.transpose(params["wfc"], (1, 0)).astype(jnp.bfloat16)       # (c_last, out_ch)
    bfcr = params["bfc"].reshape(1, out_ch).astype(jnp.float32)
    in_arrays += [wfcr, bfcr]
    in_specs += [_const_spec(wfcr.shape), _const_spec(bfcr.shape)]

    out = pl.pallas_call(
        _build_kernel(tuple(blocks_meta)),
        out_shape=jax.ShapeDtypeStruct((n, 1, out_ch), jnp.float32),
        grid_spec=pltpu.PrefetchScalarGridSpec(
            num_scalar_prefetch=0,
            grid=(n,),
            in_specs=in_specs,
            out_specs=pl.BlockSpec((1, 1, out_ch), lambda i: (i, 0, 0)),
            scratch_shapes=scratch_shapes,
        ),
        # ~4.5 MiB/step incl. double-buffered constants: fits every generation's
        # default scoped VMEM, so no vmem_limit_bytes / pipeline_mode overrides needed.
        compiler_params=pltpu.CompilerParams(dimension_semantics=("parallel",)),
    )(*in_arrays)

    # TODO(synk): vaeLike=True (second fcVar Linear head) not emitted; module default
    # is vaeLike=False.
    return out.reshape(n, out_ch)


# ----------------------------------------------------------------------------
# pure-JAX reference (mirrors PyTorch exactly, incl. the inplace-ReLU behaviour)
# ----------------------------------------------------------------------------
def _ref_conv(x, w, b, stride, pad):
    y = jax.lax.conv_general_dilated(
        x, w, (stride, stride), [(pad, pad), (pad, pad)],
        dimension_numbers=("NCHW", "OIHW", "NCHW"),
        precision=jax.lax.Precision.HIGHEST)
    return y + b[None, :, None, None]


def _ref_avgpool(x, k):
    n, c, h, w = x.shape
    return x.reshape(n, c, h // k, k, w // k, k).mean(axis=(3, 5))


def ref_forward(x, params):
    y = _ref_conv(x, params["w0"], params["b0"], 2, 1)
    for w1, b1, w2, b2, ws, bs in params["blocks"]:
        h = jnp.maximum(y, 0.0)            # inplace ReLU: shortcut also sees relu(x)
        c = jnp.maximum(_ref_conv(h, w1, b1, 1, 1), 0.0)
        c = _ref_avgpool(_ref_conv(c, w2, b2, 1, 1), 2)
        s = _ref_conv(_ref_avgpool(h, 2), ws, bs, 1, 0)
        y = c + s
    y = _ref_avgpool(jnp.maximum(y, 0.0), y.shape[-1])
    flat = y.reshape(y.shape[0], -1)
    return jnp.dot(flat, params["wfc"].T,
                   precision=jax.lax.Precision.HIGHEST) + params["bfc"]


# ----------------------------------------------------------------------------
if __name__ == "__main__":
    # E_ResNet(in_channel=4, out_channel=1, ndf=128, n_blocks=2, norm_layer=None,
    #          vaeLike=False) on a (2, 4, 32, 32) input.
    N, in_channel, H, W = 2, 4, 32, 32
    ndf, n_blocks, out_channel, max_ndf = 128, 2, 1, 4

    key = jax.random.PRNGKey(0)

    def conv_param(k, cout, cin, ksz):
        kw_, kb_ = jax.random.split(k)
        w = jax.random.normal(kw_, (cout, cin, ksz, ksz), jnp.float32) / np.sqrt(cin * ksz * ksz)
        b = 0.1 * jax.random.normal(kb_, (cout,), jnp.float32)
        return w, b

    keys = jax.random.split(key, 2 + n_blocks)
    x = jax.random.normal(keys[0], (N, in_channel, H, W), jnp.float32)
    w0, b0 = conv_param(keys[1], ndf, in_channel, 4)

    blocks = []
    out_ndf = ndf
    for nb in range(1, n_blocks):
        in_ndf = ndf * min(max_ndf, nb)
        out_ndf = ndf * min(max_ndf, nb + 1)
        k1, k2, k3 = jax.random.split(keys[1 + nb], 3)
        w1, b1 = conv_param(k1, in_ndf, in_ndf, 3)
        w2, b2 = conv_param(k2, out_ndf, in_ndf, 3)
        ws, bs = conv_param(k3, out_ndf, in_ndf, 1)
        blocks.append((w1, b1, w2, b2, ws, bs))

    kfcw, kfcb = jax.random.split(keys[-1])
    wfc = jax.random.normal(kfcw, (out_channel, out_ndf), jnp.float32) / np.sqrt(out_ndf)
    bfc = 0.1 * jax.random.normal(kfcb, (out_channel,), jnp.float32)

    params = {"w0": w0, "b0": b0, "blocks": blocks, "wfc": wfc, "bfc": bfc}

    out = jax.block_until_ready(jax.jit(e_resnet_forward)(x, params))
    ref = jax.block_until_ready(jax.jit(ref_forward)(x, params))

    # kernel uses bf16 MXU operands with f32 accumulation -> compare at bf16 tolerance
    np.testing.assert_allclose(np.asarray(out), np.asarray(ref), rtol=3e-2, atol=3e-2)
    assert out.shape == (N, out_channel) and np.all(np.isfinite(np.asarray(out)))
    print("KERNEL_OK")
</pallas_src>

<mosaic_0001>
module attributes {stable_mosaic.version = 11 : i64} {
  func.func @kernel(%arg0: i32, %arg1: memref<1x256x64xbf16, #tpu.memory_space<vmem>>, %arg2: memref<64x128xbf16, #tpu.memory_space<vmem>>, %arg3: memref<1x128xf32, #tpu.memory_space<vmem>>, %arg4: memref<328x256xbf16, #tpu.memory_space<vmem>>, %arg5: memref<1152x128xbf16, #tpu.memory_space<vmem>>, %arg6: memref<1x128xf32, #tpu.memory_space<vmem>>, %arg7: memref<576x288xbf16, #tpu.memory_space<vmem>>, %arg8: memref<1152x256xbf16, #tpu.memory_space<vmem>>, %arg9: memref<1x256xf32, #tpu.memory_space<vmem>>, %arg10: memref<64x256xbf16, #tpu.memory_space<vmem>>, %arg11: memref<128x256xbf16, #tpu.memory_space<vmem>>, %arg12: memref<1x256xf32, #tpu.memory_space<vmem>>, %arg13: memref<256x1xbf16, #tpu.memory_space<vmem>>, %arg14: memref<1x1xf32, #tpu.memory_space<vmem>>, %arg15: memref<1x1x1xf32, #tpu.memory_space<vmem>>, %arg16: memref<328x128xbf16, #tpu.memory_space<vmem>>) attributes {dimension_semantics = [#tpu.dimension_semantics<parallel>], iteration_bounds = array<i64: 2>, scalar_prefetch = 0 : i64, scratch_operands = 1 : i64, tpu.core_type = #tpu.core_type<tc>, window_params = [{transform_indices = @transform_0, window_bounds = array<i64: 1, 256, 64>}, {pipeline_mode = #tpu.pipeline_mode<synchronous>, transform_indices = @transform_1, window_bounds = array<i64: 64, 128>}, {pipeline_mode = #tpu.pipeline_mode<synchronous>, transform_indices = @transform_2, window_bounds = array<i64: 1, 128>}, {pipeline_mode = #tpu.pipeline_mode<synchronous>, transform_indices = @transform_3, window_bounds = array<i64: 328, 256>}, {pipeline_mode = #tpu.pipeline_mode<synchronous>, transform_indices = @transform_4, window_bounds = array<i64: 1152, 128>}, {pipeline_mode = #tpu.pipeline_mode<synchronous>, transform_indices = @transform_5, window_bounds = array<i64: 1, 128>}, {pipeline_mode = #tpu.pipeline_mode<synchronous>, transform_indices = @transform_6, window_bounds = array<i64: 576, 288>}, {pipeline_mode = #tpu.pipeline_mode<synchronous>, transform_indices = @transform_7, window_bounds = array<i64: 1152, 256>}, {pipeline_mode = #tpu.pipeline_mode<synchronous>, transform_indices = @transform_8, window_bounds = array<i64: 1, 256>}, {pipeline_mode = #tpu.pipeline_mode<synchronous>, transform_indices = @transform_9, window_bounds = array<i64: 64, 256>}, {pipeline_mode = #tpu.pipeline_mode<synchronous>, transform_indices = @transform_10, window_bounds = array<i64: 128, 256>}, {pipeline_mode = #tpu.pipeline_mode<synchronous>, transform_indices = @transform_11, window_bounds = array<i64: 1, 256>}, {pipeline_mode = #tpu.pipeline_mode<synchronous>, transform_indices = @transform_12, window_bounds = array<i64: 256, 1>}, {pipeline_mode = #tpu.pipeline_mode<synchronous>, transform_indices = @transform_13, window_bounds = array<i64: 1, 1>}, {transform_indices = @transform_14, window_bounds = array<i64: 1, 1, 1>}]} {
    %c0 = arith.constant 0 : index
    %c0_0 = arith.constant 0 : index
    %c0_1 = arith.constant 0 : index
    %0 = vector.load %arg1[%c0, %c0_0, %c0_1] : memref<1x256x64xbf16, #tpu.memory_space<vmem>>, vector<1x256x64xbf16>
    %1 = vector.shape_cast %0 : vector<1x256x64xbf16> to vector<256x64xbf16>
    %c0_2 = arith.constant 0 : index
    %c0_3 = arith.constant 0 : index
    %2 = vector.load %arg2[%c0_2, %c0_3] : memref<64x128xbf16, #tpu.memory_space<vmem>>, vector<64x128xbf16>
    %cst = arith.constant dense<0.000000e+00> : vector<256x128xf32>
    %3 = tpu.matmul %1, %2, %cst {dimension_numbers = #tpu.dot_dimension_numbers<[1], [0], [0], [1], [0, 0, 1, 1], [], []>} : vector<256x64xbf16>, vector<64x128xbf16>, vector<256x128xf32> -> vector<256x128xf32>
    %c0_4 = arith.constant 0 : index
    %c0_5 = arith.constant 0 : index
    %4 = vector.load %arg3[%c0_4, %c0_5] : memref<1x128xf32, #tpu.memory_space<vmem>>, vector<1x128xf32>
    %5 = vector.broadcast %4 : vector<1x128xf32> to vector<256x128xf32>
    %6 = arith.addf %3, %5 : vector<256x128xf32>
    %cst_6 = arith.constant 0.000000e+00 : f32
    %7 = vector.broadcast %cst_6 : f32 to vector<256x128xf32>
    %8 = arith.maximumf %6, %7 : vector<256x128xf32>
    %9 = arith.truncf %8 : vector<256x128xf32> to vector<256x128xbf16>
    %c0_7 = arith.constant 0 : index
    %c0_8 = arith.constant 0 : index
    %10 = vector.load %arg4[%c0_7, %c0_8] : memref<328x256xbf16, #tpu.memory_space<vmem>>, vector<328x256xbf16>
    %cst_9 = arith.constant dense<0.000000e+00> : vector<328x128xf32>
    %11 = tpu.matmul %10, %9, %cst_9 {dimension_numbers = #tpu.dot_dimension_numbers<[1], [0], [0], [1], [0, 0, 1, 1], [], []>} : vector<328x256xbf16>, vector<256x128xbf16>, vector<328x128xf32> -> vector<328x128xf32>
    %12 = arith.truncf %11 : vector<328x128xf32> to vector<328x128xbf16>
    %c0_10 = arith.constant 0 : index
    %c0_11 = arith.constant 0 : index
    %13 = vector.load %arg16[%c0_10, %c0_11] : memref<328x128xbf16, #tpu.memory_space<vmem>>, vector<328x128xbf16>
    tpu.vector_store %arg16[%c0_10, %c0_11], %12 {strides = array<i32>} : memref<328x128xbf16, #tpu.memory_space<vmem>>, vector<328x128xbf16>,
    %c0_12 = arith.constant 0 : index
    %c0_13 = arith.constant 0 : index
    %14 = vector.load %arg16[%c0_12, %c0_13] : memref<328x128xbf16, #tpu.memory_space<vmem>>, vector<288x128xbf16>
    %c0_14 = arith.constant 0 : index
    %c0_15 = arith.constant 0 : index
    %15 = vector.load %arg5[%c0_14, %c0_15] : memref<1152x128xbf16, #tpu.memory_space<vmem>>, vector<128x128xbf16>
    %cst_16 = arith.constant dense<0.000000e+00> : vector<288x128xf32>
    %16 = tpu.matmul %14, %15, %cst_16 {dimension_numbers = #tpu.dot_dimension_numbers<[1], [0], [0], [1], [0, 0, 1, 1], [], []>} : vector<288x128xbf16>, vector<128x128xbf16>, vector<288x128xf32> -> vector<288x128xf32>
    %c1 = arith.constant 1 : index
    %c0_17 = arith.constant 0 : index
    %17 = vector.load %arg16[%c1, %c0_17] : memref<328x128xbf16, #tpu.memory_space<vmem>>, vector<288x128xbf16>
    %c128 = arith.constant 128 : index
    %c0_18 = arith.constant 0 : index
    %18 = vector.load %arg5[%c128, %c0_18] : memref<1152x128xbf16, #tpu.memory_space<vmem>>, vector<128x128xbf16>
    %cst_19 = arith.constant dense<0.000000e+00> : vector<288x128xf32>
    %19 = tpu.matmul %17, %18, %cst_19 {dimension_numbers = #tpu.dot_dimension_numbers<[1], [0], [0], [1], [0, 0, 1, 1], [], []>} : vector<288x128xbf16>, vector<128x128xbf16>, vector<288x128xf32> -> vector<288x128xf32>
    %20 = arith.addf %16, %19 : vector<288x128xf32>
    %c2 = arith.constant 2 : index
    %c0_20 = arith.constant 0 : index
    %21 = vector.load %arg16[%c2, %c0_20] : memref<328x128xbf16, #tpu.memory_space<vmem>>, vector<288x128xbf16>
    %c256 = arith.constant 256 : index
    %c0_21 = arith.constant 0 : index
    %22 = vector.load %arg5[%c256, %c0_21] : memref<1152x128xbf16, #tpu.memory_space<vmem>>, vector<128x128xbf16>
    %cst_22 = arith.constant dense<0.000000e+00> : vector<288x128xf32>
    %23 = tpu.matmul %21, %22, %cst_22 {dimension_numbers = #tpu.dot_dimension_numbers<[1], [0], [0], [1], [0, 0, 1, 1], [], []>} : vector<288x128xbf16>, vector<128x128xbf16>, vector<288x128xf32> -> vector<288x128xf32>
    %24 = arith.addf %20, %23 : vector<288x128xf32>
    %c18 = arith.constant 18 : index
    %c0_23 = arith.constant 0 : index
    %25 = vector.load %arg16[%c18, %c0_23] : memref<328x128xbf16, #tpu.memory_space<vmem>>, vector<288x128xbf16>
    %c384 = arith.constant 384 : index
    %c0_24 = arith.constant 0 : index
    %26 = vector.load %arg5[%c384, %c0_24] : memref<1152x128xbf16, #tpu.memory_space<vmem>>, vector<128x128xbf16>
    %cst_25 = arith.constant dense<0.000000e+00> : vector<288x128xf32>
    %27 = tpu.matmul %25, %26, %cst_25 {dimension_numbers = #tpu.dot_dimension_numbers<[1], [0], [0], [1], [0, 0, 1, 1], [], []>} : vector<288x128xbf16>, vector<128x128xbf16>, vector<288x128xf32> -> vector<288x128xf32>
    %28 = arith.addf %24, %27 : vector<288x128xf32>
    %c19 = arith.constant 19 : index
    %c0_26 = arith.constant 0 : index
    %29 = vector.load %arg16[%c19, %c0_26] : memref<328x128xbf16, #tpu.memory_space<vmem>>, vector<288x128xbf16>
    %c512 = arith.constant 512 : index
    %c0_27 = arith.constant 0 : index
    %30 = vector.load %arg5[%c512, %c0_27] : memref<1152x128xbf16, #tpu.memory_space<vmem>>, vector<128x128xbf16>
    %cst_28 = arith.constant dense<0.000000e+00> : vector<288x128xf32>
    %31 = tpu.matmul %29, %30, %cst_28 {dimension_numbers = #tpu.dot_dimension_numbers<[1], [0], [0], [1], [0, 0, 1, 1], [], []>} : vector<288x128xbf16>, vector<128x128xbf16>, vector<288x128xf32> -> vector<288x128xf32>
    %32 = arith.addf %28, %31 : vector<288x128xf32>
    %c20 = arith.constant 20 : index
    %c0_29 = arith.constant 0 : index
    %33 = vector.load %arg16[%c20, %c0_29] : memref<328x128xbf16, #tpu.memory_space<vmem>>, vector<288x128xbf16>
    %c640 = arith.constant 640 : index
    %c0_30 = arith.constant 0 : index
    %34 = vector.load %arg5[%c640, %c0_30] : memref<1152x128xbf16, #tpu.memory_space<vmem>>, vector<128x128xbf16>
    %cst_31 = arith.constant dense<0.000000e+00> : vector<288x128xf32>
    %35 = tpu.matmul %33, %34, %cst_31 {dimension_numbers = #tpu.dot_dimension_numbers<[1], [0], [0], [1], [0, 0, 1, 1], [], []>} : vector<288x128xbf16>, vector<128x128xbf16>, vector<288x128xf32> -> vector<288x128xf32>
    %36 = arith.addf %32, %35 : vector<288x128xf32>
    %c36 = arith.constant 36 : index
    %c0_32 = arith.constant 0 : index
    %37 = vector.load %arg16[%c36, %c0_32] : memref<328x128xbf16, #tpu.memory_space<vmem>>, vector<288x128xbf16>
    %c768 = arith.constant 768 : index
    %c0_33 = arith.constant 0 : index
    %38 = vector.load %arg5[%c768, %c0_33] : memref<1152x128xbf16, #tpu.memory_space<vmem>>, vector<128x128xbf16>
    %cst_34 = arith.constant dense<0.000000e+00> : vector<288x128xf32>
    %39 = tpu.matmul %37, %38, %cst_34 {dimension_numbers = #tpu.dot_dimension_numbers<[1], [0], [0], [1], [0, 0, 1, 1], [], []>} : vector<288x128xbf16>, vector<128x128xbf16>, vector<288x128xf32> -> vector<288x128xf32>
    %40 = arith.addf %36, %39 : vector<288x128xf32>
    %c37 = arith.constant 37 : index
    %c0_35 = arith.constant 0 : index
    %41 = vector.load %arg16[%c37, %c0_35] : memref<328x128xbf16, #tpu.memory_space<vmem>>, vector<288x128xbf16>
    %c896 = arith.constant 896 : index
    %c0_36 = arith.constant 0 : index
    %42 = vector.load %arg5[%c896, %c0_36] : memref<1152x128xbf16, #tpu.memory_space<vmem>>, vector<128x128xbf16>
    %cst_37 = arith.constant dense<0.000000e+00> : vector<288x128xf32>
    %43 = tpu.matmul %41, %42, %cst_37 {dimension_numbers = #tpu.dot_dimension_numbers<[1], [0], [0], [1], [0, 0, 1, 1], [], []>} : vector<288x128xbf16>, vector<128x128xbf16>, vector<288x128xf32> -> vector<288x128xf32>
    %44 = arith.addf %40, %43 : vector<288x128xf32>
    %c38 = arith.constant 38 : index
    %c0_38 = arith.constant 0 : index
    %45 = vector.load %arg16[%c38, %c0_38] : memref<328x128xbf16, #tpu.memory_space<vmem>>, vector<288x128xbf16>
    %c1024 = arith.constant 1024 : index
    %c0_39 = arith.constant 0 : index
    %46 = vector.load %arg5[%c1024, %c0_39] : memref<1152x128xbf16, #tpu.memory_space<vmem>>, vector<128x128xbf16>
    %cst_40 = arith.constant dense<0.000000e+00> : vector<288x128xf32>
    %47 = tpu.matmul %45, %46, %cst_40 {dimension_numbers = #tpu.dot_dimension_numbers<[1], [0], [0], [1], [0, 0, 1, 1], [], []>} : vector<288x128xbf16>, vector<128x128xbf16>, vector<288x128xf32> -> vector<288x128xf32>
    %48 = arith.addf %44, %47 : vector<288x128xf32>
    %c0_41 = arith.constant 0 : index
    %c0_42 = arith.constant 0 : index
    %49 = vector.load %arg6[%c0_41, %c0_42] : memref<1x128xf32, #tpu.memory_space<vmem>>, vector<1x128xf32>
    %50 = vector.broadcast %49 : vector<1x128xf32> to vector<288x128xf32>
    %51 = arith.addf %48, %50 : vector<288x128xf32>
    %cst_43 = arith.constant 0.000000e+00 : f32
    %52 = vector.broadcast %cst_43 : f32 to vector<288x128xf32>
    %53 = arith.maximumf %51, %52 : vector<288x128xf32>
    %54 = arith.truncf %53 : vector<288x128xf32> to vector<288x128xbf16>
    %c0_44 = arith.constant 0 : index
    %c0_45 = arith.constant 0 : index
    %55 = vector.load %arg7[%c0_44, %c0_45] : memref<576x288xbf16, #tpu.memory_space<vmem>>, vector<576x288xbf16>
    %cst_46 = arith.constant dense<0.000000e+00> : vector<576x128xf32>
    %56 = tpu.matmul %55, %54, %cst_46 {dimension_numbers = #tpu.dot_dimension_numbers<[1], [0], [0], [1], [0, 0, 1, 1], [], []>} : vector<576x288xbf16>, vector<288x128xbf16>, vector<576x128xf32> -> vector<576x128xf32>
    %57 = arith.truncf %56 : vector<576x128xf32> to vector<576x128xbf16>
    %58 = vector.extract_strided_slice %57 {offsets = [0, 0], sizes = [64, 128], strides = [1, 1]} : vector<576x128xbf16> to vector<64x128xbf16>
    %c0_47 = arith.constant 0 : index
    %c0_48 = arith.constant 0 : index
    %59 = vector.load %arg8[%c0_47, %c0_48] : memref<1152x256xbf16, #tpu.memory_space<vmem>>, vector<128x256xbf16>
    %cst_49 = arith.constant dense<0.000000e+00> : vector<64x256xf32>
    %60 = tpu.matmul %58, %59, %cst_49 {dimension_numbers = #tpu.dot_dimension_numbers<[1], [0], [0], [1], [0, 0, 1, 1], [], []>} : vector<64x128xbf16>, vector<128x256xbf16>, vector<64x256xf32> -> vector<64x256xf32>
    %61 = vector.extract_strided_slice %57 {offsets = [64, 0], sizes = [64, 128], strides = [1, 1]} : vector<576x128xbf16> to vector<64x128xbf16>
    %c128_50 = arith.constant 128 : index
    %c0_51 = arith.constant 0 : index
    %62 = vector.load %arg8[%c128_50, %c0_51] : memref<1152x256xbf16, #tpu.memory_space<vmem>>, vector<128x256xbf16>
    %cst_52 = arith.constant dense<0.000000e+00> : vector<64x256xf32>
    %63 = tpu.matmul %61, %62, %cst_52 {dimension_numbers = #tpu.dot_dimension_numbers<[1], [0], [0], [1], [0, 0, 1, 1], [], []>} : vector<64x128xbf16>, vector<128x256xbf16>, vector<64x256xf32> -> vector<64x256xf32>
    %64 = arith.addf %60, %63 : vector<64x256xf32>
    %65 = vector.extract_strided_slice %57 {offsets = [128, 0], sizes = [64, 128], strides = [1, 1]} : vector<576x128xbf16> to vector<64x128xbf16>
    %c256_53 = arith.constant 256 : index
    %c0_54 = arith.constant 0 : index
    %66 = vector.load %arg8[%c256_53, %c0_54] : memref<1152x256xbf16, #tpu.memory_space<vmem>>, vector<128x256xbf16>
    %cst_55 = arith.constant dense<0.000000e+00> : vector<64x256xf32>
    %67 = tpu.matmul %65, %66, %cst_55 {dimension_numbers = #tpu.dot_dimension_numbers<[1], [0], [0], [1], [0, 0, 1, 1], [], []>} : vector<64x128xbf16>, vector<128x256xbf16>, vector<64x256xf32> -> vector<64x256xf32>
    %68 = arith.addf %64, %67 : vector<64x256xf32>
    %69 = vector.extract_strided_slice %57 {offsets = [192, 0], sizes = [64, 128], strides = [1, 1]} : vector<576x128xbf16> to vector<64x128xbf16>
    %c384_56 = arith.constant 384 : index
    %c0_57 = arith.constant 0 : index
    %70 = vector.load %arg8[%c384_56, %c0_57] : memref<1152x256xbf16, #tpu.memory_space<vmem>>, vector<128x256xbf16>
    %cst_58 = arith.constant dense<0.000000e+00> : vector<64x256xf32>
    %71 = tpu.matmul %69, %70, %cst_58 {dimension_numbers = #tpu.dot_dimension_numbers<[1], [0], [0], [1], [0, 0, 1, 1], [], []>} : vector<64x128xbf16>, vector<128x256xbf16>, vector<64x256xf32> -> vector<64x256xf32>
    %72 = arith.addf %68, %71 : vector<64x256xf32>
    %73 = vector.extract_strided_slice %57 {offsets = [256, 0], sizes = [64, 128], strides = [1, 1]} : vector<576x128xbf16> to vector<64x128xbf16>
    %c512_59 = arith.constant 512 : index
    %c0_60 = arith.constant 0 : index
    %74 = vector.load %arg8[%c512_59, %c0_60] : memref<1152x256xbf16, #tpu.memory_space<vmem>>, vector<128x256xbf16>
    %cst_61 = arith.constant dense<0.000000e+00> : vector<64x256xf32>
    %75 = tpu.matmul %73, %74, %cst_61 {dimension_numbers = #tpu.dot_dimension_numbers<[1], [0], [0], [1], [0, 0, 1, 1], [], []>} : vector<64x128xbf16>, vector<128x256xbf16>, vector<64x256xf32> -> vector<64x256xf32>
    %76 = arith.addf %72, %75 : vector<64x256xf32>
    %77 = vector.extract_strided_slice %57 {offsets = [320, 0], sizes = [64, 128], strides = [1, 1]} : vector<576x128xbf16> to vector<64x128xbf16>
    %c640_62 = arith.constant 640 : index
    %c0_63 = arith.constant 0 : index
    %78 = vector.load %arg8[%c640_62, %c0_63] : memref<1152x256xbf16, #tpu.memory_space<vmem>>, vector<128x256xbf16>
    %cst_64 = arith.constant dense<0.000000e+00> : vector<64x256xf32>
    %79 = tpu.matmul %77, %78, %cst_64 {dimension_numbers = #tpu.dot_dimension_numbers<[1], [0], [0], [1], [0, 0, 1, 1], [], []>} : vector<64x128xbf16>, vector<128x256xbf16>, vector<64x256xf32> -> vector<64x256xf32>
    %80 = arith.addf %76, %79 : vector<64x256xf32>
    %81 = vector.extract_strided_slice %57 {offsets = [384, 0], sizes = [64, 128], strides = [1, 1]} : vector<576x128xbf16> to vector<64x128xbf16>
    %c768_65 = arith.constant 768 : index
    %c0_66 = arith.constant 0 : index
    %82 = vector.load %arg8[%c768_65, %c0_66] : memref<1152x256xbf16, #tpu.memory_space<vmem>>, vector<128x256xbf16>
    %cst_67 = arith.constant dense<0.000000e+00> : vector<64x256xf32>
    %83 = tpu.matmul %81, %82, %cst_67 {dimension_numbers = #tpu.dot_dimension_numbers<[1], [0], [0], [1], [0, 0, 1, 1], [], []>} : vector<64x128xbf16>, vector<128x256xbf16>, vector<64x256xf32> -> vector<64x256xf32>
    %84 = arith.addf %80, %83 : vector<64x256xf32>
    %85 = vector.extract_strided_slice %57 {offsets = [448, 0], sizes = [64, 128], strides = [1, 1]} : vector<576x128xbf16> to vector<64x128xbf16>
    %c896_68 = arith.constant 896 : index
    %c0_69 = arith.constant 0 : index
    %86 = vector.load %arg8[%c896_68, %c0_69] : memref<1152x256xbf16, #tpu.memory_space<vmem>>, vector<128x256xbf16>
    %cst_70 = arith.constant dense<0.000000e+00> : vector<64x256xf32>
    %87 = tpu.matmul %85, %86, %cst_70 {dimension_numbers = #tpu.dot_dimension_numbers<[1], [0], [0], [1], [0, 0, 1, 1], [], []>} : vector<64x128xbf16>, vector<128x256xbf16>, vector<64x256xf32> -> vector<64x256xf32>
    %88 = arith.addf %84, %87 : vector<64x256xf32>
    %89 = vector.extract_strided_slice %57 {offsets = [512, 0], sizes = [64, 128], strides = [1, 1]} : vector<576x128xbf16> to vector<64x128xbf16>
    %c1024_71 = arith.constant 1024 : index
    %c0_72 = arith.constant 0 : index
    %90 = vector.load %arg8[%c1024_71, %c0_72] : memref<1152x256xbf16, #tpu.memory_space<vmem>>, vector<128x256xbf16>
    %cst_73 = arith.constant dense<0.000000e+00> : vector<64x256xf32>
    %91 = tpu.matmul %89, %90, %cst_73 {dimension_numbers = #tpu.dot_dimension_numbers<[1], [0], [0], [1], [0, 0, 1, 1], [], []>} : vector<64x128xbf16>, vector<128x256xbf16>, vector<64x256xf32> -> vector<64x256xf32>
    %92 = arith.addf %88, %91 : vector<64x256xf32>
    %c0_74 = arith.constant 0 : index
    %c0_75 = arith.constant 0 : index
    %93 = vector.load %arg9[%c0_74, %c0_75] : memref<1x256xf32, #tpu.memory_space<vmem>>, vector<1x256xf32>
    %94 = vector.broadcast %93 : vector<1x256xf32> to vector<64x256xf32>
    %95 = arith.addf %92, %94 : vector<64x256xf32>
    %c0_76 = arith.constant 0 : index
    %c0_77 = arith.constant 0 : index
    %96 = vector.load %arg10[%c0_76, %c0_77] : memref<64x256xbf16, #tpu.memory_space<vmem>>, vector<64x256xbf16>
    %cst_78 = arith.constant dense<0.000000e+00> : vector<64x128xf32>
    %97 = tpu.matmul %96, %9, %cst_78 {dimension_numbers = #tpu.dot_dimension_numbers<[1], [0], [0], [1], [0, 0, 1, 1], [], []>} : vector<64x256xbf16>, vector<256x128xbf16>, vector<64x128xf32> -> vector<64x128xf32>
    %98 = arith.truncf %97 : vector<64x128xf32> to vector<64x128xbf16>
    %c0_79 = arith.constant 0 : index
    %c0_80 = arith.constant 0 : index
    %99 = vector.load %arg11[%c0_79, %c0_80] : memref<128x256xbf16, #tpu.memory_space<vmem>>, vector<128x256xbf16>
    %cst_81 = arith.constant dense<0.000000e+00> : vector<64x256xf32>
    %100 = tpu.matmul %98, %99, %cst_81 {dimension_numbers = #tpu.dot_dimension_numbers<[1], [0], [0], [1], [0, 0, 1, 1], [], []>} : vector<64x128xbf16>, vector<128x256xbf16>, vector<64x256xf32> -> vector<64x256xf32>
    %c0_82 = arith.constant 0 : index
    %c0_83 = arith.constant 0 : index
    %101 = vector.load %arg12[%c0_82, %c0_83] : memref<1x256xf32, #tpu.memory_space<vmem>>, vector<1x256xf32>
    %102 = vector.broadcast %101 : vector<1x256xf32> to vector<64x256xf32>
    %103 = arith.addf %100, %102 : vector<64x256xf32>
    %104 = arith.addf %95, %103 : vector<64x256xf32>
    %cst_84 = arith.constant 0.000000e+00 : f32
    %105 = vector.broadcast %cst_84 : f32 to vector<64x256xf32>
    %106 = arith.maximumf %104, %105 : vector<64x256xf32>
    %cst_85 = arith.constant dense<0.000000e+00> : vector<256xf32>
    %107 = vector.multi_reduction <add>, %106, %cst_85 [0] : vector<64x256xf32> to vector<256xf32>
    %108 = vector.shape_cast %107 : vector<256xf32> to vector<1x256xf32>
    %cst_86 = arith.constant 6.400000e+01 : f32
    %109 = vector.broadcast %cst_86 : f32 to vector<1x256xf32>
    %110 = arith.divf %108, %109 : vector<1x256xf32>
    %111 = arith.truncf %110 : vector<1x256xf32> to vector<1x256xbf16>
    %c0_87 = arith.constant 0 : index
    %c0_88 = arith.constant 0 : index
    %112 = vector.load %arg13[%c0_87, %c0_88] : memref<256x1xbf16, #tpu.memory_space<vmem>>, vector<256x1xbf16>
    %cst_89 = arith.constant dense<0.000000e+00> : vector<1x1xf32>
    %113 = tpu.matmul %111, %112, %cst_89 {dimension_numbers = #tpu.dot_dimension_numbers<[1], [0], [0], [1], [0, 0, 1, 1], [], []>} : vector<1x256xbf16>, vector<256x1xbf16>, vector<1x1xf32> -> vector<1x1xf32>
    %c0_90 = arith.constant 0 : index
    %c0_91 = arith.constant 0 : index
    %114 = vector.load %arg14[%c0_90, %c0_91] : memref<1x1xf32, #tpu.memory_space<vmem>>, vector<1x1xf32>
    %115 = arith.addf %113, %114 : vector<1x1xf32>
    %116 = vector.shape_cast %115 : vector<1x1xf32> to vector<1x1x1xf32>
    %c0_92 = arith.constant 0 : index
    %c0_93 = arith.constant 0 : index
    %c0_94 = arith.constant 0 : index
    %117 = vector.load %arg15[%c0_92, %c0_93, %c0_94] : memref<1x1x1xf32, #tpu.memory_space<vmem>>, vector<1x1x1xf32>
    tpu.vector_store %arg15[%c0_92, %c0_93, %c0_94], %116 {strides = array<i32>} : memref<1x1x1xf32, #tpu.memory_space<vmem>>, vector<1x1x1xf32>,
    return
  }
  func.func @transform_0(%arg0: i32) -> (i32, i32, i32) {
    %c0_i32 = arith.constant 0 : i32
    %c0_i32_0 = arith.constant 0 : i32
    %c0_i32_1 = arith.constant 0 : i32
    return %arg0, %c0_i32, %c0_i32_0 : i32, i32, i32
  }
  func.func @transform_1(%arg0: i32) -> (i32, i32) {
    %c0_i32 = arith.constant 0 : i32
    %c0_i32_0 = arith.constant 0 : i32
    %c0_i32_1 = arith.constant 0 : i32
    return %c0_i32, %c0_i32_0 : i32, i32
  }
  func.func @transform_2(%arg0: i32) -> (i32, i32) {
    %c0_i32 = arith.constant 0 : i32
    %c0_i32_0 = arith.constant 0 : i32
    %c0_i32_1 = arith.constant 0 : i32
    return %c0_i32, %c0_i32_0 : i32, i32
  }
  func.func @transform_3(%arg0: i32) -> (i32, i32) {
    %c0_i32 = arith.constant 0 : i32
    %c0_i32_0 = arith.constant 0 : i32
    %c0_i32_1 = arith.constant 0 : i32
    return %c0_i32, %c0_i32_0 : i32, i32
  }
  func.func @transform_4(%arg0: i32) -> (i32, i32) {
    %c0_i32 = arith.constant 0 : i32
    %c0_i32_0 = arith.constant 0 : i32
    %c0_i32_1 = arith.constant 0 : i32
    return %c0_i32, %c0_i32_0 : i32, i32
  }
  func.func @transform_5(%arg0: i32) -> (i32, i32) {
    %c0_i32 = arith.constant 0 : i32
    %c0_i32_0 = arith.constant 0 : i32
    %c0_i32_1 = arith.constant 0 : i32
    return %c0_i32, %c0_i32_0 : i32, i32
  }
  func.func @transform_6(%arg0: i32) -> (i32, i32) {
    %c0_i32 = arith.constant 0 : i32
    %c0_i32_0 = arith.constant 0 : i32
    %c0_i32_1 = arith.constant 0 : i32
    return %c0_i32, %c0_i32_0 : i32, i32
  }
  func.func @transform_7(%arg0: i32) -> (i32, i32) {
    %c0_i32 = arith.constant 0 : i32
    %c0_i32_0 = arith.constant 0 : i32
    %c0_i32_1 = arith.constant 0 : i32
    return %c0_i32, %c0_i32_0 : i32, i32
  }
  func.func @transform_8(%arg0: i32) -> (i32, i32) {
    %c0_i32 = arith.constant 0 : i32
    %c0_i32_0 = arith.constant 0 : i32
    %c0_i32_1 = arith.constant 0 : i32
    return %c0_i32, %c0_i32_0 : i32, i32
  }
  func.func @transform_9(%arg0: i32) -> (i32, i32) {
    %c0_i32 = arith.constant 0 : i32
    %c0_i32_0 = arith.constant 0 : i32
    %c0_i32_1 = arith.constant 0 : i32
    return %c0_i32, %c0_i32_0 : i32, i32
  }
  func.func @transform_10(%arg0: i32) -> (i32, i32) {
    %c0_i32 = arith.constant 0 : i32
    %c0_i32_0 = arith.constant 0 : i32
    %c0_i32_1 = arith.constant 0 : i32
    return %c0_i32, %c0_i32_0 : i32, i32
  }
  func.func @transform_11(%arg0: i32) -> (i32, i32) {
    %c0_i32 = arith.constant 0 : i32
    %c0_i32_0 = arith.constant 0 : i32
    %c0_i32_1 = arith.constant 0 : i32
    return %c0_i32, %c0_i32_0 : i32, i32
  }
  func.func @transform_12(%arg0: i32) -> (i32, i32) {
    %c0_i32 = arith.constant 0 : i32
    %c0_i32_0 = arith.constant 0 : i32
    %c0_i32_1 = arith.constant 0 : i32
    return %c0_i32, %c0_i32_0 : i32, i32
  }
  func.func @transform_13(%arg0: i32) -> (i32, i32) {
    %c0_i32 = arith.constant 0 : i32
    %c0_i32_0 = arith.constant 0 : i32
    %c0_i32_1 = arith.constant 0 : i32
    return %c0_i32, %c0_i32_0 : i32, i32
  }
  func.func @transform_14(%arg0: i32) -> (i32, i32, i32) {
    %c0_i32 = arith.constant 0 : i32
    %c0_i32_0 = arith.constant 0 : i32
    %c0_i32_1 = arith.constant 0 : i32
    return %arg0, %c0_i32, %c0_i32_0 : i32, i32, i32
  }
}

</mosaic_0001>

<bundles_post_ra>
// kernel: e_resnet_forward.1
= control target key start
LH: loop header
LB: loop body
LE: loop exit
PB: predicated region body
PF: predicated region fallthrough
CT: control target
= control target key end

     0   :  { %s10809_s15 = smov 0   ;;  %s15659_s0 = inlined_call_operand.vmem [shape: bf16[2,256,64], index: 0, kind: input, shape index: {}]   ;;  %s15660_s1 = inlined_call_operand.vmem [shape: bf16[64,128], index: 1, kind: input, shape index: {}]   ;;  %s15661_s2 = inlined_call_operand.vmem [shape: f32[1,128], index: 2, kind: input, shape index: {}]   ;;  %s15662_s3 = inlined_call_operand.vmem [shape: bf16[328,256], index: 3, kind: input, shape index: {}]   ;;  %s15663_s4 = inlined_call_operand.vmem [shape: bf16[1152,128], index: 4, kind: input, shape index: {}]   ;;  %s15664_s5 = inlined_call_operand.vmem [shape: f32[1,128], index: 5, kind: input, shape index: {}]   ;;  %s15665_s6 = inlined_call_operand.vmem [shape: bf16[576,288], index: 6, kind: input, shape index: {}]   ;;  %s15666_s7 = inlined_call_operand.vmem [shape: bf16[1152,256], index: 7, kind: input, shape index: {}]   ;;  %s15667_s8 = inlined_call_operand.vmem [shape: f32[1,256], index: 8, kind: input, shape index: {}]   ;;  %s15668_s9 = inlined_call_operand.vmem [shape: bf16[64,256], index: 9, kind: input, shape index: {}]   ;;  %s15669_s10 = inlined_call_operand.vmem [shape: bf16[128,256], index: 10, kind: input, shape index: {}]   ;;  %s15670_s11 = inlined_call_operand.vmem [shape: f32[1,256], index: 11, kind: input, shape index: {}]   ;;  %s15671_s12 = inlined_call_operand.vmem [shape: bf16[256,1], index: 12, kind: input, shape index: {}]   ;;  %s15672_s13 = inlined_call_operand.<no memory space> [shape: f32[1,1], index: 13, kind: input, shape index: {}]   ;;  %s15673_s14 = inlined_call_operand.vmem [shape: f32[2,1,1], index: 14, kind: output, shape index: {}]  }
   0x1   :  { %v19_v0 = vstv %s15672_s13 }
   0x2   :  { %20 = vst [vmem:[#allocation3] sm:$0x1] %v19_v0 }
   0x3 LB: > { %s8132_s16 = sadd.s32 4294967295, %s10728_s15   ;;  %p8136_p0 = scmp.ge.s32.totalorder %s10728_s15, 1  ;;  %s10728_s15 = sphi %s10809_s15, %s26_s15  }
   0x4   : > { %p414_p1 = scmp.lt.s32.totalorder %s10728_s15, 3 }
   0x6   : > { %p415_p2 = pnand %p8136_p0, %p414_p1 }
   0x8   : > { %418 = sbr.rel (%p415_p2) target bundleno = 2880 (0xb40), region = 76 }
   0xd   : > { %v10113_v1 = vld [vmem:[%s15660_s1 + $0x18] sm:$0xff]  ;;  %p458_p3 = scmp.lt.s32.totalorder %s8132_s16, 1  ;;  %v10112_v2 = vld [vmem:[%s15660_s1 + $0x10] sm:$0xff]  ;;  %v10111_v3 = vld [vmem:[%s15660_s1 + $0x8] sm:$0xff]  ;;  %vm615_vm0 = vcmask 523264   ;;  %vm2018_vm2 = vcmask 1046528  }
   0xe   : > { %668 = vmatpush.bf16.msra.mxu0 %v10113_v1  ;;  %v10110_v4 = vld [vmem:[%s15660_s1] sm:$0xff]  ;;  %vm1519_vm1 = vsmask.f32 7424  ;;  %vm3053_vm3 = vcmask 1045504   ;;  %vm2661_vm4 = vsmask.f32 6400 }
   0xf   : > { %s16118_s16 = smov (!%p458_p3, %s8132_s16), 1  ;;  %v10857_v15 = vld [vmem:[%s15661_s2] ss:$0 sm:$0xff]  ;;  %vm4088_vm5 = vcmask 1044480   ;;  %vm3696_vm6 = vsmask.f32 5376 }
  0x10   : > { %s10093_s22 = sshll.u32 %s16118_s16, 7  ;;  %vm5105_vm7 = vcmask 261120   ;;  %s465_s25 = scalar_lea.vmem %s15673_s14, %s16118_s16  ;;  %vm8083_vm9 = vcmask 0  }
  0x11   : > { %s10835_s27 = scalar_lea.vmem %s15659_s0, %s10093_s22 }
  0x12   : > { %669 = vmatpush.bf16.msra.mxu0 %v10112_v2  ;;  %v10094_v5 = vld [vmem:[%s10835_s27] sm:$0xff]  ;;  %v10095_v6 = vld [vmem:[%s10835_s27 + $0x8] sm:$0xff]  ;;  %v10096_v7 = vld [vmem:[%s10835_s27 + $0x10] sm:$0xff] }
  0x13   : > { %v10097_v8 = vld [vmem:[%s10835_s27 + $0x18] sm:$0xff]  ;;  %v10098_v9 = vld [vmem:[%s10835_s27 + $0x20] sm:$0xff]  ;;  %v10099_v10 = vld [vmem:[%s10835_s27 + $0x28] sm:$0xff] }
  0x14   : > { %v10100_v11 = vld [vmem:[%s10835_s27 + $0x30] sm:$0xff]  ;;  %v10101_v12 = vld [vmem:[%s10835_s27 + $0x38] sm:$0xff]  ;;  %v10102_v13 = vld [vmem:[%s10835_s27 + $0x40] sm:$0xff] }
  0x15   : > { %v10103_v22 = vld [vmem:[%s10835_s27 + $0x48] sm:$0xff]  ;;  %v10104_v30 = vld [vmem:[%s10835_s27 + $0x50] sm:$0xff]  ;;  %v10105_v38 = vld [vmem:[%s10835_s27 + $0x58] sm:$0xff] }
  0x16   : > { %670 = vmatpush.bf16.msra.mxu0 %v10111_v3  ;;  %v10106_v46 = vld [vmem:[%s10835_s27 + $0x60] sm:$0xff]  ;;  %v10107_v49 = vld [vmem:[%s10835_s27 + $0x68] sm:$0xff]  ;;  %v10108_v52 = vld [vmem:[%s10835_s27 + $0x70] sm:$0xff] }
  0x17   : > { %v10109_v55 = vld [vmem:[%s10835_s27 + $0x78] sm:$0xff] }
  0x1a   : > { %671 = vmatpush.bf16.msra.mxu0 %v10110_v4 }
  0x1d   : > { %8219 = vmatmul.msk.bf16.vlgmr.msra.gmra.mxu0 %vm615_vm0, %v10094_v5 }
  0x2d   : > { %8220 = vmatmul.msk.bf16.gmra.mxu0 %vm615_vm0, %v10095_v6 }
  0x3d   : > { %8221 = vmatmul.msk.bf16.gmra.mxu0 %vm615_vm0, %v10096_v7 }
  0x4d   : > { %8222 = vmatmul.msk.bf16.gmra.mxu0 %vm615_vm0, %v10097_v8 }
  0x5d   : > { %8223 = vmatmul.msk.bf16.gmra.mxu0 %vm615_vm0, %v10098_v9 }
  0x6d   : > { %8224 = vmatmul.msk.bf16.gmra.mxu0 %vm615_vm0, %v10099_v10 }
  0x7d   : > { %8225 = vmatmul.msk.bf16.gmra.mxu0 %vm615_vm0, %v10100_v11 }
  0x8d   : > { %8226 = vmatmul.msk.bf16.gmra.mxu0 %vm615_vm0, %v10101_v12 }
  0x9a   : > { %v673_v14 = vpop.f32.mrf.mxu0 }
  0x9b   : > { %v674_v16 = vadd.f32 %v10857_v15, %v673_v14 }
  0x9d   : > { %8227 = vmatmul.msk.bf16.gmra.mxu0 %vm615_vm0, %v10102_v13  ;;  %v753_v19 = vmax.f32 %v674_v16, 0.0 }
  0xa2   : > { %v675_v17 = vpop.f32.mrf.mxu0 }
  0xa3   : > { %v676_v18 = vadd.f32 %v10857_v15, %v675_v17 }
  0xa5   : > { %v754_v20 = vmax.f32 %v676_v18, 0.0  ;;  %v8237_v18 = vld [vmem:[%s15662_s3] sm:$0xf] }
  0xa7   : > { %v10862_v21 = vpack.c.bf16 %v754_v20, %v753_v19  ;;  %v10115_v19 = vld [vmem:[%s15662_s3 + $0x4] sm:$0xf0] }
  0xa9   : > { %15709 = vst [vmem:[#allocation4_spill] sm:$0xff] %v10862_v21 }
  0xaa   : > { %v678_v23 = vpop.f32.mrf.mxu0 }
  0xab   : > { %v679_v24 = vadd.f32 %v10857_v15, %v678_v23 }
  0xad   : > { %8228 = vmatmul.msk.bf16.gmra.mxu0 %vm615_vm0, %v10103_v22  ;;  %v755_v27 = vmax.f32 %v679_v24, 0.0  ;;  %v8238_v22 = vor.u32 %v10115_v19, %v8237_v18  ;;  %v8245_v24 = vld [vmem:[%s15662_s3 + $0x10] sm:$0xf] }
  0xb2   : > { %v680_v25 = vpop.f32.mrf.mxu0 }
  0xb3   : > { %v681_v26 = vadd.f32 %v10857_v15, %v680_v25  ;;  %v10117_v25 = vld [vmem:[%s15662_s3 + $0x14] sm:$0xf0] }
  0xb5   : > { %v756_v28 = vmax.f32 %v681_v26, 0.0 }
  0xb7   : > { %v10868_v29 = vpack.c.bf16 %v756_v28, %v755_v27  ;;  %v8246_v27 = vor.u32 %v10117_v25, %v8245_v24  ;;  %v8293_v24 = vld [vmem:[%s15662_s3 + $0x70] sm:$0xf]  ;;  %v10129_v25 = vld [vmem:[%s15662_s3 + $0x74] sm:$0xf0] }
  0xb9   : > { %15710 = vst [vmem:[#allocation5_spill] sm:$0xff] %v10868_v29 }
  0xba   : > { %v683_v31 = vpop.f32.mrf.mxu0 }
  0xbb   : > { %v684_v32 = vadd.f32 %v10857_v15, %v683_v31  ;;  %v10119_v31 = vld [vmem:[%s15662_s3 + $0x24] sm:$0xf0] }
  0xbd   : > { %8229 = vmatmul.msk.bf16.gmra.mxu0 %vm615_vm0, %v10104_v30  ;;  %v757_v35 = vmax.f32 %v684_v32, 0.0  ;;  %v8253_v30 = vld [vmem:[%s15662_s3 + $0x20] sm:$0xf] }
  0xc2   : > { %v685_v33 = vpop.f32.mrf.mxu0 }
  0xc3   : > { %v686_v34 = vadd.f32 %v10857_v15, %v685_v33  ;;  %v8254_v33 = vor.u32 %v10119_v31, %v8253_v30 }
  0xc5   : > { %v758_v36 = vmax.f32 %v686_v34, 0.0 }
  0xc7   : > { %v10874_v37 = vpack.c.bf16 %v758_v36, %v757_v35  ;;  %v8261_v35 = vld [vmem:[%s15662_s3 + $0x30] sm:$0xf]  ;;  %v10121_v36 = vld [vmem:[%s15662_s3 + $0x34] sm:$0xf0] }
  0xc9   : > { %15711 = vst [vmem:[#allocation6_spill] sm:$0xff] %v10874_v37 }
  0xca   : > { %v688_v39 = vpop.f32.mrf.mxu0 }
  0xcb   : > { %v689_v40 = vadd.f32 %v10857_v15, %v688_v39  ;;  %v8262_v39 = vor.u32 %v10121_v36, %v8261_v35 }
  0xcd   : > { %8230 = vmatmul.msk.bf16.gmra.mxu0 %vm615_vm0, %v10105_v38  ;;  %v759_v43 = vmax.f32 %v689_v40, 0.0 }
  0xd2   : > { %v690_v41 = vpop.f32.mrf.mxu0 }
  0xd3   : > { %v691_v42 = vadd.f32 %v10857_v15, %v690_v41  ;;  %v8269_v41 = vld [vmem:[%s15662_s3 + $0x40] sm:$0xf] }
  0xd5   : > { %v760_v44 = vmax.f32 %v691_v42, 0.0  ;;  %v10123_v42 = vld [vmem:[%s15662_s3 + $0x44] sm:$0xf0] }
  0xd7   : > { %v10880_v45 = vpack.c.bf16 %v760_v44, %v759_v43  ;;  %v8270_v44 = vor.u32 %v10123_v42, %v8269_v41 }
  0xd9   : > { %15712 = vst [vmem:[#allocation7_spill] sm:$0xff] %v10880_v45 }
  0xda   : > { %v693_v47 = vpop.f32.mrf.mxu0 }
  0xdb   : > { %v694_v9 = vadd.f32 %v10857_v15, %v693_v47  ;;  %v8277_v47 = vld [vmem:[%s15662_s3 + $0x50] sm:$0xf] }
  0xdd   : > { %8231 = vmatmul.msk.bf16.gmra.mxu0 %vm615_vm0, %v10106_v46  ;;  %v761_v13 = vmax.f32 %v694_v9, 0.0 }
  0xe2   : > { %v695_v48 = vpop.f32.mrf.mxu0 }
  0xe3   : > { %v696_v6 = vadd.f32 %v10857_v15, %v695_v48  ;;  %v10125_v48 = vld [vmem:[%s15662_s3 + $0x54] sm:$0xf0] }
  0xe5   : > { %v762_v11 = vmax.f32 %v696_v6, 0.0 }
  0xe7   : > { %v10911_v16 = vpack.c.bf16 %v762_v11, %v761_v13 }
  0xe9   : > { %15716 = vst [vmem:[#allocation11_spill] sm:$0xff] %v10911_v16 }
  0xea   : > { %v698_v50 = vpop.f32.mrf.mxu0 }
  0xeb   : > { %v699_v3 = vadd.f32 %v10857_v15, %v698_v50  ;;  %v8278_v50 = vor.u32 %v10125_v48, %v8277_v47 }
  0xed   : > { %8232 = vmatmul.msk.bf16.gmra.mxu0 %vm615_vm0, %v10107_v49  ;;  %v763_v10 = vmax.f32 %v699_v3, 0.0 }
  0xf2   : > { %v700_v51 = vpop.f32.mrf.mxu0 }
  0xf3   : > { %v701_v0 = vadd.f32 %v10857_v15, %v700_v51 }
  0xf5   : > { %v764_v7 = vmax.f32 %v701_v0, 0.0 }
  0xf7   : > { %v10906_v12 = vpack.c.bf16 %v764_v7, %v763_v10 }
  0xf9   : > { %15715 = vst [vmem:[#allocation10_spill] sm:$0xff] %v10906_v12 }
  0xfa   : > { %v703_v53 = vpop.f32.mrf.mxu0 }
  0xfb   : > { %v704_v61 = vadd.f32 %v10857_v15, %v703_v53  ;;  %v8285_v53 = vld [vmem:[%s15662_s3 + $0x60] sm:$0xf] }
  0xfd   : > { %8233 = vmatmul.msk.bf16.gmra.mxu0 %vm615_vm0, %v10108_v52  ;;  %v765_v4 = vmax.f32 %v704_v61, 0.0 }
 0x102   : > { %v705_v54 = vpop.f32.mrf.mxu0 }
 0x103   : > { %v706_v59 = vadd.f32 %v10857_v15, %v705_v54  ;;  %v10127_v54 = vld [vmem:[%s15662_s3 + $0x64] sm:$0xf0] }
 0x105   : > { %v766_v1 = vmax.f32 %v706_v59, 0.0 }
 0x107   : > { %v10902_v8 = vpack.c.bf16 %v766_v1, %v765_v4 }
 0x109   : > { %15714 = vst [vmem:[#allocation9_spill] sm:$0xff] %v10902_v8 }
 0x10a   : > { %v708_v56 = vpop.f32.mrf.mxu0 }
 0x10b   : > { %v709_v57 = vadd.f32 %v10857_v15, %v708_v56 }
 0x10d   : > { %8234 = vmatmul.msk.bf16.gmra.mxu0 %vm615_vm0, %v10109_v55  ;;  %v767_v62 = vmax.f32 %v709_v57, 0.0 }
 0x112   : > { %v710_v58 = vpop.f32.mrf.mxu0 }
 0x113   : > { %v711_v60 = vadd.f32 %v10857_v15, %v710_v58  ;;  %v8286_v58 = vor.u32 %v10127_v54, %v8285_v53  ;;  %v10116_v53 = vld [vmem:[%s15662_s3 + $0x14] sm:$0xf]  ;;  %v8247_v54 = vld [vmem:[%s15662_s3 + $0x18] sm:$0xf0] }
 0x115   : > { %v768_v63 = vmax.f32 %v711_v60, 0.0 }
 0x117   : > { %v10895_v2 = vpack.c.bf16 %v768_v63, %v767_v62 }
 0x119   : > { %15713 = vst [vmem:[#allocation8_spill] sm:$0xff] %v10895_v2  ;;  %1049 = vmatpush.bf16.msra.mxu1 %v10895_v2 }
 0x11a   : > { %v10899_v5 = vpop.f32.mrf.mxu0 }
 0x11b   : > { %v714_v41 = vadd.f32 %v10857_v15, %v10899_v5  ;;  %v8239_v5 = vld [vmem:[%s15662_s3 + $0x8] sm:$0xf0] }
 0x11d   : > { %1050 = vmatpush.bf16.msra.mxu1 %v10902_v8 }
 0x121   : > { %1051 = vmatpush.bf16.msra.mxu1 %v10906_v12 }
 0x122   : > { %v10909_v14 = vpop.f32.mrf.mxu0 }
 0x125   : > { %1052 = vmatpush.bf16.msra.mxu1 %v10911_v16 }
 0x129   : > { %1053 = vmatpush.bf16.msra.mxu1 %v10880_v45 }
 0x12a   : > { %v10915_v17 = vpop.f32.mrf.mxu0 }
 0x12d   : > { %1054 = vmatpush.bf16.msra.mxu1 %v10874_v37 }
 0x131   : > { %1055 = vmatpush.bf16.msra.mxu1 %v10868_v29 }
 0x132   : > { %v10925_v20 = vpop.f32.mrf.mxu0 }
 0x135   : > { %1056 = vmatpush.bf16.msra.mxu1 %v10862_v21 }
 0x138   : > { %1057 = vmatmul.bf16.vlgmr.msra.gmra.mxu1 %v8238_v22 }
 0x13a   : > { %v10928_v23 = vpop.f32.mrf.mxu0 }
 0x142   : > { %v725_v26 = vpop.f32.mrf.mxu0 }
 0x148   : > { %1062 = vmatmul.bf16.gmra.mxu1 %v8246_v27  ;;  %v726_v27 = vadd.f32 %v10857_v15, %v725_v26  ;;  %v719_v26 = vadd.f32 %v10857_v15, %v10915_v17  ;;  %v8301_v17 = vld [vmem:[%s15662_s3 + $0x80] sm:$0xf] }
 0x14a   : > { %v728_v28 = vpop.f32.mrf.mxu0  ;;  %v774_v35 = vmax.f32 %v726_v27, 0.0  ;;  %v10139_v27 = vld [vmem:[%s15662_s3 + $0xc4] sm:$0xf0] }
 0x14b   : > { %v729_v19 = vadd.f32 %v10857_v15, %v728_v28  ;;  %v724_v28 = vadd.f32 %v10857_v15, %v10928_v23 }
 0x152   : > { %v730_v32 = vpop.f32.mrf.mxu0 }
 0x153   : > { %v731_v11 = vadd.f32 %v10857_v15, %v730_v32  ;;  %v8294_v32 = vor.u32 %v10129_v25, %v8293_v24  ;;  %v8333_v25 = vld [vmem:[%s15662_s3 + $0xc0] sm:$0xf] }
 0x155   : > { %v776_v30 = vmax.f32 %v731_v11, 0.0  ;;  %v8263_v11 = vld [vmem:[%s15662_s3 + $0x38] sm:$0xf0] }
 0x158   : > { %1067 = vmatmul.bf16.gmra.mxu1 %v8254_v33  ;;  %v775_v33 = vmax.f32 %v729_v19, 0.0 }
 0x15a   : > { %v733_v34 = vpop.f32.mrf.mxu0  ;;  %v10999_v36 = vpack.c.bf16 %v776_v30, %v775_v33  ;;  %v10122_v30 = vld [vmem:[%s15662_s3 + $0x44] sm:$0xf] }
 0x15b   : > { %v734_v9 = vadd.f32 %v10857_v15, %v733_v34  ;;  %v721_v34 = vadd.f32 %v10857_v15, %v10925_v20  ;;  %v771_v20 = vmax.f32 %v719_v26, 0.0  ;;  %v8341_v26 = vld [vmem:[%s15662_s3 + $0xd0] sm:$0xf] }
 0x15c   : > { %15721 = vst [vmem:[#allocation16_spill] sm:$0xff] %v10999_v36 }
 0x15d   : > { %v777_v22 = vmax.f32 %v734_v9, 0.0  ;;  %v772_v23 = vmax.f32 %v721_v34, 0.0  ;;  %v10137_v9 = vld [vmem:[%s15662_s3 + $0xb4] sm:$0xf0] }
 0x162   : > { %v735_v38 = vpop.f32.mrf.mxu0 }
 0x163   : > { %v736_v4 = vadd.f32 %v10857_v15, %v735_v38  ;;  %v773_v38 = vmax.f32 %v724_v28, 0.0  ;;  %v8334_v28 = vor.u32 %v10139_v27, %v8333_v25  ;;  %v10185_v25 = vld [vmem:[%s15663_s4 + $0x70] sm:$0xff] }
 0x165   : > { %v778_v13 = vmax.f32 %v736_v4, 0.0 }
 0x167   : > { %v10992_v31 = vpack.c.bf16 %v778_v13, %v777_v22 }
 0x168   : > { %1072 = vmatmul.bf16.gmra.mxu1 %v8262_v39  ;;  %v716_v39 = vadd.f32 %v10857_v15, %v10909_v14  ;;  %v10131_v14 = vld [vmem:[%s15662_s3 + $0x84] sm:$0xf0] }
 0x169   : > { %15720 = vst [vmem:[#allocation15_spill] sm:$0xff] %v10992_v31  ;;  %v8302_v47 = vor.u32 %v10131_v14, %v8301_v17  ;;  %v10177_v17 = vld [vmem:[%s15663_s4 + $0x30] sm:$0xff] }
 0x16a   : > { %v738_v40 = vpop.f32.mrf.mxu0  ;;  %v770_v42 = vmax.f32 %v716_v39, 0.0  ;;  %v10124_v39 = vld [vmem:[%s15662_s3 + $0x54] sm:$0xf] }
 0x16b   : > { %v739_v1 = vadd.f32 %v10857_v15, %v738_v40  ;;  %v11006_v40 = vpack.c.bf16 %v774_v35, %v773_v38  ;;  %v10141_v38 = vld [vmem:[%s15662_s3 + $0xd4] sm:$0xf0] }
 0x16d   : > { %v779_v10 = vmax.f32 %v739_v1, 0.0  ;;  %15722 = vst [vmem:[#allocation17_spill] sm:$0xff] %v11006_v40 }
 0x172   : > { %v740_v43 = vpop.f32.mrf.mxu0 }
 0x173   : > { %v741_v62 = vadd.f32 %v10857_v15, %v740_v43  ;;  %v11011_v43 = vpack.c.bf16 %v772_v23, %v771_v20  ;;  %v8279_v23 = vld [vmem:[%s15662_s3 + $0x58] sm:$0xf0] }
 0x174   : > { %v8282_v20 = vor.u32 %v10124_v39, %v8279_v23 }
 0x175   : > { %v780_v6 = vmax.f32 %v741_v62, 0.0  ;;  %15723 = vst [vmem:[#allocation18_spill] sm:$0xff] %v11011_v43  ;;  %v8255_v62 = vld [vmem:[%s15662_s3 + $0x28] sm:$0xf0] }
 0x177   : > { %v10981_v18 = vpack.c.bf16 %v780_v6, %v779_v10  ;;  %v8325_v6 = vld [vmem:[%s15662_s3 + $0xb0] sm:$0xf]  ;;  %v10120_v10 = vld [vmem:[%s15662_s3 + $0x34] sm:$0xf] }
 0x178   : > { %1077 = vmatmul.bf16.gmra.mxu1 %v8270_v44  ;;  %v769_v44 = vmax.f32 %v714_v41, 0.0  ;;  %v8326_v13 = vor.u32 %v10137_v9, %v8325_v6  ;;  %v8266_v19 = vor.u32 %v10120_v10, %v8263_v11  ;;  %v8342_v41 = vor.u32 %v10141_v38, %v8341_v26  ;;  %v8295_v6 = vld [vmem:[%s15662_s3 + $0x78] sm:$0xf0]  ;;  %v10171_v9 = vld [vmem:[%s15663_s4] sm:$0xff]  ;;  %v8303_v26 = vld [vmem:[%s15662_s3 + $0x88] sm:$0xf0] }
 0x179   : > { %15719 = vst [vmem:[#allocation14_spill] sm:$0xff] %v10981_v18  ;;  %v10183_v38 = vld [vmem:[%s15663_s4 + $0x60] sm:$0xff] }
 0x17a   : > { %v743_v46 = vpop.f32.mrf.mxu0 }
 0x17b   : > { %v744_v59 = vadd.f32 %v10857_v15, %v743_v46  ;;  %v11026_v46 = vpack.c.bf16 %v770_v42, %v769_v44  ;;  %v10178_v44 = vld [vmem:[%s15663_s4 + $0x38] sm:$0xff] }
 0x17c   : > { %1899 = vmatpush.bf16.msrb.mxu0 %v10178_v44  ;;  %v10181_v44 = vld [vmem:[%s15663_s4 + $0x50] sm:$0xff] }
 0x17d   : > { %v781_v3 = vmax.f32 %v744_v59, 0.0  ;;  %15724 = vst [vmem:[#allocation19_spill] sm:$0xff] %v11026_v46  ;;  %v8317_v59 = vld [vmem:[%s15662_s3 + $0xa0] sm:$0xf] }
 0x180   : > { %1900 = vmatpush.bf16.msrb.mxu0 %v10177_v17 }
 0x182   : > { %v745_v49 = vpop.f32.mrf.mxu0 }
 0x183   : > { %v746_v56 = vadd.f32 %v10857_v15, %v745_v49 }
 0x185   : > { %v782_v63 = vmax.f32 %v746_v56, 0.0  ;;  %v8250_v56 = vor.u32 %v10116_v53, %v8247_v54 }
 0x187   : > { %v10976_v7 = vpack.c.bf16 %v782_v63, %v781_v3 }
 0x188   : > { %1082 = vmatmul.bf16.gmra.mxu1 %v8278_v50 }
 0x189   : > { %15718 = vst [vmem:[#allocation13_spill] sm:$0xff] %v10976_v7 }
 0x18a   : > { %v748_v51 = vpop.f32.mrf.mxu0 }
 0x18b   : > { %v749_v52 = vadd.f32 %v10857_v15, %v748_v51  ;;  %v8309_v51 = vld [vmem:[%s15662_s3 + $0x90] sm:$0xf] }
 0x18d   : > { %v783_v60 = vmax.f32 %v749_v52, 0.0  ;;  %v10133_v52 = vld [vmem:[%s15662_s3 + $0x94] sm:$0xf0] }
 0x192   : > { %v750_v55 = vpop.f32.mrf.mxu0 }
 0x193   : > { %v751_v57 = vadd.f32 %v10857_v15, %v750_v55  ;;  %v10114_v15 = vld [vmem:[%s15662_s3 + $0x4] sm:$0xf]  ;;  %v8310_v55 = vor.u32 %v10133_v52, %v8309_v51  ;;  %v8287_v51 = vld [vmem:[%s15662_s3 + $0x68] sm:$0xf0] }
 0x194   : > { %v8242_v48 = vor.u32 %v10114_v15, %v8239_v5  ;;  %v10176_v15 = vld [vmem:[%s15663_s4 + $0x28] sm:$0xff]  ;;  %v8349_v5 = vld [vmem:[%s15662_s3 + $0xe0] sm:$0xf] }
 0x195   : > { %v784_v61 = vmax.f32 %v751_v57, 0.0  ;;  %1901 = vmatpush.bf16.msrb.mxu0 %v10176_v15  ;;  %v10175_v52 = vld [vmem:[%s15663_s4 + $0x20] sm:$0xff] }
 0x197   : > { %v10971_v0 = vpack.c.bf16 %v784_v61, %v783_v60  ;;  %v10135_v60 = vld [vmem:[%s15662_s3 + $0xa4] sm:$0xf0]  ;;  %v10118_v61 = vld [vmem:[%s15662_s3 + $0x24] sm:$0xf] }
 0x198   : > { %1087 = vmatmul.bf16.gmra.mxu1 %v8286_v58  ;;  %v8318_v63 = vor.u32 %v10135_v60, %v8317_v59  ;;  %v8258_v1 = vor.u32 %v10118_v61, %v8255_v62  ;;  %v10173_v59 = vld [vmem:[%s15663_s4 + $0x10] sm:$0xff]  ;;  %v10172_v61 = vld [vmem:[%s15663_s4 + $0x8] sm:$0xff] }
 0x199   : > { %15717 = vst [vmem:[#allocation12_spill] sm:$0xff] %v10971_v0  ;;  %1162 = vmatpush.bf16.msra.mxu2 %v10971_v0  ;;  %1902 = vmatpush.bf16.msrb.mxu0 %v10175_v52  ;;  %v8357_v62 = vld [vmem:[%s15662_s3 + $0xf0] sm:$0xf]  ;;  %v8311_v52 = vld [vmem:[%s15662_s3 + $0x98] sm:$0xf0] }
 0x19d   : > { %1163 = vmatpush.bf16.msra.mxu2 %v10976_v7 }
 0x1a1   : > { %1164 = vmatpush.bf16.msra.mxu2 %v10981_v18 }
 0x1a5   : > { %1165 = vmatpush.bf16.msra.mxu2 %v10992_v31 }
 0x1a8   : > { %1092 = vmatmul.bf16.gmra.mxu1 %v8294_v32  ;;  %v8271_v32 = vld [vmem:[%s15662_s3 + $0x48] sm:$0xf0] }
 0x1a9   : > { %1166 = vmatpush.bf16.msra.mxu2 %v10999_v36  ;;  %v8274_v33 = vor.u32 %v10122_v30, %v8271_v32  ;;  %v10184_v30 = vld [vmem:[%s15663_s4 + $0x68] sm:$0xff]  ;;  %v8365_v32 = vld [vmem:[%s15662_s3 + $0x100] sm:$0xf] }
 0x1ad   : > { %1167 = vmatpush.bf16.msra.mxu2 %v11006_v40 }
 0x1b1   : > { %1168 = vmatpush.bf16.msra.mxu2 %v11011_v43 }
 0x1b5   : > { %v11028_v49 = vpop.f32.mrf.mxu1  ;;  %1169 = vmatpush.bf16.msra.mxu2 %v11026_v46 }
 0x1b8   : > { %1097 = vmatmul.bf16.gmra.mxu1 %v8302_v47  ;;  %1170 = vmatmul.bf16.vlgmr.msra.gmra.mxu2 %v8242_v48  ;;  %v10143_v47 = vld [vmem:[%s15662_s3 + $0xe4] sm:$0xf0]  ;;  %v10126_v48 = vld [vmem:[%s15662_s3 + $0x64] sm:$0xf] }
 0x1b9   : > { %v8350_v53 = vor.u32 %v10143_v47, %v8349_v5  ;;  %v8290_v54 = vor.u32 %v10126_v48, %v8287_v51  ;;  %v10180_v5 = vld [vmem:[%s15663_s4 + $0x48] sm:$0xff]  ;;  %v8373_v47 = vld [vmem:[%s15662_s3 + $0x110] sm:$0xf]  ;;  %v10149_v48 = vld [vmem:[%s15662_s3 + $0x114] sm:$0xf0] }
 0x1ba   : > { %v10132_v51 = vld [vmem:[%s15662_s3 + $0x94] sm:$0xf] }
 0x1bd   : > { %v11031_v50 = vpop.f32.mrf.mxu1 }
 0x1c5   : > { %v11045_v57 = vpop.f32.mrf.mxu1 }
 0x1c8   : > { %1102 = vmatmul.bf16.gmra.mxu1 %v8310_v55  ;;  %1175 = vmatmul.bf16.gmra.mxu2 %v8250_v56  ;;  %v10174_v56 = vld [vmem:[%s15663_s4 + $0x18] sm:$0xff] }
 0x1c9   : > { %1903 = vmatpush.bf16.msrb.mxu0 %v10174_v56 }
 0x1cd   : > { %v11047_v58 = vpop.f32.mrf.mxu1  ;;  %1904 = vmatpush.bf16.msrb.mxu0 %v10173_v59 }
 0x1d1   : > { %1905 = vmatpush.bf16.msrb.mxu0 %v10172_v61  ;;  %v8374_v61 = vor.u32 %v10149_v48, %v8373_v47  ;;  %v10213_v47 = vld [vmem:[%s15663_s4 + $0xc8] sm:$0xff] }
 0x1d5   : > { %v11061_v3 = vpop.f32.mrf.mxu1  ;;  %1906 = vmatpush.bf16.msrb.mxu0 %v10171_v9 }
 0x1d8   : > { %1107 = vmatmul.bf16.gmra.mxu1 %v8318_v63  ;;  %1180 = vmatmul.bf16.gmra.mxu2 %v8258_v1  ;;  %v10145_v63 = vld [vmem:[%s15662_s3 + $0xf4] sm:$0xf0]  ;;  %v10128_v1 = vld [vmem:[%s15662_s3 + $0x74] sm:$0xf] }
 0x1d9   : > { %v8358_v10 = vor.u32 %v10145_v63, %v8357_v62  ;;  %v8298_v11 = vor.u32 %v10128_v1, %v8295_v6  ;;  %v8314_v62 = vor.u32 %v10132_v51, %v8311_v52  ;;  %v10219_v6 = vld [vmem:[%s15663_s4 + $0xf8] sm:$0xff]  ;;  %v8389_v52 = vld [vmem:[%s15662_s3 + $0x130] sm:$0xf] }
 0x1da   : > { %2506 = vmatpush.bf16.msrb.mxu1 %v10219_v6 }
 0x1dd   : > { %v11063_v4 = vpop.f32.mrf.mxu1 }
 0x1e5   : > { %v11077_v22 = vpop.f32.mrf.mxu1 }
 0x1e8   : > { %1112 = vmatmul.bf16.gmra.mxu1 %v8326_v13  ;;  %1185 = vmatmul.bf16.gmra.mxu2 %v8266_v19  ;;  %v10186_v19 = vld [vmem:[%s15663_s4 + $0x78] sm:$0xff] }
 0x1e9   : > { %1734 = vmatpush.bf16.msra.mxu3 %v10186_v19  ;;  %v10151_v19 = vld [vmem:[%s15662_s3 + $0x124] sm:$0xf0] }
 0x1ed   : > { %v11079_v24 = vpop.f32.mrf.mxu1  ;;  %1735 = vmatpush.bf16.msra.mxu3 %v10185_v25  ;;  %v10134_v25 = vld [vmem:[%s15662_s3 + $0xa4] sm:$0xf] }
 0x1f1   : > { %1736 = vmatpush.bf16.msra.mxu3 %v10184_v30  ;;  %v8319_v30 = vld [vmem:[%s15662_s3 + $0xa8] sm:$0xf0] }
 0x1f5   : > { %v11093_v34 = vpop.f32.mrf.mxu1  ;;  %1737 = vmatpush.bf16.msra.mxu3 %v10183_v38  ;;  %v8322_v38 = vor.u32 %v10134_v25, %v8319_v30  ;;  %v10212_v30 = vld [vmem:[%s15663_s4 + $0xc0] sm:$0xff] }
 0x1f8   : > { %1117 = vmatmul.bf16.gmra.mxu1 %v8334_v28  ;;  %1190 = vmatmul.bf16.gmra.mxu2 %v8274_v33  ;;  %v10147_v28 = vld [vmem:[%s15662_s3 + $0x104] sm:$0xf0]  ;;  %v10130_v33 = vld [vmem:[%s15662_s3 + $0x84] sm:$0xf] }
 0x1f9   : > { %v8366_v39 = vor.u32 %v10147_v28, %v8365_v32  ;;  %v8306_v23 = vor.u32 %v10130_v33, %v8303_v26 }
 0x1fd   : > { %v11095_v35 = vpop.f32.mrf.mxu1 }
 0x205   : > { %v11109_v42 = vpop.f32.mrf.mxu1 }
 0x208   : > { %1122 = vmatmul.bf16.gmra.mxu1 %v8342_v41  ;;  %1195 = vmatmul.bf16.gmra.mxu2 %v8282_v20  ;;  %v10182_v20 = vld [vmem:[%s15663_s4 + $0x58] sm:$0xff] }
 0x209   : > { %1738 = vmatpush.bf16.msra.mxu3 %v10182_v20 }
 0x20d   : > { %v11117_v14 = vpop.f32.mrf.mxu1  ;;  %1739 = vmatpush.bf16.msra.mxu3 %v10181_v44  ;;  %v10215_v44 = vld [vmem:[%s15663_s4 + $0xd8] sm:$0xff] }
 0x211   : > { %1740 = vmatpush.bf16.msra.mxu3 %v10180_v5 }
 0x215   : > { %v11137_v55 = vpop.f32.mrf.mxu1 }
 0x218   : > { %1127 = vmatmul.bf16.gmra.mxu1 %v8350_v53  ;;  %1200 = vmatmul.bf16.gmra.mxu2 %v8290_v54  ;;  %v10179_v53 = vld [vmem:[%s15663_s4 + $0x40] sm:$0xff] }
 0x219   : > { %1741 = vmatpush.bf16.msra.mxu3 %v10179_v53  ;;  %v10153_v53 = vld [vmem:[%s15662_s3 + $0x134] sm:$0xf0] }
 0x21d   : > { %v11145_v60 = vpop.f32.mrf.mxu1 }
 0x225   : > { %v11165_v13 = vpop.f32.mrf.mxu1 }
 0x228   : > { %1132 = vmatmul.bf16.gmra.mxu1 %v8358_v10  ;;  %1205 = vmatmul.bf16.gmra.mxu2 %v8298_v11  ;;  %v10217_v10 = vld [vmem:[%s15663_s4 + $0xe8] sm:$0xff]  ;;  %v8381_v11 = vld [vmem:[%s15662_s3 + $0x120] sm:$0xf] }
 0x229   : > { %v8382_v26 = vor.u32 %v10151_v19, %v8381_v11  ;;  %v8390_v19 = vor.u32 %v10153_v53, %v8389_v52 }
 0x22d   : > { %v11173_v27 = vpop.f32.mrf.mxu1 }
 0x235   : > { %v11193_v41 = vpop.f32.mrf.mxu1 }
 0x238   : > { %1137 = vmatmul.bf16.gmra.mxu1 %v8366_v39  ;;  %1210 = vmatmul.bf16.gmra.mxu2 %v8306_v23  ;;  %v10216_v39 = vld [vmem:[%s15663_s4 + $0xe0] sm:$0xff] }
 0x23b   : > { %v1171_v17 = vpop.f32.mrf.mxu2 }
 0x23c   : > { %v1172_v56 = vadd.f32 %v1171_v17, %v11028_v49  ;;  %v10218_v49 = vld [vmem:[%s15663_s4 + $0xf0] sm:$0xff] }
 0x23d   : > { %v11201_v15 = vpop.f32.mrf.mxu1  ;;  %2507 = vmatpush.bf16.msrb.mxu1 %v10218_v49  ;;  %v10214_v17 = vld [vmem:[%s15663_s4 + $0xd0] sm:$0xff] }
 0x241   : > { %2508 = vmatpush.bf16.msrb.mxu1 %v10217_v10 }
 0x243   : > { %v1173_v54 = vpop.f32.mrf.mxu2 }
 0x244   : > { %v1174_v59 = vadd.f32 %v1173_v54, %v11031_v50 }
 0x245   : > { %v11223_v63 = vpop.f32.mrf.mxu1  ;;  %2509 = vmatpush.bf16.msrb.mxu1 %v10216_v39 }
 0x246   : > { %v10572_v1 = vpack.c.bf16 %v1174_v59, %v1172_v56  ;;  %v10136_v59 = vld [vmem:[%s15662_s3 + $0xb4] sm:$0xf] }
 0x248   : > { %10573 = vst [vmem:[#allocation2] sm:$0xff] %v10572_v1   ;;  %1142 = vmatmul.bf16.gmra.mxu1 %v8374_v61  ;;  %1215 = vmatmul.bf16.gmra.mxu2 %v8314_v62  ;;  %v1521_v54 = vshrl.u32 %v10572_v1, 16  ;;  %v8327_v61 = vld [vmem:[%s15662_s3 + $0xb8] sm:$0xf0] }
 0x249   : > { %1907 = vmatmul.bf16.vlgmr.msrb.gmra.mxu0 %v10572_v1  ;;  %2510 = vmatpush.bf16.msrb.mxu1 %v10215_v44  ;;  %v8330_v25 = vor.u32 %v10136_v59, %v8327_v61 }
 0x24b   : > { %v1176_v9 = vpop.f32.mrf.mxu2 }
 0x24c   : > { %v1177_v28 = vadd.f32 %v1176_v9, %v11045_v57  ;;  %v1523_v57 = vshll.u32 %v10572_v1, 16 }
 0x24d   : > { %v11231_v50 = vpop.f32.mrf.mxu1  ;;  %2511 = vmatpush.bf16.msrb.mxu1 %v10214_v17  ;;  %v10138_v17 = vld [vmem:[%s15662_s3 + $0xc4] sm:$0xf] }
 0x24e   : > { %v1525_v48 = vrot.slane %v1523_v57, 1 }
 0x250   : > { %v1526_v49 = vor.u32 %v1525_v48, %v1521_v54 }
 0x251   : > { %2512 = vmatpush.bf16.msrb.mxu1 %v10213_v47  ;;  %v8335_v47 = vld [vmem:[%s15662_s3 + $0xc8] sm:$0xf0] }
 0x253   : > { %v1178_v32 = vpop.f32.mrf.mxu2 }
 0x254   : > { %v1179_v33 = vadd.f32 %v1178_v32, %v11047_v58 }
 0x255   : > { %v11253_v23 = vpop.f32.mrf.mxu1  ;;  %2513 = vmatpush.bf16.msrb.mxu1 %v10212_v30 }
 0x256   : > { %v10577_v20 = vpack.c.bf16 %v1179_v33, %v1177_v28 }
 0x258   : > { %10673 = vst [vmem:[#allocation2 + $0x8] sm:$0xff] %v10577_v20   ;;  %1147 = vmatmul.bf16.gmra.mxu1 %v8382_v26  ;;  %1220 = vmatmul.bf16.gmra.mxu2 %v8322_v38 }
 0x25b   : > { %v1181_v58 = vpop.f32.mrf.mxu2 }
 0x25c   : > { %v1182_v1 = vadd.f32 %v1181_v58, %v11061_v3  ;;  %v11293_v3 = vld [vmem:[%s15662_s3 + $0x140] sm:$0xff] }
 0x25d   : > { %v11261_v5 = vpop.f32.mrf.mxu1  ;;  %v963_v57 = vunpack.c.l.b16 %v11293_v3 }
 0x25f   : > { %v11266_v51 = vld [vmem:[#allocation2 + $0x8] sm:$0xff]  ;;  %v1005_v61 = vpack.c.b16 %v963_v57, %v963_v57 }
 0x260   : > { %1912 = vmatmul.bf16.gmra.mxu0 %v11266_v51  ;;  %v1528_v56 = vshll.u32 %v11266_v51, 16  ;;  %v2257_v62 = vld [vmem:[#allocation2 + $0x8] sm:$0xe]  ;;  %v2258_v6 = vld [vmem:[#allocation2 + $0xc] sm:$0xf]  ;;  %v1532_v59 = vshrl.u32 %v11266_v51, 16 }
 0x261   : > { %v2347_v33 = vunpack.c.l.b16 %v2257_v62  ;;  %v2348_v26 = vunpack.c.l.b16 %v2258_v6  ;;  %v3033_v39 = vld [vmem:[#allocation2 + $0x8] sm:$0xc]  ;;  %v8338_v62 = vor.u32 %v10138_v17, %v8335_v47  ;;  %v15674_v6 = vrot.slane %v11266_v51, 1 }
 0x262   : > { %v1530_v10 = vrot.slane %v1528_v56, 1  ;;  %v3051_v20 = vunpack.c.l.b16 %v3033_v39 }
 0x263   : > { %v1183_v9 = vpop.f32.mrf.mxu2 }
 0x264   : > { %v1184_v11 = vadd.f32 %v1183_v9, %v11063_v4  ;;  %v1531_v28 = vsel %vm1519_vm1, %v1526_v49, %v1530_v10  ;;  %v11295_v4 = vpack.c.b16 %v2348_v26, %v2347_v33  ;;  %v3052_v52 = vpack.c.b16 %v2348_v26, %v3051_v20 }
 0x265   : > { %v11287_v32 = vpop.f32.mrf.mxu1  ;;  %1742 = vmatmul.bf16.vlgmr.msra.gmra.mxu3 %v1531_v28 }
 0x266   : > { %v10582_v38 = vpack.c.bf16 %v1184_v11, %v1182_v1  ;;  %v2663_v48 = vshrl.u32 %v11295_v4, 16  ;;  %v2666_v53 = vshll.u32 %v11295_v4, 16  ;;  %v3054_v11 = vrot.slane %v3052_v52, 2 }
 0x268   : > { %10674 = vst [vmem:[#allocation2 + $0x10] sm:$0xff] %v10582_v38   ;;  %1152 = vmatmul.bf16.gmra.mxu1 %v8390_v19  ;;  %1225 = vmatmul.bf16.gmra.mxu2 %v8330_v25  ;;  %v2665_v49 = vrot.slane %v2663_v48, 1  ;;  %v2668_v19 = vrot.slane %v2666_v53, 2  ;;  %v1534_v38 = vor.u32 %v1532_v59, %v1530_v10 }
 0x26a   : > { %v2669_v10 = vor.u32 %v2668_v19, %v2665_v49  ;;  %v8343_v49 = vld [vmem:[%s15662_s3 + $0xd8] sm:$0xf0] }
 0x26b   : > { %v1186_v44 = vpop.f32.mrf.mxu2 }
 0x26c   : > { %v1187_v33 = vadd.f32 %v1186_v44, %v11077_v22 }
 0x26d   : > { %v11298_v58 = vpop.f32.mrf.mxu1 }
 0x26f   : > { %v11308_v54 = vld [vmem:[#allocation2 + $0x10] sm:$0xff] }
 0x270   : > { %v11310_v56 = vld [vmem:[#allocation2 + $0x10] sm:$0xff]  ;;  %1917 = vmatmul.bf16.gmra.mxu0 %v11308_v54  ;;  %v1536_v9 = vshll.u32 %v11308_v54, 16  ;;  %v2022_v28 = vrot.slane %v11308_v54, 1 }
 0x271   : > { %v2671_v1 = vshrl.u32 %v11310_v56, 16  ;;  %v2674_v25 = vshll.u32 %v11310_v56, 16  ;;  %v3055_v30 = vrot.slane %v11310_v56, 2  ;;  %v3292_v59 = vld [vmem:[#allocation2 + $0x10] sm:$0xc] }
 0x272   : > { %v1538_v39 = vrot.slane %v1536_v9, 1  ;;  %v11328_v48 = vsel %vm2018_vm2, %v15674_v6, %v2022_v28  ;;  %v3293_v9 = vld [vmem:[#allocation2 + $0x14] sm:$0xf]  ;;  %v3382_v19 = vunpack.c.l.b16 %v3292_v59 }
 0x273   : > { %v1188_v26 = vpop.f32.mrf.mxu2  ;;  %v2673_v20 = vrot.slane %v2671_v1, 1  ;;  %v2676_v17 = vrot.slane %v2674_v25, 2  ;;  %v11323_v47 = vsel %vm3053_vm3, %v3054_v11, %v3055_v30  ;;  %15725 = vst [vmem:[#allocation20_spill] sm:$0xff] %v11328_v48  ;;  %v4068_v1 = vld [vmem:[#allocation2 + $0x10] sm:$0x8] }
 0x274   : > { %v1189_v57 = vadd.f32 %v1188_v26, %v11079_v24  ;;  %v1539_v53 = vsel %vm1519_vm1, %v1534_v38, %v1538_v39  ;;  %v10140_v26 = vld [vmem:[%s15662_s3 + $0xd4] sm:$0xf] }
 0x275   : > { %v11330_v52 = vpop.f32.mrf.mxu1  ;;  %1747 = vmatmul.bf16.gmra.mxu3 %v1539_v53  ;;  %v2677_v44 = vor.u32 %v2676_v17, %v2673_v20  ;;  %v1540_v20 = vshrl.u32 %v11308_v54, 16  ;;  %v2403_v17 = vrot.slane %v11295_v4, 1 }
 0x276   : > { %v10587_v22 = vpack.c.bf16 %v1189_v57, %v1187_v33  ;;  %v8346_v57 = vor.u32 %v10140_v26, %v8343_v49 }
 0x277   : > { %v11334_v24 = vsel %vm2661_vm4, %v2669_v10, %v2677_v44  ;;  %v1542_v4 = vor.u32 %v1540_v20, %v1538_v39 }
 0x278   : > { %10675 = vst [vmem:[#allocation2 + $0x18] sm:$0xff] %v10587_v22   ;;  %1157 = vmatmul.bf16.gmra.mxu1 %v1005_v61  ;;  %1230 = vmatmul.bf16.gmra.mxu2 %v8338_v62  ;;  %v3383_v61 = vunpack.c.l.b16 %v3293_v9  ;;  %v4086_v62 = vunpack.c.l.b16 %v4068_v1 }
 0x27a   : > { %v11353_v10 = vpack.c.b16 %v3383_v61, %v3382_v19  ;;  %v4087_v59 = vpack.c.b16 %v3383_v61, %v4086_v62 }
 0x27b   : > { %v1191_v11 = vpop.f32.mrf.mxu2 }
 0x27c   : > { %15726 = vst [vmem:[#allocation21_spill] sm:$0xff] %v11353_v10  ;;  %v1192_v37 = vadd.f32 %v1191_v11, %v11093_v34  ;;  %v4089_v39 = vrot.slane %v4087_v59, 3  ;;  %v3438_v20 = vrot.slane %v11353_v10, 2 }
 0x27d   : > { %v11336_v25 = vpop.f32.mrf.mxu1 }
 0x27f   : > { %v11344_v33 = vld [vmem:[#allocation2 + $0x18] sm:$0xff] }
 0x280   : > { %v11346_v38 = vld [vmem:[#allocation2 + $0x18] sm:$0xff]  ;;  %1922 = vmatmul.bf16.gmra.mxu0 %v11344_v33  ;;  %v1544_v53 = vshll.u32 %v11344_v33, 16  ;;  %v2024_v29 = vrot.slane %v11344_v33, 1 }
 0x281   : > { %v2680_v22 = vshrl.u32 %v11346_v38, 16  ;;  %v2683_v1 = vshll.u32 %v11346_v38, 16  ;;  %v3057_v6 = vrot.slane %v11346_v38, 2  ;;  %v11358_v21 = vld [vmem:[#allocation2 + $0x18] sm:$0xff] }
 0x282   : > { %v1546_v26 = vrot.slane %v1544_v53, 1  ;;  %v11370_v16 = vsel %vm2018_vm2, %v2022_v28, %v2024_v29  ;;  %v4090_v34 = vrot.slane %v11358_v21, 3 }
 0x283   : > { %v1193_v54 = vpop.f32.mrf.mxu2  ;;  %v2682_v49 = vrot.slane %v2680_v22, 1  ;;  %v2685_v61 = vrot.slane %v2683_v1, 2  ;;  %v11364_v62 = vsel %vm3053_vm3, %v3055_v30, %v3057_v6  ;;  %15727 = vst [vmem:[#allocation22_spill] sm:$0xff] %v11370_v16  ;;  %v15728_v30 = vrot.slane %v11310_v56, 1 }
 0x284   : > { %v1194_v19 = vadd.f32 %v1193_v54, %v11095_v35  ;;  %v1547_v45 = vsel %vm1519_vm1, %v1542_v4, %v1546_v26  ;;  %v3439_v35 = vrot.slane %v11358_v21, 2  ;;  %v11382_v59 = vsel %vm4088_vm5, %v4089_v39, %v4090_v34  ;;  %v10142_v21 = vld [vmem:[%s15662_s3 + $0xe4] sm:$0xf] }
 0x285   : > { %v11366_v9 = vpop.f32.mrf.mxu1  ;;  %1752 = vmatmul.bf16.gmra.mxu3 %v1547_v45  ;;  %v2686_v22 = vor.u32 %v2685_v61, %v2682_v49  ;;  %v2405_v11 = vsel %vm2018_vm2, %v2403_v17, %v15728_v30  ;;  %15729 = vst [vmem:[#allocation23_spill] sm:$0xff] %v11382_v59  ;;  %v1548_v54 = vshrl.u32 %v11344_v33, 16  ;;  %v2406_v61 = vrot.slane %v11346_v38, 1 }
 0x286   : > { %v10592_v53 = vpack.c.bf16 %v1194_v19, %v1192_v37  ;;  %v11385_v37 = vsel %vm3053_vm3, %v3438_v20, %v3439_v35 }
 0x287   : > { %v11379_v28 = vsel %vm2661_vm4, %v2677_v44, %v2686_v22  ;;  %15730 = vst [vmem:[#allocation24_spill] sm:$0xff] %v11385_v37  ;;  %v8351_v44 = vld [vmem:[%s15662_s3 + $0xe8] sm:$0xf0] }
 0x288   : > { %10676 = vst [vmem:[#allocation2 + $0x20] sm:$0xff] %v10592_v53   ;;  %1235 = vmatmul.bf16.gmra.mxu2 %v8346_v57  ;;  %2514 = vmatmul.bf16.vlgmr.msrb.gmra.mxu1 %v2405_v11  ;;  %v8354_v19 = vor.u32 %v10142_v21, %v8351_v44  ;;  %v1550_v11 = vor.u32 %v1548_v54, %v1546_v26 }
 0x28b   : > { %v1196_v45 = vpop.f32.mrf.mxu2 }
 0x28c   : > { %v1197_v33 = vadd.f32 %v1196_v45, %v11109_v42 }
 0x28d   : > { %v11387_v1 = vpop.f32.mrf.mxu1 }
 0x28f   : > { %v11392_v17 = vld [vmem:[#allocation2 + $0x20] sm:$0xff] }
 0x290   : > { %v11397_v57 = vld [vmem:[#allocation2 + $0x20] sm:$0xff]  ;;  %1927 = vmatmul.bf16.gmra.mxu0 %v11392_v17  ;;  %v1552_v4 = vshll.u32 %v11392_v17, 16  ;;  %v2026_v2 = vrot.slane %v11392_v17, 1 }
 0x291   : > { %v2689_v49 = vshrl.u32 %v11397_v57, 16  ;;  %v2692_v39 = vshll.u32 %v11397_v57, 16  ;;  %v3059_v20 = vrot.slane %v11397_v57, 2  ;;  %v11406_v53 = vld [vmem:[#allocation2 + $0x20] sm:$0xff] }
 0x292   : > { %v1554_v12 = vrot.slane %v1552_v4, 1  ;;  %v11418_v40 = vsel %vm2018_vm2, %v2024_v29, %v2026_v2  ;;  %v4092_v4 = vrot.slane %v11406_v53, 3  ;;  %v3441_v42 = vrot.slane %v11406_v53, 2 }
 0x293   : > { %v1198_v30 = vpop.f32.mrf.mxu2  ;;  %v2691_v8 = vrot.slane %v2689_v49, 1  ;;  %v2694_v43 = vrot.slane %v2692_v39, 2  ;;  %v11412_v21 = vsel %vm3053_vm3, %v3057_v6, %v3059_v20  ;;  %15731 = vst [vmem:[#allocation25_spill] sm:$0xff] %v11418_v40 }
 0x294   : > { %v1199_v46 = vadd.f32 %v1198_v30, %v11117_v14  ;;  %v1555_v44 = vsel %vm1519_vm1, %v1550_v11, %v1554_v12  ;;  %v15732_v14 = vrot.slane %v11310_v56, 1  ;;  %v11429_v29 = vsel %vm4088_vm5, %v4090_v34, %v4092_v4  ;;  %v10144_v56 = vld [vmem:[%s15662_s3 + $0xf4] sm:$0xf] }
 0x295   : > { %v11414_v38 = vpop.f32.mrf.mxu1  ;;  %1757 = vmatmul.bf16.gmra.mxu3 %v1555_v44  ;;  %v2695_v54 = vor.u32 %v2694_v43, %v2691_v8  ;;  %15733 = vst [vmem:[#allocation26_spill] sm:$0xff] %v11429_v29  ;;  %v1556_v34 = vshrl.u32 %v11392_v17, 16  ;;  %v2408_v30 = vrot.slane %v11397_v57, 1 }
 0x296   : > { %v10597_v26 = vpack.c.bf16 %v1199_v46, %v1197_v33  ;;  %v2407_v45 = vsel %vm2018_vm2, %v15732_v14, %v2406_v61  ;;  %v11432_v46 = vsel %vm3053_vm3, %v3439_v35, %v3441_v42 }
 0x297   : > { %v11426_v6 = vsel %vm2661_vm4, %v2686_v22, %v2695_v54  ;;  %15734 = vst [vmem:[#allocation27_spill] sm:$0xff] %v11432_v46  ;;  %v8359_v22 = vld [vmem:[%s15662_s3 + $0xf8] sm:$0xf0]  ;;  %v1558_v14 = vor.u32 %v1556_v34, %v1554_v12 }
 0x298   : > { %10677 = vst [vmem:[#allocation2 + $0x28] sm:$0xff] %v10597_v26   ;;  %1240 = vmatmul.bf16.gmra.mxu2 %v8354_v19  ;;  %2519 = vmatmul.bf16.gmra.mxu1 %v2407_v45  ;;  %v8362_v53 = vor.u32 %v10144_v56, %v8359_v22 }
 0x29b   : > { %v1201_v8 = vpop.f32.mrf.mxu2 }
 0x29c   : > { %v1202_v17 = vadd.f32 %v1201_v8, %v11137_v55 }
 0x29d   : > { %v11434_v43 = vpop.f32.mrf.mxu1 }
 0x29f   : > { %v11439_v49 = vld [vmem:[#allocation2 + $0x28] sm:$0xff] }
 0x2a0   : > { %v11444_v19 = vld [vmem:[#allocation2 + $0x28] sm:$0xff]  ;;  %1932 = vmatmul.bf16.gmra.mxu0 %v11439_v49  ;;  %v1560_v35 = vshll.u32 %v11439_v49, 16  ;;  %v2028_v31 = vrot.slane %v11439_v49, 1 }
 0x2a1   : > { %v2698_v39 = vshrl.u32 %v11444_v19, 16  ;;  %v2701_v11 = vshll.u32 %v11444_v19, 16  ;;  %v3061_v33 = vrot.slane %v11444_v19, 2  ;;  %v11453_v44 = vld [vmem:[#allocation2 + $0x28] sm:$0xff] }
 0x2a2   : > { %v1562_v45 = vrot.slane %v1560_v35, 1  ;;  %v11465_v0 = vsel %vm2018_vm2, %v2026_v2, %v2028_v31  ;;  %v4094_v35 = vrot.slane %v11453_v44, 3  ;;  %v3443_v55 = vrot.slane %v11453_v44, 2 }
 0x2a3   : > { %v1203_v26 = vpop.f32.mrf.mxu2  ;;  %v2700_v36 = vrot.slane %v2698_v39, 1  ;;  %v2703_v7 = vrot.slane %v2701_v11, 2  ;;  %v11459_v56 = vsel %vm3053_vm3, %v3059_v20, %v3061_v33  ;;  %15736 = vst [vmem:[#allocation29_spill] sm:$0xff] %v11465_v0  ;;  %v2410_v44 = vrot.slane %v11444_v19, 1 }
 0x2a4   : > { %v1204_v18 = vadd.f32 %v1203_v26, %v11145_v60  ;;  %15735 = vst [vmem:[#allocation28_spill] sm:$0xff] %v11459_v56  ;;  %v1563_v22 = vsel %vm1519_vm1, %v1558_v14, %v1562_v45  ;;  %v2409_v60 = vsel %vm2018_vm2, %v2406_v61, %v2408_v30  ;;  %v11474_v8 = vsel %vm4088_vm5, %v4092_v4, %v4094_v35 }
 0x2a5   : > { %v11461_v57 = vpop.f32.mrf.mxu1  ;;  %1762 = vmatmul.bf16.gmra.mxu3 %v1563_v22  ;;  %v2704_v34 = vor.u32 %v2703_v7, %v2700_v36  ;;  %15737 = vst [vmem:[#allocation30_spill] sm:$0xff] %v11474_v8  ;;  %v11477_v2 = vsel %vm3053_vm3, %v3441_v42, %v3443_v55  ;;  %v10146_v36 = vld [vmem:[%s15662_s3 + $0x104] sm:$0xf]  ;;  %v1564_v4 = vshrl.u32 %v11439_v49, 16 }
 0x2a6   : > { %v10602_v12 = vpack.c.bf16 %v1204_v18, %v1202_v17  ;;  %15738 = vst [vmem:[#allocation31_spill] sm:$0xff] %v11477_v2 }
 0x2a7   : > { %v11471_v20 = vsel %vm2661_vm4, %v2695_v54, %v2704_v34  ;;  %v8367_v54 = vld [vmem:[%s15662_s3 + $0x108] sm:$0xf0] }
 0x2a8   : > { %10678 = vst [vmem:[#allocation2 + $0x30] sm:$0xff] %v10602_v12   ;;  %1245 = vmatmul.bf16.gmra.mxu2 %v8362_v53  ;;  %2524 = vmatmul.bf16.gmra.mxu1 %v2409_v60  ;;  %v8370_v11 = vor.u32 %v10146_v36, %v8367_v54  ;;  %v1566_v12 = vor.u32 %v1564_v4, %v1562_v45 }
 0x2ab   : > { %v1206_v18 = vpop.f32.mrf.mxu2 }
 0x2ac   : > { %v1207_v49 = vadd.f32 %v1206_v18, %v11165_v13 }
 0x2ad   : > { %v11479_v7 = vpop.f32.mrf.mxu1 }
 0x2af   : > { %v11484_v61 = vld [vmem:[#allocation2 + $0x30] sm:$0xff] }
 0x2b0   : > { %v11489_v39 = vld [vmem:[#allocation2 + $0x30] sm:$0xff]  ;;  %1937 = vmatmul.bf16.gmra.mxu0 %v11484_v61  ;;  %v1568_v42 = vshll.u32 %v11484_v61, 16  ;;  %v2030_v46 = vrot.slane %v11484_v61, 1 }
 0x2b1   : > { %v2707_v53 = vshrl.u32 %v11489_v39, 16  ;;  %v2710_v26 = vshll.u32 %v11489_v39, 16  ;;  %v3063_v14 = vrot.slane %v11489_v39, 2  ;;  %v11498_v17 = vld [vmem:[#allocation2 + $0x30] sm:$0xff] }
 0x2b2   : > { %v1570_v60 = vrot.slane %v1568_v42, 1  ;;  %v11510_v29 = vsel %vm2018_vm2, %v2028_v31, %v2030_v46  ;;  %v4096_v42 = vrot.slane %v11498_v17, 3  ;;  %v3445_v13 = vrot.slane %v11498_v17, 2 }
 0x2b3   : > { %v1208_v22 = vpop.f32.mrf.mxu2  ;;  %v2709_v2 = vrot.slane %v2707_v53, 1  ;;  %v2712_v8 = vrot.slane %v2710_v26, 2  ;;  %v11504_v36 = vsel %vm3053_vm3, %v3061_v33, %v3063_v14  ;;  %15740 = vst [vmem:[#allocation33_spill] sm:$0xff] %v11510_v29 }
 0x2b4   : > { %v1209_v37 = vadd.f32 %v1208_v22, %v11173_v27  ;;  %15739 = vst [vmem:[#allocation32_spill] sm:$0xff] %v11504_v36  ;;  %v1571_v54 = vsel %vm1519_vm1, %v1566_v12, %v1570_v60  ;;  %v2411_v27 = vsel %vm2018_vm2, %v2408_v30, %v2410_v44  ;;  %v11519_v18 = vsel %vm4088_vm5, %v4094_v35, %v4096_v42 }
 0x2b5   : > { %v11506_v19 = vpop.f32.mrf.mxu1  ;;  %1767 = vmatmul.bf16.gmra.mxu3 %v1571_v54  ;;  %v2713_v4 = vor.u32 %v2712_v8, %v2709_v2  ;;  %15741 = vst [vmem:[#allocation34_spill] sm:$0xff] %v11519_v18  ;;  %v11522_v31 = vsel %vm3053_vm3, %v3443_v55, %v3445_v13  ;;  %v10148_v2 = vld [vmem:[%s15662_s3 + $0x114] sm:$0xf]  ;;  %v1572_v35 = vshrl.u32 %v11484_v61, 16 }
 0x2b6   : > { %v10607_v45 = vpack.c.bf16 %v1209_v37, %v1207_v49  ;;  %15742 = vst [vmem:[#allocation35_spill] sm:$0xff] %v11522_v31 }
 0x2b7   : > { %v11516_v33 = vsel %vm2661_vm4, %v2704_v34, %v2713_v4  ;;  %v8375_v34 = vld [vmem:[%s15662_s3 + $0x118] sm:$0xf0] }
 0x2b8   : > { %10679 = vst [vmem:[#allocation2 + $0x38] sm:$0xff] %v10607_v45   ;;  %1250 = vmatmul.bf16.gmra.mxu2 %v8370_v11  ;;  %2529 = vmatmul.bf16.gmra.mxu1 %v2411_v27  ;;  %v8378_v26 = vor.u32 %v10148_v2, %v8375_v34  ;;  %v1574_v45 = vor.u32 %v1572_v35, %v1570_v60 }
 0x2bb   : > { %v1211_v37 = vpop.f32.mrf.mxu2 }
 0x2bc   : > { %v1212_v61 = vadd.f32 %v1211_v37, %v11193_v41 }
 0x2bd   : > { %v11524_v8 = vpop.f32.mrf.mxu1 }
 0x2bf   : > { %v11529_v30 = vld [vmem:[#allocation2 + $0x38] sm:$0xff] }
 0x2c0   : > { %v11534_v53 = vld [vmem:[#allocation2 + $0x38] sm:$0xff]  ;;  %1942 = vmatmul.bf16.gmra.mxu0 %v11529_v30  ;;  %v1576_v55 = vshll.u32 %v11529_v30, 16  ;;  %v2032_v18 = vrot.slane %v11529_v30, 1 }
 0x2c1   : > { %v2716_v11 = vshrl.u32 %v11534_v53, 16  ;;  %v2719_v22 = vshll.u32 %v11534_v53, 16  ;;  %v3065_v12 = vrot.slane %v11534_v53, 2  ;;  %v11543_v49 = vld [vmem:[#allocation2 + $0x38] sm:$0xff] }
 0x2c2   : > { %v1578_v27 = vrot.slane %v1576_v55, 1  ;;  %v11555_v0 = vsel %vm2018_vm2, %v2030_v46, %v2032_v18  ;;  %v4098_v55 = vrot.slane %v11543_v49, 3  ;;  %v3447_v41 = vrot.slane %v11543_v49, 2 }
 0x2c3   : > { %v1213_v54 = vpop.f32.mrf.mxu2  ;;  %v2718_v31 = vrot.slane %v2716_v11, 1  ;;  %v2721_v29 = vrot.slane %v2719_v22, 2  ;;  %v11549_v2 = vsel %vm3053_vm3, %v3063_v14, %v3065_v12  ;;  %15744 = vst [vmem:[#allocation37_spill] sm:$0xff] %v11555_v0  ;;  %v10227_v14 = vld [vmem:[%s15663_s4 + $0x138] sm:$0xff]  ;;  %v1580_v49 = vshrl.u32 %v11529_v30, 16 }
 0x2c4   : > { %v1214_v59 = vadd.f32 %v1213_v54, %v11201_v15  ;;  %15743 = vst [vmem:[#allocation36_spill] sm:$0xff] %v11549_v2  ;;  %v1579_v17 = vsel %vm1519_vm1, %v1574_v45, %v1578_v27  ;;  %v15745_v15 = vrot.slane %v11489_v39, 1  ;;  %2898 = vmatpush.bf16.msrb.mxu2 %v10227_v14 }
 0x2c5   : > { %v11551_v34 = vpop.f32.mrf.mxu1  ;;  %1772 = vmatmul.bf16.gmra.mxu3 %v1579_v17  ;;  %v2722_v35 = vor.u32 %v2721_v29, %v2718_v31  ;;  %v11572_v29 = vsel %vm3053_vm3, %v3445_v13, %v3447_v41  ;;  %v8383_v17 = vld [vmem:[%s15662_s3 + $0x128] sm:$0xf0] }
 0x2c6   : > { %v10612_v60 = vpack.c.bf16 %v1214_v59, %v1212_v61  ;;  %v2413_v37 = vsel %vm2018_vm2, %v2410_v44, %v15745_v15  ;;  %v11569_v59 = vsel %vm4088_vm5, %v4096_v42, %v4098_v55  ;;  %15747 = vst [vmem:[#allocation39_spill] sm:$0xff] %v11572_v29  ;;  %v11574_v11 = vpop.f32.mrf.mxu0  ;;  %v10226_v44 = vld [vmem:[%s15663_s4 + $0x130] sm:$0xff]  ;;  %v10225_v42 = vld [vmem:[%s15663_s4 + $0x128] sm:$0xff]  ;;  %v1582_v29 = vor.u32 %v1580_v49, %v1578_v27 }
 0x2c7   : > { %v11566_v46 = vsel %vm2661_vm4, %v2713_v4, %v2722_v35  ;;  %15746 = vst [vmem:[#allocation38_spill] sm:$0xff] %v11569_v59  ;;  %v10150_v4 = vld [vmem:[%s15662_s3 + $0x124] sm:$0xf] }
 0x2c8   : > { %10680 = vst [vmem:[#allocation2 + $0x40] sm:$0xff] %v10612_v60   ;;  %1255 = vmatmul.bf16.gmra.mxu2 %v8378_v26  ;;  %2534 = vmatmul.bf16.gmra.mxu1 %v2413_v37  ;;  %v8386_v61 = vor.u32 %v10150_v4, %v8383_v17  ;;  %v10224_v4 = vld [vmem:[%s15663_s4 + $0x120] sm:$0xff] }
 0x2c9   : > { %2899 = vmatpush.bf16.msrb.mxu2 %v10226_v44 }
 0x2cb   : > { %v1216_v31 = vpop.f32.mrf.mxu2 }
 0x2cc   : > { %v1217_v2 = vadd.f32 %v1216_v31, %v11223_v63 }
 0x2cd   : > { %v11579_v26 = vpop.f32.mrf.mxu1  ;;  %2900 = vmatpush.bf16.msrb.mxu2 %v10225_v42 }
 0x2cf   : > { %v11587_v13 = vld [vmem:[#allocation2 + $0x40] sm:$0xff] }
 0x2d0   : > { %v11592_v22 = vld [vmem:[#allocation2 + $0x40] sm:$0xff]  ;;  %1947 = vmatmul.bf16.gmra.mxu0 %v11587_v13  ;;  %v1584_v54 = vshll.u32 %v11587_v13, 16  ;;  %v2034_v30 = vrot.slane %v11587_v13, 1 }
 0x2d1   : > { %v2725_v45 = vshrl.u32 %v11592_v22, 16  ;;  %v2728_v15 = vshll.u32 %v11592_v22, 16  ;;  %v3067_v37 = vrot.slane %v11592_v22, 2  ;;  %v11601_v14 = vld [vmem:[#allocation2 + $0x40] sm:$0xff]  ;;  %2901 = vmatpush.bf16.msrb.mxu2 %v10224_v4  ;;  %v8391_v4 = vld [vmem:[%s15662_s3 + $0x138] sm:$0xf0] }
 0x2d2   : > { %v1586_v59 = vrot.slane %v1584_v54, 1  ;;  %v11615_v54 = vpop.f32.mrf.mxu0  ;;  %v4100_v31 = vrot.slane %v11601_v14, 3 }
 0x2d3   : > { %v1218_v44 = vpop.f32.mrf.mxu2  ;;  %v2727_v0 = vrot.slane %v2725_v45, 1  ;;  %v2730_v42 = vrot.slane %v2728_v15, 2  ;;  %v11610_v17 = vsel %vm3053_vm3, %v3065_v12, %v3067_v37  ;;  %v15750_v45 = vrot.slane %v11534_v53, 1 }
 0x2d4   : > { %v1219_v40 = vadd.f32 %v1218_v44, %v11231_v50  ;;  %15748 = vst [vmem:[#allocation40_spill] sm:$0xff] %v11610_v17  ;;  %v1587_v27 = vsel %vm1519_vm1, %v1582_v29, %v1586_v59  ;;  %v11618_v50 = vsel %vm2018_vm2, %v2032_v18, %v2034_v30  ;;  %v15751_v12 = vrot.slane %v11489_v39, 1  ;;  %v10222_v29 = vld [vmem:[%s15663_s4 + $0x110] sm:$0xff] }
 0x2d5   : > { %v11612_v60 = vpop.f32.mrf.mxu1  ;;  %1777 = vmatmul.bf16.gmra.mxu3 %v1587_v27  ;;  %v2731_v63 = vor.u32 %v2730_v42, %v2727_v0  ;;  %15749 = vst [vmem:[#allocation41_spill] sm:$0xff] %v11618_v50  ;;  %v3449_v44 = vrot.slane %v11601_v14, 2  ;;  %v10223_v0 = vld [vmem:[%s15663_s4 + $0x118] sm:$0xff]  ;;  %v11634_v18 = vsel %vm4088_vm5, %v4098_v55, %v4100_v31  ;;  %v10221_v55 = vld [vmem:[%s15663_s4 + $0x108] sm:$0xff]  ;;  %v1588_v27 = vshrl.u32 %v11587_v13, 16 }
 0x2d6   : > { %v10617_v49 = vpack.c.bf16 %v1219_v40, %v1217_v2  ;;  %v2415_v15 = vsel %vm2018_vm2, %v15751_v12, %v15750_v45  ;;  %15752 = vst [vmem:[#allocation42_spill] sm:$0xff] %v11634_v18  ;;  %2902 = vmatpush.bf16.msrb.mxu2 %v10223_v0 }
 0x2d7   : > { %v11631_v40 = vsel %vm2661_vm4, %v2722_v35, %v2731_v63  ;;  %v11637_v2 = vsel %vm3053_vm3, %v3447_v41, %v3449_v44  ;;  %v10152_v35 = vld [vmem:[%s15662_s3 + $0x134] sm:$0xf]  ;;  %v1590_v50 = vor.u32 %v1588_v27, %v1586_v59 }
 0x2d8   : > { %10681 = vst [vmem:[#allocation2 + $0x48] sm:$0xff] %v10617_v49   ;;  %1260 = vmatmul.bf16.gmra.mxu2 %v8386_v61  ;;  %2539 = vmatmul.bf16.gmra.mxu1 %v2415_v15  ;;  %v8394_v12 = vor.u32 %v10152_v35, %v8391_v4  ;;  %v10220_v35 = vld [vmem:[%s15663_s4 + $0x100] sm:$0xff] }
 0x2d9   : > { %15753 = vst [vmem:[#allocation43_spill] sm:$0xff] %v11637_v2 }
 0x2da   : > { %2903 = vmatpush.bf16.msrb.mxu2 %v10222_v29 }
 0x2db   : > { %v1221_v39 = vpop.f32.mrf.mxu2 }
 0x2dc   : > { %v1222_v16 = vadd.f32 %v1221_v39, %v11253_v23 }
 0x2dd   : > { %v11642_v61 = vpop.f32.mrf.mxu1  ;;  %v11644_v14 = vpop.f32.mrf.mxu0 }
 0x2de   : > { %2904 = vmatpush.bf16.msrb.mxu2 %v10221_v55 }
 0x2df   : > { %v11652_v41 = vld [vmem:[#allocation2 + $0x48] sm:$0xff] }
 0x2e0   : > { %v11657_v42 = vld [vmem:[#allocation2 + $0x48] sm:$0xff]  ;;  %1952 = vmatmul.bf16.gmra.mxu0 %v11652_v41  ;;  %v1592_v49 = vshll.u32 %v11652_v41, 16  ;;  %v2036_v13 = vrot.slane %v11652_v41, 1 }
 0x2e1   : > { %v2734_v45 = vshrl.u32 %v11657_v42, 16  ;;  %v2737_v0 = vshll.u32 %v11657_v42, 16  ;;  %v3069_v29 = vrot.slane %v11657_v42, 2  ;;  %v11666_v2 = vld [vmem:[#allocation2 + $0x48] sm:$0xff] }
 0x2e2   : > { %v1594_v17 = vrot.slane %v1592_v49, 1  ;;  %v11681_v27 = vsel %vm2018_vm2, %v2034_v30, %v2036_v13  ;;  %2905 = vmatpush.bf16.msrb.mxu2 %v10220_v35  ;;  %v3451_v39 = vrot.slane %v11666_v2, 2 }
 0x2e3   : > { %v1223_v18 = vpop.f32.mrf.mxu2  ;;  %v2736_v36 = vrot.slane %v2734_v45, 1  ;;  %v2739_v55 = vrot.slane %v2737_v0, 2  ;;  %v11675_v4 = vsel %vm3053_vm3, %v3067_v37, %v3069_v29  ;;  %15755 = vst [vmem:[#allocation45_spill] sm:$0xff] %v11681_v27  ;;  %v15756_v37 = vrot.slane %v11592_v22, 1 }
 0x2e4   : > { %v1224_v56 = vadd.f32 %v1223_v18, %v11261_v5  ;;  %15754 = vst [vmem:[#allocation44_spill] sm:$0xff] %v11675_v4  ;;  %v1595_v59 = vsel %vm1519_vm1, %v1590_v50, %v1594_v17  ;;  %v4102_v18 = vrot.slane %v11666_v2, 3  ;;  %v15757_v45 = vrot.slane %v11534_v53, 1 }
 0x2e5   : > { %v11677_v15 = vpop.f32.mrf.mxu1  ;;  %1782 = vmatmul.bf16.gmra.mxu3 %v1595_v59  ;;  %v11683_v23 = vpop.f32.mrf.mxu0  ;;  %v2740_v5 = vor.u32 %v2739_v55, %v2736_v36  ;;  %v11699_v36 = vsel %vm3053_vm3, %v3449_v44, %v3451_v39  ;;  %v1596_v44 = vshrl.u32 %v11652_v41, 16 }
 0x2e6   : > { %v10622_v49 = vpack.c.bf16 %v1224_v56, %v1222_v16  ;;  %v2417_v0 = vsel %vm2018_vm2, %v15757_v45, %v15756_v37  ;;  %v11696_v56 = vsel %vm4088_vm5, %v4100_v31, %v4102_v18  ;;  %15759 = vst [vmem:[#allocation47_spill] sm:$0xff] %v11699_v36 }
 0x2e7   : > { %v11693_v16 = vsel %vm2661_vm4, %v2731_v63, %v2740_v5  ;;  %15758 = vst [vmem:[#allocation46_spill] sm:$0xff] %v11696_v56  ;;  %v1598_v36 = vor.u32 %v1596_v44, %v1594_v17 }
 0x2e8   : > { %10682 = vst [vmem:[#allocation2 + $0x50] sm:$0xff] %v10622_v49   ;;  %1265 = vmatmul.bf16.gmra.mxu2 %v8394_v12  ;;  %2544 = vmatmul.bf16.gmra.mxu1 %v2417_v0  ;;  %v1743_v30 = vpop.f32.mrf.mxu3  ;;  %v964_v12 = vunpack.c.h.b16 %v11293_v3 }
 0x2e9   : > { %v11702_v50 = vadd.f32 %v11574_v11, %v1743_v30 }
 0x2ea   : > { %v1006_v37 = vpack.c.b16 %v964_v12, %v964_v12 }
 0x2eb   : > { %15760 = vst [vmem:[#allocation48_spill] sm:$0xff] %v11702_v50  ;;  %v1226_v2 = vpop.f32.mrf.mxu2  ;;  %v2418_v50 = vrot.slane %v11657_v42, 1 }
 0x2ec   : > { %v1227_v27 = vadd.f32 %v1226_v2, %v11287_v32 }
 0x2ed   : > { %v11704_v53 = vpop.f32.mrf.mxu1  ;;  %v11706_v35 = vpop.f32.mrf.mxu0 }
 0x2ef   : > { %v11709_v55 = vld [vmem:[#allocation2 + $0x50] sm:$0xff] }
 0x2f0   : > { %v11711_v63 = vld [vmem:[#allocation2 + $0x50] sm:$0xff]  ;;  %v1745_v31 = vpop.f32.mrf.mxu3  ;;  %1957 = vmatmul.bf16.gmra.mxu0 %v11709_v55  ;;  %v1600_v59 = vshll.u32 %v11709_v55, 16 }
 0x2f1   : > { %v2743_v11 = vshrl.u32 %v11711_v63, 16  ;;  %v11718_v49 = vadd.f32 %v11615_v54, %v1745_v31  ;;  %v2746_v45 = vshll.u32 %v11711_v63, 16  ;;  %v3071_v3 = vrot.slane %v11711_v63, 2  ;;  %v11722_v0 = vld [vmem:[#allocation2 + $0x50] sm:$0xff] }
 0x2f2   : > { %v1602_v56 = vrot.slane %v1600_v59, 1  ;;  %v4104_v44 = vrot.slane %v11722_v0, 3  ;;  %v3453_v32 = vrot.slane %v11722_v0, 2 }
 0x2f3   : > { %15761 = vst [vmem:[#allocation49_spill] sm:$0xff] %v11718_v49  ;;  %v1228_v30 = vpop.f32.mrf.mxu2  ;;  %v2745_v41 = vrot.slane %v2743_v11, 1  ;;  %v2748_v10 = vrot.slane %v2746_v45, 2  ;;  %v11728_v54 = vsel %vm3053_vm3, %v3069_v29, %v3071_v3  ;;  %v2038_v49 = vrot.slane %v11709_v55, 1 }
 0x2f4   : > { %v1229_v4 = vadd.f32 %v1228_v30, %v11298_v58  ;;  %v1603_v31 = vsel %vm1519_vm1, %v1598_v36, %v1602_v56  ;;  %v15762_v58 = vrot.slane %v11592_v22, 1 }
 0x2f5   : > { %v11730_v12 = vpop.f32.mrf.mxu1  ;;  %1787 = vmatmul.bf16.gmra.mxu3 %v1603_v31  ;;  %v11734_v17 = vpop.f32.mrf.mxu0  ;;  %v2749_v42 = vor.u32 %v2748_v10, %v2745_v41  ;;  %v11742_v2 = vsel %vm2018_vm2, %v2036_v13, %v2038_v49  ;;  %v11751_v10 = vsel %vm3053_vm3, %v3451_v39, %v3453_v32 }
 0x2f6   : > { %v10627_v48 = vpack.c.bf16 %v1229_v4, %v1227_v27  ;;  %v2419_v29 = vsel %vm2018_vm2, %v15762_v58, %v2418_v50  ;;  %15763 = vst [vmem:[#allocation50_spill] sm:$0xff] %v11742_v2  ;;  %v11748_v27 = vsel %vm4088_vm5, %v4102_v18, %v4104_v44  ;;  %v1604_v18 = vshrl.u32 %v11709_v55, 16 }
 0x2f7   : > { %v11745_v4 = vsel %vm2661_vm4, %v2740_v5, %v2749_v42  ;;  %15764 = vst [vmem:[#allocation51_spill] sm:$0xff] %v11748_v27 }
 0x2f8   : > { %10683 = vst [vmem:[#allocation2 + $0x58] sm:$0xff] %v10627_v48   ;;  %1270 = vmatmul.bf16.gmra.mxu2 %v1006_v37  ;;  %2549 = vmatmul.bf16.gmra.mxu1 %v2419_v29  ;;  %v1748_v36 = vpop.f32.mrf.mxu3  ;;  %v1606_v58 = vor.u32 %v1604_v18, %v1602_v56 }
 0x2f9   : > { %15765 = vst [vmem:[#allocation52_spill] sm:$0xff] %v11751_v10  ;;  %v11754_v22 = vadd.f32 %v11644_v14, %v1748_v36  ;;  %v2420_v36 = vrot.slane %v11711_v63, 1 }
 0x2fb   : > { %15766 = vst [vmem:[#allocation53_spill] sm:$0xff] %v11754_v22  ;;  %v1231_v59 = vpop.f32.mrf.mxu2 }
 0x2fc   : > { %v1232_v55 = vadd.f32 %v1231_v59, %v11330_v52 }
 0x2fd   : > { %v1160_v11 = vpop.f32.mrf.mxu1  ;;  %v11756_v13 = vpop.f32.mrf.mxu0 }
 0x2ff   : > { %v11758_v48 = vld [vmem:[#allocation2 + $0x58] sm:$0xff] }
 0x300   : > { %v11760_v37 = vld [vmem:[#allocation2 + $0x58] sm:$0xff]  ;;  %v1750_v5 = vpop.f32.mrf.mxu3  ;;  %1962 = vmatmul.bf16.gmra.mxu0 %v11758_v48  ;;  %v1608_v39 = vshll.u32 %v11758_v48, 16  ;;  %v2040_v22 = vrot.slane %v11758_v48, 1 }
 0x301   : > { %v2752_v45 = vshrl.u32 %v11760_v37, 16  ;;  %v11767_v14 = vadd.f32 %v11683_v23, %v1750_v5  ;;  %v2755_v0 = vshll.u32 %v11760_v37, 16  ;;  %v3073_v30 = vrot.slane %v11760_v37, 2  ;;  %v11771_v41 = vld [vmem:[#allocation2 + $0x58] sm:$0xff] }
 0x302   : > { %v1610_v29 = vrot.slane %v1608_v39, 1  ;;  %v4106_v18 = vrot.slane %v11771_v41, 3  ;;  %v3455_v52 = vrot.slane %v11771_v41, 2 }
 0x303   : > { %15767 = vst [vmem:[#allocation54_spill] sm:$0xff] %v11767_v14  ;;  %v1233_v31 = vpop.f32.mrf.mxu2  ;;  %v2754_v11 = vrot.slane %v2752_v45, 1  ;;  %v2757_v27 = vrot.slane %v2755_v0, 2  ;;  %v11777_v23 = vsel %vm3053_vm3, %v3071_v3, %v3073_v30  ;;  %v11789_v3 = vsel %vm2018_vm2, %v2038_v49, %v2040_v22 }
 0x304   : > { %v1234_v10 = vadd.f32 %v1233_v31, %v11336_v25  ;;  %v1611_v14 = vsel %vm1519_vm1, %v1606_v58, %v1610_v29  ;;  %v2421_v25 = vsel %vm2018_vm2, %v2418_v50, %v2420_v36  ;;  %15768 = vst [vmem:[#allocation55_spill] sm:$0xff] %v11789_v3 }
 0x305   : > { %v11779_v5 = vpop.f32.mrf.mxu1  ;;  %1792 = vmatmul.bf16.gmra.mxu3 %v1611_v14  ;;  %v11783_v56 = vpop.f32.mrf.mxu0  ;;  %v2758_v63 = vor.u32 %v2757_v27, %v2754_v11  ;;  %v11799_v27 = vsel %vm3053_vm3, %v3453_v32, %v3455_v52 }
 0x306   : > { %v10632_v2 = vpack.c.bf16 %v1234_v10, %v1232_v55  ;;  %v11796_v10 = vsel %vm4088_vm5, %v4104_v44, %v4106_v18  ;;  %15770 = vst [vmem:[#allocation57_spill] sm:$0xff] %v11799_v27  ;;  %v1612_v44 = vshrl.u32 %v11758_v48, 16 }
 0x307   : > { %v11793_v59 = vsel %vm2661_vm4, %v2749_v42, %v2758_v63  ;;  %15769 = vst [vmem:[#allocation56_spill] sm:$0xff] %v11796_v10 }
 0x308   : > { %10684 = vst [vmem:[#allocation2 + $0x60] sm:$0xff] %v10632_v2   ;;  %2554 = vmatmul.bf16.gmra.mxu1 %v2421_v25  ;;  %2906 = vmatmul.bf16.vlgmr.msrb.gmra.mxu2 %v11334_v24  ;;  %v1753_v39 = vpop.f32.mrf.mxu3  ;;  %v1614_v55 = vor.u32 %v1612_v44, %v1610_v29 }
 0x309   : > { %v11802_v45 = vadd.f32 %v11706_v35, %v1753_v39  ;;  %v2422_v39 = vrot.slane %v11760_v37, 1 }
 0x30b   : > { %15771 = vst [vmem:[#allocation58_spill] sm:$0xff] %v11802_v45  ;;  %v1236_v50 = vpop.f32.mrf.mxu2 }
 0x30c   : > { %v1237_v48 = vadd.f32 %v1236_v50, %v11366_v9 }
 0x30d   : > { %v11804_v49 = vpop.f32.mrf.mxu1  ;;  %v11806_v2 = vpop.f32.mrf.mxu0 }
 0x30e   : > { %15772 = vst [vmem:[#allocation59_spill] sm:$0xff] %v11804_v49 }
 0x30f   : > { %v11808_v14 = vld [vmem:[#allocation2 + $0x60] sm:$0xff] }
 0x310   : > { %v11810_v24 = vld [vmem:[#allocation2 + $0x60] sm:$0xff]  ;;  %v1755_v42 = vpop.f32.mrf.mxu3  ;;  %1967 = vmatmul.bf16.gmra.mxu0 %v11808_v14  ;;  %v1616_v32 = vshll.u32 %v11808_v14, 16  ;;  %v2042_v3 = vrot.slane %v11808_v14, 1 }
 0x311   : > { %v2761_v0 = vshrl.u32 %v11810_v24, 16  ;;  %v11817_v35 = vadd.f32 %v11734_v17, %v1755_v42  ;;  %v2764_v41 = vshll.u32 %v11810_v24, 16  ;;  %v3075_v31 = vrot.slane %v11810_v24, 2  ;;  %v11821_v58 = vld [vmem:[#allocation2 + $0x60] sm:$0xff] }
 0x312   : > { %v1618_v25 = vrot.slane %v1616_v32, 1  ;;  %v4108_v44 = vrot.slane %v11821_v58, 3  ;;  %v3457_v9 = vrot.slane %v11821_v58, 2 }
 0x313   : > { %15773 = vst [vmem:[#allocation60_spill] sm:$0xff] %v11817_v35  ;;  %v1238_v11 = vpop.f32.mrf.mxu2  ;;  %v2763_v27 = vrot.slane %v2761_v0, 1  ;;  %v2766_v45 = vrot.slane %v2764_v41, 2  ;;  %v11827_v17 = vsel %vm3053_vm3, %v3073_v30, %v3075_v31  ;;  %v11839_v30 = vsel %vm2018_vm2, %v2040_v22, %v2042_v3 }
 0x314   : > { %v1239_v10 = vadd.f32 %v1238_v11, %v11387_v1  ;;  %v1619_v35 = vsel %vm1519_vm1, %v1614_v55, %v1618_v25  ;;  %v2423_v1 = vsel %vm2018_vm2, %v2420_v36, %v2422_v39  ;;  %15774 = vst [vmem:[#allocation61_spill] sm:$0xff] %v11839_v30 }
 0x315   : > { %v11829_v42 = vpop.f32.mrf.mxu1  ;;  %1797 = vmatmul.bf16.gmra.mxu3 %v1619_v35  ;;  %v11833_v29 = vpop.f32.mrf.mxu0  ;;  %v2767_v37 = vor.u32 %v2766_v45, %v2763_v27  ;;  %v11849_v27 = vsel %vm3053_vm3, %v3455_v52, %v3457_v9 }
 0x316   : > { %v10637_v49 = vpack.c.bf16 %v1239_v10, %v1237_v48  ;;  %v11846_v10 = vsel %vm4088_vm5, %v4106_v18, %v4108_v44  ;;  %15776 = vst [vmem:[#allocation63_spill] sm:$0xff] %v11849_v27  ;;  %v1620_v18 = vshrl.u32 %v11808_v14, 16 }
 0x317   : > { %v11843_v50 = vsel %vm2661_vm4, %v2758_v63, %v2767_v37  ;;  %15775 = vst [vmem:[#allocation62_spill] sm:$0xff] %v11846_v10 }
 0x318   : > { %10685 = vst [vmem:[#allocation2 + $0x68] sm:$0xff] %v10637_v49   ;;  %2559 = vmatmul.bf16.gmra.mxu1 %v2423_v1  ;;  %2911 = vmatmul.bf16.gmra.mxu2 %v11379_v28  ;;  %v1758_v45 = vpop.f32.mrf.mxu3  ;;  %v1622_v48 = vor.u32 %v1620_v18, %v1618_v25 }
 0x319   : > { %v11852_v32 = vadd.f32 %v11756_v13, %v1758_v45  ;;  %v2424_v45 = vrot.slane %v11810_v24, 1 }
 0x31b   : > { %15777 = vst [vmem:[#allocation64_spill] sm:$0xff] %v11852_v32  ;;  %v1241_v36 = vpop.f32.mrf.mxu2 }
 0x31c   : > { %v1242_v14 = vadd.f32 %v1241_v36, %v11414_v38 }
 0x31d   : > { %v11854_v22 = vpop.f32.mrf.mxu1  ;;  %v11856_v49 = vpop.f32.mrf.mxu0 }
 0x31e   : > { %15778 = vst [vmem:[#allocation65_spill] sm:$0xff] %v11854_v22 }
 0x31f   : > { %v11858_v0 = vld [vmem:[#allocation2 + $0x68] sm:$0xff] }
 0x320   : > { %v11860_v28 = vld [vmem:[#allocation2 + $0x68] sm:$0xff]  ;;  %v1760_v63 = vpop.f32.mrf.mxu3  ;;  %1972 = vmatmul.bf16.gmra.mxu0 %v11858_v0  ;;  %v1624_v52 = vshll.u32 %v11858_v0, 16  ;;  %v2044_v30 = vrot.slane %v11858_v0, 1 }
 0x321   : > { %v2770_v35 = vshrl.u32 %v11860_v28, 16  ;;  %v11867_v13 = vadd.f32 %v11783_v56, %v1760_v63  ;;  %v2773_v41 = vshll.u32 %v11860_v28, 16  ;;  %v3077_v58 = vrot.slane %v11860_v28, 2  ;;  %v11871_v11 = vld [vmem:[#allocation2 + $0x68] sm:$0xff] }
 0x322   : > { %v1626_v1 = vrot.slane %v1624_v52, 1  ;;  %v4110_v18 = vrot.slane %v11871_v11, 3  ;;  %v3459_v38 = vrot.slane %v11871_v11, 2 }
 0x323   : > { %15779 = vst [vmem:[#allocation66_spill] sm:$0xff] %v11867_v13  ;;  %v1243_v55 = vpop.f32.mrf.mxu2  ;;  %v2772_v27 = vrot.slane %v2770_v35, 1  ;;  %v2775_v32 = vrot.slane %v2773_v41, 2  ;;  %v11877_v56 = vsel %vm3053_vm3, %v3075_v31, %v3077_v58  ;;  %v11889_v31 = vsel %vm2018_vm2, %v2042_v3, %v2044_v30 }
 0x324   : > { %v1244_v10 = vadd.f32 %v1243_v55, %v11434_v43  ;;  %v1627_v13 = vsel %vm1519_vm1, %v1622_v48, %v1626_v1  ;;  %v2425_v43 = vsel %vm2018_vm2, %v2422_v39, %v2424_v45  ;;  %15780 = vst [vmem:[#allocation67_spill] sm:$0xff] %v11889_v31 }
 0x325   : > { %v11879_v63 = vpop.f32.mrf.mxu1  ;;  %1802 = vmatmul.bf16.gmra.mxu3 %v1627_v13  ;;  %v11883_v25 = vpop.f32.mrf.mxu0  ;;  %v2776_v24 = vor.u32 %v2775_v32, %v2772_v27  ;;  %v11899_v27 = vsel %vm3053_vm3, %v3457_v9, %v3459_v38 }
 0x326   : > { %v10642_v22 = vpack.c.bf16 %v1244_v10, %v1242_v14  ;;  %v11896_v10 = vsel %vm4088_vm5, %v4108_v44, %v4110_v18  ;;  %15782 = vst [vmem:[#allocation69_spill] sm:$0xff] %v11899_v27  ;;  %v1628_v44 = vshrl.u32 %v11858_v0, 16 }
 0x327   : > { %v11893_v36 = vsel %vm2661_vm4, %v2767_v37, %v2776_v24  ;;  %15781 = vst [vmem:[#allocation68_spill] sm:$0xff] %v11896_v10 }
 0x328   : > { %10686 = vst [vmem:[#allocation2 + $0x70] sm:$0xff] %v10642_v22   ;;  %2564 = vmatmul.bf16.gmra.mxu1 %v2425_v43  ;;  %2916 = vmatmul.bf16.gmra.mxu2 %v11426_v6  ;;  %v1763_v32 = vpop.f32.mrf.mxu3  ;;  %v1630_v43 = vor.u32 %v1628_v44, %v1626_v1  ;;  %v10234_v1 = vld [vmem:[%s15663_s4 + $0x170] sm:$0xff] }
 0x329   : > { %v11902_v52 = vadd.f32 %v11806_v2, %v1763_v32  ;;  %v10235_v2 = vld [vmem:[%s15663_s4 + $0x178] sm:$0xff]  ;;  %v15693_v32 = vrot.slane %v11860_v28, 1 }
 0x32a   : > { %3157 = vmatpush.bf16.msra.mxu0 %v10235_v2 }
 0x32b   : > { %15783 = vst [vmem:[#allocation70_spill] sm:$0xff] %v11902_v52  ;;  %v1246_v39 = vpop.f32.mrf.mxu2 }
 0x32c   : > { %v1247_v10 = vadd.f32 %v1246_v39, %v11461_v57  ;;  %v2427_v39 = vsel %vm2018_vm2, %v2424_v45, %v15693_v32  ;;  %v10233_v45 = vld [vmem:[%s15663_s4 + $0x168] sm:$0xff] }
 0x32d   : > { %v11904_v3 = vpop.f32.mrf.mxu1  ;;  %v11906_v22 = vpop.f32.mrf.mxu0 }
 0x32e   : > { %3158 = vmatpush.bf16.msra.mxu0 %v10234_v1 }
 0x32f   : > { %v11908_v35 = vld [vmem:[#allocation2 + $0x70] sm:$0xff] }
 0x330   : > { %v11910_v6 = vld [vmem:[#allocation2 + $0x70] sm:$0xff]  ;;  %v1765_v37 = vpop.f32.mrf.mxu3  ;;  %1977 = vmatmul.bf16.gmra.mxu0 %v11908_v35  ;;  %v1632_v9 = vshll.u32 %v11908_v35, 16  ;;  %v2046_v44 = vrot.slane %v11908_v35, 1 }
 0x331   : > { %v2779_v13 = vshrl.u32 %v11910_v6, 16  ;;  %v11920_v41 = vadd.f32 %v11833_v29, %v1765_v37  ;;  %v2782_v11 = vshll.u32 %v11910_v6, 16  ;;  %v3079_v55 = vrot.slane %v11910_v6, 2  ;;  %v11924_v48 = vld [vmem:[#allocation2 + $0x70] sm:$0xff] }
 0x332   : > { %v1634_v0 = vrot.slane %v1632_v9, 1  ;;  %3159 = vmatpush.bf16.msra.mxu0 %v10233_v45 }
 0x333   : > { %15784 = vst [vmem:[#allocation71_spill] sm:$0xff] %v11920_v41  ;;  %v1248_v14 = vpop.f32.mrf.mxu2  ;;  %v2781_v27 = vrot.slane %v2779_v13, 1  ;;  %v2784_v31 = vrot.slane %v2782_v11, 2  ;;  %v11930_v29 = vsel %vm3053_vm3, %v3077_v58, %v3079_v55  ;;  %v3461_v58 = vrot.slane %v11924_v48, 2 }
 0x334   : > { %v1249_v52 = vadd.f32 %v1248_v14, %v11479_v7  ;;  %v1635_v41 = vsel %vm1519_vm1, %v1630_v43, %v1634_v0  ;;  %v4112_v7 = vrot.slane %v11924_v48, 3  ;;  %v11947_v13 = vsel %vm2018_vm2, %v2044_v30, %v2046_v44  ;;  %v10231_v43 = vld [vmem:[%s15663_s4 + $0x158] sm:$0xff] }
 0x335   : > { %v11932_v37 = vpop.f32.mrf.mxu1  ;;  %1807 = vmatmul.bf16.gmra.mxu3 %v1635_v41  ;;  %v11939_v2 = vpop.f32.mrf.mxu0  ;;  %v2785_v57 = vor.u32 %v2784_v31, %v2781_v27  ;;  %15785 = vst [vmem:[#allocation72_spill] sm:$0xff] %v11947_v13  ;;  %v11957_v27 = vsel %vm3053_vm3, %v3459_v38, %v3461_v58 }
 0x336   : > { %v10647_v9 = vpack.c.bf16 %v1249_v52, %v1247_v10  ;;  %v11954_v31 = vsel %vm4088_vm5, %v4110_v18, %v4112_v7  ;;  %15787 = vst [vmem:[#allocation74_spill] sm:$0xff] %v11957_v27  ;;  %v15697_v27 = vrot.slane %v11910_v6, 1 }
 0x337   : > { %v11951_v10 = vsel %vm2661_vm4, %v2776_v24, %v2785_v57  ;;  %15786 = vst [vmem:[#allocation73_spill] sm:$0xff] %v11954_v31  ;;  %v10232_v24 = vld [vmem:[%s15663_s4 + $0x160] sm:$0xff] }
 0x338   : > { %10687 = vst [vmem:[#allocation2 + $0x78] sm:$0xff] %v10647_v9   ;;  %2569 = vmatmul.bf16.gmra.mxu1 %v2427_v39  ;;  %2921 = vmatmul.bf16.gmra.mxu2 %v11471_v20  ;;  %v1768_v52 = vpop.f32.mrf.mxu3 }
 0x339   : > { %v11963_v30 = vadd.f32 %v11856_v49, %v1768_v52  ;;  %3160 = vmatpush.bf16.msra.mxu0 %v10232_v24  ;;  %v1636_v49 = vshrl.u32 %v11908_v35, 16 }
 0x33b   : > { %15788 = vst [vmem:[#allocation75_spill] sm:$0xff] %v11963_v30  ;;  %v1251_v41 = vpop.f32.mrf.mxu2  ;;  %v1638_v32 = vor.u32 %v1636_v49, %v1634_v0  ;;  %v10230_v0 = vld [vmem:[%s15663_s4 + $0x150] sm:$0xff] }
 0x33c   : > { %v1252_v30 = vadd.f32 %v1251_v41, %v11506_v19 }
 0x33d   : > { %v11965_v20 = vpop.f32.mrf.mxu1  ;;  %v11970_v18 = vpop.f32.mrf.mxu0  ;;  %3161 = vmatpush.bf16.msra.mxu0 %v10231_v43 }
 0x33e   : > { %15789 = vst [vmem:[#allocation76_spill] sm:$0xff] %v11965_v20 }
 0x33f   : > { %v11972_v38 = vld [vmem:[#allocation2 + $0x78] sm:$0xff] }
 0x340   : > { %v11974_v11 = vld [vmem:[#allocation2 + $0x78] sm:$0xff]  ;;  %v1770_v48 = vpop.f32.mrf.mxu3  ;;  %1982 = vmatmul.bf16.gmra.mxu0 %v11972_v38  ;;  %v1640_v14 = vshll.u32 %v11972_v38, 16  ;;  %v15696_v49 = vrot.slane %v11972_v38, 1 }
 0x341   : > { %v2788_v1 = vshrl.u32 %v11974_v11, 16  ;;  %v11984_v9 = vadd.f32 %v11883_v25, %v1770_v48  ;;  %v2791_v39 = vshll.u32 %v11974_v11, 16  ;;  %v15698_v52 = vrot.slane %v11974_v11, 2  ;;  %v11988_v45 = vld [vmem:[#allocation2 + $0x78] sm:$0xff]  ;;  %3162 = vmatpush.bf16.msra.mxu0 %v10230_v0 }
 0x342   : > { %v1642_v35 = vrot.slane %v1640_v14, 1  ;;  %v15695_v41 = vrot.slane %v11988_v45, 3 }
 0x343   : > { %15790 = vst [vmem:[#allocation77_spill] sm:$0xff] %v11984_v9  ;;  %v1253_v24 = vpop.f32.mrf.mxu2  ;;  %v2790_v31 = vrot.slane %v2788_v1, 1  ;;  %v2793_v20 = vrot.slane %v2791_v39, 2  ;;  %v11996_v25 = vsel %vm3053_vm3, %v3079_v55, %v15698_v52  ;;  %v15694_v55 = vrot.slane %v11988_v45, 2 }
 0x344   : > { %v1254_v13 = vadd.f32 %v1253_v24, %v11524_v8  ;;  %v1643_v9 = vsel %vm1519_vm1, %v1638_v32, %v1642_v35  ;;  %v15791_v32 = vrot.slane %v11860_v28, 1  ;;  %v12029_v28 = vsel %vm4088_vm5, %v4112_v7, %v15695_v41 }
 0x345   : > { %v11998_v48 = vpop.f32.mrf.mxu1  ;;  %1812 = vmatmul.bf16.gmra.mxu3 %v1643_v9  ;;  %v12005_v19 = vpop.f32.mrf.mxu0  ;;  %v12007_v8 = vor.u32 %v2793_v20, %v2790_v31  ;;  %15793 = vst [vmem:[#allocation79_spill] sm:$0xff] %v12029_v28  ;;  %v10194_v20 = vld [vmem:[%s15663_s4 + $0xb8] sm:$0xff]  ;;  %v10228_v9 = vld [vmem:[%s15663_s4 + $0x140] sm:$0xff] }
 0x346   : > { %v10652_v14 = vpack.c.bf16 %v1254_v13, %v1252_v30  ;;  %v2429_v43 = vsel %vm2018_vm2, %v15791_v32, %v15697_v27  ;;  %v12019_v13 = vsel %vm2018_vm2, %v2046_v44, %v15696_v49  ;;  %v12034_v30 = vsel %vm3053_vm3, %v3461_v58, %v15694_v55  ;;  %2122 = vmatpush.bf16.msrb.mxu3 %v10194_v20  ;;  %v10193_v58 = vld [vmem:[%s15663_s4 + $0xb0] sm:$0xff] }
 0x347   : > { %15792 = vst [vmem:[#allocation78_spill] sm:$0xff] %v12019_v13  ;;  %v12024_v31 = vsel %vm2661_vm4, %v2785_v57, %v12007_v8  ;;  %v15699_v27 = vrot.slane %v11974_v11, 1 }
 0x348   : > { %10688 = vst [vmem:[#allocation2 + $0x80] sm:$0xff] %v10652_v14   ;;  %2574 = vmatmul.bf16.gmra.mxu1 %v2429_v43  ;;  %2926 = vmatmul.bf16.gmra.mxu2 %v11516_v33  ;;  %v1773_v44 = vpop.f32.mrf.mxu3  ;;  %v10229_v33 = vld [vmem:[%s15663_s4 + $0x148] sm:$0xff]  ;;  %v1644_v14 = vshrl.u32 %v11972_v38, 16 }
 0x349   : > { %15794 = vst [vmem:[#allocation80_spill] sm:$0xff] %v12034_v30  ;;  %v12043_v57 = vadd.f32 %v11906_v22, %v1773_v44  ;;  %3163 = vmatpush.bf16.msra.mxu0 %v10229_v33  ;;  %v10192_v43 = vld [vmem:[%s15663_s4 + $0xa8] sm:$0xff] }
 0x34a   : > { %2123 = vmatpush.bf16.msrb.mxu3 %v10193_v58  ;;  %v1646_v41 = vor.u32 %v1644_v14, %v1642_v35  ;;  %v10191_v35 = vld [vmem:[%s15663_s4 + $0xa0] sm:$0xff] }
 0x34b   : > { %15795 = vst [vmem:[#allocation81_spill] sm:$0xff] %v12043_v57  ;;  %v1256_v1 = vpop.f32.mrf.mxu2 }
 0x34c   : > { %v1257_v30 = vadd.f32 %v1256_v1, %v11551_v34 }
 0x34d   : > { %v12045_v7 = vpop.f32.mrf.mxu1  ;;  %v12053_v39 = vpop.f32.mrf.mxu0  ;;  %3164 = vmatpush.bf16.msra.mxu0 %v10228_v9 }
 0x34e   : > { %2124 = vmatpush.bf16.msrb.mxu3 %v10192_v43  ;;  %v15799_v43 = vrot.slane %v11910_v6, 1 }
 0x34f   : > { %v12055_v24 = vld [vmem:[#allocation2 + $0x80] sm:$0xff] }
 0x350   : > { %v12057_v0 = vld [vmem:[#allocation2 + $0x80] sm:$0xff]  ;;  %v1775_v22 = vpop.f32.mrf.mxu3  ;;  %1987 = vmatmul.bf16.gmra.mxu0 %v12055_v24  ;;  %v1648_v32 = vshll.u32 %v12055_v24, 16  ;;  %v2050_v14 = vrot.slane %v12055_v24, 1 }
 0x351   : > { %v2797_v44 = vshrl.u32 %v12057_v0, 16  ;;  %v12067_v20 = vadd.f32 %v11939_v2, %v1775_v22  ;;  %v2800_v33 = vshll.u32 %v12057_v0, 16  ;;  %v3083_v58 = vrot.slane %v12057_v0, 2  ;;  %v12071_v9 = vld [vmem:[#allocation2 + $0x80] sm:$0xff] }
 0x352   : > { %v1650_v49 = vrot.slane %v1648_v32, 1  ;;  %v15797_v2 = vrot.slane %v11974_v11, 2  ;;  %v3465_v1 = vrot.slane %v12071_v9, 2  ;;  %2125 = vmatpush.bf16.msrb.mxu3 %v10191_v35 }
 0x353   : > { %15796 = vst [vmem:[#allocation82_spill] sm:$0xff] %v12067_v20  ;;  %v1258_v55 = vpop.f32.mrf.mxu2  ;;  %v2799_v52 = vrot.slane %v2797_v44, 1  ;;  %v2802_v57 = vrot.slane %v2800_v33, 2  ;;  %v15800_v44 = vrot.slane %v11972_v38, 1 }
 0x354   : > { %v1259_v28 = vadd.f32 %v1258_v55, %v11579_v26  ;;  %v12079_v22 = vsel %vm3053_vm3, %v15797_v2, %v3083_v58  ;;  %v1651_v13 = vsel %vm1519_vm1, %v1646_v41, %v1650_v49  ;;  %v4116_v55 = vrot.slane %v12071_v9, 3  ;;  %v10189_v2 = vld [vmem:[%s15663_s4 + $0x90] sm:$0xff] }
 0x355   : > { %v12081_v20 = vpop.f32.mrf.mxu1  ;;  %1817 = vmatmul.bf16.gmra.mxu3 %v1651_v13  ;;  %v12088_v34 = vpop.f32.mrf.mxu0  ;;  %v2803_v26 = vor.u32 %v2802_v57, %v2799_v52  ;;  %v2431_v41 = vsel %vm2018_vm2, %v15799_v43, %v15699_v27  ;;  %v12100_v33 = vsel %vm2018_vm2, %v15800_v44, %v2050_v14  ;;  %v15802_v13 = vrot.slane %v11988_v45, 3  ;;  %v10190_v57 = vld [vmem:[%s15663_s4 + $0x98] sm:$0xff]  ;;  %v10188_v44 = vld [vmem:[%s15663_s4 + $0x88] sm:$0xff] }
 0x356   : > { %15798 = vst [vmem:[#allocation83_spill] sm:$0xff] %v12081_v20  ;;  %v10657_v32 = vpack.c.bf16 %v1259_v28, %v1257_v30  ;;  %v15804_v28 = vrot.slane %v11988_v45, 2  ;;  %2126 = vmatpush.bf16.msrb.mxu3 %v10190_v57 }
 0x357   : > { %15801 = vst [vmem:[#allocation84_spill] sm:$0xff] %v12100_v33  ;;  %v12105_v52 = vsel %vm2661_vm4, %v12007_v8, %v2803_v26  ;;  %v12110_v6 = vsel %vm4088_vm5, %v15802_v13, %v4116_v55 }
 0x358   : > { %10689 = vst [vmem:[#allocation2 + $0x88] sm:$0xff] %v10657_v32   ;;  %2579 = vmatmul.bf16.gmra.mxu1 %v2431_v41  ;;  %2931 = vmatmul.bf16.gmra.mxu2 %v11566_v46  ;;  %v12115_v38 = vsel %vm3053_vm3, %v15804_v28, %v3465_v1  ;;  %v1778_v30 = vpop.f32.mrf.mxu3 }
 0x359   : > { %15803 = vst [vmem:[#allocation85_spill] sm:$0xff] %v12110_v6  ;;  %v12121_v46 = vadd.f32 %v11970_v18, %v1778_v30  ;;  %v1652_v18 = vshrl.u32 %v12055_v24, 16  ;;  %v15700_v6 = vrot.slane %v12057_v0, 1 }
 0x35a   : > { %15805 = vst [vmem:[#allocation86_spill] sm:$0xff] %v12115_v38  ;;  %2127 = vmatpush.bf16.msrb.mxu3 %v10189_v2 }
 0x35b   : > { %15806 = vst [vmem:[#allocation87_spill] sm:$0xff] %v12121_v46  ;;  %v1261_v8 = vpop.f32.mrf.mxu2  ;;  %v1654_v38 = vor.u32 %v1652_v18, %v1650_v49  ;;  %v10187_v49 = vld [vmem:[%s15663_s4 + $0x80] sm:$0xff] }
 0x35c   : > { %v1262_v33 = vadd.f32 %v1261_v8, %v11612_v60  ;;  %v15810_v8 = vrot.slane %v11974_v11, 1 }
 0x35d   : > { %v12123_v9 = vpop.f32.mrf.mxu1  ;;  %v12128_v45 = vpop.f32.mrf.mxu0 }
 0x35e   : > { %15807 = vst [vmem:[#allocation88_spill] sm:$0xff] %v12123_v9  ;;  %2128 = vmatpush.bf16.msrb.mxu3 %v10188_v44 }
 0x35f   : > { %v12130_v35 = vld [vmem:[#allocation2 + $0x88] sm:$0xff] }
 0x360   : > { %v12132_v32 = vld [vmem:[#allocation2 + $0x88] sm:$0xff]  ;;  %v1780_v43 = vpop.f32.mrf.mxu3  ;;  %1992 = vmatmul.bf16.gmra.mxu0 %v12130_v35  ;;  %v1656_v41 = vshll.u32 %v12130_v35, 16  ;;  %v2052_v18 = vrot.slane %v12130_v35, 1 }
 0x361   : > { %v2806_v13 = vshrl.u32 %v12132_v32, 16  ;;  %v12142_v28 = vadd.f32 %v12005_v19, %v1780_v43  ;;  %v2809_v30 = vshll.u32 %v12132_v32, 16  ;;  %v3085_v57 = vrot.slane %v12132_v32, 2  ;;  %v12146_v2 = vld [vmem:[#allocation2 + $0x88] sm:$0xff] }
 0x362   : > { %v12148_v24 = vrot.slane %v1656_v41, 1  ;;  %2129 = vmatpush.bf16.msrb.mxu3 %v10187_v49  ;;  %v12174_v44 = vsel %vm2018_vm2, %v2050_v14, %v2052_v18 }
 0x363   : > { %15808 = vst [vmem:[#allocation89_spill] sm:$0xff] %v12142_v28  ;;  %v1263_v27 = vpop.f32.mrf.mxu2  ;;  %v2808_v46 = vrot.slane %v2806_v13, 1  ;;  %v2811_v19 = vrot.slane %v2809_v30, 2  ;;  %v12154_v43 = vsel %vm3053_vm3, %v3083_v58, %v3085_v57  ;;  %v3467_v58 = vrot.slane %v12146_v2, 2 }
 0x364   : > { %v1264_v9 = vadd.f32 %v1263_v27, %v11642_v61  ;;  %v1659_v20 = vsel %vm1519_vm1, %v1654_v38, %v12148_v24  ;;  %v4118_v27 = vrot.slane %v12146_v2, 3  ;;  %v2433_v38 = vsel %vm2018_vm2, %v15810_v8, %v15700_v6 }
 0x365   : > { %v12156_v28 = vpop.f32.mrf.mxu1  ;;  %1822 = vmatmul.bf16.gmra.mxu3 %v1659_v20  ;;  %v12164_v60 = vpop.f32.mrf.mxu0  ;;  %v2812_v61 = vor.u32 %v2811_v19, %v2808_v46  ;;  %v10268_v20 = vld [vmem:[%s15663_s4 + $0x1f8] sm:$0xff]  ;;  %v12187_v11 = vsel %vm3053_vm3, %v3465_v1, %v3467_v58  ;;  %v2434_v6 = vrot.slane %v12132_v32, 1 }
 0x366   : > { %15809 = vst [vmem:[#allocation90_spill] sm:$0xff] %v12156_v28  ;;  %v10662_v41 = vpack.c.bf16 %v1264_v9, %v1262_v33  ;;  %v12184_v46 = vsel %vm4088_vm5, %v4116_v55, %v4118_v27  ;;  %3933 = vmatpush.bf16.msra.mxu1 %v10268_v20  ;;  %v10266_v55 = vld [vmem:[%s15663_s4 + $0x1e8] sm:$0xff] }
 0x367   : > { %v12181_v33 = vsel %vm2661_vm4, %v2803_v26, %v2812_v61  ;;  %15811 = vst [vmem:[#allocation91_spill] sm:$0xff] %v12184_v46 }
 0x368   : > { %10690 = vst [vmem:[#allocation2 + $0x90] sm:$0xff] %v10662_v41   ;;  %2584 = vmatmul.bf16.gmra.mxu1 %v2433_v38  ;;  %2936 = vmatmul.bf16.gmra.mxu2 %v11631_v40  ;;  %v1783_v9 = vpop.f32.mrf.mxu3  ;;  %v10267_v40 = vld [vmem:[%s15663_s4 + $0x1f0] sm:$0xff] }
 0x369   : > { %15812 = vst [vmem:[#allocation92_spill] sm:$0xff] %v12187_v11  ;;  %v12190_v14 = vadd.f32 %v12053_v39, %v1783_v9 }
 0x36a   : > { %3934 = vmatpush.bf16.msra.mxu1 %v10267_v40 }
 0x36b   : > { %15813 = vst [vmem:[#allocation93_spill] sm:$0xff] %v12190_v14  ;;  %v1266_v13 = vpop.f32.mrf.mxu2  ;;  %v1660_v14 = vshrl.u32 %v12130_v35, 16 }
 0x36c   : > { %v1267_v9 = vadd.f32 %v1266_v13, %v11677_v15 }
 0x36d   : > { %v12195_v30 = vpop.f32.mrf.mxu1  ;;  %v12197_v26 = vpop.f32.mrf.mxu0 }
 0x36e   : > { %15814 = vst [vmem:[#allocation94_spill] sm:$0xff] %v12195_v30  ;;  %3935 = vmatpush.bf16.msra.mxu1 %v10266_v55 }
 0x36f   : > { %v1409_v1 = vld [vmem:[#allocation2 + $0x90] sm:$0x1] }
 0x370   : > { %v12202_v19 = vld [vmem:[#allocation2 + $0x90] sm:$0xff]  ;;  %v1499_v39 = vunpack.c.l.b16 %v1409_v1  ;;  %v1785_v49 = vpop.f32.mrf.mxu3  ;;  %3165 = vmatmul.bf16.vlgmr.msra.gmra.mxu0 %v11323_v47 }
 0x371   : > { %v2815_v41 = vshrl.u32 %v12202_v19, 16  ;;  %v2818_v8 = vshll.u32 %v12202_v19, 16  ;;  %v15701_v38 = vrot.slane %v12202_v19, 2  ;;  %v12208_v20 = vld [vmem:[#allocation2 + $0x90] sm:$0xff]  ;;  %v12212_v40 = vadd.f32 %v12088_v34, %v1785_v49  ;;  %v10265_v34 = vld [vmem:[%s15663_s4 + $0x1e0] sm:$0xff] }
 0x372   : > { %v1518_v30 = vpack.c.b16 %v1499_v39, %v1499_v39  ;;  %v4120_v49 = vrot.slane %v12208_v20, 3  ;;  %3936 = vmatpush.bf16.msra.mxu1 %v10265_v34  ;;  %v10262_v34 = vld [vmem:[%s15663_s4 + $0x1c8] sm:$0xff] }
 0x373   : > { %v1268_v1 = vpop.f32.mrf.mxu2  ;;  %v2817_v11 = vrot.slane %v2815_v41, 1  ;;  %v2820_v47 = vrot.slane %v2818_v8, 2  ;;  %v12218_v28 = vsel %vm3053_vm3, %v3085_v57, %v15701_v38  ;;  %v3469_v41 = vrot.slane %v12208_v20, 2 }
 0x374   : > { %v1269_v46 = vadd.f32 %v1268_v1, %v11704_v53  ;;  %v1664_v15 = vshll.u32 %v1518_v30, 16  ;;  %v2054_v39 = vrot.slane %v1518_v30, 1  ;;  %v15816_v53 = vrot.slane %v12057_v0, 1 }
 0x375   : > { %v12225_v13 = vpop.f32.mrf.mxu1  ;;  %v12227_v55 = vor.u32 %v2820_v47, %v2817_v11  ;;  %v12231_v8 = vpop.f32.mrf.mxu0  ;;  %v1662_v1 = vor.u32 %v1660_v14, %v12148_v24  ;;  %v10264_v24 = vld [vmem:[%s15663_s4 + $0x1d8] sm:$0xff]  ;;  %v10263_v14 = vld [vmem:[%s15663_s4 + $0x1d0] sm:$0xff] }
 0x376   : > { %15815 = vst [vmem:[#allocation95_spill] sm:$0xff] %v12225_v13  ;;  %v10667_v57 = vpack.c.bf16 %v1269_v46, %v1267_v9  ;;  %v2435_v35 = vsel %vm2018_vm2, %v15816_v53, %v2434_v6  ;;  %v1666_v38 = vrot.slane %v1664_v15, 1  ;;  %v12244_v30 = vsel %vm2018_vm2, %v2052_v18, %v2054_v39  ;;  %3937 = vmatpush.bf16.msra.mxu1 %v10264_v24  ;;  %v10692_v15 = vld [vmem:[#allocation2] sm:$0xf0] }
 0x377   : > { %v12241_v11 = vsel %vm2661_vm4, %v2812_v61, %v12227_v55  ;;  %v12247_v46 = vsel %vm4088_vm5, %v4118_v27, %v4120_v49  ;;  %v12250_v9 = vsel %vm3053_vm3, %v3467_v58, %v3469_v41 }
 0x378   : > { %15817 = vst [vmem:[#allocation96_spill] sm:$0xff] %v12247_v46  ;;  %2589 = vmatmul.bf16.gmra.mxu1 %v2435_v35  ;;  %2941 = vmatmul.bf16.gmra.mxu2 %v11693_v16  ;;  %v1667_v0 = vsel %vm1519_vm1, %v1662_v1, %v1666_v38  ;;  %v1788_v61 = vpop.f32.mrf.mxu3 }
 0x379   : > { %15818 = vst [vmem:[#allocation97_spill] sm:$0xff] %v12250_v9  ;;  %1827 = vmatmul.bf16.gmra.mxu3 %v1667_v0  ;;  %v12258_v18 = vadd.f32 %v12128_v45, %v1788_v61  ;;  %v10693_v45 = vld [vmem:[#allocation2] sm:$0xe] }
 0x37a   : > { %10691 = vst [vmem:[#allocation2 + $0x98] sm:$0xff] %v10667_v57   ;;  %3938 = vmatpush.bf16.msra.mxu1 %v10263_v14  ;;  %v10694_v24 = vor.u32 %v10693_v45, %v10692_v15 }
 0x37b   : > { %v1271_v27 = vpop.f32.mrf.mxu2 }
 0x37c   : > { %v1272_v58 = vadd.f32 %v1271_v27, %v11730_v12  ;;  %v2019_v45 = vrot.slane %v10694_v24, 1 }
 0x37d   : > { %v12264_v16 = vpop.f32.mrf.mxu1  ;;  %v1963_v47 = vpop.f32.mrf.mxu0 }
 0x37e   : > { %15819 = vst [vmem:[#allocation98_spill] sm:$0xff] %v12264_v16  ;;  %v1315_v38 = vpack.c.bf16 %v1272_v58, %v1272_v58  ;;  %3939 = vmatpush.bf16.msra.mxu1 %v10262_v34  ;;  %v2436_v58 = vrot.slane %v12202_v19, 1 }
 0x380   : > { %1356 = vst [vmem:[#allocation2 + $0xa0] sm:$0xf] %v1315_v38  ;;  %v1790_v53 = vpop.f32.mrf.mxu3  ;;  %3170 = vmatmul.bf16.gmra.mxu0 %v11364_v62 }
 0x381   : > { %v2641_v39 = vld [vmem:[#allocation2 + $0x98] sm:$0x3]  ;;  %v12275_v0 = vadd.f32 %v12164_v60, %v1790_v53  ;;  %v10261_v60 = vld [vmem:[%s15663_s4 + $0x1c0] sm:$0xff] }
 0x382   : > { %v12269_v57 = vld [vmem:[#allocation2 + $0x98] sm:$0xff]  ;;  %v2659_v12 = vunpack.c.l.b16 %v2641_v39  ;;  %3940 = vmatpush.bf16.msra.mxu1 %v10261_v60  ;;  %v15822_v39 = vrot.slane %v12202_v19, 2 }
 0x383   : > { %v15703_v35 = vrot.slane %v12269_v57, 3  ;;  %v15702_v1 = vrot.slane %v12269_v57, 2  ;;  %v1273_v27 = vpop.f32.mrf.mxu2 }
 0x384   : > { %v12277_v61 = vpack.c.b16 %v2659_v12, %v2659_v12  ;;  %v15823_v12 = vrot.slane %v11266_v51, 1  ;;  %v2293_v27 = vld [vmem:[#allocation2 + $0x98] sm:$0x1] }
 0x385   : > { %v12283_v14 = vsel %vm4088_vm5, %v4120_v49, %v15703_v35  ;;  %v12288_v62 = vsel %vm3053_vm3, %v3469_v41, %v15702_v1  ;;  %v12294_v15 = vpop.f32.mrf.mxu1  ;;  %v1965_v34 = vpop.f32.mrf.mxu0  ;;  %v2437_v41 = vsel %vm2018_vm2, %v2434_v6, %v2436_v58  ;;  %v15829_v35 = vld [vmem:[#allocation21_spill] sm:$0xff] }
 0x386   : > { %15820 = vst [vmem:[#allocation99_spill] sm:$0xff] %v12283_v14  ;;  %v3089_v38 = vrot.slane %v12277_v61, 2  ;;  %v2021_v53 = vsel %vm2018_vm2, %v2019_v45, %v15823_v12 }
 0x387   : > { %15821 = vst [vmem:[#allocation100_spill] sm:$0xff] %v12288_v62 }
 0x388   : > { %v12299_v49 = vsel %vm3053_vm3, %v15822_v39, %v3089_v38  ;;  %2594 = vmatmul.bf16.gmra.mxu1 %v2437_v41  ;;  %2946 = vmatmul.bf16.gmra.mxu2 %v11745_v4  ;;  %v1793_v24 = vpop.f32.mrf.mxu3  ;;  %v2383_v38 = vunpack.c.l.b16 %v2293_v27  ;;  %v15827_v27 = vld [vmem:[#allocation20_spill] sm:$0xff] }
 0x389   : > { %2130 = vmatmul.bf16.vlgmr.msrb.gmra.mxu3 %v2021_v53  ;;  %v12309_v60 = vadd.f32 %v12197_v26, %v1793_v24 }
 0x38a   : > { %v2402_v6 = vpack.c.b16 %v2383_v38, %v2383_v38 }
 0x38b   : > { %15824 = vst [vmem:[#allocation101_spill] sm:$0xff] %v12309_v60  ;;  %v12311_v19 = vpop.f32.mrf.mxu2 }
 0x38c   : > { %v2438_v45 = vrot.slane %v2402_v6, 1  ;;  %v3698_v6 = vshrl.u32 %v15829_v35, 16 }
 0x38d   : > { %v12313_v39 = vpop.f32.mrf.mxu1  ;;  %v1968_v32 = vpop.f32.mrf.mxu0 }
 0x38e   : > { %15825 = vst [vmem:[#allocation102_spill] sm:$0xff] %v12313_v39  ;;  %v2439_v53 = vsel %vm2018_vm2, %v2436_v58, %v2438_v45  ;;  %v3701_v39 = vshll.u32 %v15829_v35, 16 }
 0x390   : > { %v1795_v41 = vpop.f32.mrf.mxu3  ;;  %3175 = vmatmul.bf16.gmra.mxu0 %v11412_v21 }
 0x391   : > { %v12317_v51 = vadd.f32 %v12231_v8, %v1795_v41  ;;  %v10708_v8 = vld [vmem:[#allocation2 + $0x18] sm:$0xff] }
 0x392   : > { %v3706_v41 = vshrl.u32 %v10708_v8, 16  ;;  %v3709_v1 = vshll.u32 %v10708_v8, 16 }
 0x393   : > { %15826 = vst [vmem:[#allocation103_spill] sm:$0xff] %v12317_v51  ;;  %v12319_v4 = vpop.f32.mrf.mxu2 }
 0x394   : > { %v3708_v16 = vrot.slane %v3706_v41, 2  ;;  %v3711_v58 = vrot.slane %v3709_v1, 3  ;;  %v15833_v1 = vld [vmem:[#allocation22_spill] sm:$0xff] }
 0x395   : > { %v12321_v12 = vpop.f32.mrf.mxu1  ;;  %v1970_v26 = vpop.f32.mrf.mxu0 }
 0x396   : > { %v3712_v13 = vor.u32 %v3711_v58, %v3708_v16 }
 0x398   : > { %2599 = vmatmul.bf16.gmra.mxu1 %v2439_v53  ;;  %2951 = vmatmul.bf16.gmra.mxu2 %v11793_v59  ;;  %v1798_v24 = vpop.f32.mrf.mxu3  ;;  %v15831_v53 = vld [vmem:[#allocation28_spill] sm:$0xff] }
 0x399   : > { %2135 = vmatmul.bf16.gmra.mxu3 %v15827_v27  ;;  %v12326_v38 = vadd.f32 %v1963_v47, %v1798_v24  ;;  %v3700_v27 = vrot.slane %v3698_v6, 2  ;;  %v3703_v47 = vrot.slane %v3701_v39, 3  ;;  %v10709_v39 = vld [vmem:[#allocation2 + $0x20] sm:$0xff] }
 0x39a   : > { %v3718_v16 = vshll.u32 %v10709_v39, 16 }
 0x39b   : > { %15828 = vst [vmem:[#allocation20_spill] sm:$0xff] %v12326_v38  ;;  %v12328_v21 = vpop.f32.mrf.mxu2  ;;  %v3704_v8 = vor.u32 %v3703_v47, %v3700_v27 }
 0x39c   : > { %v3720_v27 = vrot.slane %v3718_v16, 3 }
 0x39d   : > { %v1973_v62 = vpop.f32.mrf.mxu0  ;;  %v12332_v45 = vpop.f32.mrf.mxu1  ;;  %v3713_v35 = vsel %vm3696_vm6, %v3704_v8, %v3712_v13  ;;  %v15836_v8 = vld [vmem:[#allocation32_spill] sm:$0xff] }
 0x39e   : > { %15830 = vst [vmem:[#allocation21_spill] sm:$0xff] %v12332_v45 }
 0x3a0   : > { %v1800_v59 = vpop.f32.mrf.mxu3  ;;  %3180 = vmatmul.bf16.gmra.mxu0 %v15831_v53 }
 0x3a1   : > { %v12335_v24 = vadd.f32 %v1965_v34, %v1800_v59  ;;  %v3715_v59 = vshrl.u32 %v10709_v39, 16  ;;  %v15839_v39 = vld [vmem:[#allocation25_spill] sm:$0xff] }
 0x3a3   : > { %15832 = vst [vmem:[#allocation28_spill] sm:$0xff] %v12335_v24  ;;  %v12337_v9 = vpop.f32.mrf.mxu2  ;;  %v3717_v53 = vrot.slane %v3715_v59, 2 }
 0x3a5   : > { %v1975_v14 = vpop.f32.mrf.mxu0  ;;  %v12342_v45 = vpop.f32.mrf.mxu1 }
 0x3a6   : > { %15834 = vst [vmem:[#allocation22_spill] sm:$0xff] %v12342_v45 }
 0x3a8   : > { %2956 = vmatmul.bf16.gmra.mxu2 %v11843_v50  ;;  %3941 = vmatmul.bf16.vlgmr.msra.gmra.mxu1 %v3713_v35  ;;  %v1803_v41 = vpop.f32.mrf.mxu3 }
 0x3a9   : > { %2140 = vmatmul.bf16.gmra.mxu3 %v15833_v1  ;;  %v12344_v6 = vadd.f32 %v1968_v32, %v1803_v41  ;;  %v3721_v1 = vor.u32 %v3720_v27, %v3717_v53 }
 0x3ab   : > { %15835 = vst [vmem:[#allocation104_spill] sm:$0xff] %v12344_v6  ;;  %v12346_v34 = vpop.f32.mrf.mxu2  ;;  %v3722_v41 = vsel %vm3696_vm6, %v3712_v13, %v3721_v1  ;;  %v15842_v13 = vld [vmem:[#allocation36_spill] sm:$0xff] }
 0x3ad   : > { %v1978_v58 = vpop.f32.mrf.mxu0  ;;  %v12353_v46 = vpop.f32.mrf.mxu1 }
 0x3ae   : > { %15838 = vst [vmem:[#allocation105_spill] sm:$0xff] %v12353_v46 }
 0x3b0   : > { %v1805_v47 = vpop.f32.mrf.mxu3  ;;  %3185 = vmatmul.bf16.gmra.mxu0 %v15836_v8 }
 0x3b1   : > { %v12349_v50 = vadd.f32 %v1970_v26, %v1805_v47  ;;  %v10710_v26 = vld [vmem:[#allocation2 + $0x28] sm:$0xff] }
 0x3b2   : > { %v3724_v47 = vshrl.u32 %v10710_v26, 16  ;;  %v3727_v8 = vshll.u32 %v10710_v26, 16  ;;  %v15845_v26 = vld [vmem:[#allocation29_spill] sm:$0xff] }
 0x3b3   : > { %15837 = vst [vmem:[#allocation32_spill] sm:$0xff] %v12349_v50  ;;  %v12351_v35 = vpop.f32.mrf.mxu2 }
 0x3b4   : > { %v3726_v27 = vrot.slane %v3724_v47, 2  ;;  %v3729_v46 = vrot.slane %v3727_v8, 3 }
 0x3b5   : > { %v1980_v32 = vpop.f32.mrf.mxu0  ;;  %v12362_v50 = vpop.f32.mrf.mxu1 }
 0x3b6   : > { %15841 = vst [vmem:[#allocation106_spill] sm:$0xff] %v12362_v50 }
 0x3b8   : > { %2961 = vmatmul.bf16.gmra.mxu2 %v11893_v36  ;;  %3946 = vmatmul.bf16.gmra.mxu1 %v3722_v41  ;;  %v1808_v59 = vpop.f32.mrf.mxu3 }
 0x3b9   : > { %2145 = vmatmul.bf16.gmra.mxu3 %v15839_v39  ;;  %v12358_v16 = vadd.f32 %v1973_v62, %v1808_v59  ;;  %v3730_v39 = vor.u32 %v3729_v46, %v3726_v27 }
 0x3bb   : > { %15840 = vst [vmem:[#allocation25_spill] sm:$0xff] %v12358_v16  ;;  %v12360_v6 = vpop.f32.mrf.mxu2  ;;  %v3731_v59 = vsel %vm3696_vm6, %v3721_v1, %v3730_v39  ;;  %v15847_v1 = vld [vmem:[#allocation40_spill] sm:$0xff] }
 0x3bd   : > { %v1983_v53 = vpop.f32.mrf.mxu0  ;;  %v12370_v16 = vpop.f32.mrf.mxu1 }
 0x3be   : > { %15844 = vst [vmem:[#allocation107_spill] sm:$0xff] %v12370_v16 }
 0x3c0   : > { %v1810_v24 = vpop.f32.mrf.mxu3  ;;  %3190 = vmatmul.bf16.gmra.mxu0 %v15842_v13 }
 0x3c1   : > { %v12365_v36 = vadd.f32 %v1975_v14, %v1810_v24  ;;  %v10711_v14 = vld [vmem:[#allocation2 + $0x30] sm:$0xff] }
 0x3c2   : > { %v3733_v24 = vshrl.u32 %v10711_v14, 16  ;;  %v3736_v13 = vshll.u32 %v10711_v14, 16  ;;  %v15850_v14 = vld [vmem:[#allocation33_spill] sm:$0xff] }
 0x3c3   : > { %15843 = vst [vmem:[#allocation36_spill] sm:$0xff] %v12365_v36  ;;  %v12367_v41 = vpop.f32.mrf.mxu2 }
 0x3c4   : > { %v3735_v46 = vrot.slane %v3733_v24, 2  ;;  %v3738_v27 = vrot.slane %v3736_v13, 3 }
 0x3c5   : > { %v1985_v62 = vpop.f32.mrf.mxu0  ;;  %v12379_v16 = vpop.f32.mrf.mxu1 }
 0x3c6   : > { %15848 = vst [vmem:[#allocation40_spill] sm:$0xff] %v12379_v16 }
 0x3c8   : > { %2966 = vmatmul.bf16.gmra.mxu2 %v11951_v10  ;;  %3951 = vmatmul.bf16.gmra.mxu1 %v3731_v59  ;;  %v1813_v47 = vpop.f32.mrf.mxu3 }
 0x3c9   : > { %2150 = vmatmul.bf16.gmra.mxu3 %v15845_v26  ;;  %v12374_v8 = vadd.f32 %v1978_v58, %v1813_v47  ;;  %v3739_v26 = vor.u32 %v3738_v27, %v3735_v46 }
 0x3cb   : > { %15846 = vst [vmem:[#allocation29_spill] sm:$0xff] %v12374_v8  ;;  %v12376_v50 = vpop.f32.mrf.mxu2  ;;  %v3740_v47 = vsel %vm3696_vm6, %v3730_v39, %v3739_v26 }
 0x3cd   : > { %v1988_v36 = vpop.f32.mrf.mxu0 }
 0x3d0   : > { %v1815_v38 = vpop.f32.mrf.mxu3  ;;  %3195 = vmatmul.bf16.gmra.mxu0 %v15847_v1  ;;  %v10712_v1 = vld [vmem:[#allocation2 + $0x38] sm:$0xff] }
 0x3d1   : > { %v12381_v10 = vadd.f32 %v1980_v32, %v1815_v38  ;;  %v3742_v16 = vshrl.u32 %v10712_v1, 16  ;;  %v3745_v38 = vshll.u32 %v10712_v1, 16  ;;  %v12392_v32 = vpop.f32.mrf.mxu1  ;;  %v15855_v1 = vrot.slane %v12269_v57, 3 }
 0x3d2   : > { %15852 = vst [vmem:[#allocation109_spill] sm:$0xff] %v12392_v32 }
 0x3d3   : > { %15849 = vst [vmem:[#allocation108_spill] sm:$0xff] %v12381_v10  ;;  %v12383_v59 = vpop.f32.mrf.mxu2  ;;  %v3676_v10 = vld [vmem:[#allocation2 + $0xa0] sm:$0x7]  ;;  %v3744_v51 = vrot.slane %v3742_v16, 2  ;;  %v3747_v39 = vrot.slane %v3745_v38, 3 }
 0x3d4   : > { %v3694_v46 = vunpack.c.l.b16 %v3676_v10 }
 0x3d5   : > { %v1990_v58 = vpop.f32.mrf.mxu0 }
 0x3d6   : > { %v12394_v45 = vpack.c.b16 %v3694_v46, %v3694_v46 }
 0x3d8   : > { %2971 = vmatmul.bf16.gmra.mxu2 %v12024_v31  ;;  %3956 = vmatmul.bf16.gmra.mxu1 %v3740_v47  ;;  %v1818_v24 = vpop.f32.mrf.mxu3  ;;  %v15853_v47 = vld [vmem:[#allocation44_spill] sm:$0xff] }
 0x3d9   : > { %2155 = vmatmul.bf16.gmra.mxu3 %v15850_v14  ;;  %v12388_v13 = vadd.f32 %v1983_v53, %v1818_v24  ;;  %v4124_v53 = vrot.slane %v12394_v45, 3  ;;  %v12407_v10 = vpop.f32.mrf.mxu1 }
 0x3da   : > { %15857 = vst [vmem:[#allocation111_spill] sm:$0xff] %v12407_v10 }
 0x3db   : > { %15851 = vst [vmem:[#allocation33_spill] sm:$0xff] %v12388_v13  ;;  %v12390_v8 = vpop.f32.mrf.mxu2  ;;  %v3748_v13 = vor.u32 %v3747_v39, %v3744_v51  ;;  %v12405_v32 = vsel %vm4088_vm5, %v15855_v1, %v4124_v53  ;;  %v10276_v51 = vld [vmem:[%s15663_s4 + $0x238] sm:$0xff] }
 0x3dc   : > { %15856 = vst [vmem:[#allocation110_spill] sm:$0xff] %v12405_v32  ;;  %4192 = vmatpush.bf16.msra.mxu2 %v10276_v51 }
 0x3dd   : > { %v1993_v27 = vpop.f32.mrf.mxu0  ;;  %v3749_v38 = vsel %vm3696_vm6, %v3739_v26, %v3748_v13 }
 0x3e0   : > { %v1820_v31 = vpop.f32.mrf.mxu3  ;;  %3200 = vmatmul.bf16.gmra.mxu0 %v15853_v47  ;;  %v10713_v47 = vld [vmem:[#allocation2 + $0x40] sm:$0xff] }
 0x3e1   : > { %v12397_v14 = vadd.f32 %v1985_v62, %v1820_v31  ;;  %v15858_v62 = vld [vmem:[#allocation37_spill] sm:$0xff]  ;;  %v3751_v53 = vshrl.u32 %v10713_v47, 16  ;;  %v3754_v1 = vshll.u32 %v10713_v47, 16 }
 0x3e3   : > { %15854 = vst [vmem:[#allocation44_spill] sm:$0xff] %v12397_v14  ;;  %v12400_v24 = vpop.f32.mrf.mxu2  ;;  %v3753_v26 = vrot.slane %v3751_v53, 2  ;;  %v10273_v53 = vld [vmem:[%s15663_s4 + $0x220] sm:$0xff] }
 0x3e5   : > { %v1995_v16 = vpop.f32.mrf.mxu0 }
 0x3e8   : > { %2976 = vmatmul.bf16.gmra.mxu2 %v12105_v52  ;;  %3961 = vmatmul.bf16.gmra.mxu1 %v3749_v38  ;;  %v1823_v46 = vpop.f32.mrf.mxu3  ;;  %v10275_v52 = vld [vmem:[%s15663_s4 + $0x230] sm:$0xff]  ;;  %v3756_v38 = vrot.slane %v3754_v1, 3 }
 0x3e9   : > { %2160 = vmatmul.bf16.gmra.mxu3 %v15858_v62  ;;  %v12415_v39 = vadd.f32 %v1988_v36, %v1823_v46  ;;  %v12424_v62 = vpop.f32.mrf.mxu1  ;;  %4193 = vmatpush.bf16.msra.mxu2 %v10275_v52  ;;  %v10274_v36 = vld [vmem:[%s15663_s4 + $0x228] sm:$0xff] }
 0x3ea   : > { %15861 = vst [vmem:[#allocation113_spill] sm:$0xff] %v12424_v62  ;;  %v15864_v52 = vld [vmem:[#allocation41_spill] sm:$0xff] }
 0x3eb   : > { %15859 = vst [vmem:[#allocation37_spill] sm:$0xff] %v12415_v39  ;;  %v12417_v31 = vpop.f32.mrf.mxu2 }
 0x3ec   : > { %15860 = vst [vmem:[#allocation112_spill] sm:$0xff] %v12417_v31  ;;  %v3757_v31 = vor.u32 %v3756_v38, %v3753_v26  ;;  %v10714_v38 = vld [vmem:[#allocation2 + $0x48] sm:$0xff] }
 0x3ed   : > { %v12419_v10 = vpop.f32.mrf.mxu0  ;;  %4194 = vmatpush.bf16.msra.mxu2 %v10274_v36  ;;  %v3760_v36 = vshrl.u32 %v10714_v38, 16 }
 0x3ee   : > { %v3758_v1 = vsel %vm3696_vm6, %v3748_v13, %v3757_v31 }
 0x3ef   : > { %v3762_v13 = vrot.slane %v3760_v36, 2 }
 0x3f0   : > { %v1825_v46 = vpop.f32.mrf.mxu3  ;;  %3205 = vmatmul.bf16.gmra.mxu0 %v11728_v54  ;;  %v10272_v54 = vld [vmem:[%s15663_s4 + $0x218] sm:$0xff] }
 0x3f1   : > { %v12430_v47 = vadd.f32 %v1990_v58, %v1825_v46  ;;  %4195 = vmatpush.bf16.msra.mxu2 %v10273_v53  ;;  %v12445_v58 = vpop.f32.mrf.mxu1  ;;  %v3763_v46 = vshll.u32 %v10714_v38, 16  ;;  %v10271_v53 = vld [vmem:[%s15663_s4 + $0x210] sm:$0xff] }
 0x3f2   : > { %15865 = vst [vmem:[#allocation41_spill] sm:$0xff] %v12445_v58 }
 0x3f3   : > { %15862 = vst [vmem:[#allocation114_spill] sm:$0xff] %v12430_v47  ;;  %v12432_v51 = vpop.f32.mrf.mxu2 }
 0x3f4   : > { %15863 = vst [vmem:[#allocation115_spill] sm:$0xff] %v12432_v51 }
 0x3f5   : > { %v12434_v32 = vpop.f32.mrf.mxu0  ;;  %4196 = vmatpush.bf16.msra.mxu2 %v10272_v54 }
 0x3f8   : > { %2981 = vmatmul.bf16.gmra.mxu2 %v12181_v33  ;;  %3966 = vmatmul.bf16.gmra.mxu1 %v3758_v1  ;;  %v3765_v1 = vrot.slane %v3763_v46, 3 }
 0x3f9   : > { %2165 = vmatmul.bf16.gmra.mxu3 %v15864_v52  ;;  %4197 = vmatpush.bf16.msra.mxu2 %v10271_v53  ;;  %v10270_v52 = vld [vmem:[%s15663_s4 + $0x208] sm:$0xff] }
 0x3fa   : > { %v15871_v53 = vld [vmem:[#allocation45_spill] sm:$0xff] }
 0x3fb   : > { %v12447_v26 = vpop.f32.mrf.mxu2 }
 0x3fc   : > { %15866 = vst [vmem:[#allocation116_spill] sm:$0xff] %v12447_v26  ;;  %v1828_v62 = vpop.f32.mrf.mxu3 }
 0x3fd   : > { %v12449_v51 = vadd.f32 %v1993_v27, %v1828_v62  ;;  %v12451_v33 = vpop.f32.mrf.mxu0  ;;  %v3766_v27 = vor.u32 %v3765_v1, %v3762_v13  ;;  %v12462_v62 = vpop.f32.mrf.mxu1  ;;  %4198 = vmatpush.bf16.msra.mxu2 %v10270_v52  ;;  %v10715_v13 = vld [vmem:[#allocation2 + $0x50] sm:$0xff]  ;;  %v2827_v52 = vshll.u32 %v12277_v61, 16 }
 0x3fe   : > { %15869 = vst [vmem:[#allocation119_spill] sm:$0xff] %v12462_v62  ;;  %v3769_v1 = vshrl.u32 %v10715_v13, 16 }
 0x3ff   : > { %15867 = vst [vmem:[#allocation117_spill] sm:$0xff] %v12449_v51  ;;  %v3767_v46 = vsel %vm3696_vm6, %v3757_v31, %v3766_v27 }
 0x400   : > { %3210 = vmatmul.bf16.gmra.mxu0 %v11777_v23  ;;  %v10269_v23 = vld [vmem:[%s15663_s4 + $0x200] sm:$0xff] }
 0x401   : > { %4199 = vmatpush.bf16.msra.mxu2 %v10269_v23 }
 0x403   : > { %v12460_v38 = vpop.f32.mrf.mxu2 }
 0x404   : > { %15868 = vst [vmem:[#allocation118_spill] sm:$0xff] %v12460_v38  ;;  %v1830_v54 = vpop.f32.mrf.mxu3  ;;  %v15872_v38 = vld [vmem:[#allocation48_spill] sm:$0xff] }
 0x405   : > { %v12464_v58 = vadd.f32 %v1995_v16, %v1830_v54  ;;  %v12466_v36 = vpop.f32.mrf.mxu0  ;;  %v2824_v16 = vshrl.u32 %v12277_v61, 16  ;;  %v3772_v54 = vshll.u32 %v10715_v13, 16 }
 0x407   : > { %15870 = vst [vmem:[#allocation120_spill] sm:$0xff] %v12464_v58  ;;  %v12479_v58 = vpop.f32.mrf.mxu1  ;;  %v2826_v23 = vrot.slane %v2824_v16, 1  ;;  %v3774_v47 = vrot.slane %v3772_v54, 3 }
 0x408   : > { %2986 = vmatmul.bf16.gmra.mxu2 %v12241_v11  ;;  %3971 = vmatmul.bf16.gmra.mxu1 %v3767_v46  ;;  %15873 = vst [vmem:[#allocation45_spill] sm:$0xff] %v12479_v58  ;;  %v3771_v11 = vrot.slane %v3769_v1, 2  ;;  %v15874_v58 = vld [vmem:[#allocation49_spill] sm:$0xff] }
 0x409   : > { %2170 = vmatmul.bf16.gmra.mxu3 %v15871_v53  ;;  %v2829_v53 = vrot.slane %v2827_v52, 2 }
 0x40a   : > { %v3775_v13 = vor.u32 %v3774_v47, %v3771_v11  ;;  %v15877_v47 = vld [vmem:[#allocation50_spill] sm:$0xff] }
 0x40b   : > { %v12474_v62 = vpop.f32.mrf.mxu2  ;;  %v2830_v61 = vor.u32 %v2829_v53, %v2826_v23 }
 0x40c   : > { %v2131_v31 = vpop.f32.mrf.mxu3 }
 0x40d   : > { %v2221_v26 = vadd.f32 %v2131_v31, %v15872_v38  ;;  %v12481_v51 = vpop.f32.mrf.mxu0  ;;  %v2831_v16 = vsel %vm2661_vm4, %v12227_v55, %v2830_v61  ;;  %v15878_v55 = vld [vmem:[#allocation53_spill] sm:$0xff] }
 0x40f   : > { %v2605_v46 = vadd.f32 %v11779_v5, %v2221_v26  ;;  %v15875_v5 = vld [vmem:[#allocation59_spill] sm:$0xff] }
 0x410   : > { %3215 = vmatmul.bf16.gmra.mxu0 %v11827_v17  ;;  %v3776_v17 = vsel %vm3696_vm6, %v3766_v27, %v3775_v13 }
 0x411   : > { %v2997_v39 = vadd.f32 %v12311_v19, %v2605_v46  ;;  %v12498_v19 = vpop.f32.mrf.mxu1 }
 0x412   : > { %15876 = vst [vmem:[#allocation48_spill] sm:$0xff] %v12498_v19 }
 0x413   : > { %v12486_v14 = vpop.f32.mrf.mxu2  ;;  %v12489_v38 = vadd.f32 %v12419_v10, %v2997_v39 }
 0x414   : > { %v2133_v31 = vpop.f32.mrf.mxu3 }
 0x415   : > { %v2222_v60 = vadd.f32 %v2133_v31, %v15874_v58  ;;  %v12492_v1 = vpop.f32.mrf.mxu0  ;;  %v10716_v58 = vld [vmem:[#allocation2 + $0x58] sm:$0xff] }
 0x416   : > { %v3778_v52 = vshrl.u32 %v10716_v58, 16  ;;  %v3781_v54 = vshll.u32 %v10716_v58, 16 }
 0x417   : > { %v2606_v26 = vadd.f32 %v15875_v5, %v2222_v60 }
 0x418   : > { %2991 = vmatmul.bf16.gmra.mxu2 %v2831_v16  ;;  %3976 = vmatmul.bf16.gmra.mxu1 %v3776_v17  ;;  %v3780_v53 = vrot.slane %v3778_v52, 2  ;;  %v3783_v61 = vrot.slane %v3781_v54, 3  ;;  %v15880_v17 = vld [vmem:[#allocation54_spill] sm:$0xff] }
 0x419   : > { %2175 = vmatmul.bf16.gmra.mxu3 %v15877_v47  ;;  %v2998_v10 = vadd.f32 %v12319_v4, %v2606_v26  ;;  %v12511_v31 = vpop.f32.mrf.mxu1 }
 0x41a   : > { %15879 = vst [vmem:[#allocation49_spill] sm:$0xff] %v12511_v31  ;;  %v3784_v26 = vor.u32 %v3783_v61, %v3780_v53 }
 0x41b   : > { %v12502_v39 = vpop.f32.mrf.mxu2  ;;  %v12505_v60 = vadd.f32 %v12434_v32, %v2998_v10  ;;  %v15881_v10 = vld [vmem:[#allocation65_spill] sm:$0xff] }
 0x41c   : > { %v2136_v11 = vpop.f32.mrf.mxu3 }
 0x41d   : > { %v2223_v46 = vadd.f32 %v2136_v11, %v15878_v55  ;;  %v3181_v27 = vpop.f32.mrf.mxu0  ;;  %v10717_v55 = vld [vmem:[#allocation2 + $0x60] sm:$0xff] }
 0x41f   : > { %v2607_v23 = vadd.f32 %v11829_v42, %v2223_v46  ;;  %v3785_v42 = vsel %vm3696_vm6, %v3775_v13, %v3784_v26  ;;  %v3790_v46 = vshll.u32 %v10717_v55, 16  ;;  %v15885_v13 = vld [vmem:[#allocation58_spill] sm:$0xff] }
 0x420   : > { %3220 = vmatmul.bf16.gmra.mxu0 %v11877_v56  ;;  %v15882_v56 = vld [vmem:[#allocation23_spill] sm:$0xff] }
 0x421   : > { %v2999_v4 = vadd.f32 %v12328_v21, %v2607_v23  ;;  %v15883_v21 = vld [vmem:[#allocation55_spill] sm:$0xff]  ;;  %v12529_v53 = vpop.f32.mrf.mxu1 }
 0x422   : > { %15884 = vst [vmem:[#allocation59_spill] sm:$0xff] %v12529_v53 }
 0x423   : > { %v12513_v5 = vpop.f32.mrf.mxu2  ;;  %v12516_v32 = vadd.f32 %v12451_v33, %v2999_v4  ;;  %v3787_v33 = vshrl.u32 %v10717_v55, 16 }
 0x424   : > { %v2138_v16 = vpop.f32.mrf.mxu3 }
 0x425   : > { %v2224_v47 = vadd.f32 %v2138_v16, %v15880_v17  ;;  %v3183_v52 = vpop.f32.mrf.mxu0  ;;  %v3789_v17 = vrot.slane %v3787_v33, 2 }
 0x427   : > { %v2608_v58 = vadd.f32 %v15881_v10, %v2224_v47  ;;  %v3792_v47 = vrot.slane %v3790_v46, 3 }
 0x428   : > { %3981 = vmatmul.bf16.gmra.mxu1 %v3785_v42  ;;  %4200 = vmatmul.bf16.vlgmr.msra.gmra.mxu2 %v15882_v56 }
 0x429   : > { %2180 = vmatmul.bf16.gmra.mxu3 %v15883_v21  ;;  %v3000_v54 = vadd.f32 %v12337_v9, %v2608_v58  ;;  %v3793_v58 = vor.u32 %v3792_v47, %v3789_v17  ;;  %v15887_v21 = vld [vmem:[#allocation60_spill] sm:$0xff]  ;;  %v12541_v55 = vpop.f32.mrf.mxu1 }
 0x42a   : > { %15888 = vst [vmem:[#allocation53_spill] sm:$0xff] %v12541_v55  ;;  %v15891_v47 = vld [vmem:[#allocation64_spill] sm:$0xff] }
 0x42b   : > { %v12524_v11 = vpop.f32.mrf.mxu2  ;;  %v12527_v23 = vadd.f32 %v12466_v36, %v3000_v54  ;;  %v3794_v33 = vsel %vm3696_vm6, %v3784_v26, %v3793_v58 }
 0x42c   : > { %v2141_v61 = vpop.f32.mrf.mxu3 }
 0x42d   : > { %v2225_v4 = vadd.f32 %v2141_v61, %v15885_v13  ;;  %v3186_v10 = vpop.f32.mrf.mxu0 }
 0x42f   : > { %v2609_v16 = vadd.f32 %v11879_v63, %v2225_v4 }
 0x430   : > { %3225 = vmatmul.bf16.gmra.mxu0 %v11930_v29  ;;  %v15889_v29 = vld [vmem:[#allocation26_spill] sm:$0xff] }
 0x431   : > { %v3001_v9 = vadd.f32 %v12346_v34, %v2609_v16  ;;  %v15890_v34 = vld [vmem:[#allocation61_spill] sm:$0xff] }
 0x433   : > { %v12536_v42 = vadd.f32 %v12481_v51, %v3001_v9  ;;  %v12538_v36 = vpop.f32.mrf.mxu2  ;;  %v10718_v51 = vld [vmem:[#allocation2 + $0x68] sm:$0xff] }
 0x434   : > { %15886 = vst [vmem:[#allocation50_spill] sm:$0xff] %v12538_v36  ;;  %v2143_v56 = vpop.f32.mrf.mxu3  ;;  %v3796_v61 = vshrl.u32 %v10718_v51, 16  ;;  %v3799_v13 = vshll.u32 %v10718_v51, 16  ;;  %v15894_v51 = vld [vmem:[#allocation76_spill] sm:$0xff]  ;;  %v15973_v36 = vld [vmem:[#allocation114_spill] sm:$0xff] }
 0x435   : > { %v2226_v54 = vadd.f32 %v2143_v56, %v15887_v21  ;;  %v3188_v16 = vpop.f32.mrf.mxu0 }
 0x436   : > { %v3798_v56 = vrot.slane %v3796_v61, 2  ;;  %v3801_v21 = vrot.slane %v3799_v13, 3  ;;  %v15896_v61 = vld [vmem:[#allocation30_spill] sm:$0xff]  ;;  %v15897_v13 = vld [vmem:[#allocation67_spill] sm:$0xff] }
 0x437   : > { %v2610_v63 = vadd.f32 %v11904_v3, %v2226_v54  ;;  %v12555_v54 = vpop.f32.mrf.mxu1 }
 0x438   : > { %3986 = vmatmul.bf16.gmra.mxu1 %v3794_v33  ;;  %4205 = vmatmul.bf16.gmra.mxu2 %v15889_v29  ;;  %15892 = vst [vmem:[#allocation54_spill] sm:$0xff] %v12555_v54  ;;  %v15893_v29 = vld [vmem:[#allocation66_spill] sm:$0xff] }
 0x439   : > { %2185 = vmatmul.bf16.gmra.mxu3 %v15890_v34  ;;  %v3002_v46 = vadd.f32 %v12351_v35, %v2610_v63  ;;  %v3802_v63 = vor.u32 %v3801_v21, %v3798_v56 }
 0x43b   : > { %v12549_v4 = vadd.f32 %v12492_v1, %v3002_v46  ;;  %v12552_v3 = vpop.f32.mrf.mxu2 }
 0x43c   : > { %v2146_v17 = vpop.f32.mrf.mxu3 }
 0x43d   : > { %v2227_v9 = vadd.f32 %v2146_v17, %v15891_v47  ;;  %v3191_v46 = vpop.f32.mrf.mxu0  ;;  %v3803_v47 = vsel %vm3696_vm6, %v3793_v58, %v3802_v63 }
 0x43f   : > { %v2611_v26 = vadd.f32 %v11932_v37, %v2227_v9 }
 0x440   : > { %3230 = vmatmul.bf16.gmra.mxu0 %v11996_v25 }
 0x441   : > { %v3003_v35 = vadd.f32 %v12360_v6, %v2611_v26  ;;  %v12569_v6 = vpop.f32.mrf.mxu1 }
 0x443   : > { %v12559_v33 = vadd.f32 %v3181_v27, %v3003_v35  ;;  %v12564_v37 = vpop.f32.mrf.mxu2  ;;  %v10719_v27 = vld [vmem:[#allocation2 + $0x70] sm:$0xff] }
 0x444   : > { %v2148_v1 = vpop.f32.mrf.mxu3  ;;  %15895 = vst [vmem:[#allocation65_spill] sm:$0xff] %v12564_v37  ;;  %v3805_v9 = vshrl.u32 %v10719_v27, 16  ;;  %v3808_v26 = vshll.u32 %v10719_v27, 16  ;;  %v15898_v35 = vld [vmem:[#allocation70_spill] sm:$0xff] }
 0x445   : > { %v2228_v34 = vadd.f32 %v2148_v1, %v15893_v29 }
 0x446   : > { %v3807_v29 = vrot.slane %v3805_v9, 2  ;;  %v15900_v9 = vld [vmem:[#allocation34_spill] sm:$0xff] }
 0x447   : > { %v2612_v17 = vadd.f32 %v15894_v51, %v2228_v34  ;;  %v3810_v34 = vrot.slane %v3808_v26, 3  ;;  %v3193_v51 = vpop.f32.mrf.mxu0 }
 0x448   : > { %3991 = vmatmul.bf16.gmra.mxu1 %v3803_v47  ;;  %4210 = vmatmul.bf16.gmra.mxu2 %v15896_v61 }
 0x449   : > { %2190 = vmatmul.bf16.gmra.mxu3 %v15897_v13  ;;  %v3004_v25 = vadd.f32 %v12367_v41, %v2612_v17  ;;  %v3811_v17 = vor.u32 %v3810_v34, %v3807_v29  ;;  %v12581_v13 = vpop.f32.mrf.mxu1 }
 0x44b   : > { %v12571_v56 = vadd.f32 %v3183_v52, %v3004_v25  ;;  %v12577_v41 = vpop.f32.mrf.mxu2  ;;  %v15899_v25 = vld [vmem:[#allocation71_spill] sm:$0xff] }
 0x44c   : > { %v2151_v21 = vpop.f32.mrf.mxu3 }
 0x44d   : > { %v2229_v1 = vadd.f32 %v2151_v21, %v15898_v35 }
 0x44f   : > { %v2613_v58 = vadd.f32 %v11998_v48, %v2229_v1  ;;  %v3812_v48 = vsel %vm3696_vm6, %v3802_v63, %v3811_v17  ;;  %v12589_v26 = vpop.f32.mrf.mxu0 }
 0x450   : > { %3235 = vmatmul.bf16.gmra.mxu0 %v12079_v22  ;;  %v15901_v22 = vld [vmem:[#allocation72_spill] sm:$0xff] }
 0x451   : > { %v3005_v47 = vadd.f32 %v12376_v50, %v2613_v58  ;;  %v12596_v63 = vpop.f32.mrf.mxu1 }
 0x453   : > { %v12579_v61 = vadd.f32 %v3186_v10, %v3005_v47  ;;  %v10720_v10 = vld [vmem:[#allocation2 + $0x78] sm:$0xff]  ;;  %v12593_v29 = vpop.f32.mrf.mxu2 }
 0x454   : > { %v2153_v52 = vpop.f32.mrf.mxu3  ;;  %v3814_v35 = vshrl.u32 %v10720_v10, 16  ;;  %v3817_v1 = vshll.u32 %v10720_v10, 16  ;;  %15902 = vst [vmem:[#allocation23_spill] sm:$0xff] %v12593_v29 }
 0x455   : > { %v2230_v27 = vadd.f32 %v2153_v52, %v15899_v25  ;;  %v15904_v52 = vld [vmem:[#allocation83_spill] sm:$0xff] }
 0x457   : > { %v2614_v21 = vadd.f32 %v12045_v7, %v2230_v27  ;;  %v15903_v7 = vld [vmem:[#allocation75_spill] sm:$0xff]  ;;  %v3816_v27 = vrot.slane %v3814_v35, 2 }
 0x458   : > { %3996 = vmatmul.bf16.gmra.mxu1 %v3812_v48  ;;  %4215 = vmatmul.bf16.gmra.mxu2 %v15900_v9  ;;  %v3819_v48 = vrot.slane %v3817_v1, 3 }
 0x459   : > { %2195 = vmatmul.bf16.gmra.mxu3 %v15901_v22  ;;  %v3006_v50 = vadd.f32 %v12383_v59, %v2614_v21  ;;  %v12610_v35 = vpop.f32.mrf.mxu1 }
 0x45a   : > { %v3820_v21 = vor.u32 %v3819_v48, %v3816_v27 }
 0x45b   : > { %v12591_v58 = vadd.f32 %v3188_v16, %v3006_v50  ;;  %v12603_v16 = vpop.f32.mrf.mxu0  ;;  %v15905_v50 = vld [vmem:[#allocation77_spill] sm:$0xff]  ;;  %v12606_v54 = vpop.f32.mrf.mxu2 }
 0x45c   : > { %v2156_v34 = vpop.f32.mrf.mxu3  ;;  %15906 = vst [vmem:[#allocation55_spill] sm:$0xff] %v12606_v54 }
 0x45d   : > { %v2231_v47 = vadd.f32 %v2156_v34, %v15903_v7  ;;  %v15907_v34 = vld [vmem:[#allocation88_spill] sm:$0xff] }
 0x45f   : > { %v2615_v25 = vadd.f32 %v15904_v52, %v2231_v47  ;;  %v3821_v47 = vsel %vm3696_vm6, %v3811_v17, %v3820_v21  ;;  %v10721_v52 = vld [vmem:[#allocation2 + $0x80] sm:$0xff] }
 0x460   : > { %3240 = vmatmul.bf16.gmra.mxu0 %v12154_v43  ;;  %v15908_v43 = vld [vmem:[#allocation38_spill] sm:$0xff]  ;;  %v3826_v27 = vshll.u32 %v10721_v52, 16 }
 0x461   : > { %v3007_v59 = vadd.f32 %v12390_v8, %v2615_v25  ;;  %v15909_v8 = vld [vmem:[#allocation78_spill] sm:$0xff]  ;;  %v3823_v25 = vshrl.u32 %v10721_v52, 16 }
 0x463   : > { %v12601_v9 = vadd.f32 %v3191_v46, %v3007_v59  ;;  %v10260_v46 = vld [vmem:[%s15663_s4 + $0x1b8] sm:$0xff]  ;;  %v15910_v59 = vld [vmem:[#allocation81_spill] sm:$0xff] }
 0x464   : > { %v2158_v22 = vpop.f32.mrf.mxu3  ;;  %3541 = vmatpush.bf16.msra.mxu3 %v10260_v46  ;;  %v15912_v46 = vld [vmem:[#allocation82_spill] sm:$0xff] }
 0x465   : > { %v2232_v10 = vadd.f32 %v2158_v22, %v15905_v50  ;;  %v12623_v50 = vpop.f32.mrf.mxu0 }
 0x467   : > { %v2616_v7 = vadd.f32 %v15907_v34, %v2232_v10  ;;  %v3825_v10 = vrot.slane %v3823_v25, 2  ;;  %v3828_v34 = vrot.slane %v3826_v27, 3  ;;  %v10257_v25 = vld [vmem:[%s15663_s4 + $0x1a0] sm:$0xff]  ;;  %v15913_v27 = vld [vmem:[#allocation42_spill] sm:$0xff] }
 0x468   : > { %4001 = vmatmul.bf16.gmra.mxu1 %v3821_v47  ;;  %4220 = vmatmul.bf16.gmra.mxu2 %v15908_v43  ;;  %v10259_v47 = vld [vmem:[%s15663_s4 + $0x1b0] sm:$0xff]  ;;  %v12628_v43 = vpop.f32.mrf.mxu2 }
 0x469   : > { %2200 = vmatmul.bf16.gmra.mxu3 %v15909_v8  ;;  %v3008_v1 = vadd.f32 %v12400_v24, %v2616_v7  ;;  %15911 = vst [vmem:[#allocation58_spill] sm:$0xff] %v12628_v43  ;;  %v10258_v24 = vld [vmem:[%s15663_s4 + $0x1a8] sm:$0xff]  ;;  %v3829_v7 = vor.u32 %v3828_v34, %v3825_v10  ;;  %v10256_v10 = vld [vmem:[%s15663_s4 + $0x198] sm:$0xff]  ;;  %v3835_v34 = vshll.u32 %v12146_v2, 16 }
 0x46a   : > { %3542 = vmatpush.bf16.msra.mxu3 %v10259_v47 }
 0x46b   : > { %v12618_v48 = vadd.f32 %v3193_v51, %v3008_v1  ;;  %v12634_v51 = vpop.f32.mrf.mxu1  ;;  %v3830_v52 = vsel %vm3696_vm6, %v3820_v21, %v3829_v7  ;;  %v3832_v21 = vshrl.u32 %v12146_v2, 16  ;;  %v10254_v2 = vld [vmem:[%s15663_s4 + $0x188] sm:$0xff] }
 0x46c   : > { %v2161_v17 = vpop.f32.mrf.mxu3 }
 0x46d   : > { %v12621_v22 = vadd.f32 %v2161_v17, %v15910_v59  ;;  %v15914_v17 = vld [vmem:[#allocation84_spill] sm:$0xff] }
 0x46e   : > { %3543 = vmatpush.bf16.msra.mxu3 %v10258_v24 }
 0x470   : > { %3245 = vmatmul.bf16.gmra.mxu0 %v12218_v28  ;;  %v12643_v28 = vpop.f32.mrf.mxu0  ;;  %v12647_v59 = vpop.f32.mrf.mxu2 }
 0x471   : > { %15915 = vst [vmem:[#allocation60_spill] sm:$0xff] %v12647_v59 }
 0x472   : > { %3544 = vmatpush.bf16.msra.mxu3 %v10257_v25  ;;  %v10255_v25 = vld [vmem:[%s15663_s4 + $0x190] sm:$0xff] }
 0x473   : > { %v12654_v47 = vpop.f32.mrf.mxu1 }
 0x474   : > { %v2163_v8 = vpop.f32.mrf.mxu3 }
 0x475   : > { %v12637_v1 = vadd.f32 %v2163_v8, %v15912_v46  ;;  %v15916_v8 = vld [vmem:[#allocation87_spill] sm:$0xff] }
 0x476   : > { %3545 = vmatpush.bf16.msra.mxu3 %v10256_v10 }
 0x478   : > { %4006 = vmatmul.bf16.gmra.mxu1 %v3830_v52  ;;  %4225 = vmatmul.bf16.gmra.mxu2 %v15913_v27  ;;  %v3834_v52 = vrot.slane %v3832_v21, 2  ;;  %v3837_v27 = vrot.slane %v3835_v34, 3  ;;  %v12666_v53 = vpop.f32.mrf.mxu2 }
 0x479   : > { %2205 = vmatmul.bf16.gmra.mxu3 %v15914_v17  ;;  %v3206_v17 = vpop.f32.mrf.mxu0  ;;  %15917 = vst [vmem:[#allocation26_spill] sm:$0xff] %v12666_v53 }
 0x47a   : > { %3546 = vmatpush.bf16.msra.mxu3 %v10255_v25  ;;  %v3838_v55 = vor.u32 %v3837_v27, %v3834_v52  ;;  %v15919_v25 = vld [vmem:[#allocation46_spill] sm:$0xff]  ;;  %v3841_v52 = vshrl.u32 %v12208_v20, 16  ;;  %v3844_v27 = vshll.u32 %v12208_v20, 16 }
 0x47b   : > { %v12671_v21 = vpop.f32.mrf.mxu1 }
 0x47c   : > { %v2166_v24 = vpop.f32.mrf.mxu3  ;;  %v3839_v34 = vsel %vm3696_vm6, %v3829_v7, %v3838_v55  ;;  %v3843_v53 = vrot.slane %v3841_v52, 2 }
 0x47d   : > { %v12657_v46 = vadd.f32 %v2166_v24, %v15916_v8  ;;  %v15918_v8 = vld [vmem:[#allocation89_spill] sm:$0xff] }
 0x47e   : > { %3547 = vmatpush.bf16.msra.mxu3 %v10254_v2  ;;  %v15920_v2 = vld [vmem:[#allocation93_spill] sm:$0xff] }
 0x480   : > { %3250 = vmatmul.bf16.gmra.mxu0 %v12299_v49  ;;  %v10253_v49 = vld [vmem:[%s15663_s4 + $0x180] sm:$0xff]  ;;  %v12684_v7 = vpop.f32.mrf.mxu2 }
 0x481   : > { %15921 = vst [vmem:[#allocation61_spill] sm:$0xff] %v12684_v7 }
 0x482   : > { %3548 = vmatpush.bf16.msra.mxu3 %v10253_v49 }
 0x483   : > { %v12687_v59 = vpop.f32.mrf.mxu1 }
 0x484   : > { %v2168_v24 = vpop.f32.mrf.mxu3 }
 0x485   : > { %v12669_v10 = vadd.f32 %v2168_v24, %v15918_v8  ;;  %v12681_v24 = vpop.f32.mrf.mxu0 }
 0x488   : > { %4011 = vmatmul.bf16.gmra.mxu1 %v3839_v34  ;;  %4230 = vmatmul.bf16.gmra.mxu2 %v15919_v25  ;;  %v3846_v34 = vrot.slane %v3844_v27, 3 }
 0x489   : > { %2210 = vmatmul.bf16.gmra.mxu3 %v12174_v44 }
 0x48a   : > { %v3847_v49 = vor.u32 %v3846_v34, %v3843_v53 }
 0x48c   : > { %v2171_v8 = vpop.f32.mrf.mxu3 }
 0x48d   : > { %v2237_v31 = vadd.f32 %v2171_v8, %v15920_v2  ;;  %v3211_v54 = vpop.f32.mrf.mxu0  ;;  %v3848_v8 = vsel %vm3696_vm6, %v3838_v55, %v3847_v49  ;;  %v12696_v2 = vpop.f32.mrf.mxu2 }
 0x48e   : > { %15922 = vst [vmem:[#allocation64_spill] sm:$0xff] %v12696_v2 }
 0x48f   : > { %v2621_v19 = vadd.f32 %v12294_v15, %v2237_v31  ;;  %v15923_v15 = vld [vmem:[#allocation51_spill] sm:$0xff]  ;;  %v12700_v31 = vpop.f32.mrf.mxu1 }
 0x491   : > { %v3013_v44 = vadd.f32 %v12474_v62, %v2621_v19  ;;  %v3850_v62 = vshrl.u32 %v12269_v57, 16  ;;  %v3853_v19 = vshll.u32 %v12269_v57, 16 }
 0x493   : > { %v12690_v25 = vadd.f32 %v3206_v17, %v3013_v44  ;;  %v3852_v17 = vrot.slane %v3850_v62, 2  ;;  %v3855_v55 = vrot.slane %v3853_v19, 3  ;;  %v15926_v62 = vld [vmem:[#allocation24_spill] sm:$0xff] }
 0x494   : > { %v2173_v43 = vpop.f32.mrf.mxu3 }
 0x495   : > { %v12693_v20 = vadd.f32 %v2173_v43, %v12212_v40  ;;  %v12706_v52 = vpop.f32.mrf.mxu0  ;;  %v12709_v34 = vpop.f32.mrf.mxu2 }
 0x496   : > { %15924 = vst [vmem:[#allocation66_spill] sm:$0xff] %v12709_v34 }
 0x498   : > { %4016 = vmatmul.bf16.gmra.mxu1 %v3848_v8  ;;  %4235 = vmatmul.bf16.gmra.mxu2 %v15923_v15  ;;  %v12713_v8 = vpop.f32.mrf.mxu1 }
 0x499   : > { %2215 = vmatmul.bf16.gmra.mxu3 %v12244_v30  ;;  %v3856_v30 = vor.u32 %v3855_v55, %v3852_v17 }
 0x49c   : > { %v2176_v53 = vpop.f32.mrf.mxu3 }
 0x49d   : > { %v2239_v40 = vadd.f32 %v2176_v53, %v12258_v18  ;;  %v3857_v18 = vsel %vm3696_vm6, %v3847_v49, %v3856_v30  ;;  %v3216_v19 = vpop.f32.mrf.mxu0  ;;  %v3862_v53 = vshll.u32 %v12394_v45, 16 }
 0x49f   : > { %v2623_v43 = vadd.f32 %v12321_v12, %v2239_v40  ;;  %v15925_v12 = vld [vmem:[#allocation56_spill] sm:$0xff] }
 0x4a0   : > { %v12726_v55 = vpop.f32.mrf.mxu1 }
 0x4a1   : > { %v3015_v27 = vadd.f32 %v12502_v39, %v2623_v43  ;;  %v3859_v39 = vshrl.u32 %v12394_v45, 16  ;;  %v15928_v43 = vld [vmem:[#allocation101_spill] sm:$0xff]  ;;  %v15932_v45 = vld [vmem:[#allocation103_spill] sm:$0xff] }
 0x4a3   : > { %v12711_v44 = vadd.f32 %v3211_v54, %v3015_v27  ;;  %v12723_v54 = vpop.f32.mrf.mxu2  ;;  %v3861_v49 = vrot.slane %v3859_v39, 2  ;;  %v15935_v39 = vld [vmem:[#allocation62_spill] sm:$0xff] }
 0x4a4   : > { %v2178_v15 = vpop.f32.mrf.mxu3  ;;  %15927 = vst [vmem:[#allocation76_spill] sm:$0xff] %v12723_v54 }
 0x4a5   : > { %v12716_v2 = vadd.f32 %v2178_v15, %v12275_v0  ;;  %v15929_v0 = vld [vmem:[#allocation22_spill] sm:$0xff]  ;;  %v3864_v15 = vrot.slane %v3862_v53, 3  ;;  %v12732_v34 = vpop.f32.mrf.mxu0  ;;  %v15936_v53 = vld [vmem:[#allocation27_spill] sm:$0xff] }
 0x4a6   : > { %15931 = vst [vmem:[#allocation67_spill] sm:$0xff] %v12732_v34 }
 0x4a8   : > { %4021 = vmatmul.bf16.gmra.mxu1 %v3857_v18  ;;  %4240 = vmatmul.bf16.gmra.mxu2 %v15925_v12  ;;  %v3865_v12 = vor.u32 %v3864_v15, %v3861_v49 }
 0x4a9   : > { %3549 = vmatmul.bf16.vlgmr.msra.gmra.mxu3 %v15926_v62 }
 0x4ab   : > { %v12737_v54 = vpop.f32.mrf.mxu2 }
 0x4ac   : > { %v2181_v40 = vpop.f32.mrf.mxu3  ;;  %15934 = vst [vmem:[#allocation71_spill] sm:$0xff] %v12737_v54  ;;  %v15946_v54 = vld [vmem:[#allocation104_spill] sm:$0xff] }
 0x4ad   : > { %v2241_v17 = vadd.f32 %v2181_v40, %v15928_v43  ;;  %v3866_v40 = vsel %vm3696_vm6, %v3856_v30, %v3865_v12  ;;  %v12740_v43 = vpop.f32.mrf.mxu1  ;;  %v15941_v12 = vld [vmem:[#allocation28_spill] sm:$0xff] }
 0x4af   : > { %v2625_v27 = vadd.f32 %v15929_v0, %v2241_v17  ;;  %v3221_v0 = vpop.f32.mrf.mxu0 }
 0x4b1   : > { %v3017_v18 = vadd.f32 %v12524_v11, %v2625_v27  ;;  %v15938_v27 = vld [vmem:[#allocation106_spill] sm:$0xff] }
 0x4b3   : > { %v12730_v62 = vadd.f32 %v3216_v19, %v3017_v18  ;;  %v15937_v19 = vld [vmem:[#allocation20_spill] sm:$0xff]  ;;  %v12746_v15 = vpop.f32.mrf.mxu2 }
 0x4b4   : > { %v2183_v7 = vpop.f32.mrf.mxu3  ;;  %15939 = vst [vmem:[#allocation34_spill] sm:$0xff] %v12746_v15 }
 0x4b5   : > { %15930 = vst [vmem:[#allocation30_spill] sm:$0xff] %v12730_v62  ;;  %v12735_v29 = vadd.f32 %v2183_v7, %v15932_v45  ;;  %v15981_v62 = vld [vmem:[#allocation99_spill] sm:$0xff] }
 0x4b7   : > { %15933 = vst [vmem:[#allocation70_spill] sm:$0xff] %v12735_v29 }
 0x4b8   : > { %4026 = vmatmul.bf16.gmra.mxu1 %v3866_v40  ;;  %4245 = vmatmul.bf16.gmra.mxu2 %v15935_v39  ;;  %v12754_v40 = vpop.f32.mrf.mxu0  ;;  %v15944_v39 = vld [vmem:[#allocation68_spill] sm:$0xff] }
 0x4b9   : > { %3554 = vmatmul.bf16.gmra.mxu3 %v15936_v53  ;;  %15943 = vst [vmem:[#allocation83_spill] sm:$0xff] %v12754_v40  ;;  %v15945_v53 = vld [vmem:[#allocation31_spill] sm:$0xff]  ;;  %v15951_v40 = vld [vmem:[#allocation73_spill] sm:$0xff] }
 0x4bc   : > { %v2186_v11 = vpop.f32.mrf.mxu3 }
 0x4bd   : > { %v2243_v17 = vadd.f32 %v2186_v11, %v15937_v19  ;;  %v4201_v11 = vpop.f32.mrf.mxu2 }
 0x4bf   : > { %v2627_v49 = vadd.f32 %v15938_v27, %v2243_v17  ;;  %v15947_v27 = vld [vmem:[#allocation40_spill] sm:$0xff] }
 0x4c1   : > { %v3019_v7 = vadd.f32 %v12552_v3, %v2627_v49 }
 0x4c3   : > { %v12749_v18 = vadd.f32 %v3221_v0, %v3019_v7  ;;  %v3226_v0 = vpop.f32.mrf.mxu0 }
 0x4c4   : > { %v2188_v30 = vpop.f32.mrf.mxu3 }
 0x4c5   : > { %15940 = vst [vmem:[#allocation72_spill] sm:$0xff] %v12749_v18  ;;  %v12752_v45 = vadd.f32 %v2188_v30, %v15941_v12  ;;  %v4203_v7 = vpop.f32.mrf.mxu2  ;;  %v15949_v12 = vld [vmem:[#allocation32_spill] sm:$0xff]  ;;  %v15953_v18 = vld [vmem:[#allocation25_spill] sm:$0xff] }
 0x4c7   : > { %15942 = vst [vmem:[#allocation75_spill] sm:$0xff] %v12752_v45 }
 0x4c8   : > { %4250 = vmatmul.bf16.gmra.mxu2 %v15944_v39  ;;  %v15952_v39 = vld [vmem:[#allocation35_spill] sm:$0xff] }
 0x4c9   : > { %3559 = vmatmul.bf16.gmra.mxu3 %v15945_v53 }
 0x4cc   : > { %v2191_v19 = vpop.f32.mrf.mxu3 }
 0x4cd   : > { %v2245_v17 = vadd.f32 %v2191_v19, %v15946_v54  ;;  %v4206_v54 = vpop.f32.mrf.mxu2 }
 0x4cf   : > { %v2629_v15 = vadd.f32 %v15947_v27, %v2245_v17  ;;  %v15955_v17 = vld [vmem:[#allocation36_spill] sm:$0xff]  ;;  %v15957_v27 = vld [vmem:[#allocation79_spill] sm:$0xff] }
 0x4d1   : > { %v3021_v3 = vadd.f32 %v12577_v41, %v2629_v15 }
 0x4d3   : > { %v12761_v49 = vadd.f32 %v3226_v0, %v3021_v3  ;;  %v15958_v3 = vld [vmem:[#allocation39_spill] sm:$0xff] }
 0x4d4   : > { %v2193_v30 = vpop.f32.mrf.mxu3 }
 0x4d5   : > { %15948 = vst [vmem:[#allocation77_spill] sm:$0xff] %v12761_v49  ;;  %v12764_v37 = vadd.f32 %v2193_v30, %v15949_v12  ;;  %v4208_v15 = vpop.f32.mrf.mxu2  ;;  %v15959_v30 = vld [vmem:[#allocation29_spill] sm:$0xff]  ;;  %v15961_v49 = vld [vmem:[#allocation108_spill] sm:$0xff] }
 0x4d7   : > { %15950 = vst [vmem:[#allocation88_spill] sm:$0xff] %v12764_v37  ;;  %v15967_v37 = vld [vmem:[#allocation44_spill] sm:$0xff] }
 0x4d8   : > { %4255 = vmatmul.bf16.gmra.mxu2 %v15951_v40 }
 0x4d9   : > { %3564 = vmatmul.bf16.gmra.mxu3 %v15952_v39 }
 0x4dc   : > { %v2196_v53 = vpop.f32.mrf.mxu3 }
 0x4dd   : > { %v12769_v45 = vadd.f32 %v2196_v53, %v15953_v18  ;;  %v12779_v40 = vpop.f32.mrf.mxu2  ;;  %v15963_v53 = vld [vmem:[#allocation85_spill] sm:$0xff] }
 0x4df   : > { %15954 = vst [vmem:[#allocation38_spill] sm:$0xff] %v12769_v45  ;;  %v15964_v45 = vld [vmem:[#allocation43_spill] sm:$0xff] }
 0x4e4   : > { %v2198_v19 = vpop.f32.mrf.mxu3 }
 0x4e5   : > { %v12772_v41 = vadd.f32 %v2198_v19, %v15955_v17  ;;  %v4213_v19 = vpop.f32.mrf.mxu2 }
 0x4e7   : > { %15956 = vst [vmem:[#allocation78_spill] sm:$0xff] %v12772_v41  ;;  %v15965_v41 = vld [vmem:[#allocation33_spill] sm:$0xff] }
 0x4e8   : > { %4260 = vmatmul.bf16.gmra.mxu2 %v15957_v27 }
 0x4e9   : > { %3569 = vmatmul.bf16.gmra.mxu3 %v15958_v3 }
 0x4ec   : > { %v2201_v0 = vpop.f32.mrf.mxu3 }
 0x4ed   : > { %v12777_v12 = vadd.f32 %v2201_v0, %v15959_v30  ;;  %v12792_v0 = vpop.f32.mrf.mxu2  ;;  %v15969_v30 = vld [vmem:[#allocation91_spill] sm:$0xff] }
 0x4ef   : > { %15960 = vst [vmem:[#allocation81_spill] sm:$0xff] %v12777_v12  ;;  %v15970_v12 = vld [vmem:[#allocation47_spill] sm:$0xff] }
 0x4f4   : > { %v2203_v39 = vpop.f32.mrf.mxu3 }
 0x4f5   : > { %v12782_v18 = vadd.f32 %v2203_v39, %v15961_v49  ;;  %v15971_v39 = vld [vmem:[#allocation37_spill] sm:$0xff] }
 0x4f7   : > { %15962 = vst [vmem:[#allocation82_spill] sm:$0xff] %v12782_v18 }
 0x4f8   : > { %4265 = vmatmul.bf16.gmra.mxu2 %v15963_v53 }
 0x4f9   : > { %3574 = vmatmul.bf16.gmra.mxu3 %v15964_v45  ;;  %v12799_v45 = vpop.f32.mrf.mxu2 }
 0x4fc   : > { %v2206_v17 = vpop.f32.mrf.mxu3 }
 0x4fd   : > { %v12787_v27 = vadd.f32 %v2206_v17, %v15965_v41  ;;  %v15975_v17 = vld [vmem:[#allocation96_spill] sm:$0xff] }
 0x4ff   : > { %15966 = vst [vmem:[#allocation42_spill] sm:$0xff] %v12787_v27 }
 0x504   : > { %v2208_v3 = vpop.f32.mrf.mxu3 }
 0x505   : > { %v12790_v34 = vadd.f32 %v2208_v3, %v15967_v37  ;;  %v15976_v37 = vld [vmem:[#allocation52_spill] sm:$0xff]  ;;  %v12806_v3 = vpop.f32.mrf.mxu2 }
 0x507   : > { %15968 = vst [vmem:[#allocation84_spill] sm:$0xff] %v12790_v34 }
 0x508   : > { %4270 = vmatmul.bf16.gmra.mxu2 %v15969_v30  ;;  %v15977_v30 = vld [vmem:[#allocation117_spill] sm:$0xff] }
 0x509   : > { %3579 = vmatmul.bf16.gmra.mxu3 %v15970_v12 }
 0x50c   : > { %v2211_v49 = vpop.f32.mrf.mxu3 }
 0x50d   : > { %v12797_v53 = vadd.f32 %v2211_v49, %v15971_v39  ;;  %v12811_v12 = vpop.f32.mrf.mxu2  ;;  %v15979_v39 = vld [vmem:[#allocation120_spill] sm:$0xff] }
 0x50f   : > { %15972 = vst [vmem:[#allocation87_spill] sm:$0xff] %v12797_v53 }
 0x514   : > { %v2213_v18 = vpop.f32.mrf.mxu3 }
 0x515   : > { %v12802_v41 = vadd.f32 %v2213_v18, %v15973_v36  ;;  %v15982_v36 = vld [vmem:[#allocation57_spill] sm:$0xff] }
 0x517   : > { %15974 = vst [vmem:[#allocation89_spill] sm:$0xff] %v12802_v41 }
 0x518   : > { %4275 = vmatmul.bf16.gmra.mxu2 %v15975_v17 }
 0x519   : > { %3584 = vmatmul.bf16.gmra.mxu3 %v15976_v37  ;;  %v12819_v37 = vpop.f32.mrf.mxu2 }
 0x51c   : > { %v2216_v34 = vpop.f32.mrf.mxu3 }
 0x51d   : > { %v12809_v27 = vadd.f32 %v2216_v34, %v15977_v30 }
 0x51f   : > { %15978 = vst [vmem:[#allocation46_spill] sm:$0xff] %v12809_v27 }
 0x524   : > { %v2218_v49 = vpop.f32.mrf.mxu3 }
 0x525   : > { %v12814_v53 = vadd.f32 %v2218_v49, %v15979_v39  ;;  %v12826_v49 = vld [vmem:[%s15664_s5] ss:$0 sm:$0xff]  ;;  %v12829_v39 = vpop.f32.mrf.mxu2 }
 0x527   : > { %15980 = vst [vmem:[#allocation93_spill] sm:$0xff] %v12814_v53 }
 0x528   : > { %4280 = vmatmul.bf16.gmra.mxu2 %v15981_v62 }
 0x529   : > { %3589 = vmatmul.bf16.gmra.mxu3 %v15982_v36  ;;  %v15983_v36 = vld [vmem:[#allocation110_spill] sm:$0xff] }
 0x52c   : > { %v3550_v18 = vpop.f32.mrf.mxu3 }
 0x52d   : > { %v3640_v17 = vadd.f32 %v3550_v18, %v12489_v38  ;;  %v15984_v18 = vld [vmem:[#allocation63_spill] sm:$0xff] }
 0x52f   : > { %v4032_v41 = vadd.f32 %v12569_v6, %v3640_v17 }
 0x531   : > { %v4291_v34 = vadd.f32 %v4201_v11, %v4032_v41 }
 0x533   : > { %v4331_v6 = vadd.f32 %v12826_v49, %v4291_v34 }
 0x534   : > { %v3552_v29 = vpop.f32.mrf.mxu3 }
 0x535   : > { %v3641_v30 = vadd.f32 %v3552_v29, %v12505_v60  ;;  %v4367_v29 = vmax.f32 %v4331_v6, 0.0 }
 0x537   : > { %v4033_v62 = vadd.f32 %v12581_v13, %v3641_v30 }
 0x538   : > { %4285 = vmatmul.bf16.gmra.mxu2 %v15983_v36 }
 0x539   : > { %v4292_v38 = vadd.f32 %v4203_v7, %v4033_v62  ;;  %3594 = vmatmul.bf16.gmra.mxu3 %v15984_v18  ;;  %v15985_v18 = vld [vmem:[#allocation69_spill] sm:$0xff] }
 0x53b   : > { %v4332_v11 = vadd.f32 %v12826_v49, %v4292_v38 }
 0x53c   : > { %v3555_v41 = vpop.f32.mrf.mxu3 }
 0x53d   : > { %v3642_v60 = vadd.f32 %v3555_v41, %v12516_v32  ;;  %v4368_v17 = vmax.f32 %v4332_v11, 0.0 }
 0x53f   : > { %v12836_v53 = vpack.c.bf16 %v4368_v17, %v4367_v29  ;;  %v4034_v13 = vadd.f32 %v12596_v63, %v3642_v60 }
 0x541   : > { %v4293_v27 = vadd.f32 %v4206_v54, %v4034_v13 }
 0x543   : > { %v4333_v34 = vadd.f32 %v12826_v49, %v4293_v27  ;;  %v15986_v27 = vld [vmem:[#allocation74_spill] sm:$0xff] }
 0x544   : > { %v3557_v30 = vpop.f32.mrf.mxu3 }
 0x545   : > { %v3643_v36 = vadd.f32 %v3557_v30, %v12527_v23  ;;  %v4369_v11 = vmax.f32 %v4333_v34, 0.0 }
 0x547   : > { %v4035_v7 = vadd.f32 %v12610_v35, %v3643_v36 }
 0x549   : > { %v4294_v62 = vadd.f32 %v4208_v15, %v4035_v7  ;;  %3599 = vmatmul.bf16.gmra.mxu3 %v15985_v18 }
 0x54b   : > { %v4334_v38 = vadd.f32 %v12826_v49, %v4294_v62  ;;  %v3972_v62 = vpop.f32.mrf.mxu1 }
 0x54c   : > { %v3560_v32 = vpop.f32.mrf.mxu3 }
 0x54d   : > { %v3644_v6 = vadd.f32 %v3560_v32, %v12536_v42  ;;  %v4370_v41 = vmax.f32 %v4334_v38, 0.0  ;;  %v15987_v32 = vld [vmem:[#allocation80_spill] sm:$0xff] }
 0x54f   : > { %v12845_v29 = vpack.c.bf16 %v4370_v41, %v4369_v11  ;;  %v4036_v63 = vadd.f32 %v12634_v51, %v3644_v6 }
 0x551   : > { %v4295_v23 = vadd.f32 %v12779_v40, %v4036_v63 }
 0x553   : > { %v4335_v17 = vadd.f32 %v12826_v49, %v4295_v23  ;;  %v3974_v6 = vpop.f32.mrf.mxu1 }
 0x554   : > { %v3562_v54 = vpop.f32.mrf.mxu3 }
 0x555   : > { %v3645_v35 = vadd.f32 %v3562_v54, %v12549_v4  ;;  %v4371_v36 = vmax.f32 %v4335_v17, 0.0  ;;  %v4231_v4 = vpop.f32.mrf.mxu2 }
 0x557   : > { %v4037_v15 = vadd.f32 %v12654_v47, %v3645_v35 }
 0x559   : > { %v4296_v60 = vadd.f32 %v4213_v19, %v4037_v15  ;;  %3604 = vmatmul.bf16.gmra.mxu3 %v15986_v27 }
 0x55b   : > { %v4336_v42 = vadd.f32 %v12826_v49, %v4296_v60 }
 0x55c   : > { %v3565_v13 = vpop.f32.mrf.mxu3 }
 0x55d   : > { %v3646_v30 = vadd.f32 %v3565_v13, %v12559_v33  ;;  %v4372_v7 = vmax.f32 %v4336_v42, 0.0  ;;  %v4233_v41 = vpop.f32.mrf.mxu2  ;;  %v15988_v42 = vld [vmem:[#allocation86_spill] sm:$0xff] }
 0x55f   : > { %v12855_v51 = vpack.c.bf16 %v4372_v7, %v4371_v36  ;;  %v4038_v40 = vadd.f32 %v12671_v21, %v3646_v30 }
 0x561   : > { %v4297_v47 = vadd.f32 %v12792_v0, %v4038_v40 }
 0x563   : > { %v4337_v33 = vadd.f32 %v12826_v49, %v4297_v47 }
 0x564   : > { %v3567_v18 = vpop.f32.mrf.mxu3 }
 0x565   : > { %v3647_v19 = vadd.f32 %v3567_v18, %v12571_v56  ;;  %v4373_v54 = vmax.f32 %v4337_v33, 0.0  ;;  %v4236_v60 = vpop.f32.mrf.mxu2 }
 0x567   : > { %v4039_v34 = vadd.f32 %v12687_v59, %v3647_v19  ;;  %v3977_v59 = vpop.f32.mrf.mxu1 }
 0x569   : > { %v4298_v38 = vadd.f32 %v12799_v45, %v4039_v34  ;;  %3609 = vmatmul.bf16.gmra.mxu3 %v15987_v32  ;;  %v15990_v32 = vld [vmem:[#allocation112_spill] sm:$0xff] }
 0x56b   : > { %v4338_v11 = vadd.f32 %v12826_v49, %v4298_v38 }
 0x56c   : > { %v3570_v63 = vpop.f32.mrf.mxu3 }
 0x56d   : > { %v3648_v21 = vadd.f32 %v3570_v63, %v12579_v61  ;;  %v4374_v23 = vmax.f32 %v4338_v11, 0.0  ;;  %v15991_v63 = vld [vmem:[#allocation92_spill] sm:$0xff] }
 0x56f   : > { %v12866_v0 = vpack.c.bf16 %v4374_v23, %v4373_v54  ;;  %v4040_v56 = vadd.f32 %v12700_v31, %v3648_v21  ;;  %v3979_v40 = vpop.f32.mrf.mxu1 }
 0x571   : > { %v4299_v45 = vadd.f32 %v12806_v3, %v4040_v56 }
 0x573   : > { %v4339_v61 = vadd.f32 %v12826_v49, %v4299_v45  ;;  %v15993_v45 = vld [vmem:[#allocation115_spill] sm:$0xff] }
 0x574   : > { %v3572_v35 = vpop.f32.mrf.mxu3 }
 0x575   : > { %v3649_v15 = vadd.f32 %v3572_v35, %v12591_v58  ;;  %v4375_v36 = vmax.f32 %v4339_v61, 0.0  ;;  %v4238_v58 = vpop.f32.mrf.mxu2 }
 0x577   : > { %v4041_v27 = vadd.f32 %v12713_v8, %v3649_v15  ;;  %v15989_v8 = vld [vmem:[#allocation90_spill] sm:$0xff]  ;;  %v3982_v33 = vpop.f32.mrf.mxu1 }
 0x579   : > { %v4300_v17 = vadd.f32 %v12811_v12, %v4041_v27  ;;  %3614 = vmatmul.bf16.gmra.mxu3 %v15988_v42  ;;  %v2617_v12 = vadd.f32 %v15989_v8, %v12621_v22  ;;  %v15992_v22 = vld [vmem:[#allocation94_spill] sm:$0xff]  ;;  %v15994_v42 = vld [vmem:[#allocation95_spill] sm:$0xff] }
 0x57a   : > { %v2618_v54 = vadd.f32 %v15992_v22, %v12637_v1  ;;  %v2619_v61 = vadd.f32 %v15994_v42, %v12657_v46 }
 0x57b   : > { %v4340_v13 = vadd.f32 %v12826_v49, %v4300_v17 }
 0x57c   : > { %v3575_v30 = vpop.f32.mrf.mxu3  ;;  %v3010_v15 = vadd.f32 %v15993_v45, %v2618_v54  ;;  %v3328_v45 = vld [vmem:[#allocation2 + $0xa0] sm:$0x3] }
 0x57d   : > { %v3650_v31 = vadd.f32 %v3575_v30, %v12601_v9  ;;  %v4376_v7 = vmax.f32 %v4340_v13, 0.0  ;;  %v3009_v9 = vadd.f32 %v15990_v32, %v2617_v12  ;;  %v15996_v12 = vld [vmem:[#allocation97_spill] sm:$0xff] }
 0x57e   : > { %v3269_v13 = vadd.f32 %v12603_v16, %v3010_v15  ;;  %v16000_v15 = vld [vmem:[#allocation102_spill] sm:$0xff] }
 0x57f   : > { %v12877_v3 = vpack.c.bf16 %v4376_v7, %v4375_v36  ;;  %v4042_v18 = vadd.f32 %v12726_v55, %v3650_v31  ;;  %v12889_v55 = vpop.f32.mrf.mxu2  ;;  %v3984_v17 = vpop.f32.mrf.mxu1  ;;  %v15995_v7 = vld [vmem:[#allocation116_spill] sm:$0xff] }
 0x581   : > { %v4301_v19 = vadd.f32 %v12819_v37, %v4042_v18  ;;  %v3268_v37 = vadd.f32 %v12589_v26, %v3009_v9  ;;  %v3011_v18 = vadd.f32 %v15995_v7, %v2619_v61  ;;  %v3418_v61 = vunpack.c.l.b16 %v3328_v45 }
 0x583   : > { %v4341_v21 = vadd.f32 %v12826_v49, %v4301_v19 }
 0x584   : > { %v3577_v47 = vpop.f32.mrf.mxu3 }
 0x585   : > { %v3651_v34 = vadd.f32 %v3577_v47, %v12618_v48  ;;  %v4377_v56 = vmax.f32 %v4341_v21, 0.0 }
 0x587   : > { %v4043_v38 = vadd.f32 %v12740_v43, %v3651_v34  ;;  %v4243_v30 = vpop.f32.mrf.mxu2  ;;  %v3270_v34 = vadd.f32 %v12623_v50, %v3011_v18  ;;  %v3987_v16 = vpop.f32.mrf.mxu1 }
 0x589   : > { %v4302_v11 = vadd.f32 %v12829_v39, %v4043_v38  ;;  %3619 = vmatmul.bf16.gmra.mxu3 %v15991_v63 }
 0x58b   : > { %v4342_v48 = vadd.f32 %v12826_v49, %v4302_v11  ;;  %v15998_v11 = vld [vmem:[#allocation118_spill] sm:$0xff] }
 0x58c   : > { %v3580_v23 = vpop.f32.mrf.mxu3 }
 0x58d   : > { %v3652_v43 = vadd.f32 %v3580_v23, %v3268_v37  ;;  %v4378_v35 = vmax.f32 %v4342_v48, 0.0 }
 0x58f   : > { %v4408_v39 = vpack.c.bf16 %v4378_v35, %v4377_v56  ;;  %v4044_v27 = vadd.f32 %v3972_v62, %v3652_v43  ;;  %v15997_v62 = vld [vmem:[#allocation98_spill] sm:$0xff]  ;;  %v15999_v35 = vld [vmem:[#allocation100_spill] sm:$0xff] }
 0x590   : > { %v2620_v19 = vadd.f32 %v15997_v62, %v12669_v10  ;;  %v3989_v10 = vpop.f32.mrf.mxu1  ;;  %v16001_v62 = vrot.slane %v12269_v57, 2 }
 0x591   : > { %v4303_v31 = vadd.f32 %v4231_v4, %v4044_v27  ;;  %v2622_v27 = vadd.f32 %v16000_v15, %v12693_v20 }
 0x592   : > { %v3012_v63 = vadd.f32 %v15998_v11, %v2620_v19 }
 0x593   : > { %v4343_v47 = vadd.f32 %v12826_v49, %v4303_v31 }
 0x594   : > { %v3582_v1 = vpop.f32.mrf.mxu3  ;;  %v3271_v22 = vadd.f32 %v12643_v28, %v3012_v63 }
 0x595   : > { %v3653_v26 = vadd.f32 %v3582_v1, %v3269_v13  ;;  %v4379_v4 = vmax.f32 %v4343_v47, 0.0 }
 0x597   : > { %v4045_v36 = vadd.f32 %v3974_v6, %v3653_v26  ;;  %v4246_v6 = vpop.f32.mrf.mxu2  ;;  %v3437_v26 = vpack.c.b16 %v3418_v61, %v3418_v61 }
 0x598   : > { %v3992_v31 = vpop.f32.mrf.mxu1 }
 0x599   : > { %v4304_v8 = vadd.f32 %v4233_v41, %v4045_v36  ;;  %3624 = vmatmul.bf16.gmra.mxu3 %v15996_v12  ;;  %v3473_v20 = vrot.slane %v3437_v26, 2 }
 0x59b   : > { %v4344_v46 = vadd.f32 %v12826_v49, %v4304_v8 }
 0x59c   : > { %v3585_v38 = vpop.f32.mrf.mxu3 }
 0x59d   : > { %v3654_v32 = vadd.f32 %v3585_v38, %v3270_v34  ;;  %v4380_v9 = vmax.f32 %v4344_v46, 0.0  ;;  %v16002_v34 = vld [vmem:[#allocation21_spill] sm:$0xff] }
 0x59f   : > { %v4409_v41 = vpack.c.bf16 %v4380_v9, %v4379_v4  ;;  %v4046_v21 = vadd.f32 %v3977_v59, %v3654_v32  ;;  %v4248_v50 = vpop.f32.mrf.mxu2 }
 0x5a1   : > { %v4305_v37 = vadd.f32 %v4236_v60, %v4046_v21 }
 0x5a3   : > { %v4345_v43 = vadd.f32 %v12826_v49, %v4305_v37 }
 0x5a4   : > { %v3587_v54 = vpop.f32.mrf.mxu3 }
 0x5a5   : > { %v3655_v48 = vadd.f32 %v3587_v54, %v3271_v22  ;;  %v4381_v28 = vmax.f32 %v4345_v43, 0.0  ;;  %v16006_v43 = vld [vmem:[#allocation50_spill] sm:$0xff] }
 0x5a7   : > { %v4047_v23 = vadd.f32 %v3979_v40, %v3655_v48  ;;  %v3014_v40 = vadd.f32 %v12486_v14, %v2622_v27  ;;  %v4251_v36 = vpop.f32.mrf.mxu2  ;;  %v16005_v48 = vld [vmem:[#allocation30_spill] sm:$0xff]  ;;  %v16007_v27 = vld [vmem:[#allocation67_spill] sm:$0xff] }
 0x5a9   : > { %v4306_v56 = vadd.f32 %v4238_v58, %v4047_v23  ;;  %3629 = vmatmul.bf16.gmra.mxu3 %v15999_v35  ;;  %v3273_v7 = vadd.f32 %v12681_v24, %v3014_v40  ;;  %v2624_v24 = vadd.f32 %v16002_v34, %v12716_v2  ;;  %v10281_v40 = vld [vmem:[%s15665_s6 + $0x20] sm:$0xf0] }
 0x5ab   : > { %v4346_v42 = vadd.f32 %v12826_v49, %v4306_v56 }
 0x5ac   : > { %v3590_v59 = vpop.f32.mrf.mxu3 }
 0x5ad   : > { %v4382_v13 = vmax.f32 %v4346_v42, 0.0  ;;  %v3656_v60 = vadd.f32 %v3590_v59, %v12690_v25  ;;  %v3474_v25 = vsel %vm3053_vm3, %v16001_v62, %v3473_v20 }
 0x5af   : > { %v4410_v1 = vpack.c.bf16 %v4382_v13, %v4381_v28  ;;  %v4048_v58 = vadd.f32 %v3982_v33, %v3656_v60  ;;  %v3994_v33 = vpop.f32.mrf.mxu1  ;;  %v4253_v38 = vpop.f32.mrf.mxu2 }
 0x5b1   : > { %5214 = vmatpush.bf16.msrb.mxu0 %v4410_v1  ;;  %v4307_v8 = vadd.f32 %v12889_v55, %v4048_v58 }
 0x5b3   : > { %v4347_v14 = vadd.f32 %v12826_v49, %v4307_v8 }
 0x5b4   : > { %v3592_v18 = vpop.f32.mrf.mxu3 }
 0x5b5   : > { %v3657_v12 = vadd.f32 %v3592_v18, %v3273_v7  ;;  %5215 = vmatpush.bf16.msrb.mxu0 %v4409_v41  ;;  %v4383_v57 = vmax.f32 %v4347_v14, 0.0  ;;  %v16009_v7 = vld [vmem:[#allocation107_spill] sm:$0xff]  ;;  %v16011_v14 = vld [vmem:[#allocation65_spill] sm:$0xff] }
 0x5b7   : > { %v4049_v47 = vadd.f32 %v3984_v17, %v3657_v12  ;;  %v3997_v2 = vpop.f32.mrf.mxu1  ;;  %v16010_v12 = vld [vmem:[#allocation72_spill] sm:$0xff] }
 0x5b9   : > { %v4308_v19 = vadd.f32 %v4243_v30, %v4049_v47  ;;  %3634 = vmatmul.bf16.gmra.mxu3 %v3474_v25  ;;  %5216 = vmatpush.bf16.msrb.mxu0 %v4408_v39  ;;  %v3016_v30 = vadd.f32 %v12513_v5, %v2624_v24  ;;  %v8889_v5 = vld [vmem:[%s15665_s6] sm:$0xf] }
 0x5bb   : > { %v4348_v46 = vadd.f32 %v12826_v49, %v4308_v19  ;;  %v3275_v9 = vadd.f32 %v12706_v52, %v3016_v30  ;;  %v3228_v19 = vpop.f32.mrf.mxu0 }
 0x5bc   : > { %v3595_v55 = vpop.f32.mrf.mxu3 }
 0x5bd   : > { %v3658_v32 = vadd.f32 %v3595_v55, %v12711_v44  ;;  %5217 = vmatpush.bf16.msrb.mxu0 %v12877_v3  ;;  %v4384_v17 = vmax.f32 %v4348_v46, 0.0  ;;  %v4256_v44 = vpop.f32.mrf.mxu2 }
 0x5bf   : > { %v12927_v4 = vpack.c.bf16 %v4384_v17, %v4383_v57  ;;  %v4050_v39 = vadd.f32 %v3987_v16, %v3658_v32  ;;  %v16003_v16 = vld [vmem:[#allocation70_spill] sm:$0xff] }
 0x5c1   : > { %5218 = vmatpush.bf16.msrb.mxu0 %v12866_v0  ;;  %v4309_v63 = vadd.f32 %v4246_v6, %v4050_v39  ;;  %v10278_v0 = vld [vmem:[%s15665_s6 + $0x8] sm:$0xf0] }
 0x5c2   : > { %v16004_v6 = vld [vmem:[#allocation105_spill] sm:$0xff]  ;;  %v8890_v37 = vor.u32 %v10278_v0, %v8889_v5 }
 0x5c3   : > { %v4349_v52 = vadd.f32 %v12826_v49, %v4309_v63  ;;  %v2626_v22 = vadd.f32 %v16004_v6, %v16003_v16  ;;  %v8913_v63 = vld [vmem:[%s15665_s6 + $0x30] sm:$0xf] }
 0x5c4   : > { %v3597_v11 = vpop.f32.mrf.mxu3  ;;  %v16015_v6 = vld [vmem:[#allocation77_spill] sm:$0xff] }
 0x5c5   : > { %v3659_v41 = vadd.f32 %v3597_v11, %v3275_v9  ;;  %5219 = vmatpush.bf16.msrb.mxu0 %v12855_v51  ;;  %v3018_v56 = vadd.f32 %v16006_v43, %v2626_v22  ;;  %v4258_v45 = vpop.f32.mrf.mxu2  ;;  %v3231_v9 = vpop.f32.mrf.mxu0 }
 0x5c7   : > { %v4051_v21 = vadd.f32 %v3989_v10, %v3659_v41  ;;  %v3277_v42 = vadd.f32 %v16007_v27, %v3018_v56  ;;  %v10284_v41 = vld [vmem:[%s15665_s6 + $0x38] sm:$0xf0] }
 0x5c8   : > { %v8914_v16 = vor.u32 %v10284_v41, %v8913_v63  ;;  %v16017_v56 = vld [vmem:[#allocation38_spill] sm:$0xff] }
 0x5c9   : > { %v4310_v3 = vadd.f32 %v4248_v50, %v4051_v21  ;;  %5220 = vmatpush.bf16.msrb.mxu0 %v12845_v29  ;;  %v4385_v29 = vmax.f32 %v4349_v52, 0.0  ;;  %v3999_v50 = vpop.f32.mrf.mxu1  ;;  %v16013_v21 = vld [vmem:[#allocation88_spill] sm:$0xff] }
 0x5cb   : > { %v4350_v51 = vadd.f32 %v12826_v49, %v4310_v3  ;;  %v16014_v3 = vld [vmem:[#allocation109_spill] sm:$0xff] }
 0x5cc   : > { %v3600_v54 = vpop.f32.mrf.mxu3  ;;  %v2630_v5 = vadd.f32 %v16014_v3, %v16013_v21 }
 0x5cd   : > { %v3660_v10 = vadd.f32 %v3600_v54, %v16005_v48  ;;  %5221 = vmatpush.bf16.msrb.mxu0 %v12836_v53  ;;  %v4386_v23 = vmax.f32 %v4350_v51, 0.0  ;;  %v8901_v53 = vld [vmem:[%s15665_s6 + $0x18] sm:$0xf]  ;;  %v4261_v58 = vpop.f32.mrf.mxu2  ;;  %v3233_v43 = vpop.f32.mrf.mxu0 }
 0x5ce   : > { %v8902_v8 = vor.u32 %v10281_v40, %v8901_v53 }
 0x5cf   : > { %v12946_v35 = vpack.c.bf16 %v4386_v23, %v4385_v29  ;;  %v4052_v15 = vadd.f32 %v3992_v31, %v3660_v10  ;;  %v16008_v31 = vld [vmem:[#allocation75_spill] sm:$0xff] }
 0x5d0   : > { %5222 = vmatmul.bf16.vlgmr.msrb.gmra.mxu0 %v8890_v37  ;;  %v2628_v18 = vadd.f32 %v16009_v7, %v16008_v31  ;;  %v16016_v10 = vld [vmem:[#allocation23_spill] sm:$0xff]  ;;  %v16020_v31 = vld [vmem:[#allocation78_spill] sm:$0xff]  ;;  %v16021_v7 = vld [vmem:[#allocation113_spill] sm:$0xff] }
 0x5d1   : > { %v4311_v61 = vadd.f32 %v4251_v36, %v4052_v15  ;;  %v4002_v60 = vpop.f32.mrf.mxu1  ;;  %v3022_v29 = vadd.f32 %v16016_v10, %v2630_v5  ;;  %v8937_v5 = vld [vmem:[%s15665_s6 + $0x60] sm:$0xf] }
 0x5d3   : > { %v4351_v26 = vadd.f32 %v12826_v49, %v4311_v61  ;;  %v3281_v27 = vadd.f32 %v3228_v19, %v3022_v29 }
 0x5d4   : > { %v3602_v59 = vpop.f32.mrf.mxu3 }
 0x5d5   : > { %v3661_v28 = vadd.f32 %v3602_v59, %v3277_v42  ;;  %v4387_v62 = vmax.f32 %v4351_v26, 0.0  ;;  %v4263_v32 = vpop.f32.mrf.mxu2  ;;  %v10287_v26 = vld [vmem:[%s15665_s6 + $0x50] sm:$0xf0] }
 0x5d7   : > { %v4053_v13 = vadd.f32 %v3994_v33, %v3661_v28  ;;  %v3020_v33 = vadd.f32 %v16011_v14, %v2628_v18  ;;  %v2632_v18 = vadd.f32 %v16021_v7, %v16020_v31  ;;  %v16022_v14 = vld [vmem:[#allocation58_spill] sm:$0xff]  ;;  %v16031_v31 = vld [vmem:[#allocation61_spill] sm:$0xff] }
 0x5d9   : > { %v4312_v1 = vadd.f32 %v4253_v38, %v4053_v13  ;;  %v4004_v46 = vpop.f32.mrf.mxu1  ;;  %v16012_v38 = vld [vmem:[#allocation83_spill] sm:$0xff] }
 0x5da   : > { %v3279_v55 = vadd.f32 %v16012_v38, %v3020_v33  ;;  %v16019_v13 = vld [vmem:[#allocation55_spill] sm:$0xff]  ;;  %v3024_v33 = vadd.f32 %v16022_v14, %v2632_v18 }
 0x5db   : > { %v4352_v36 = vadd.f32 %v12826_v49, %v4312_v1 }
 0x5dc   : > { %v3605_v20 = vpop.f32.mrf.mxu3 }
 0x5dd   : > { %v3662_v47 = vadd.f32 %v3605_v20, %v16010_v12  ;;  %v4388_v25 = vmax.f32 %v4352_v36, 0.0  ;;  %v4266_v37 = vpop.f32.mrf.mxu2 }
 0x5df   : > { %v12961_v34 = vpack.c.bf16 %v4388_v25, %v4387_v62  ;;  %v4054_v24 = vadd.f32 %v3997_v2, %v3662_v47 }
 0x5e0   : > { %5227 = vmatmul.bf16.gmra.mxu0 %v8902_v8  ;;  %v3236_v8 = vpop.f32.mrf.mxu0 }
 0x5e1   : > { %v4313_v17 = vadd.f32 %v4256_v44, %v4054_v24  ;;  %v4007_v44 = vpop.f32.mrf.mxu1 }
 0x5e3   : > { %v4353_v2 = vadd.f32 %v12826_v49, %v4313_v17 }
 0x5e4   : > { %v3607_v57 = vpop.f32.mrf.mxu3 }
 0x5e5   : > { %v3663_v30 = vadd.f32 %v3607_v57, %v3279_v55  ;;  %v4389_v51 = vmax.f32 %v4353_v2, 0.0  ;;  %v4268_v53 = vpop.f32.mrf.mxu2  ;;  %v16024_v57 = vld [vmem:[#allocation41_spill] sm:$0xff]  ;;  %v16025_v2 = vld [vmem:[#allocation60_spill] sm:$0xff] }
 0x5e7   : > { %v4055_v39 = vadd.f32 %v3999_v50, %v3663_v30  ;;  %v3283_v30 = vadd.f32 %v3233_v43, %v3024_v33 }
 0x5e8   : > { %v3238_v63 = vpop.f32.mrf.mxu0 }
 0x5e9   : > { %v4314_v11 = vadd.f32 %v4258_v45, %v4055_v39  ;;  %v16018_v45 = vld [vmem:[#allocation111_spill] sm:$0xff]  ;;  %v4009_v61 = vpop.f32.mrf.mxu1 }
 0x5ea   : > { %v2631_v15 = vadd.f32 %v16018_v45, %v16017_v56  ;;  %v16028_v56 = vld [vmem:[#allocation26_spill] sm:$0xff] }
 0x5eb   : > { %v4354_v0 = vadd.f32 %v12826_v49, %v4314_v11 }
 0x5ec   : > { %v3610_v52 = vpop.f32.mrf.mxu3  ;;  %v3023_v1 = vadd.f32 %v16019_v13, %v2631_v15 }
 0x5ed   : > { %v3664_v22 = vadd.f32 %v3610_v52, %v16015_v6  ;;  %v4390_v54 = vmax.f32 %v4354_v0, 0.0  ;;  %v4271_v55 = vpop.f32.mrf.mxu2  ;;  %v10290_v0 = vld [vmem:[%s15665_s6 + $0x68] sm:$0xf0]  ;;  %v16027_v6 = vld [vmem:[#allocation119_spill] sm:$0xff] }
 0x5ee   : > { %v3282_v36 = vadd.f32 %v3231_v9, %v3023_v1  ;;  %v8938_v10 = vor.u32 %v10290_v0, %v8937_v5 }
 0x5ef   : > { %v4056_v48 = vadd.f32 %v4002_v60, %v3664_v22  ;;  %v12976_v23 = vpack.c.bf16 %v4390_v54, %v4389_v51  ;;  %v8925_v60 = vld [vmem:[%s15665_s6 + $0x48] sm:$0xf] }
 0x5f0   : > { %5232 = vmatmul.bf16.gmra.mxu0 %v8914_v16  ;;  %v8926_v47 = vor.u32 %v10287_v26, %v8925_v60  ;;  %v16026_v16 = vld [vmem:[#allocation82_spill] sm:$0xff] }
 0x5f1   : > { %v4315_v50 = vadd.f32 %v4261_v58, %v4056_v48  ;;  %v2634_v22 = vadd.f32 %v16027_v6, %v16026_v16  ;;  %v16037_v16 = vld [vmem:[#allocation66_spill] sm:$0xff] }
 0x5f3   : > { %v4355_v58 = vadd.f32 %v12826_v49, %v4315_v50  ;;  %v3026_v45 = vadd.f32 %v16028_v56, %v2634_v22 }
 0x5f4   : > { %v3612_v42 = vpop.f32.mrf.mxu3 }
 0x5f5   : > { %v3665_v59 = vadd.f32 %v3612_v42, %v3281_v27  ;;  %v4391_v25 = vmax.f32 %v4355_v58, 0.0  ;;  %v3241_v27 = vpop.f32.mrf.mxu0  ;;  %v3285_v13 = vadd.f32 %v3238_v63, %v3026_v45  ;;  %v16035_v63 = vld [vmem:[#allocation87_spill] sm:$0xff] }
 0x5f7   : > { %v4057_v28 = vadd.f32 %v4004_v46, %v3665_v59  ;;  %v4012_v46 = vpop.f32.mrf.mxu1  ;;  %v16029_v59 = vld [vmem:[#allocation42_spill] sm:$0xff] }
 0x5f9   : > { %v4316_v40 = vadd.f32 %v4263_v32, %v4057_v28  ;;  %v16023_v32 = vld [vmem:[#allocation81_spill] sm:$0xff] }
 0x5fa   : > { %v2633_v17 = vadd.f32 %v16024_v57, %v16023_v32 }
 0x5fb   : > { %v4356_v20 = vadd.f32 %v12826_v49, %v4316_v40 }
 0x5fc   : > { %v3615_v12 = vpop.f32.mrf.mxu3  ;;  %v3025_v21 = vadd.f32 %v16025_v2, %v2633_v17  ;;  %v16034_v17 = vld [vmem:[#allocation64_spill] sm:$0xff] }
 0x5fd   : > { %v3666_v62 = vadd.f32 %v3615_v12, %v3282_v36  ;;  %v4392_v19 = vmax.f32 %v4356_v20, 0.0  ;;  %v8949_v36 = vld [vmem:[%s15665_s6 + $0x78] sm:$0xf]  ;;  %v10293_v20 = vld [vmem:[%s15665_s6 + $0x80] sm:$0xf0]  ;;  %v3243_v12 = vpop.f32.mrf.mxu0 }
 0x5fe   : > { %v3284_v51 = vadd.f32 %v3236_v8, %v3025_v21 }
 0x5ff   : > { %v12992_v24 = vpack.c.bf16 %v4392_v19, %v4391_v25  ;;  %v4058_v38 = vadd.f32 %v4007_v44, %v3666_v62  ;;  %v4014_v52 = vpop.f32.mrf.mxu1  ;;  %v16033_v62 = vld [vmem:[#allocation48_spill] sm:$0xff] }
 0x600   : > { %5237 = vmatmul.bf16.gmra.mxu0 %v8926_v47  ;;  %v16032_v47 = vld [vmem:[#allocation84_spill] sm:$0xff] }
 0x601   : > { %v4317_v9 = vadd.f32 %v4266_v37, %v4058_v38  ;;  %v4273_v37 = vpop.f32.mrf.mxu2  ;;  %v2636_v25 = vadd.f32 %v16033_v62, %v16032_v47  ;;  %v16043_v62 = vld [vmem:[#allocation71_spill] sm:$0xff] }
 0x603   : > { %v4357_v44 = vadd.f32 %v12826_v49, %v4317_v9 }
 0x604   : > { %v3617_v39 = vpop.f32.mrf.mxu3 }
 0x605   : > { %v3667_v11 = vadd.f32 %v3617_v39, %v3283_v30  ;;  %v4393_v50 = vmax.f32 %v4357_v44, 0.0  ;;  %v3028_v30 = vadd.f32 %v16034_v17, %v2636_v25 }
 0x607   : > { %v4059_v41 = vadd.f32 %v4009_v61, %v3667_v11  ;;  %v16030_v61 = vld [vmem:[#allocation45_spill] sm:$0xff]  ;;  %v4017_v1 = vpop.f32.mrf.mxu1  ;;  %v3287_v21 = vadd.f32 %v3243_v12, %v3028_v30 }
 0x608   : > { %v2635_v28 = vadd.f32 %v16030_v61, %v16029_v59 }
 0x609   : > { %v4318_v3 = vadd.f32 %v4268_v53, %v4059_v41  ;;  %v4276_v26 = vpop.f32.mrf.mxu2  ;;  %v16036_v41 = vld [vmem:[#allocation49_spill] sm:$0xff] }
 0x60a   : > { %v3027_v7 = vadd.f32 %v16031_v31, %v2635_v28  ;;  %v2637_v2 = vadd.f32 %v16036_v41, %v16035_v63  ;;  %v16042_v31 = vld [vmem:[#allocation53_spill] sm:$0xff] }
 0x60b   : > { %v4358_v54 = vadd.f32 %v12826_v49, %v4318_v3  ;;  %v3246_v3 = vpop.f32.mrf.mxu0 }
 0x60c   : > { %v3620_v48 = vpop.f32.mrf.mxu3  ;;  %v3286_v19 = vadd.f32 %v3241_v27, %v3027_v7  ;;  %v3029_v6 = vadd.f32 %v16037_v16, %v2637_v2 }
 0x60d   : > { %v3668_v29 = vadd.f32 %v3620_v48, %v3284_v51  ;;  %v4394_v43 = vmax.f32 %v4358_v54, 0.0  ;;  %v10296_v48 = vld [vmem:[%s15665_s6 + $0x98] sm:$0xf0] }
 0x60e   : > { %v3288_v45 = vadd.f32 %v3246_v3, %v3029_v6 }
 0x60f   : > { %v13008_v15 = vpack.c.bf16 %v4394_v43, %v4393_v50  ;;  %v4060_v42 = vadd.f32 %v4012_v46, %v3668_v29  ;;  %v8950_v46 = vor.u32 %v10293_v20, %v8949_v36  ;;  %v4019_v57 = vpop.f32.mrf.mxu1  ;;  %v16038_v29 = vld [vmem:[#allocation89_spill] sm:$0xff]  ;;  %v16039_v50 = vld [vmem:[#allocation59_spill] sm:$0xff] }
 0x610   : > { %5242 = vmatmul.bf16.gmra.mxu0 %v8938_v10  ;;  %v2638_v43 = vadd.f32 %v16039_v50, %v16038_v29  ;;  %v8891_v29 = vld [vmem:[%s15665_s6 + $0xc] sm:$0xf0] }
 0x611   : > { %v4319_v40 = vadd.f32 %v4271_v55, %v4060_v42  ;;  %v4278_v9 = vpop.f32.mrf.mxu2 }
 0x613   : > { %v4359_v8 = vadd.f32 %v12826_v49, %v4319_v40 }
 0x614   : > { %v3622_v53 = vpop.f32.mrf.mxu3 }
 0x615   : > { %v3669_v60 = vadd.f32 %v3622_v53, %v3285_v13  ;;  %v4395_v55 = vmax.f32 %v4359_v8, 0.0  ;;  %v3248_v13 = vpop.f32.mrf.mxu0  ;;  %v16040_v53 = vld [vmem:[#allocation76_spill] sm:$0xff] }
 0x616   : > { %v3030_v40 = vadd.f32 %v16040_v53, %v2638_v43  ;;  %v8903_v53 = vld [vmem:[%s15665_s6 + $0x24] sm:$0xf0] }
 0x617   : > { %v4061_v58 = vadd.f32 %v4014_v52, %v3669_v60  ;;  %v4022_v22 = vpop.f32.mrf.mxu1 }
 0x619   : > { %v4320_v18 = vadd.f32 %v4273_v37, %v4061_v58  ;;  %v8961_v37 = vld [vmem:[%s15665_s6 + $0x90] sm:$0xf]  ;;  %v4281_v10 = vpop.f32.mrf.mxu2  ;;  %v16041_v58 = vld [vmem:[#allocation46_spill] sm:$0xff] }
 0x61a   : > { %v8962_v42 = vor.u32 %v10296_v48, %v8961_v37  ;;  %v2639_v7 = vadd.f32 %v16042_v31, %v16041_v58  ;;  %v8985_v37 = vld [vmem:[%s15665_s6 + $0xc0] sm:$0xf]  ;;  %v10282_v31 = vld [vmem:[%s15665_s6 + $0x28] sm:$0xf0] }
 0x61b   : > { %v4360_v14 = vadd.f32 %v12826_v49, %v4320_v18  ;;  %v3289_v18 = vadd.f32 %v3248_v13, %v3030_v40  ;;  %v10305_v13 = vld [vmem:[%s15665_s6 + $0xe0] sm:$0xf0]  ;;  %v8909_v58 = vld [vmem:[%s15665_s6 + $0x20] sm:$0xf] }
 0x61c   : > { %v3625_v33 = vpop.f32.mrf.mxu3  ;;  %v3031_v25 = vadd.f32 %v16043_v62, %v2639_v7  ;;  %v8910_v7 = vor.u32 %v10282_v31, %v8909_v58  ;;  %v10298_v58 = vld [vmem:[%s15665_s6 + $0xac] sm:$0xf]  ;;  %v8975_v31 = vld [vmem:[%s15665_s6 + $0xb4] sm:$0xf0] }
 0x61d   : > { %v3670_v38 = vadd.f32 %v3625_v33, %v3286_v19  ;;  %v4396_v32 = vmax.f32 %v4360_v14, 0.0  ;;  %v3251_v19 = vpop.f32.mrf.mxu0  ;;  %v8973_v33 = vld [vmem:[%s15665_s6 + $0xa8] sm:$0xf] }
 0x61e   : > { %v3290_v17 = vadd.f32 %v3251_v19, %v3031_v25  ;;  %v8921_v19 = vld [vmem:[%s15665_s6 + $0x38] sm:$0xf] }
 0x61f   : > { %v4417_v39 = vpack.c.bf16 %v4396_v32, %v4395_v55  ;;  %v4062_v11 = vadd.f32 %v4017_v1, %v3670_v38  ;;  %v16044_v55 = vld [vmem:[#allocation93_spill] sm:$0xff]  ;;  %v16045_v32 = vld [vmem:[#allocation54_spill] sm:$0xff] }
 0x620   : > { %5247 = vmatmul.bf16.gmra.mxu0 %v8950_v46  ;;  %v10299_v46 = vld [vmem:[%s15665_s6 + $0xb0] sm:$0xf0] }
 0x621   : > { %v4321_v0 = vadd.f32 %v4276_v26, %v4062_v11  ;;  %v4024_v26 = vpop.f32.mrf.mxu1  ;;  %v4283_v36 = vpop.f32.mrf.mxu2  ;;  %v8974_v11 = vor.u32 %v10299_v46, %v8973_v33 }
 0x623   : > { %v4361_v51 = vadd.f32 %v12826_v49, %v4321_v0 }
 0x624   : > { %v3627_v5 = vpop.f32.mrf.mxu3 }
 0x625   : > { %v3671_v44 = vadd.f32 %v3627_v5, %v3287_v21  ;;  %v4397_v59 = vmax.f32 %v4361_v51, 0.0  ;;  %v16046_v21 = vld [vmem:[#allocation34_spill] sm:$0xff] }
 0x627   : > { %v4063_v52 = vadd.f32 %v4019_v57, %v3671_v44  ;;  %v2640_v57 = vadd.f32 %v16045_v32, %v16044_v55  ;;  %v3253_v44 = vpop.f32.mrf.mxu0  ;;  %v10311_v55 = vld [vmem:[%s15665_s6 + $0x110] sm:$0xf0]  ;;  %v10286_v32 = vld [vmem:[%s15665_s6 + $0x4c] sm:$0xf] }
 0x629   : > { %v4322_v54 = vadd.f32 %v4278_v9, %v4063_v52  ;;  %v4286_v2 = vpop.f32.mrf.mxu2  ;;  %v3032_v3 = vadd.f32 %v16046_v21, %v2640_v57  ;;  %v8927_v57 = vld [vmem:[%s15665_s6 + $0x54] sm:$0xf0]  ;;  %v10289_v21 = vld [vmem:[%s15665_s6 + $0x64] sm:$0xf] }
 0x62b   : > { %v4362_v56 = vadd.f32 %v12826_v49, %v4322_v54  ;;  %v3291_v52 = vadd.f32 %v3253_v44, %v3032_v3  ;;  %v8939_v3 = vld [vmem:[%s15665_s6 + $0x6c] sm:$0xf0] }
 0x62c   : > { %v3630_v27 = vpop.f32.mrf.mxu3 }
 0x62d   : > { %v4398_v61 = vmax.f32 %v4362_v56, 0.0  ;;  %v3672_v28 = vadd.f32 %v3630_v27, %v3288_v45 }
 0x62f   : > { %v4418_v1 = vpack.c.bf16 %v4398_v61, %v4397_v59  ;;  %v4064_v60 = vadd.f32 %v4022_v22, %v3672_v28  ;;  %v8897_v59 = vld [vmem:[%s15665_s6 + $0x8] sm:$0xf] }
 0x630   : > { %5252 = vmatmul.bf16.gmra.mxu0 %v8962_v42 }
 0x631   : > { %5403 = vmatpush.bf16.msrb.mxu3 %v4418_v1  ;;  %v4323_v8 = vadd.f32 %v4281_v10, %v4064_v60  ;;  %v10280_v1 = vld [vmem:[%s15665_s6 + $0x1c] sm:$0xf] }
 0x632   : > { %v8906_v60 = vor.u32 %v10280_v1, %v8903_v53 }
 0x633   : > { %v4363_v38 = vadd.f32 %v12826_v49, %v4323_v8  ;;  %v10283_v8 = vld [vmem:[%s15665_s6 + $0x34] sm:$0xf] }
 0x634   : > { %v3632_v20 = vpop.f32.mrf.mxu3 }
 0x635   : > { %v3673_v12 = vadd.f32 %v3632_v20, %v3289_v18  ;;  %5404 = vmatpush.bf16.msrb.mxu3 %v4417_v39  ;;  %v4027_v39 = vpop.f32.mrf.mxu1  ;;  %v4399_v63 = vmax.f32 %v4363_v38, 0.0  ;;  %v10308_v20 = vld [vmem:[%s15665_s6 + $0xf8] sm:$0xf0]  ;;  %v9021_v38 = vld [vmem:[%s15665_s6 + $0x108] sm:$0xf] }
 0x637   : > { %v4065_v47 = vadd.f32 %v4024_v26, %v3673_v12  ;;  %v8915_v12 = vld [vmem:[%s15665_s6 + $0x3c] sm:$0xf0] }
 0x638   : > { %v8918_v62 = vor.u32 %v10283_v8, %v8915_v12  ;;  %v8981_v8 = vld [vmem:[%s15665_s6 + $0xb0] sm:$0xf]  ;;  %v10300_v12 = vld [vmem:[%s15665_s6 + $0xb8] sm:$0xf0] }
 0x639   : > { %v4324_v14 = vadd.f32 %v4283_v36, %v4065_v47  ;;  %5405 = vmatpush.bf16.msrb.mxu3 %v13008_v15  ;;  %v9009_v36 = vld [vmem:[%s15665_s6 + $0xf0] sm:$0xf] }
 0x63a   : > { %v9010_v47 = vor.u32 %v10308_v20, %v9009_v36  ;;  %v8978_v36 = vor.u32 %v10298_v58, %v8975_v31  ;;  %v10416_v58 = vld [vmem:[%s15666_s7 + $0xf4] sm:$0xf0] }
 0x63b   : > { %v4364_v30 = vadd.f32 %v12826_v49, %v4324_v14  ;;  %v10285_v14 = vld [vmem:[%s15665_s6 + $0x40] sm:$0xf0] }
 0x63c   : > { %v3635_v9 = vpop.f32.mrf.mxu3  ;;  %v8922_v33 = vor.u32 %v10285_v14, %v8921_v19  ;;  %v9081_v19 = vld [vmem:[%s15665_s6 + $0x180] sm:$0xf]  ;;  %v10326_v14 = vld [vmem:[%s15665_s6 + $0x188] sm:$0xf0] }
 0x63d   : > { %v3674_v15 = vadd.f32 %v3635_v9, %v3290_v17  ;;  %5406 = vmatpush.bf16.msrb.mxu3 %v12992_v24  ;;  %v4400_v41 = vmax.f32 %v4364_v30, 0.0  ;;  %v4029_v51 = vpop.f32.mrf.mxu1  ;;  %v4288_v24 = vpop.f32.mrf.mxu2  ;;  %v9022_v17 = vor.u32 %v10311_v55, %v9021_v38  ;;  %v8930_v30 = vor.u32 %v10286_v32, %v8927_v57  ;;  %v8933_v9 = vld [vmem:[%s15665_s6 + $0x50] sm:$0xf] }
 0x63e   : > { %v8987_v38 = vld [vmem:[%s15665_s6 + $0xcc] sm:$0xf0]  ;;  %v9082_v55 = vor.u32 %v10326_v14, %v9081_v19  ;;  %v10414_v19 = vld [vmem:[%s15666_s7 + $0xe4] sm:$0xf0] }
 0x63f   : > { %v4419_v5 = vpack.c.bf16 %v4400_v41, %v4399_v63  ;;  %v4066_v0 = vadd.f32 %v4027_v39, %v3674_v15  ;;  %v9033_v41 = vld [vmem:[%s15665_s6 + $0x120] sm:$0xf] }
 0x640   : > { %5257 = vmatmul.bf16.gmra.mxu0 %v8974_v11  ;;  %v10288_v11 = vld [vmem:[%s15665_s6 + $0x58] sm:$0xf0] }
 0x641   : > { %5407 = vmatpush.bf16.msrb.mxu3 %v12976_v23  ;;  %v4325_v6 = vadd.f32 %v4286_v2, %v4066_v0  ;;  %v10302_v23 = vld [vmem:[%s15665_s6 + $0xc8] sm:$0xf0]  ;;  %v8934_v15 = vor.u32 %v10288_v11, %v8933_v9  ;;  %v8942_v0 = vor.u32 %v10289_v21, %v8939_v3  ;;  %v9093_v3 = vld [vmem:[%s15665_s6 + $0x198] sm:$0xf] }
 0x642   : > { %v8986_v43 = vor.u32 %v10302_v23, %v8985_v37  ;;  %v10314_v2 = vld [vmem:[%s15665_s6 + $0x128] sm:$0xf0]  ;;  %v8951_v37 = vld [vmem:[%s15665_s6 + $0x84] sm:$0xf0] }
 0x643   : > { %v4365_v48 = vadd.f32 %v12826_v49, %v4325_v6 }
 0x644   : > { %v3637_v16 = vpop.f32.mrf.mxu3 }
 0x645   : > { %v3675_v22 = vadd.f32 %v3637_v16, %v3291_v52  ;;  %5408 = vmatpush.bf16.msrb.mxu3 %v12961_v34  ;;  %v10277_v34 = vld [vmem:[%s15665_s6 + $0x4] sm:$0xf]  ;;  %v4401_v45 = vmax.f32 %v4365_v48, 0.0  ;;  %v8945_v52 = vld [vmem:[%s15665_s6 + $0x68] sm:$0xf] }
 0x646   : > { %v8894_v56 = vor.u32 %v10277_v34, %v8891_v29  ;;  %v10291_v16 = vld [vmem:[%s15665_s6 + $0x70] sm:$0xf0]  ;;  %v8957_v34 = vld [vmem:[%s15665_s6 + $0x80] sm:$0xf]  ;;  %v10294_v29 = vld [vmem:[%s15665_s6 + $0x88] sm:$0xf0] }
 0x647   : > { %v4067_v54 = vadd.f32 %v4029_v51, %v3675_v22  ;;  %v8946_v6 = vor.u32 %v10291_v16, %v8945_v52  ;;  %v9045_v51 = vld [vmem:[%s15665_s6 + $0x138] sm:$0xf] }
 0x649   : > { %v4326_v10 = vadd.f32 %v4288_v24, %v4067_v54  ;;  %5409 = vmatpush.bf16.msrb.mxu3 %v12946_v35  ;;  %v10317_v54 = vld [vmem:[%s15665_s6 + $0x140] sm:$0xf0]  ;;  %v10292_v24 = vld [vmem:[%s15665_s6 + $0x7c] sm:$0xf] }
 0x64a   : > { %v9046_v48 = vor.u32 %v10317_v54, %v9045_v51 }
 0x64b   : > { %v4366_v50 = vadd.f32 %v12826_v49, %v4326_v10  ;;  %v10279_v49 = vld [vmem:[%s15665_s6 + $0x10] sm:$0xf0]  ;;  %v8954_v10 = vor.u32 %v10292_v24, %v8951_v37 }
 0x64c   : > { %v8898_v61 = vor.u32 %v10279_v49, %v8897_v59 }
 0x64d   : > { %v4402_v27 = vmax.f32 %v4366_v50, 0.0  ;;  %5410 = vmatpush.bf16.msrb.mxu3 %v12927_v4  ;;  %v13072_v35 = vpop.f32.mrf.mxu0  ;;  %v8997_v4 = vld [vmem:[%s15665_s6 + $0xd8] sm:$0xf]  ;;  %v8958_v50 = vor.u32 %v10294_v29, %v8957_v34  ;;  %v9005_v34 = vld [vmem:[%s15665_s6 + $0xe0] sm:$0xf] }
 0x64e   : > { %v8998_v40 = vor.u32 %v10305_v13, %v8997_v4  ;;  %v8969_v4 = vld [vmem:[%s15665_s6 + $0x98] sm:$0xf]  ;;  %v10297_v13 = vld [vmem:[%s15665_s6 + $0xa0] sm:$0xf0]  ;;  %v10306_v29 = vld [vmem:[%s15665_s6 + $0xe8] sm:$0xf0] }
 0x64f   : > { %v4420_v42 = vpack.c.bf16 %v4402_v27, %v4401_v45  ;;  %v10320_v45 = vld [vmem:[%s15665_s6 + $0x158] sm:$0xf0]  ;;  %v10295_v27 = vld [vmem:[%s15665_s6 + $0x94] sm:$0xf]  ;;  %v8970_v1 = vor.u32 %v10297_v13, %v8969_v4  ;;  %v9105_v13 = vld [vmem:[%s15665_s6 + $0x1b0] sm:$0xf] }
 0x650   : > { %5262 = vmatmul.bf16.gmra.mxu0 %v8986_v43  ;;  %5411 = vmatmul.bf16.vlgmr.msrb.gmra.mxu3 %v8894_v56  ;;  %v9057_v56 = vld [vmem:[%s15665_s6 + $0x150] sm:$0xf] }
 0x651   : > { %5598 = vmatpush.bf16.msrb.mxu1 %v4420_v42  ;;  %v8963_v42 = vld [vmem:[%s15665_s6 + $0x9c] sm:$0xf0]  ;;  %v9058_v59 = vor.u32 %v10320_v45, %v9057_v56 }
 0x652   : > { %v8966_v49 = vor.u32 %v10295_v27, %v8963_v42  ;;  %v9006_v42 = vor.u32 %v10306_v29, %v9005_v34  ;;  %v9023_v34 = vld [vmem:[%s15665_s6 + $0x114] sm:$0xf0]  ;;  %v9381_v29 = vld [vmem:[%s15666_s7 + $0xb0] sm:$0xf] }
 0x655   : > { %5599 = vmatpush.bf16.msrb.mxu1 %v4419_v5  ;;  %v13080_v28 = vpop.f32.mrf.mxu0  ;;  %v9034_v5 = vor.u32 %v10314_v2, %v9033_v41 }
 0x658   : > { %9319 = vmatmul.msk.bf16.vlgmr.msrb.gmra.mxu1 %vm5105_vm7, %v8898_v61 }
 0x65d   : > { %v13095_v26 = vpop.f32.mrf.mxu0 }
 0x660   : > { %5267 = vmatmul.bf16.gmra.mxu0 %v8998_v40  ;;  %5416 = vmatmul.bf16.gmra.mxu3 %v8906_v60  ;;  %v9069_v40 = vld [vmem:[%s15665_s6 + $0x168] sm:$0xf]  ;;  %v10323_v60 = vld [vmem:[%s15665_s6 + $0x170] sm:$0xf0] }
 0x665   : > { %v13103_v18 = vpop.f32.mrf.mxu0 }
 0x668   : > { %9320 = vmatmul.msk.bf16.gmra.mxu1 %vm5105_vm7, %v8910_v7  ;;  %v9070_v7 = vor.u32 %v10323_v60, %v9069_v40  ;;  %v10307_v40 = vld [vmem:[%s15665_s6 + $0xf4] sm:$0xf]  ;;  %v9413_v60 = vld [vmem:[%s15666_s7 + $0xf0] sm:$0xf] }
 0x66d   : > { %v13118_v25 = vpop.f32.mrf.mxu0 }
 0x670   : > { %5272 = vmatmul.bf16.gmra.mxu0 %v9010_v47  ;;  %5421 = vmatmul.bf16.gmra.mxu3 %v8918_v62  ;;  %v8982_v47 = vor.u32 %v10300_v12, %v8981_v8 }
 0x675   : > { %v13126_v46 = vpop.f32.mrf.mxu0 }
 0x678   : > { %9321 = vmatmul.msk.bf16.gmra.mxu1 %vm5105_vm7, %v8922_v33  ;;  %v10301_v33 = vld [vmem:[%s15665_s6 + $0xc4] sm:$0xf] }
 0x679   : > { %v8990_v32 = vor.u32 %v10301_v33, %v8987_v38 }
 0x67d   : > { %v13141_v39 = vpop.f32.mrf.mxu0 }
 0x680   : > { %5277 = vmatmul.bf16.gmra.mxu0 %v9022_v17  ;;  %5426 = vmatmul.bf16.gmra.mxu3 %v8930_v30  ;;  %v8993_v17 = vld [vmem:[%s15665_s6 + $0xc8] sm:$0xf]  ;;  %v10303_v30 = vld [vmem:[%s15665_s6 + $0xd0] sm:$0xf0] }
 0x685   : > { %v13149_v63 = vpop.f32.mrf.mxu0 }
 0x688   : > { %9322 = vmatmul.msk.bf16.gmra.mxu1 %vm5105_vm7, %v8934_v15  ;;  %v8994_v15 = vor.u32 %v10303_v30, %v8993_v17  ;;  %v10309_v30 = vld [vmem:[%s15665_s6 + $0x100] sm:$0xf0] }
 0x68d   : > { %v13164_v44 = vpop.f32.mrf.mxu0 }
 0x690   : > { %5282 = vmatmul.bf16.gmra.mxu0 %v9034_v5  ;;  %5431 = vmatmul.bf16.gmra.mxu3 %v8942_v0  ;;  %v10329_v5 = vld [vmem:[%s15665_s6 + $0x1a0] sm:$0xf0]  ;;  %v10304_v0 = vld [vmem:[%s15665_s6 + $0xdc] sm:$0xf] }
 0x695   : > { %v13172_v22 = vpop.f32.mrf.mxu0 }
 0x698   : > { %9323 = vmatmul.msk.bf16.gmra.mxu1 %vm5105_vm7, %v8946_v6  ;;  %v9094_v6 = vor.u32 %v10329_v5, %v9093_v3 }
 0x69d   : > { %v13187_v23 = vpop.f32.mrf.mxu0 }
 0x6a0   : > { %5287 = vmatmul.bf16.gmra.mxu0 %v9046_v48  ;;  %5436 = vmatmul.bf16.gmra.mxu3 %v8954_v10 }
 0x6a5   : > { %v13195_v43 = vpop.f32.mrf.mxu0 }
 0x6a8   : > { %9324 = vmatmul.msk.bf16.gmra.mxu1 %vm5105_vm7, %v8958_v50 }
 0x6ad   : > { %v13210_v61 = vpop.f32.mrf.mxu0 }
 0x6b0   : > { %5292 = vmatmul.bf16.gmra.mxu0 %v9058_v59  ;;  %5441 = vmatmul.bf16.gmra.mxu3 %v8966_v49 }
 0x6b5   : > { %v13218_v53 = vpop.f32.mrf.mxu0 }
 0x6b8   : > { %9325 = vmatmul.msk.bf16.gmra.mxu1 %vm5105_vm7, %v8970_v1  ;;  %v10332_v1 = vld [vmem:[%s15665_s6 + $0x1b8] sm:$0xf0] }
 0x6b9   : > { %v9106_v8 = vor.u32 %v10332_v1, %v9105_v13  ;;  %v10406_v13 = vld [vmem:[%s15666_s7 + $0xa4] sm:$0xf0] }
 0x6bd   : > { %v13233_v20 = vpop.f32.mrf.mxu0 }
 0x6c0   : > { %5297 = vmatmul.bf16.gmra.mxu0 %v9070_v7  ;;  %5446 = vmatmul.bf16.gmra.mxu3 %v8978_v36  ;;  %v9414_v7 = vor.u32 %v10416_v58, %v9413_v60 }
 0x6c2   : > { %5989 = vmatpush.bf16.msrb.mxu2 %v9414_v7  ;;  %v10312_v7 = vld [vmem:[%s15665_s6 + $0x118] sm:$0xf0] }
 0x6c5   : > { %v13241_v62 = vpop.f32.mrf.mxu0 }
 0x6c8   : > { %9326 = vmatmul.msk.bf16.gmra.mxu1 %vm5105_vm7, %v8982_v47  ;;  %v9405_v47 = vld [vmem:[%s15666_s7 + $0xe0] sm:$0xf] }
 0x6c9   : > { %v9406_v33 = vor.u32 %v10414_v19, %v9405_v47  ;;  %v10404_v47 = vld [vmem:[%s15666_s7 + $0x94] sm:$0xf0] }
 0x6cb   : > { %5990 = vmatpush.bf16.msrb.mxu2 %v9406_v33 }
 0x6cd   : > { %v13256_v57 = vpop.f32.mrf.mxu0 }
 0x6d0   : > { %5302 = vmatmul.bf16.gmra.mxu0 %v9082_v55  ;;  %5451 = vmatmul.bf16.gmra.mxu3 %v8990_v32 }
 0x6d3   : > { %v5412_v9 = vpop.f32.mrf.mxu3 }
 0x6d4   : > { %v5413_v11 = vadd.f32 %v5412_v9, %v13072_v35  ;;  %v8999_v35 = vld [vmem:[%s15665_s6 + $0xe4] sm:$0xf0] }
 0x6d5   : > { %v5601_v41 = vpop.f32.mrf.mxu1  ;;  %v13265_v2 = vpop.f32.mrf.mxu0  ;;  %v9002_v51 = vor.u32 %v10304_v0, %v8999_v35  ;;  %v9389_v35 = vld [vmem:[%s15666_s7 + $0xc0] sm:$0xf] }
 0x6d6   : > { %v5602_v21 = vadd.f32 %v5601_v41, %v5413_v11  ;;  %v10412_v41 = vld [vmem:[%s15666_s7 + $0xd4] sm:$0xf0] }
 0x6d8   : > { %9327 = vmatmul.msk.bf16.gmra.mxu1 %vm5105_vm7, %v8994_v15  ;;  %v5781_v37 = vpack.c.bf16 %v5602_v21, %v5602_v21  ;;  %v9397_v15 = vld [vmem:[%s15666_s7 + $0xd0] sm:$0xf] }
 0x6d9   : > { %v9398_v3 = vor.u32 %v10412_v41, %v9397_v15  ;;  %v10338_v41 = vld [vmem:[%s15665_s6 + $0x1e8] sm:$0xf0] }
 0x6da   : > { %v6055_v50 = vunpack.c.l.b16 %v5781_v37 }
 0x6db   : > { %v5414_v52 = vpop.f32.mrf.mxu3  ;;  %5991 = vmatpush.bf16.msrb.mxu2 %v9398_v3  ;;  %v9035_v3 = vld [vmem:[%s15665_s6 + $0x12c] sm:$0xf0] }
 0x6dc   : > { %v5415_v16 = vadd.f32 %v5414_v52, %v13080_v28  ;;  %v10410_v52 = vld [vmem:[%s15666_s7 + $0xc4] sm:$0xf0] }
 0x6dd   : > { %v5603_v54 = vpop.f32.mrf.mxu1  ;;  %v13281_v24 = vpop.f32.mrf.mxu0 }
 0x6de   : > { %v5604_v48 = vadd.f32 %v5603_v54, %v5415_v16 }
 0x6e0   : > { %v5782_v10 = vpack.c.bf16 %v5604_v48, %v5604_v48  ;;  %5307 = vmatmul.bf16.gmra.mxu0 %v9094_v6  ;;  %5456 = vmatmul.bf16.gmra.mxu3 %v9002_v51  ;;  %v9390_v51 = vor.u32 %v10410_v52, %v9389_v35  ;;  %v10335_v48 = vld [vmem:[%s15665_s6 + $0x1d0] sm:$0xf0] }
 0x6e2   : > { %v6056_v28 = vunpack.c.l.b16 %v5782_v10  ;;  %v10310_v10 = vld [vmem:[%s15665_s6 + $0x10c] sm:$0xf]  ;;  %5992 = vmatpush.bf16.msrb.mxu2 %v9390_v51 }
 0x6e3   : > { %v5417_v56 = vpop.f32.mrf.mxu3 }
 0x6e4   : > { %v13289_v45 = vpack.c.b16 %v6056_v28, %v6055_v50  ;;  %v5418_v27 = vadd.f32 %v5417_v56, %v13095_v26  ;;  %v9011_v26 = vld [vmem:[%s15665_s6 + $0xfc] sm:$0xf0]  ;;  %v10408_v50 = vld [vmem:[%s15666_s7 + $0xb4] sm:$0xf0] }
 0x6e5   : > { %v5606_v59 = vpop.f32.mrf.mxu1  ;;  %v13292_v49 = vpop.f32.mrf.mxu0  ;;  %v9014_v12 = vor.u32 %v10307_v40, %v9011_v26  ;;  %v9382_v56 = vor.u32 %v10408_v50, %v9381_v29 }
 0x6e6   : > { %v5607_v4 = vadd.f32 %v5606_v59, %v5418_v27  ;;  %v9026_v59 = vor.u32 %v10310_v10, %v9023_v34  ;;  %v9041_v10 = vld [vmem:[%s15665_s6 + $0x128] sm:$0xf]  ;;  %v10315_v34 = vld [vmem:[%s15665_s6 + $0x130] sm:$0xf0] }
 0x6e7   : > { %5993 = vmatpush.bf16.msrb.mxu2 %v9382_v56 }
 0x6e8   : > { %9328 = vmatmul.msk.bf16.gmra.mxu1 %vm5105_vm7, %v9006_v42  ;;  %v5783_v55 = vpack.c.bf16 %v5607_v4, %v5607_v4  ;;  %v9373_v4 = vld [vmem:[%s15666_s7 + $0xa0] sm:$0xf] }
 0x6e9   : > { %v9374_v40 = vor.u32 %v10406_v13, %v9373_v4  ;;  %v9141_v4 = vld [vmem:[%s15665_s6 + $0x1f8] sm:$0xf]  ;;  %v10341_v13 = vld [vmem:[%s15665_s6 + $0x200] sm:$0xf0] }
 0x6ea   : > { %v6057_v9 = vunpack.c.l.b16 %v5783_v55 }
 0x6eb   : > { %v5419_v31 = vpop.f32.mrf.mxu3  ;;  %5994 = vmatpush.bf16.msrb.mxu2 %v9374_v40  ;;  %v9047_v40 = vld [vmem:[%s15665_s6 + $0x144] sm:$0xf0] }
 0x6ec   : > { %v5420_v36 = vadd.f32 %v5419_v31, %v13103_v18  ;;  %v9017_v18 = vld [vmem:[%s15665_s6 + $0xf8] sm:$0xf] }
 0x6ed   : > { %v5608_v14 = vpop.f32.mrf.mxu1  ;;  %v13320_v38 = vpop.f32.mrf.mxu0  ;;  %v9018_v0 = vor.u32 %v10309_v30, %v9017_v18 }
 0x6ee   : > { %v5609_v32 = vadd.f32 %v5608_v14, %v5420_v36 }
 0x6f0   : > { %v5784_v17 = vpack.c.bf16 %v5609_v32, %v5609_v32  ;;  %5312 = vmatmul.bf16.gmra.mxu0 %v9106_v8  ;;  %5461 = vmatmul.bf16.gmra.mxu3 %v9014_v12  ;;  %v9365_v12 = vld [vmem:[%s15666_s7 + $0x90] sm:$0xf]  ;;  %v9357_v32 = vld [vmem:[%s15666_s7 + $0x80] sm:$0xf] }
 0x6f1   : > { %v9366_v14 = vor.u32 %v10404_v47, %v9365_v12 }
 0x6f2   : > { %v6058_v11 = vunpack.c.l.b16 %v5784_v17  ;;  %v10402_v17 = vld [vmem:[%s15666_s7 + $0x84] sm:$0xf0] }
 0x6f3   : > { %v5422_v21 = vpop.f32.mrf.mxu3  ;;  %5995 = vmatpush.bf16.msrb.mxu2 %v9366_v14  ;;  %v10318_v14 = vld [vmem:[%s15665_s6 + $0x148] sm:$0xf0] }
 0x6f4   : > { %v5423_v5 = vadd.f32 %v5422_v21, %v13118_v25  ;;  %v13341_v16 = vpack.c.b16 %v6058_v11, %v6057_v9  ;;  %v9117_v25 = vld [vmem:[%s15665_s6 + $0x1c8] sm:$0xf]  ;;  %v9358_v9 = vor.u32 %v10402_v17, %v9357_v32  ;;  %v10313_v21 = vld [vmem:[%s15665_s6 + $0x124] sm:$0xf] }
 0x6f5   : > { %v5611_v6 = vpop.f32.mrf.mxu1  ;;  %v13343_v54 = vpop.f32.mrf.mxu0  ;;  %v9118_v42 = vor.u32 %v10335_v48, %v9117_v25  ;;  %v9038_v52 = vor.u32 %v10313_v21, %v9035_v3  ;;  %v10319_v21 = vld [vmem:[%s15665_s6 + $0x154] sm:$0xf] }
 0x6f6   : > { %v5612_v37 = vadd.f32 %v5611_v6, %v5423_v5 }
 0x6f7   : > { %5996 = vmatpush.bf16.msrb.mxu2 %v9358_v9 }
 0x6f8   : > { %9329 = vmatmul.msk.bf16.gmra.mxu1 %vm5105_vm7, %v9018_v0  ;;  %v5785_v60 = vpack.c.bf16 %v5612_v37, %v5612_v37 }
 0x6fa   : > { %v6059_v36 = vunpack.c.l.b16 %v5785_v60 }
 0x6fb   : > { %v5424_v28 = vpop.f32.mrf.mxu3 }
 0x6fc   : > { %v5425_v27 = vadd.f32 %v5424_v28, %v13126_v46  ;;  %v9029_v46 = vld [vmem:[%s15665_s6 + $0x110] sm:$0xf]  ;;  %v9042_v28 = vor.u32 %v10315_v34, %v9041_v10  ;;  %v9407_v10 = vld [vmem:[%s15666_s7 + $0xe8] sm:$0xf0] }
 0x6fd   : > { %v5613_v1 = vpop.f32.mrf.mxu1  ;;  %v13371_v26 = vpop.f32.mrf.mxu0  ;;  %v9030_v55 = vor.u32 %v10312_v7, %v9029_v46 }
 0x6fe   : > { %v5614_v58 = vadd.f32 %v5613_v1, %v5425_v27  ;;  %v10316_v1 = vld [vmem:[%s15665_s6 + $0x13c] sm:$0xf] }
 0x6ff   : > { %v9050_v46 = vor.u32 %v10316_v1, %v9047_v40  ;;  %v10411_v1 = vld [vmem:[%s15666_s7 + $0xd4] sm:$0xf]  ;;  %v9399_v40 = vld [vmem:[%s15666_s7 + $0xd8] sm:$0xf0] }
 0x700   : > { %v5786_v31 = vpack.c.bf16 %v5614_v58, %v5614_v58  ;;  %5317 = vmatmul.bf16.gmra.mxu0 %v9118_v42  ;;  %5466 = vmatmul.bf16.gmra.mxu3 %v9026_v59 }
 0x702   : > { %v6060_v8 = vunpack.c.l.b16 %v5786_v31  ;;  %v9142_v31 = vor.u32 %v10341_v13, %v9141_v4 }
 0x703   : > { %v5427_v19 = vpop.f32.mrf.mxu3 }
 0x704   : > { %v5428_v33 = vadd.f32 %v5427_v19, %v13141_v39  ;;  %v13392_v18 = vpack.c.b16 %v6060_v8, %v6059_v36  ;;  %v9129_v39 = vld [vmem:[%s15665_s6 + $0x1e0] sm:$0xf] }
 0x705   : > { %v5616_v30 = vpop.f32.mrf.mxu1  ;;  %v13394_v11 = vpop.f32.mrf.mxu0  ;;  %v9130_v35 = vor.u32 %v10338_v41, %v9129_v39  ;;  %v9053_v19 = vld [vmem:[%s15665_s6 + $0x140] sm:$0xf]  ;;  %v9153_v39 = vld [vmem:[%s15665_s6 + $0x210] sm:$0xf]  ;;  %v10344_v41 = vld [vmem:[%s15665_s6 + $0x218] sm:$0xf0] }
 0x706   : > { %v5617_v15 = vadd.f32 %v5616_v30, %v5428_v33  ;;  %v9054_v17 = vor.u32 %v10318_v14, %v9053_v19  ;;  %v9165_v14 = vld [vmem:[%s15665_s6 + $0x228] sm:$0xf] }
 0x708   : > { %9330 = vmatmul.msk.bf16.gmra.mxu1 %vm5105_vm7, %v9030_v55  ;;  %v5787_v37 = vpack.c.bf16 %v5617_v15, %v5617_v15 }
 0x70a   : > { %v6061_v29 = vunpack.c.l.b16 %v5787_v37  ;;  %v9154_v37 = vor.u32 %v10344_v41, %v9153_v39 }
 0x70b   : > { %v5429_v5 = vpop.f32.mrf.mxu3 }
 0x70c   : > { %v5430_v0 = vadd.f32 %v5429_v5, %v13149_v63  ;;  %v10415_v5 = vld [vmem:[%s15666_s7 + $0xf4] sm:$0xf] }
 0x70d   : > { %v5618_v6 = vpop.f32.mrf.mxu1  ;;  %v13410_v51 = vpop.f32.mrf.mxu0 }
 0x70e   : > { %v5619_v25 = vadd.f32 %v5618_v6, %v5430_v0  ;;  %v9415_v0 = vld [vmem:[%s15666_s7 + $0xf8] sm:$0xf0] }
 0x710   : > { %v5788_v48 = vpack.c.bf16 %v5619_v25, %v5619_v25  ;;  %5322 = vmatmul.bf16.gmra.mxu0 %v9130_v35  ;;  %5471 = vmatmul.bf16.gmra.mxu3 %v9038_v52  ;;  %v9418_v52 = vor.u32 %v10415_v5, %v9415_v0  ;;  %v9375_v5 = vld [vmem:[%s15666_s7 + $0xa8] sm:$0xf0] }
 0x712   : > { %v6062_v63 = vunpack.c.l.b16 %v5788_v48  ;;  %v10413_v48 = vld [vmem:[%s15666_s7 + $0xe4] sm:$0xf]  ;;  %6018 = vmatpush.bf16.msra.mxu2 %v9418_v52 }
 0x713   : > { %v5432_v50 = vpop.f32.mrf.mxu3 }
 0x714   : > { %v13418_v56 = vpack.c.b16 %v6062_v63, %v6061_v29  ;;  %v5433_v59 = vadd.f32 %v5432_v50, %v13164_v44  ;;  %v9410_v29 = vor.u32 %v10413_v48, %v9407_v10  ;;  %v10324_v48 = vld [vmem:[%s15665_s6 + $0x178] sm:$0xf0] }
 0x715   : > { %v5621_v27 = vpop.f32.mrf.mxu1  ;;  %v13420_v42 = vpop.f32.mrf.mxu0 }
 0x716   : > { %v5622_v60 = vadd.f32 %v5621_v27, %v5433_v59  ;;  %v10321_v59 = vld [vmem:[%s15665_s6 + $0x160] sm:$0xf0]  ;;  %6019 = vmatpush.bf16.msra.mxu2 %v9410_v29  ;;  %v10403_v29 = vld [vmem:[%s15666_s7 + $0x94] sm:$0xf] }
 0x718   : > { %9331 = vmatmul.msk.bf16.gmra.mxu1 %vm5105_vm7, %v9042_v28  ;;  %v5789_v8 = vpack.c.bf16 %v5622_v60, %v5622_v60 }
 0x71a   : > { %v5893_v33 = vunpack.c.l.b16 %v5789_v8 }
 0x71b   : > { %v5434_v44 = vpop.f32.mrf.mxu3 }
 0x71c   : > { %v5435_v58 = vadd.f32 %v5434_v44, %v13172_v22  ;;  %v9402_v44 = vor.u32 %v10411_v1, %v9399_v40 }
 0x71d   : > { %v5623_v7 = vpop.f32.mrf.mxu1  ;;  %v13437_v36 = vpop.f32.mrf.mxu0 }
 0x71e   : > { %v5624_v12 = vadd.f32 %v5623_v7, %v5435_v58  ;;  %v9391_v7 = vld [vmem:[%s15666_s7 + $0xc8] sm:$0xf0]  ;;  %6020 = vmatpush.bf16.msra.mxu2 %v9402_v44 }
 0x720   : > { %v5790_v47 = vpack.c.bf16 %v5624_v12, %v5624_v12  ;;  %5327 = vmatmul.bf16.gmra.mxu0 %v9142_v31  ;;  %5476 = vmatmul.bf16.gmra.mxu3 %v9050_v46  ;;  %v10409_v46 = vld [vmem:[%s15666_s7 + $0xc4] sm:$0xf] }
 0x721   : > { %v9394_v12 = vor.u32 %v10409_v46, %v9391_v7  ;;  %v10350_v46 = vld [vmem:[%s15665_s6 + $0x248] sm:$0xf0]  ;;  %v10325_v7 = vld [vmem:[%s15665_s6 + $0x184] sm:$0xf] }
 0x722   : > { %v5894_v22 = vunpack.c.l.b16 %v5790_v47 }
 0x723   : > { %v5437_v55 = vpop.f32.mrf.mxu3  ;;  %6021 = vmatpush.bf16.msra.mxu2 %v9394_v12 }
 0x724   : > { %v13445_v32 = vpack.c.b16 %v5894_v22, %v5893_v33  ;;  %v5438_v15 = vadd.f32 %v5437_v55, %v13187_v23  ;;  %v9059_v23 = vld [vmem:[%s15665_s6 + $0x15c] sm:$0xf0]  ;;  %v10347_v33 = vld [vmem:[%s15665_s6 + $0x230] sm:$0xf0]  ;;  %v10322_v22 = vld [vmem:[%s15665_s6 + $0x16c] sm:$0xf] }
 0x725   : > { %v5626_v30 = vpop.f32.mrf.mxu1  ;;  %v13447_v9 = vpop.f32.mrf.mxu0  ;;  %v9062_v25 = vor.u32 %v10319_v21, %v9059_v23  ;;  %v9166_v21 = vor.u32 %v10347_v33, %v9165_v14 }
 0x726   : > { %5997 = vmatmul.bf16.vlgmr.msrb.gmra.mxu2 %v13445_v32  ;;  %v5627_v3 = vadd.f32 %v5626_v30, %v5438_v15  ;;  %v9383_v30 = vld [vmem:[%s15666_s7 + $0xb8] sm:$0xf0] }
 0x728   : > { %9332 = vmatmul.msk.bf16.gmra.mxu1 %vm5105_vm7, %v9054_v17  ;;  %v5791_v50 = vpack.c.bf16 %v5627_v3, %v5627_v3  ;;  %v10407_v17 = vld [vmem:[%s15666_s7 + $0xb4] sm:$0xf]  ;;  %v10405_v3 = vld [vmem:[%s15666_s7 + $0xa4] sm:$0xf] }
 0x729   : > { %v9386_v39 = vor.u32 %v10407_v17, %v9383_v30 }
 0x72a   : > { %v5895_v4 = vunpack.c.l.b16 %v5791_v50  ;;  %v9367_v50 = vld [vmem:[%s15666_s7 + $0x98] sm:$0xf0] }
 0x72b   : > { %v5439_v35 = vpop.f32.mrf.mxu3  ;;  %6022 = vmatpush.bf16.msra.mxu2 %v9386_v39  ;;  %v10327_v39 = vld [vmem:[%s15665_s6 + $0x190] sm:$0xf0] }
 0x72c   : > { %v5440_v6 = vadd.f32 %v5439_v35, %v13195_v43  ;;  %v9065_v43 = vld [vmem:[%s15665_s6 + $0x158] sm:$0xf]  ;;  %v9378_v35 = vor.u32 %v10405_v3, %v9375_v5 }
 0x72d   : > { %v5628_v34 = vpop.f32.mrf.mxu1  ;;  %v13477_v63 = vpop.f32.mrf.mxu0  ;;  %v9066_v31 = vor.u32 %v10321_v59, %v9065_v43 }
 0x72e   : > { %v5629_v28 = vadd.f32 %v5628_v34, %v5440_v6 }
 0x72f   : > { %6023 = vmatpush.bf16.msra.mxu2 %v9378_v35 }
 0x730   : > { %v5792_v27 = vpack.c.bf16 %v5629_v28, %v5629_v28  ;;  %5332 = vmatmul.bf16.gmra.mxu0 %v9154_v37  ;;  %5481 = vmatmul.bf16.gmra.mxu3 %v9062_v25 }
 0x732   : > { %v5896_v13 = vunpack.c.l.b16 %v5792_v27  ;;  %v9370_v27 = vor.u32 %v10403_v29, %v9367_v50 }
 0x733   : > { %v5442_v60 = vpop.f32.mrf.mxu3 }
 0x734   : > { %v13491_v58 = vpack.c.b16 %v5896_v13, %v5895_v4  ;;  %v5443_v19 = vadd.f32 %v5442_v60, %v13210_v61  ;;  %v9071_v61 = vld [vmem:[%s15665_s6 + $0x174] sm:$0xf0]  ;;  %v10401_v4 = vld [vmem:[%s15666_s7 + $0x84] sm:$0xf]  ;;  %v9359_v13 = vld [vmem:[%s15666_s7 + $0x88] sm:$0xf0]  ;;  %6024 = vmatpush.bf16.msra.mxu2 %v9370_v27 }
 0x735   : > { %v5631_v8 = vpop.f32.mrf.mxu1  ;;  %v13499_v47 = vpop.f32.mrf.mxu0  ;;  %v9074_v23 = vor.u32 %v10322_v22, %v9071_v61  ;;  %v9362_v40 = vor.u32 %v10401_v4, %v9359_v13 }
 0x736   : > { %6002 = vmatmul.bf16.gmra.mxu2 %v13491_v58  ;;  %v5632_v55 = vadd.f32 %v5631_v8, %v5443_v19 }
 0x738   : > { %9333 = vmatmul.msk.bf16.gmra.mxu1 %vm5105_vm7, %v9066_v31  ;;  %v5793_v6 = vpack.c.bf16 %v5632_v55, %v5632_v55  ;;  %v9177_v31 = vld [vmem:[%s15665_s6 + $0x240] sm:$0xf]  ;;  %6025 = vmatpush.bf16.msra.mxu2 %v9362_v40 }
 0x739   : > { %v9178_v14 = vor.u32 %v10350_v46, %v9177_v31  ;;  %v10330_v31 = vld [vmem:[%s15665_s6 + $0x1a8] sm:$0xf0] }
 0x73a   : > { %v5897_v10 = vunpack.c.l.b16 %v5793_v6 }
 0x73b   : > { %v5444_v15 = vpop.f32.mrf.mxu3 }
 0x73c   : > { %v5445_v41 = vadd.f32 %v5444_v15, %v13218_v53  ;;  %v9077_v53 = vld [vmem:[%s15665_s6 + $0x170] sm:$0xf]  ;;  %v9089_v15 = vld [vmem:[%s15665_s6 + $0x188] sm:$0xf] }
 0x73d   : > { %v5633_v0 = vpop.f32.mrf.mxu1  ;;  %v13529_v52 = vpop.f32.mrf.mxu0  ;;  %v9078_v59 = vor.u32 %v10324_v48, %v9077_v53  ;;  %v9090_v5 = vor.u32 %v10327_v39, %v9089_v15  ;;  %v9095_v53 = vld [vmem:[%s15665_s6 + $0x1a4] sm:$0xf0]  ;;  %v9669_v48 = vld [vmem:[%s15666_s7 + $0x270] sm:$0xf] }
 0x73e   : > { %v5634_v37 = vadd.f32 %v5633_v0, %v5445_v41 }
 0x740   : > { %v5794_v25 = vpack.c.bf16 %v5634_v37, %v5634_v37  ;;  %5337 = vmatmul.bf16.gmra.mxu0 %v9166_v21  ;;  %5486 = vmatmul.bf16.gmra.mxu3 %v9074_v23  ;;  %v9189_v37 = vld [vmem:[%s15665_s6 + $0x258] sm:$0xf] }
 0x742   : > { %v5898_v34 = vunpack.c.l.b16 %v5794_v25  ;;  %v10353_v25 = vld [vmem:[%s15665_s6 + $0x260] sm:$0xf0] }
 0x743   : > { %v5447_v28 = vpop.f32.mrf.mxu3 }
 0x744   : > { %v13543_v43 = vpack.c.b16 %v5898_v34, %v5897_v10  ;;  %v5448_v44 = vadd.f32 %v5447_v28, %v13233_v20  ;;  %v9083_v20 = vld [vmem:[%s15665_s6 + $0x18c] sm:$0xf0]  ;;  %v10464_v10 = vld [vmem:[%s15666_s7 + $0x274] sm:$0xf0]  ;;  %v9190_v28 = vor.u32 %v10353_v25, %v9189_v37 }
 0x745   : > { %v5636_v1 = vpop.f32.mrf.mxu1  ;;  %v13551_v60 = vpop.f32.mrf.mxu0  ;;  %v9086_v33 = vor.u32 %v10325_v7, %v9083_v20  ;;  %v9670_v29 = vor.u32 %v10464_v10, %v9669_v48  ;;  %v10333_v48 = vld [vmem:[%s15665_s6 + $0x1c0] sm:$0xf0] }
 0x746   : > { %6007 = vmatmul.bf16.gmra.mxu2 %v13543_v43  ;;  %v5637_v8 = vadd.f32 %v5636_v1, %v5448_v44  ;;  %v9101_v44 = vld [vmem:[%s15665_s6 + $0x1a0] sm:$0xf] }
 0x747   : > { %6717 = vmatpush.bf16.msra.mxu0 %v9670_v29  ;;  %v9461_v29 = vld [vmem:[%s15666_s7 + $0x50] sm:$0xf] }
 0x748   : > { %9334 = vmatmul.msk.bf16.gmra.mxu1 %vm5105_vm7, %v9078_v59  ;;  %v5795_v55 = vpack.c.bf16 %v5637_v8, %v5637_v8 }
 0x74a   : > { %v5899_v41 = vunpack.c.l.b16 %v5795_v55  ;;  %v10356_v55 = vld [vmem:[%s15665_s6 + $0x278] sm:$0xf0] }
 0x74b   : > { %v5449_v12 = vpop.f32.mrf.mxu3 }
 0x74c   : > { %v5450_v19 = vadd.f32 %v5449_v12, %v13241_v62  ;;  %v9102_v12 = vor.u32 %v10330_v31, %v9101_v44 }
 0x74d   : > { %v5638_v22 = vpop.f32.mrf.mxu1  ;;  %v13569_v61 = vpop.f32.mrf.mxu0 }
 0x74e   : > { %v5639_v17 = vadd.f32 %v5638_v22, %v5450_v19  ;;  %v9201_v22 = vld [vmem:[%s15665_s6 + $0x270] sm:$0xf] }
 0x750   : > { %v5796_v30 = vpack.c.bf16 %v5639_v17, %v5639_v17  ;;  %5342 = vmatmul.bf16.gmra.mxu0 %v9178_v14  ;;  %5491 = vmatmul.bf16.gmra.mxu3 %v9086_v33  ;;  %v9107_v17 = vld [vmem:[%s15665_s6 + $0x1bc] sm:$0xf0] }
 0x752   : > { %v5900_v62 = vunpack.c.l.b16 %v5796_v30  ;;  %v10400_v30 = vld [vmem:[%s15666_s7 + $0x74] sm:$0xf0] }
 0x753   : > { %v5452_v21 = vpop.f32.mrf.mxu3 }
 0x754   : > { %v5453_v23 = vadd.f32 %v5452_v21, %v13256_v57  ;;  %v13578_v3 = vpack.c.b16 %v5900_v62, %v5899_v41  ;;  %v10328_v57 = vld [vmem:[%s15665_s6 + $0x19c] sm:$0xf]  ;;  %v9202_v62 = vor.u32 %v10356_v55, %v9201_v22 }
 0x755   : > { %v5641_v0 = vpop.f32.mrf.mxu1  ;;  %v13580_v35 = vpop.f32.mrf.mxu0  ;;  %v9098_v27 = vor.u32 %v10328_v57, %v9095_v53 }
 0x756   : > { %v5642_v6 = vadd.f32 %v5641_v0, %v5453_v23  ;;  %6012 = vmatmul.bf16.gmra.mxu2 %v13578_v3  ;;  %v9469_v23 = vld [vmem:[%s15666_s7 + $0x60] sm:$0xf] }
 0x758   : > { %9335 = vmatmul.msk.bf16.gmra.mxu1 %vm5105_vm7, %v9090_v5  ;;  %v5797_v13 = vpack.c.bf16 %v5642_v6, %v5642_v6  ;;  %v10398_v5 = vld [vmem:[%s15666_s7 + $0x64] sm:$0xf0] }
 0x759   : > { %v9470_v6 = vor.u32 %v10398_v5, %v9469_v23 }
 0x75b   : > { %v5454_v34 = vpop.f32.mrf.mxu3 }
 0x75c   : > { %v5455_v50 = vadd.f32 %v5454_v34, %v13265_v2  ;;  %v6233_v2 = vunpack.c.l.b16 %v5797_v13 }
 0x75d   : > { %v5643_v59 = vpop.f32.mrf.mxu1  ;;  %v13603_v4 = vpop.f32.mrf.mxu0 }
 0x75e   : > { %v5644_v1 = vadd.f32 %v5643_v59, %v5455_v50  ;;  %v10396_v50 = vld [vmem:[%s15666_s7 + $0x54] sm:$0xf0] }
 0x760   : > { %v5798_v40 = vpack.c.bf16 %v5644_v1, %v5644_v1  ;;  %5347 = vmatmul.bf16.gmra.mxu0 %v9190_v28  ;;  %5496 = vmatmul.bf16.gmra.mxu3 %v9098_v27  ;;  %v9462_v27 = vor.u32 %v10396_v50, %v9461_v29  ;;  %v9453_v1 = vld [vmem:[%s15666_s7 + $0x40] sm:$0xf]  ;;  %v10386_v50 = vld [vmem:[%s15666_s7 + $0x4] sm:$0xf0] }
 0x761   : > { %v9421_v29 = vld [vmem:[%s15666_s7] sm:$0xf] }
 0x762   : > { %v6234_v46 = vunpack.c.l.b16 %v5798_v40  ;;  %v10394_v40 = vld [vmem:[%s15666_s7 + $0x44] sm:$0xf0] }
 0x763   : > { %v5457_v7 = vpop.f32.mrf.mxu3 }
 0x764   : > { %v13611_v20 = vpack.c.b16 %v6234_v46, %v6233_v2  ;;  %v5458_v8 = vadd.f32 %v5457_v7, %v13281_v24  ;;  %v10331_v24 = vld [vmem:[%s15665_s6 + $0x1b4] sm:$0xf]  ;;  %v9454_v2 = vor.u32 %v10394_v40, %v9453_v1  ;;  %v10362_v40 = vld [vmem:[%s15665_s6 + $0x2a8] sm:$0xf0] }
 0x765   : > { %v5646_v19 = vpop.f32.mrf.mxu1  ;;  %v13614_v14 = vpop.f32.mrf.mxu0  ;;  %v9110_v21 = vor.u32 %v10331_v24, %v9107_v17 }
 0x766   : > { %v5647_v33 = vadd.f32 %v5646_v19, %v5458_v8  ;;  %6026 = vmatmul.bf16.vlgmr.msra.gmra.mxu2 %v13445_v32  ;;  %v9477_v32 = vld [vmem:[%s15666_s7 + $0x70] sm:$0xf]  ;;  %v10359_v8 = vld [vmem:[%s15665_s6 + $0x290] sm:$0xf0]  ;;  %v9119_v19 = vld [vmem:[%s15665_s6 + $0x1d4] sm:$0xf0] }
 0x767   : > { %v9478_v39 = vor.u32 %v10400_v30, %v9477_v32  ;;  %v9437_v30 = vld [vmem:[%s15666_s7 + $0x20] sm:$0xf] }
 0x768   : > { %9336 = vmatmul.msk.bf16.gmra.mxu1 %vm5105_vm7, %v9102_v12  ;;  %v5799_v25 = vpack.c.bf16 %v5647_v33, %v5647_v33  ;;  %v10334_v12 = vld [vmem:[%s15665_s6 + $0x1cc] sm:$0xf]  ;;  %v10392_v33 = vld [vmem:[%s15666_s7 + $0x34] sm:$0xf0] }
 0x769   : > { %6151 = vmatpush.bf16.msrb.mxu2 %v9478_v39  ;;  %v9122_v32 = vor.u32 %v10334_v12, %v9119_v19 }
 0x76a   : > { %v6235_v10 = vunpack.c.l.b16 %v5799_v25 }
 0x76b   : > { %v5459_v15 = vpop.f32.mrf.mxu3 }
 0x76c   : > { %v5460_v41 = vadd.f32 %v5459_v15, %v13292_v49  ;;  %v9113_v49 = vld [vmem:[%s15665_s6 + $0x1b8] sm:$0xf]  ;;  %v10390_v15 = vld [vmem:[%s15666_s7 + $0x24] sm:$0xf0] }
 0x76d   : > { %v5648_v0 = vpop.f32.mrf.mxu1  ;;  %v13643_v37 = vpop.f32.mrf.mxu0  ;;  %6152 = vmatpush.bf16.msrb.mxu2 %v9470_v6  ;;  %v9114_v13 = vor.u32 %v10333_v48, %v9113_v49 }
 0x76e   : > { %v5649_v57 = vadd.f32 %v5648_v0, %v5460_v41  ;;  %v9438_v41 = vor.u32 %v10390_v15, %v9437_v30  ;;  %v10336_v0 = vld [vmem:[%s15665_s6 + $0x1d8] sm:$0xf0]  ;;  %v10480_v30 = vld [vmem:[%s15666_s7 + $0x2f4] sm:$0xf0] }
 0x770   : > { %v5800_v53 = vpack.c.bf16 %v5649_v57, %v5649_v57  ;;  %5352 = vmatmul.bf16.gmra.mxu0 %v9202_v62  ;;  %5501 = vmatmul.bf16.gmra.mxu3 %v9110_v21  ;;  %v9429_v57 = vld [vmem:[%s15666_s7 + $0x10] sm:$0xf] }
 0x771   : > { %6153 = vmatpush.bf16.msrb.mxu2 %v9462_v27 }
 0x772   : > { %v6236_v34 = vunpack.c.l.b16 %v5800_v53  ;;  %v10388_v53 = vld [vmem:[%s15666_s7 + $0x14] sm:$0xf0] }
 0x773   : > { %v5462_v28 = vpop.f32.mrf.mxu3  ;;  %v9430_v48 = vor.u32 %v10388_v53, %v9429_v57  ;;  %v9143_v57 = vld [vmem:[%s15665_s6 + $0x204] sm:$0xf0] }
 0x774   : > { %v5463_v59 = vadd.f32 %v5462_v28, %v13320_v38  ;;  %v13664_v44 = vpack.c.b16 %v6236_v34, %v6235_v10  ;;  %v9213_v38 = vld [vmem:[%s15665_s6 + $0x288] sm:$0xf] }
 0x775   : > { %v5651_v31 = vpop.f32.mrf.mxu1  ;;  %v13666_v46 = vpop.f32.mrf.mxu0  ;;  %6154 = vmatpush.bf16.msrb.mxu2 %v9454_v2  ;;  %v9214_v17 = vor.u32 %v10359_v8, %v9213_v38  ;;  %v9131_v2 = vld [vmem:[%s15665_s6 + $0x1ec] sm:$0xf0] }
 0x776   : > { %v5652_v7 = vadd.f32 %v5651_v31, %v5463_v59  ;;  %6031 = vmatmul.bf16.gmra.mxu2 %v13491_v58  ;;  %v9445_v58 = vld [vmem:[%s15666_s7 + $0x30] sm:$0xf]  ;;  %v9422_v59 = vor.u32 %v10386_v50, %v9421_v29  ;;  %v10337_v31 = vld [vmem:[%s15665_s6 + $0x1e4] sm:$0xf] }
 0x777   : > { %v9446_v55 = vor.u32 %v10392_v33, %v9445_v58  ;;  %v9134_v8 = vor.u32 %v10337_v31, %v9131_v2  ;;  %v10462_v31 = vld [vmem:[%s15666_s7 + $0x264] sm:$0xf0] }
 0x778   : > { %9337 = vmatmul.msk.bf16.gmra.mxu1 %vm5105_vm7, %v9114_v13  ;;  %v5801_v21 = vpack.c.bf16 %v5652_v7, %v5652_v7 }
 0x779   : > { %6155 = vmatpush.bf16.msrb.mxu2 %v9446_v55  ;;  %v9137_v55 = vld [vmem:[%s15665_s6 + $0x1e8] sm:$0xf] }
 0x77a   : > { %v6237_v6 = vunpack.c.l.b16 %v5801_v21 }
 0x77b   : > { %v5464_v22 = vpop.f32.mrf.mxu3 }
 0x77c   : > { %v5465_v24 = vadd.f32 %v5464_v22, %v13343_v54  ;;  %v9125_v54 = vld [vmem:[%s15665_s6 + $0x1d0] sm:$0xf] }
 0x77d   : > { %v5653_v39 = vpop.f32.mrf.mxu1  ;;  %v13695_v62 = vpop.f32.mrf.mxu0  ;;  %6156 = vmatpush.bf16.msrb.mxu2 %v9438_v41  ;;  %v9126_v34 = vor.u32 %v10336_v0, %v9125_v54 }
 0x77e   : > { %v5654_v23 = vadd.f32 %v5653_v39, %v5465_v24  ;;  %v10339_v24 = vld [vmem:[%s15665_s6 + $0x1f0] sm:$0xf0] }
 0x77f   : > { %v9138_v21 = vor.u32 %v10339_v24, %v9137_v55  ;;  %v10343_v24 = vld [vmem:[%s15665_s6 + $0x214] sm:$0xf] }
 0x780   : > { %v5802_v5 = vpack.c.bf16 %v5654_v23, %v5654_v23  ;;  %5357 = vmatmul.bf16.gmra.mxu0 %v9214_v17  ;;  %5506 = vmatmul.bf16.gmra.mxu3 %v9122_v32  ;;  %v9733_v32 = vld [vmem:[%s15666_s7 + $0x2f0] sm:$0xf] }
 0x781   : > { %6157 = vmatpush.bf16.msrb.mxu2 %v9430_v48  ;;  %v9734_v39 = vor.u32 %v10480_v30, %v9733_v32  ;;  %v9479_v32 = vld [vmem:[%s15666_s7 + $0x78] sm:$0xf0] }
 0x782   : > { %v6238_v25 = vunpack.c.l.b16 %v5802_v5 }
 0x783   : > { %v5467_v49 = vpop.f32.mrf.mxu3  ;;  %6911 = vmatpush.bf16.msra.mxu3 %v9734_v39 }
 0x784   : > { %v5468_v10 = vadd.f32 %v5467_v49, %v13371_v26  ;;  %v13716_v28 = vpack.c.b16 %v6238_v25, %v6237_v6  ;;  %v9225_v26 = vld [vmem:[%s15665_s6 + $0x2a0] sm:$0xf]  ;;  %v9237_v6 = vld [vmem:[%s15665_s6 + $0x2b8] sm:$0xf]  ;;  %v10340_v25 = vld [vmem:[%s15665_s6 + $0x1fc] sm:$0xf] }
 0x785   : > { %v5656_v27 = vpop.f32.mrf.mxu1  ;;  %v13718_v13 = vpop.f32.mrf.mxu0  ;;  %6158 = vmatpush.bf16.msrb.mxu2 %v9422_v59  ;;  %v9226_v38 = vor.u32 %v10362_v40, %v9225_v26  ;;  %v9146_v48 = vor.u32 %v10340_v25, %v9143_v57  ;;  %v9149_v59 = vld [vmem:[%s15665_s6 + $0x200] sm:$0xf] }
 0x786   : > { %v5657_v1 = vadd.f32 %v5656_v27, %v5468_v10  ;;  %6036 = vmatmul.bf16.gmra.mxu2 %v13543_v43  ;;  %v9661_v40 = vld [vmem:[%s15666_s7 + $0x260] sm:$0xf] }
 0x788   : > { %9338 = vmatmul.msk.bf16.gmra.mxu1 %vm5105_vm7, %v9126_v34  ;;  %v5803_v58 = vpack.c.bf16 %v5657_v1, %v5657_v1  ;;  %v10342_v1 = vld [vmem:[%s15665_s6 + $0x208] sm:$0xf0] }
 0x78a   : > { %v6239_v17 = vunpack.c.l.b16 %v5803_v58 }
 0x78b   : > { %v5469_v43 = vpop.f32.mrf.mxu3 }
 0x78c   : > { %v5470_v7 = vadd.f32 %v5469_v43, %v13394_v11  ;;  %v9662_v43 = vor.u32 %v10462_v31, %v9661_v40  ;;  %v10393_v40 = vld [vmem:[%s15666_s7 + $0x44] sm:$0xf]  ;;  %v9455_v31 = vld [vmem:[%s15666_s7 + $0x48] sm:$0xf0] }
 0x78d   : > { %v5658_v12 = vpop.f32.mrf.mxu1  ;;  %v13735_v19 = vpop.f32.mrf.mxu0 }
 0x78e   : > { %v5659_v33 = vadd.f32 %v5658_v12, %v5470_v7  ;;  %6718 = vmatpush.bf16.msra.mxu0 %v9662_v43 }
 0x790   : > { %v5804_v22 = vpack.c.bf16 %v5659_v33, %v5659_v33  ;;  %5362 = vmatmul.bf16.gmra.mxu0 %v9226_v38  ;;  %5511 = vmatmul.bf16.gmra.mxu3 %v9134_v8  ;;  %v9150_v8 = vor.u32 %v10342_v1, %v9149_v59 }
 0x792   : > { %v6240_v11 = vunpack.c.l.b16 %v5804_v22  ;;  %v9249_v22 = vld [vmem:[%s15665_s6 + $0x2d0] sm:$0xf] }
 0x793   : > { %v5472_v15 = vpop.f32.mrf.mxu3 }
 0x794   : > { %v5473_v41 = vadd.f32 %v5472_v15, %v13410_v51  ;;  %v13750_v23 = vpack.c.b16 %v6240_v11, %v6239_v17  ;;  %v10365_v51 = vld [vmem:[%s15665_s6 + $0x2c0] sm:$0xf0]  ;;  %v9155_v17 = vld [vmem:[%s15665_s6 + $0x21c] sm:$0xf0]  ;;  %v10399_v11 = vld [vmem:[%s15666_s7 + $0x74] sm:$0xf] }
 0x795   : > { %v5661_v5 = vpop.f32.mrf.mxu1  ;;  %v13752_v54 = vpop.f32.mrf.mxu0  ;;  %v9238_v49 = vor.u32 %v10365_v51, %v9237_v6  ;;  %v9482_v15 = vor.u32 %v10399_v11, %v9479_v32  ;;  %v9447_v11 = vld [vmem:[%s15666_s7 + $0x38] sm:$0xf0] }
 0x796   : > { %v5662_v0 = vadd.f32 %v5661_v5, %v5473_v41  ;;  %6041 = vmatmul.bf16.gmra.mxu2 %v13578_v3  ;;  %v10397_v5 = vld [vmem:[%s15666_s7 + $0x64] sm:$0xf] }
 0x797   : > { %6180 = vmatpush.bf16.msra.mxu2 %v9482_v15 }
 0x798   : > { %9339 = vmatmul.msk.bf16.gmra.mxu1 %vm5105_vm7, %v9138_v21  ;;  %v5805_v29 = vpack.c.bf16 %v5662_v0, %v5662_v0  ;;  %v9158_v21 = vor.u32 %v10343_v24, %v9155_v17  ;;  %v9471_v0 = vld [vmem:[%s15666_s7 + $0x68] sm:$0xf0]  ;;  %v9167_v24 = vld [vmem:[%s15665_s6 + $0x234] sm:$0xf0]  ;;  %v10391_v17 = vld [vmem:[%s15666_s7 + $0x34] sm:$0xf] }
 0x799   : > { %v9474_v51 = vor.u32 %v10397_v5, %v9471_v0  ;;  %v9439_v5 = vld [vmem:[%s15666_s7 + $0x28] sm:$0xf0] }
 0x79a   : > { %v6427_v26 = vunpack.c.l.b16 %v5805_v29 }
 0x79b   : > { %v5474_v53 = vpop.f32.mrf.mxu3  ;;  %6181 = vmatpush.bf16.msra.mxu2 %v9474_v51 }
 0x79c   : > { %v5475_v3 = vadd.f32 %v5474_v53, %v13420_v42 }
 0x79d   : > { %v5663_v10 = vpop.f32.mrf.mxu1  ;;  %v13769_v34 = vpop.f32.mrf.mxu0 }
 0x79e   : > { %v5664_v50 = vadd.f32 %v5663_v10, %v5475_v3 }
 0x7a0   : > { %v5806_v27 = vpack.c.bf16 %v5664_v50, %v5664_v50  ;;  %5367 = vmatmul.bf16.gmra.mxu0 %v9238_v49  ;;  %5516 = vmatmul.bf16.gmra.mxu3 %v9146_v48  ;;  %v9161_v49 = vld [vmem:[%s15665_s6 + $0x218] sm:$0xf]  ;;  %v10345_v48 = vld [vmem:[%s15665_s6 + $0x220] sm:$0xf0]  ;;  %v10395_v50 = vld [vmem:[%s15666_s7 + $0x54] sm:$0xf] }
 0x7a2   : > { %v6428_v42 = vunpack.c.l.b16 %v5806_v27  ;;  %v9463_v27 = vld [vmem:[%s15666_s7 + $0x58] sm:$0xf0] }
 0x7a3   : > { %v5477_v2 = vpop.f32.mrf.mxu3  ;;  %v9466_v1 = vor.u32 %v10395_v50, %v9463_v27  ;;  %v10387_v50 = vld [vmem:[%s15666_s7 + $0x14] sm:$0xf]  ;;  %v9431_v27 = vld [vmem:[%s15666_s7 + $0x18] sm:$0xf0] }
 0x7a4   : > { %v13783_v7 = vpack.c.b16 %v6428_v42, %v6427_v26  ;;  %v5478_v38 = vadd.f32 %v5477_v2, %v13437_v36  ;;  %v10368_v36 = vld [vmem:[%s15665_s6 + $0x2d8] sm:$0xf0]  ;;  %v9162_v42 = vor.u32 %v10345_v48, %v9161_v49  ;;  %v9173_v49 = vld [vmem:[%s15665_s6 + $0x230] sm:$0xf] }
 0x7a5   : > { %v5666_v12 = vpop.f32.mrf.mxu1  ;;  %v13786_v58 = vpop.f32.mrf.mxu0  ;;  %v9250_v41 = vor.u32 %v10368_v36, %v9249_v22  ;;  %6182 = vmatpush.bf16.msra.mxu2 %v9466_v1  ;;  %v10371_v22 = vld [vmem:[%s15665_s6 + $0x2f0] sm:$0xf0]  ;;  %v10346_v36 = vld [vmem:[%s15665_s6 + $0x22c] sm:$0xf]  ;;  %v10348_v48 = vld [vmem:[%s15665_s6 + $0x238] sm:$0xf0]  ;;  %v9434_v1 = vor.u32 %v10387_v50, %v9431_v27 }
 0x7a6   : > { %v5667_v33 = vadd.f32 %v5666_v12, %v5478_v38  ;;  %6159 = vmatmul.bf16.vlgmr.msrb.gmra.mxu2 %v13289_v45  ;;  %v9458_v38 = vor.u32 %v10393_v40, %v9455_v31  ;;  %v10385_v40 = vld [vmem:[%s15666_s7 + $0x4] sm:$0xf]  ;;  %v9423_v31 = vld [vmem:[%s15666_s7 + $0x8] sm:$0xf0] }
 0x7a8   : > { %9340 = vmatmul.msk.bf16.gmra.mxu1 %vm5105_vm7, %v9150_v8  ;;  %v5807_v57 = vpack.c.bf16 %v5667_v33, %v5667_v33 }
 0x7a9   : > { %v13793_v55 = vpop.f32.mrf.mxu2  ;;  %6183 = vmatpush.bf16.msra.mxu2 %v9458_v38 }
 0x7aa   : > { %v6429_v10 = vunpack.c.l.b16 %v5807_v57 }
 0x7ab   : > { %v5479_v30 = vpop.f32.mrf.mxu3 }
 0x7ac   : > { %v5480_v39 = vadd.f32 %v5479_v30, %v13447_v9  ;;  %v9450_v30 = vor.u32 %v10391_v17, %v9447_v11  ;;  %v10349_v17 = vld [vmem:[%s15665_s6 + $0x244] sm:$0xf]  ;;  %v9179_v11 = vld [vmem:[%s15665_s6 + $0x24c] sm:$0xf0] }
 0x7ad   : > { %v5668_v6 = vpop.f32.mrf.mxu1  ;;  %v13817_v25 = vpop.f32.mrf.mxu0 }
 0x7ae   : > { %v5669_v53 = vadd.f32 %v5668_v6, %v5480_v39  ;;  %6184 = vmatpush.bf16.msra.mxu2 %v9450_v30 }
 0x7b0   : > { %v5808_v3 = vpack.c.bf16 %v5669_v53, %v5669_v53  ;;  %5372 = vmatmul.bf16.gmra.mxu0 %v9250_v41  ;;  %5521 = vmatmul.bf16.gmra.mxu3 %v9158_v21  ;;  %v9170_v41 = vor.u32 %v10346_v36, %v9167_v24  ;;  %v10389_v21 = vld [vmem:[%s15666_s7 + $0x24] sm:$0xf]  ;;  %v10374_v24 = vld [vmem:[%s15665_s6 + $0x308] sm:$0xf0] }
 0x7b1   : > { %v13819_v9 = vpop.f32.mrf.mxu2  ;;  %v9442_v6 = vor.u32 %v10389_v21, %v9439_v5 }
 0x7b2   : > { %v6430_v29 = vunpack.c.l.b16 %v5808_v3 }
 0x7b3   : > { %v5482_v59 = vpop.f32.mrf.mxu3  ;;  %6185 = vmatpush.bf16.msra.mxu2 %v9442_v6 }
 0x7b4   : > { %v5483_v26 = vadd.f32 %v5482_v59, %v13477_v63  ;;  %v13840_v2 = vpack.c.b16 %v6430_v29, %v6429_v10  ;;  %v9261_v63 = vld [vmem:[%s15665_s6 + $0x2e8] sm:$0xf] }
 0x7b5   : > { %v5671_v43 = vpop.f32.mrf.mxu1  ;;  %v13842_v8 = vpop.f32.mrf.mxu0  ;;  %v9262_v39 = vor.u32 %v10371_v22, %v9261_v63 }
 0x7b6   : > { %v5672_v12 = vadd.f32 %v5671_v43, %v5483_v26  ;;  %6164 = vmatmul.bf16.gmra.mxu2 %v13341_v16 }
 0x7b7   : > { %6186 = vmatpush.bf16.msra.mxu2 %v9434_v1 }
 0x7b8   : > { %9341 = vmatmul.msk.bf16.gmra.mxu1 %vm5105_vm7, %v9162_v42  ;;  %v5809_v57 = vpack.c.bf16 %v5672_v12, %v5672_v12  ;;  %v9174_v42 = vor.u32 %v10348_v48, %v9173_v49  ;;  %v9426_v12 = vor.u32 %v10385_v40, %v9423_v31  ;;  %v9191_v40 = vld [vmem:[%s15665_s6 + $0x264] sm:$0xf0]  ;;  %v9725_v31 = vld [vmem:[%s15666_s7 + $0x2e0] sm:$0xf] }
 0x7b9   : > { %v13849_v33 = vpop.f32.mrf.mxu2 }
 0x7ba   : > { %v6431_v10 = vunpack.c.l.b16 %v5809_v57 }
 0x7bb   : > { %v5484_v32 = vpop.f32.mrf.mxu3  ;;  %6187 = vmatpush.bf16.msra.mxu2 %v9426_v12 }
 0x7bc   : > { %v5485_v15 = vadd.f32 %v5484_v32, %v13499_v47 }
 0x7bd   : > { %v5673_v0 = vpop.f32.mrf.mxu1  ;;  %v13873_v51 = vpop.f32.mrf.mxu0 }
 0x7be   : > { %v5674_v53 = vadd.f32 %v5673_v0, %v5485_v15 }
 0x7c0   : > { %v5810_v3 = vpack.c.bf16 %v5674_v53, %v5674_v53  ;;  %5377 = vmatmul.bf16.gmra.mxu0 %v9262_v39  ;;  %5526 = vmatmul.bf16.gmra.mxu3 %v9170_v41  ;;  %v9182_v39 = vor.u32 %v10349_v17, %v9179_v11  ;;  %v9185_v53 = vld [vmem:[%s15665_s6 + $0x248] sm:$0xf] }
 0x7c1   : > { %v13875_v47 = vpop.f32.mrf.mxu2 }
 0x7c2   : > { %v6432_v29 = vunpack.c.l.b16 %v5810_v3 }
 0x7c3   : > { %v5487_v59 = vpop.f32.mrf.mxu3 }
 0x7c4   : > { %v5488_v26 = vadd.f32 %v5487_v59, %v13529_v52  ;;  %v13896_v43 = vpack.c.b16 %v6432_v29, %v6431_v10  ;;  %v9273_v52 = vld [vmem:[%s15665_s6 + $0x300] sm:$0xf]  ;;  %v9285_v59 = vld [vmem:[%s15665_s6 + $0x318] sm:$0xf] }
 0x7c5   : > { %v5676_v38 = vpop.f32.mrf.mxu1  ;;  %v13898_v63 = vpop.f32.mrf.mxu0  ;;  %v9274_v15 = vor.u32 %v10374_v24, %v9273_v52  ;;  %v9653_v52 = vld [vmem:[%s15666_s7 + $0x250] sm:$0xf]  ;;  %v10460_v24 = vld [vmem:[%s15666_s7 + $0x254] sm:$0xf0] }
 0x7c6   : > { %v5677_v22 = vadd.f32 %v5676_v38, %v5488_v26  ;;  %6169 = vmatmul.bf16.gmra.mxu2 %v13392_v18  ;;  %v10377_v26 = vld [vmem:[%s15665_s6 + $0x320] sm:$0xf0]  ;;  %v10478_v38 = vld [vmem:[%s15666_s7 + $0x2e4] sm:$0xf0] }
 0x7c7   : > { %v9286_v17 = vor.u32 %v10377_v26, %v9285_v59 }
 0x7c8   : > { %9342 = vmatmul.msk.bf16.gmra.mxu1 %vm5105_vm7, %v9174_v42  ;;  %v5811_v5 = vpack.c.bf16 %v5677_v22, %v5677_v22  ;;  %v10352_v42 = vld [vmem:[%s15665_s6 + $0x25c] sm:$0xf]  ;;  %v9726_v22 = vor.u32 %v10478_v38, %v9725_v31  ;;  %v9629_v31 = vld [vmem:[%s15666_s7 + $0x220] sm:$0xf]  ;;  %v10454_v38 = vld [vmem:[%s15666_s7 + $0x224] sm:$0xf0] }
 0x7c9   : > { %v13905_v36 = vpop.f32.mrf.mxu2  ;;  %v9194_v11 = vor.u32 %v10352_v42, %v9191_v40  ;;  %v9297_v40 = vld [vmem:[%s15665_s6 + $0x330] sm:$0xf] }
 0x7ca   : > { %v6433_v3 = vunpack.c.l.b16 %v5811_v5  ;;  %6912 = vmatpush.bf16.msra.mxu3 %v9726_v22 }
 0x7cb   : > { %v5489_v32 = vpop.f32.mrf.mxu3 }
 0x7cc   : > { %v5490_v30 = vadd.f32 %v5489_v32, %v13551_v60  ;;  %v10351_v60 = vld [vmem:[%s15665_s6 + $0x250] sm:$0xf0]  ;;  %v9654_v32 = vor.u32 %v10460_v24, %v9653_v52  ;;  %v9203_v24 = vld [vmem:[%s15665_s6 + $0x27c] sm:$0xf0] }
 0x7cd   : > { %v5678_v41 = vpop.f32.mrf.mxu1  ;;  %v13917_v21 = vpop.f32.mrf.mxu0  ;;  %v9186_v10 = vor.u32 %v10351_v60, %v9185_v53  ;;  %v10355_v52 = vld [vmem:[%s15665_s6 + $0x274] sm:$0xf] }
 0x7ce   : > { %v5679_v0 = vadd.f32 %v5678_v41, %v5490_v30  ;;  %6719 = vmatpush.bf16.msra.mxu0 %v9654_v32  ;;  %v10458_v41 = vld [vmem:[%s15666_s7 + $0x244] sm:$0xf0]  ;;  %v10432_v32 = vld [vmem:[%s15666_s7 + $0x174] sm:$0xf0] }
 0x7d0   : > { %v5812_v6 = vpack.c.bf16 %v5679_v0, %v5679_v0  ;;  %5382 = vmatmul.bf16.gmra.mxu0 %v9274_v15  ;;  %5531 = vmatmul.bf16.gmra.mxu3 %v9182_v39  ;;  %v9645_v39 = vld [vmem:[%s15666_s7 + $0x240] sm:$0xf] }
 0x7d1   : > { %v13919_v57 = vpop.f32.mrf.mxu2  ;;  %v9197_v0 = vld [vmem:[%s15665_s6 + $0x260] sm:$0xf]  ;;  %v9646_v53 = vor.u32 %v10458_v41, %v9645_v39 }
 0x7d2   : > { %16047 = vst [vmem:[#allocation51_spill] sm:$0xff] %v13919_v57  ;;  %v6434_v49 = vunpack.c.l.b16 %v5812_v6  ;;  %v10354_v6 = vld [vmem:[%s15665_s6 + $0x268] sm:$0xf0] }
 0x7d3   : > { %v13927_v48 = vpop.f32.mrf.mxu3  ;;  %6720 = vmatpush.bf16.msra.mxu0 %v9646_v53 }
 0x7d4   : > { %v13929_v29 = vpack.c.b16 %v6434_v49, %v6433_v3  ;;  %v9637_v3 = vld [vmem:[%s15666_s7 + $0x230] sm:$0xf]  ;;  %v10456_v49 = vld [vmem:[%s15666_s7 + $0x234] sm:$0xf0] }
 0x7d5   : > { %v13931_v50 = vpop.f32.mrf.mxu1  ;;  %v13933_v27 = vpop.f32.mrf.mxu0  ;;  %v9638_v59 = vor.u32 %v10456_v49, %v9637_v3  ;;  %v9206_v3 = vor.u32 %v10355_v52, %v9203_v24  ;;  %v9209_v24 = vld [vmem:[%s15665_s6 + $0x278] sm:$0xf] }
 0x7d6   : > { %16048 = vst [vmem:[#allocation56_spill] sm:$0xff] %v13929_v29  ;;  %6174 = vmatmul.bf16.gmra.mxu2 %v13418_v56 }
 0x7d7   : > { %6721 = vmatpush.bf16.msra.mxu0 %v9638_v59  ;;  %v10430_v59 = vld [vmem:[%s15666_s7 + $0x164] sm:$0xf0] }
 0x7d8   : > { %9343 = vmatmul.msk.bf16.gmra.mxu1 %vm5105_vm7, %v9186_v10  ;;  %v9198_v10 = vor.u32 %v10354_v6, %v9197_v0  ;;  %v9621_v0 = vld [vmem:[%s15666_s7 + $0x210] sm:$0xf]  ;;  %v10452_v6 = vld [vmem:[%s15666_s7 + $0x214] sm:$0xf0] }
 0x7d9   : > { %v13940_v1 = vpop.f32.mrf.mxu2  ;;  %v9622_v49 = vor.u32 %v10452_v6, %v9621_v0  ;;  %v10428_v0 = vld [vmem:[%s15666_s7 + $0x154] sm:$0xf0] }
 0x7da   : > { %16049 = vst [vmem:[#allocation24_spill] sm:$0xff] %v13940_v1 }
 0x7db   : > { %v13957_v12 = vpop.f32.mrf.mxu3 }
 0x7dd   : > { %v13965_v30 = vpop.f32.mrf.mxu1  ;;  %v13967_v15 = vpop.f32.mrf.mxu0 }
 0x7e0   : > { %5387 = vmatmul.bf16.gmra.mxu0 %v9286_v17  ;;  %5536 = vmatmul.bf16.gmra.mxu3 %v9194_v11  ;;  %v9630_v17 = vor.u32 %v10454_v38, %v9629_v31  ;;  %v9541_v11 = vld [vmem:[%s15666_s7 + $0x170] sm:$0xf] }
 0x7e1   : > { %v13975_v5 = vpop.f32.mrf.mxu2  ;;  %v9542_v41 = vor.u32 %v10432_v32, %v9541_v11  ;;  %v10357_v11 = vld [vmem:[%s15665_s6 + $0x280] sm:$0xf0] }
 0x7e2   : > { %16050 = vst [vmem:[#allocation101_spill] sm:$0xff] %v13975_v5  ;;  %6722 = vmatpush.bf16.msra.mxu0 %v9630_v17  ;;  %v10422_v5 = vld [vmem:[%s15666_s7 + $0x124] sm:$0xf0] }
 0x7e3   : > { %v13983_v60 = vpop.f32.mrf.mxu3  ;;  %6329 = vmatpush.bf16.msrb.mxu2 %v9542_v41  ;;  %v9525_v41 = vld [vmem:[%s15666_s7 + $0x150] sm:$0xf] }
 0x7e5   : > { %v13991_v26 = vpop.f32.mrf.mxu1  ;;  %v13993_v42 = vpop.f32.mrf.mxu0 }
 0x7e6   : > { %6188 = vmatmul.bf16.vlgmr.msra.gmra.mxu2 %v13289_v45  ;;  %v10380_v45 = vld [vmem:[%s15665_s6 + $0x338] sm:$0xf0]  ;;  %6723 = vmatpush.bf16.msra.mxu0 %v9622_v49  ;;  %v9517_v49 = vld [vmem:[%s15666_s7 + $0x140] sm:$0xf] }
 0x7e7   : > { %v9298_v53 = vor.u32 %v10380_v45, %v9297_v40  ;;  %v9613_v40 = vld [vmem:[%s15666_s7 + $0x200] sm:$0xf]  ;;  %v10450_v45 = vld [vmem:[%s15666_s7 + $0x204] sm:$0xf0] }
 0x7e8   : > { %9344 = vmatmul.msk.bf16.gmra.mxu1 %vm5105_vm7, %v9198_v10  ;;  %v9533_v10 = vld [vmem:[%s15666_s7 + $0x160] sm:$0xf]  ;;  %v9614_v32 = vor.u32 %v10450_v45, %v9613_v40  ;;  %v9309_v45 = vld [vmem:[%s15665_s6 + $0x348] sm:$0xf] }
 0x7e9   : > { %v14006_v22 = vpop.f32.mrf.mxu2  ;;  %v9534_v38 = vor.u32 %v10430_v59, %v9533_v10  ;;  %v10426_v10 = vld [vmem:[%s15666_s7 + $0x144] sm:$0xf0] }
 0x7ea   : > { %16051 = vst [vmem:[#allocation22_spill] sm:$0xff] %v14006_v22  ;;  %6724 = vmatpush.bf16.msra.mxu0 %v9614_v32  ;;  %v9501_v22 = vld [vmem:[%s15666_s7 + $0x120] sm:$0xf] }
 0x7eb   : > { %v14023_v39 = vpop.f32.mrf.mxu3  ;;  %6330 = vmatpush.bf16.msrb.mxu2 %v9534_v38  ;;  %v9518_v38 = vor.u32 %v10426_v10, %v9517_v49  ;;  %v10424_v49 = vld [vmem:[%s15666_s7 + $0x134] sm:$0xf0]  ;;  %v9502_v1 = vor.u32 %v10422_v5, %v9501_v22  ;;  %v10360_v5 = vld [vmem:[%s15665_s6 + $0x298] sm:$0xf0]  ;;  %v9493_v22 = vld [vmem:[%s15666_s7 + $0x110] sm:$0xf] }
 0x7ed   : > { %v14037_v31 = vpop.f32.mrf.mxu1  ;;  %v14039_v17 = vpop.f32.mrf.mxu0 }
 0x7f0   : > { %5392 = vmatmul.bf16.gmra.mxu0 %v9298_v53  ;;  %5541 = vmatmul.bf16.gmra.mxu3 %v9206_v3  ;;  %v9526_v53 = vor.u32 %v10428_v0, %v9525_v41  ;;  %v9210_v3 = vor.u32 %v10357_v11, %v9209_v24  ;;  %v10383_v24 = vld [vmem:[%s15665_s6 + $0x350] sm:$0xf0]  ;;  %v10358_v11 = vld [vmem:[%s15665_s6 + $0x28c] sm:$0xf]  ;;  %v9735_v0 = vld [vmem:[%s15666_s7 + $0x2f8] sm:$0xf0] }
 0x7f1   : > { %v14047_v52 = vpop.f32.mrf.mxu2  ;;  %v10479_v41 = vld [vmem:[%s15666_s7 + $0x2f4] sm:$0xf] }
 0x7f2   : > { %16052 = vst [vmem:[#allocation103_spill] sm:$0xff] %v14047_v52  ;;  %6331 = vmatpush.bf16.msrb.mxu2 %v9526_v53  ;;  %v9738_v53 = vor.u32 %v10479_v41, %v9735_v0  ;;  %v9727_v52 = vld [vmem:[%s15666_s7 + $0x2e8] sm:$0xf0]  ;;  %v9310_v41 = vor.u32 %v10383_v24, %v9309_v45  ;;  %v5495_v45 = vadd.f32 %v13957_v12, %v13580_v35  ;;  %v10475_v35 = vld [vmem:[%s15666_s7 + $0x2d4] sm:$0xf] }
 0x7f3   : > { %v14061_v6 = vpop.f32.mrf.mxu3  ;;  %v5493_v24 = vadd.f32 %v13927_v48, %v13569_v61  ;;  %v9719_v61 = vld [vmem:[%s15666_s7 + $0x2d8] sm:$0xf0] }
 0x7f4   : > { %6940 = vmatpush.bf16.msrb.mxu0 %v9738_v53  ;;  %v5684_v48 = vadd.f32 %v13965_v30, %v5495_v45  ;;  %v9722_v12 = vor.u32 %v10475_v35, %v9719_v61  ;;  %v9711_v30 = vld [vmem:[%s15666_s7 + $0x2c8] sm:$0xf0]  ;;  %v10361_v61 = vld [vmem:[%s15665_s6 + $0x2a4] sm:$0xf] }
 0x7f5   : > { %v14069_v59 = vpop.f32.mrf.mxu1  ;;  %v14071_v40 = vpop.f32.mrf.mxu0  ;;  %v5682_v53 = vadd.f32 %v13931_v50, %v5493_v24  ;;  %v10418_v50 = vld [vmem:[%s15666_s7 + $0x104] sm:$0xf0] }
 0x7f6   : > { %6193 = vmatmul.bf16.gmra.mxu2 %v13341_v16  ;;  %v9215_v16 = vld [vmem:[%s15665_s6 + $0x294] sm:$0xf0] }
 0x7f7   : > { %6332 = vmatpush.bf16.msrb.mxu2 %v9518_v38  ;;  %v9218_v0 = vor.u32 %v10358_v11, %v9215_v16  ;;  %v9221_v11 = vld [vmem:[%s15665_s6 + $0x290] sm:$0xf]  ;;  %v5813_v35 = vpack.c.bf16 %v5682_v53, %v5682_v53  ;;  %v10469_v53 = vld [vmem:[%s15666_s7 + $0x2a4] sm:$0xf] }
 0x7f8   : > { %9345 = vmatmul.msk.bf16.gmra.mxu1 %vm5105_vm7, %v9210_v3  ;;  %v9509_v3 = vld [vmem:[%s15666_s7 + $0x130] sm:$0xf] }
 0x7f9   : > { %v14084_v32 = vpop.f32.mrf.mxu2  ;;  %v9510_v38 = vor.u32 %v10424_v49, %v9509_v3 }
 0x7fa   : > { %16053 = vst [vmem:[#allocation62_spill] sm:$0xff] %v14084_v32  ;;  %v10477_v32 = vld [vmem:[%s15666_s7 + $0x2e4] sm:$0xf] }
 0x7fb   : > { %v14101_v10 = vpop.f32.mrf.mxu3  ;;  %6333 = vmatpush.bf16.msrb.mxu2 %v9510_v38  ;;  %v9730_v49 = vor.u32 %v10477_v32, %v9727_v52  ;;  %v10420_v52 = vld [vmem:[%s15666_s7 + $0x114] sm:$0xf0]  ;;  %v9222_v38 = vor.u32 %v10360_v5, %v9221_v11  ;;  %v5814_v11 = vpack.c.bf16 %v5684_v48, %v5684_v48  ;;  %v9703_v48 = vld [vmem:[%s15666_s7 + $0x2b8] sm:$0xf0] }
 0x7fc   : > { %v9494_v32 = vor.u32 %v10420_v52, %v9493_v22  ;;  %v9227_v22 = vld [vmem:[%s15665_s6 + $0x2ac] sm:$0xf0] }
 0x7fd   : > { %v14115_v3 = vpop.f32.mrf.mxu1  ;;  %v14117_v29 = vpop.f32.mrf.mxu0  ;;  %6941 = vmatpush.bf16.msrb.mxu0 %v9730_v49  ;;  %v6622_v52 = vunpack.c.l.b16 %v5814_v11 }
 0x7ff   : > { %6334 = vmatpush.bf16.msrb.mxu2 %v9502_v1 }
 0x800   : > { %5397 = vmatmul.bf16.gmra.mxu0 %v9310_v41  ;;  %5546 = vmatmul.bf16.gmra.mxu3 %v9218_v0  ;;  %v10473_v41 = vld [vmem:[%s15666_s7 + $0x2c4] sm:$0xf]  ;;  %v9485_v0 = vld [vmem:[%s15666_s7 + $0x100] sm:$0xf] }
 0x801   : > { %v14126_v16 = vpop.f32.mrf.mxu2  ;;  %6942 = vmatpush.bf16.msrb.mxu0 %v9722_v12  ;;  %v9714_v45 = vor.u32 %v10473_v41, %v9711_v30  ;;  %v9486_v5 = vor.u32 %v10418_v50, %v9485_v0  ;;  %v9695_v41 = vld [vmem:[%s15666_s7 + $0x2a8] sm:$0xf0]  ;;  %v6621_v30 = vunpack.c.l.b16 %v5813_v35  ;;  %v9230_v0 = vor.u32 %v10361_v61, %v9227_v22  ;;  %v9233_v35 = vld [vmem:[%s15665_s6 + $0x2a8] sm:$0xf]  ;;  %v10363_v22 = vld [vmem:[%s15665_s6 + $0x2b0] sm:$0xf0] }
 0x802   : > { %16054 = vst [vmem:[#allocation27_spill] sm:$0xff] %v14126_v16  ;;  %v9698_v50 = vor.u32 %v10469_v53, %v9695_v41  ;;  %v9679_v53 = vld [vmem:[%s15666_s7 + $0x288] sm:$0xf0] }
 0x803   : > { %v14144_v1 = vpop.f32.mrf.mxu3  ;;  %6335 = vmatpush.bf16.msrb.mxu2 %v9494_v32  ;;  %v14191_v11 = vpack.c.b16 %v6622_v52, %v6621_v30  ;;  %v10465_v52 = vld [vmem:[%s15666_s7 + $0x284] sm:$0xf]  ;;  %v9234_v30 = vor.u32 %v10363_v22, %v9233_v35  ;;  %v10364_v35 = vld [vmem:[%s15665_s6 + $0x2bc] sm:$0xf]  ;;  %v9239_v22 = vld [vmem:[%s15665_s6 + $0x2c4] sm:$0xf0] }
 0x805   : > { %v14156_v49 = vpop.f32.mrf.mxu1  ;;  %v14161_v24 = vpop.f32.mrf.mxu0  ;;  %6943 = vmatpush.bf16.msrb.mxu0 %v9714_v45  ;;  %16056 = vst [vmem:[#allocation106_spill] sm:$0xff] %v14191_v11 }
 0x806   : > { %6198 = vmatmul.bf16.gmra.mxu2 %v13392_v18  ;;  %v10471_v18 = vld [vmem:[%s15666_s7 + $0x2b4] sm:$0xf] }
 0x807   : > { %6336 = vmatpush.bf16.msrb.mxu2 %v9486_v5  ;;  %v9706_v32 = vor.u32 %v10471_v18, %v9703_v48  ;;  %v5500_v18 = vadd.f32 %v14023_v39, %v13614_v14  ;;  %v5498_v48 = vadd.f32 %v13983_v60, %v13603_v4  ;;  %v10467_v14 = vld [vmem:[%s15666_s7 + $0x294] sm:$0xf]  ;;  %v9687_v4 = vld [vmem:[%s15666_s7 + $0x298] sm:$0xf0] }
 0x808   : > { %9346 = vmatmul.msk.bf16.gmra.mxu1 %vm5105_vm7, %v9222_v38  ;;  %v9690_v39 = vor.u32 %v10467_v14, %v9687_v4 }
 0x809   : > { %v14168_v12 = vpop.f32.mrf.mxu2  ;;  %6944 = vmatpush.bf16.msrb.mxu0 %v9706_v32  ;;  %v5689_v60 = vadd.f32 %v14037_v31, %v5500_v18  ;;  %v5687_v41 = vadd.f32 %v13991_v26, %v5498_v48  ;;  %v9863_v31 = vld [vmem:[%s15666_s7 + $0x3f8] sm:$0xf0]  ;;  %v9682_v18 = vor.u32 %v10465_v52, %v9679_v53 }
 0x80a   : > { %16055 = vst [vmem:[#allocation20_spill] sm:$0xff] %v14168_v12  ;;  %v5508_v12 = vadd.f32 %v14144_v1, %v13695_v62  ;;  %v10427_v62 = vld [vmem:[%s15666_s7 + $0x154] sm:$0xf]  ;;  %v9527_v1 = vld [vmem:[%s15666_s7 + $0x158] sm:$0xf0] }
 0x80b   : > { %v14182_v38 = vpop.f32.mrf.mxu3  ;;  %v5816_v4 = vpack.c.bf16 %v5689_v60, %v5689_v60  ;;  %v5815_v26 = vpack.c.bf16 %v5687_v41, %v5687_v41  ;;  %v9855_v60 = vld [vmem:[%s15666_s7 + $0x3e8] sm:$0xf0] }
 0x80d   : > { %v14187_v45 = vpop.f32.mrf.mxu1  ;;  %v14189_v5 = vpop.f32.mrf.mxu0  ;;  %6945 = vmatpush.bf16.msrb.mxu0 %v9698_v50  ;;  %v6623_v41 = vunpack.c.l.b16 %v5815_v26 }
 0x810   : > { %5551 = vmatmul.bf16.gmra.mxu3 %v9230_v0  ;;  %6725 = vmatmul.bf16.vlgmr.msra.gmra.mxu0 %v14191_v11  ;;  %v10511_v0 = vld [vmem:[%s15666_s7 + $0x3f4] sm:$0xf] }
 0x811   : > { %v14201_v61 = vpop.f32.mrf.mxu2  ;;  %6946 = vmatpush.bf16.msrb.mxu0 %v9690_v39  ;;  %v9866_v11 = vor.u32 %v10511_v0, %v9863_v31  ;;  %v6624_v39 = vunpack.c.l.b16 %v5816_v4  ;;  %v10507_v0 = vld [vmem:[%s15666_s7 + $0x3d4] sm:$0xf]  ;;  %v5505_v4 = vadd.f32 %v14101_v10, %v13666_v46  ;;  %v10366_v46 = vld [vmem:[%s15665_s6 + $0x2c8] sm:$0xf0] }
 0x812   : > { %16057 = vst [vmem:[#allocation28_spill] sm:$0xff] %v14201_v61 }
 0x813   : > { %v14216_v32 = vpop.f32.mrf.mxu3  ;;  %v5694_v10 = vadd.f32 %v14115_v3, %v5505_v4  ;;  %v10496_v3 = vld [vmem:[%s15666_s7 + $0x374] sm:$0xf0] }
 0x815   : > { %v14228_v50 = vpop.f32.mrf.mxu1  ;;  %v14230_v14 = vpop.f32.mrf.mxu0  ;;  %6947 = vmatpush.bf16.msrb.mxu0 %v9682_v18  ;;  %v5818_v61 = vpack.c.bf16 %v5694_v10, %v5694_v10  ;;  %v10431_v10 = vld [vmem:[%s15666_s7 + $0x174] sm:$0xf] }
 0x816   : > { %6203 = vmatmul.bf16.gmra.mxu2 %v13418_v56  ;;  %v10509_v56 = vld [vmem:[%s15666_s7 + $0x3e4] sm:$0xf] }
 0x817   : > { %v9858_v53 = vor.u32 %v10509_v56, %v9855_v60  ;;  %v9245_v56 = vld [vmem:[%s15665_s6 + $0x2c0] sm:$0xf] }
 0x818   : > { %9347 = vmatmul.msk.bf16.gmra.mxu1 %vm5105_vm7, %v9234_v30  ;;  %v9242_v30 = vor.u32 %v10364_v35, %v9239_v22  ;;  %v5503_v35 = vadd.f32 %v14061_v6, %v13643_v37  ;;  %v9717_v37 = vld [vmem:[%s15666_s7 + $0x2d0] sm:$0xf]  ;;  %v10476_v6 = vld [vmem:[%s15666_s7 + $0x2d4] sm:$0xf0] }
 0x819   : > { %v14234_v48 = vpop.f32.mrf.mxu2  ;;  %7328 = vmatpush.bf16.msra.mxu0 %v9866_v11  ;;  %v9847_v11 = vld [vmem:[%s15666_s7 + $0x3d8] sm:$0xf0] }
 0x81a   : > { %16058 = vst [vmem:[#allocation68_spill] sm:$0xff] %v14234_v48  ;;  %v14262_v48 = vpack.c.b16 %v6624_v39, %v6623_v41  ;;  %v9850_v26 = vor.u32 %v10507_v0, %v9847_v11  ;;  %v9797_v39 = vld [vmem:[%s15666_s7 + $0x370] sm:$0xf]  ;;  %v10505_v41 = vld [vmem:[%s15666_s7 + $0x3c4] sm:$0xf]  ;;  %v5692_v0 = vadd.f32 %v14069_v59, %v5503_v35  ;;  %v9246_v11 = vor.u32 %v10366_v46, %v9245_v56 }
 0x81b   : > { %v14248_v52 = vpop.f32.mrf.mxu3  ;;  %v9798_v4 = vor.u32 %v10496_v3, %v9797_v39  ;;  %v10367_v46 = vld [vmem:[%s15665_s6 + $0x2d4] sm:$0xf]  ;;  %v9251_v39 = vld [vmem:[%s15665_s6 + $0x2dc] sm:$0xf0]  ;;  %v10501_v3 = vld [vmem:[%s15666_s7 + $0x3a4] sm:$0xf] }
 0x81c   : > { %16059 = vst [vmem:[#allocation31_spill] sm:$0xff] %v14262_v48  ;;  %v5817_v35 = vpack.c.bf16 %v5692_v0, %v5692_v0  ;;  %v5515_v16 = vadd.f32 %v14248_v52, %v13752_v54 }
 0x81d   : > { %v14256_v31 = vpop.f32.mrf.mxu1  ;;  %v14258_v18 = vpop.f32.mrf.mxu0  ;;  %7329 = vmatpush.bf16.msra.mxu0 %v9858_v53  ;;  %v9718_v53 = vor.u32 %v10476_v6, %v9717_v37  ;;  %v10503_v37 = vld [vmem:[%s15666_s7 + $0x3b4] sm:$0xf]  ;;  %7105 = vmatpush.bf16.msra.mxu1 %v9798_v4 }
 0x81e   : > { %v6625_v0 = vunpack.c.l.b16 %v5817_v35  ;;  %v9815_v35 = vld [vmem:[%s15666_s7 + $0x398] sm:$0xf0]  ;;  %v5704_v54 = vadd.f32 %v14256_v31, %v5515_v16  ;;  %v10474_v16 = vld [vmem:[%s15666_s7 + $0x2c4] sm:$0xf0]  ;;  %v10417_v31 = vld [vmem:[%s15666_s7 + $0x104] sm:$0xf] }
 0x81f   : > { %6913 = vmatpush.bf16.msra.mxu3 %v9718_v53  ;;  %v6626_v53 = vunpack.c.l.b16 %v5818_v61  ;;  %v9823_v61 = vld [vmem:[%s15666_s7 + $0x3a8] sm:$0xf0] }
 0x820   : > { %5556 = vmatmul.bf16.gmra.mxu3 %v9242_v30  ;;  %6730 = vmatmul.bf16.gmra.mxu0 %v14262_v48  ;;  %v9839_v30 = vld [vmem:[%s15666_s7 + $0x3c8] sm:$0xf0]  ;;  %v9831_v48 = vld [vmem:[%s15666_s7 + $0x3b8] sm:$0xf0]  ;;  %v9826_v4 = vor.u32 %v10501_v3, %v9823_v61 }
 0x821   : > { %v14267_v22 = vpop.f32.mrf.mxu2  ;;  %7330 = vmatpush.bf16.msra.mxu0 %v9850_v26  ;;  %v9842_v26 = vor.u32 %v10505_v41, %v9839_v30  ;;  %v9834_v59 = vor.u32 %v10503_v37, %v9831_v48  ;;  %v9543_v48 = vld [vmem:[%s15666_s7 + $0x178] sm:$0xf0]  ;;  %v9535_v37 = vld [vmem:[%s15666_s7 + $0x168] sm:$0xf0]  ;;  %v14349_v3 = vpack.c.b16 %v6626_v53, %v6625_v0  ;;  %v10497_v53 = vld [vmem:[%s15666_s7 + $0x384] sm:$0xf] }
 0x822   : > { %16060 = vst [vmem:[#allocation104_spill] sm:$0xff] %v14267_v22  ;;  %v9546_v30 = vor.u32 %v10431_v10, %v9543_v48 }
 0x823   : > { %v14285_v60 = vpop.f32.mrf.mxu3  ;;  %16061 = vst [vmem:[#allocation40_spill] sm:$0xff] %v14349_v3 }
 0x824   : > { %6358 = vmatpush.bf16.msra.mxu2 %v9546_v30 }
 0x825   : > { %v14300_v6 = vpop.f32.mrf.mxu1  ;;  %v14305_v22 = vpop.f32.mrf.mxu0  ;;  %7331 = vmatpush.bf16.msra.mxu0 %v9842_v26  ;;  %v10429_v26 = vld [vmem:[%s15666_s7 + $0x164] sm:$0xf] }
 0x826   : > { %6337 = vmatmul.bf16.vlgmr.msrb.gmra.mxu2 %v13611_v20  ;;  %v9538_v48 = vor.u32 %v10429_v26, %v9535_v37  ;;  %v9257_v26 = vld [vmem:[%s15665_s6 + $0x2d8] sm:$0xf] }
 0x828   : > { %9348 = vmatmul.msk.bf16.gmra.mxu1 %vm5105_vm7, %v9246_v11  ;;  %v9254_v11 = vor.u32 %v10367_v46, %v9251_v39  ;;  %v5510_v39 = vadd.f32 %v14182_v38, %v13718_v13  ;;  %v10369_v13 = vld [vmem:[%s15665_s6 + $0x2e0] sm:$0xf0]  ;;  %6359 = vmatpush.bf16.msra.mxu2 %v9538_v48 }
 0x829   : > { %v14309_v56 = vpop.f32.mrf.mxu2  ;;  %7332 = vmatpush.bf16.msra.mxu0 %v9834_v59  ;;  %v10499_v59 = vld [vmem:[%s15666_s7 + $0x394] sm:$0xf]  ;;  %v9258_v37 = vor.u32 %v10369_v13, %v9257_v26  ;;  %v10425_v48 = vld [vmem:[%s15666_s7 + $0x144] sm:$0xf]  ;;  %v10370_v26 = vld [vmem:[%s15665_s6 + $0x2ec] sm:$0xf] }
 0x82a   : > { %v9818_v61 = vor.u32 %v10499_v59, %v9815_v35  ;;  %v5699_v38 = vadd.f32 %v14187_v45, %v5510_v39  ;;  %v9807_v45 = vld [vmem:[%s15666_s7 + $0x388] sm:$0xf0]  ;;  %v9263_v13 = vld [vmem:[%s15665_s6 + $0x2f4] sm:$0xf0] }
 0x82b   : > { %v14326_v41 = vpop.f32.mrf.mxu3  ;;  %v9810_v59 = vor.u32 %v10497_v53, %v9807_v45  ;;  %v9519_v35 = vld [vmem:[%s15666_s7 + $0x148] sm:$0xf0] }
 0x82d   : > { %v14340_v10 = vpop.f32.mrf.mxu1  ;;  %v14345_v46 = vpop.f32.mrf.mxu0  ;;  %7333 = vmatpush.bf16.msra.mxu0 %v9826_v4  ;;  %v5697_v4 = vadd.f32 %v14156_v49, %v5508_v12 }
 0x82f   : > { %v5819_v49 = vpack.c.bf16 %v5697_v4, %v5697_v4 }
 0x830   : > { %5561 = vmatmul.bf16.gmra.mxu3 %v9254_v11  ;;  %6735 = vmatmul.bf16.gmra.mxu0 %v14349_v3  ;;  %v9530_v11 = vor.u32 %v10427_v62, %v9527_v1  ;;  %v5820_v1 = vpack.c.bf16 %v5699_v38, %v5699_v38  ;;  %v10423_v38 = vld [vmem:[%s15666_s7 + $0x134] sm:$0xf] }
 0x831   : > { %v14354_v30 = vpop.f32.mrf.mxu2  ;;  %7334 = vmatpush.bf16.msra.mxu0 %v9818_v61  ;;  %v9522_v61 = vor.u32 %v10425_v48, %v9519_v35  ;;  %v10421_v48 = vld [vmem:[%s15666_s7 + $0x124] sm:$0xf]  ;;  %v9503_v35 = vld [vmem:[%s15666_s7 + $0x128] sm:$0xf0] }
 0x832   : > { %6360 = vmatpush.bf16.msra.mxu2 %v9530_v11  ;;  %v6628_v53 = vunpack.c.l.b16 %v5820_v1  ;;  %v9511_v11 = vld [vmem:[%s15666_s7 + $0x138] sm:$0xf0]  ;;  %v9506_v1 = vor.u32 %v10421_v48, %v9503_v35 }
 0x833   : > { %v14372_v0 = vpop.f32.mrf.mxu3  ;;  %v9514_v4 = vor.u32 %v10423_v38, %v9511_v11  ;;  %v10372_v11 = vld [vmem:[%s15665_s6 + $0x2f8] sm:$0xf0] }
 0x835   : > { %v14384_v39 = vpop.f32.mrf.mxu1  ;;  %v14386_v62 = vpop.f32.mrf.mxu0  ;;  %7335 = vmatpush.bf16.msra.mxu0 %v9810_v59  ;;  %v9266_v59 = vor.u32 %v10370_v26, %v9263_v13  ;;  %v9269_v13 = vld [vmem:[%s15665_s6 + $0x2f0] sm:$0xf] }
 0x836   : > { %6342 = vmatmul.bf16.gmra.mxu2 %v13664_v44 }
 0x837   : > { %6361 = vmatpush.bf16.msra.mxu2 %v9522_v61 }
 0x838   : > { %9349 = vmatmul.msk.bf16.gmra.mxu1 %vm5105_vm7, %v9258_v37  ;;  %v6627_v37 = vunpack.c.l.b16 %v5819_v49  ;;  %v5513_v49 = vadd.f32 %v14216_v32, %v13735_v19  ;;  %v10419_v19 = vld [vmem:[%s15666_s7 + $0x114] sm:$0xf]  ;;  %v9495_v32 = vld [vmem:[%s15666_s7 + $0x118] sm:$0xf0] }
 0x839   : > { %v14390_v12 = vpop.f32.mrf.mxu2 }
 0x83a   : > { %v14418_v38 = vpack.c.b16 %v6628_v53, %v6627_v37  ;;  %v9498_v53 = vor.u32 %v10419_v19, %v9495_v32  ;;  %v9270_v37 = vor.u32 %v10372_v11, %v9269_v13  ;;  %v10373_v19 = vld [vmem:[%s15665_s6 + $0x304] sm:$0xf] }
 0x83b   : > { %v14404_v45 = vpop.f32.mrf.mxu3  ;;  %6362 = vmatpush.bf16.msra.mxu2 %v9514_v4  ;;  %v5702_v4 = vadd.f32 %v14228_v50, %v5513_v49  ;;  %v9487_v50 = vld [vmem:[%s15666_s7 + $0x108] sm:$0xf0]  ;;  %v5822_v49 = vpack.c.bf16 %v5704_v54, %v5704_v54  ;;  %v9701_v54 = vld [vmem:[%s15666_s7 + $0x2b0] sm:$0xf] }
 0x83c   : > { %16062 = vst [vmem:[#allocation32_spill] sm:$0xff] %v14418_v38  ;;  %v9490_v13 = vor.u32 %v10417_v31, %v9487_v50 }
 0x83d   : > { %v14412_v61 = vpop.f32.mrf.mxu1  ;;  %v14414_v3 = vpop.f32.mrf.mxu0  ;;  %v5821_v11 = vpack.c.bf16 %v5702_v4, %v5702_v4  ;;  %v10472_v4 = vld [vmem:[%s15666_s7 + $0x2b4] sm:$0xf0] }
 0x83f   : > { %6363 = vmatpush.bf16.msra.mxu2 %v9506_v1  ;;  %v6815_v50 = vunpack.c.l.b16 %v5821_v11  ;;  %v9281_v11 = vld [vmem:[%s15665_s6 + $0x308] sm:$0xf] }
 0x840   : > { %5566 = vmatmul.bf16.gmra.mxu3 %v9266_v59  ;;  %6740 = vmatmul.bf16.gmra.mxu0 %v14418_v38  ;;  %v9709_v59 = vld [vmem:[%s15666_s7 + $0x2c0] sm:$0xf] }
 0x841   : > { %v14423_v26 = vpop.f32.mrf.mxu2  ;;  %v9710_v35 = vor.u32 %v10474_v16, %v9709_v59  ;;  %v9702_v59 = vor.u32 %v10472_v4, %v9701_v54  ;;  %v9693_v16 = vld [vmem:[%s15666_s7 + $0x2a0] sm:$0xf]  ;;  %v5520_v54 = vadd.f32 %v14326_v41, %v13786_v58  ;;  %v5518_v4 = vadd.f32 %v14285_v60, %v13769_v34  ;;  %v9685_v34 = vld [vmem:[%s15666_s7 + $0x290] sm:$0xf]  ;;  %v10468_v58 = vld [vmem:[%s15666_s7 + $0x294] sm:$0xf0] }
 0x842   : > { %v9686_v41 = vor.u32 %v10468_v58, %v9685_v34 }
 0x843   : > { %v14438_v52 = vpop.f32.mrf.mxu3  ;;  %6364 = vmatpush.bf16.msra.mxu2 %v9498_v53  ;;  %6914 = vmatpush.bf16.msra.mxu3 %v9710_v35  ;;  %v9275_v53 = vld [vmem:[%s15665_s6 + $0x30c] sm:$0xf0]  ;;  %v10470_v35 = vld [vmem:[%s15666_s7 + $0x2a4] sm:$0xf0]  ;;  %v5709_v60 = vadd.f32 %v14340_v10, %v5520_v54  ;;  %v10512_v10 = vld [vmem:[%s15666_s7 + $0x3f4] sm:$0xf0] }
 0x844   : > { %v9694_v57 = vor.u32 %v10470_v35, %v9693_v16  ;;  %v5707_v35 = vadd.f32 %v14300_v6, %v5518_v4  ;;  %v16067_v54 = vld [vmem:[#allocation13_spill] sm:$0xff] }
 0x845   : > { %v14450_v48 = vpop.f32.mrf.mxu1  ;;  %v14455_v1 = vpop.f32.mrf.mxu0 }
 0x846   : > { %16063 = vst [vmem:[#allocation73_spill] sm:$0xff] %v14455_v1  ;;  %6347 = vmatmul.bf16.gmra.mxu2 %v13716_v28  ;;  %v5823_v4 = vpack.c.bf16 %v5707_v35, %v5707_v35 }
 0x847   : > { %6365 = vmatpush.bf16.msra.mxu2 %v9490_v13  ;;  %v9278_v13 = vor.u32 %v10373_v19, %v9275_v53  ;;  %6915 = vmatpush.bf16.msra.mxu3 %v9702_v59  ;;  %v16065_v19 = vld [vmem:[#allocation12_spill] sm:$0xff]  ;;  %v9677_v59 = vld [vmem:[%s15666_s7 + $0x280] sm:$0xf] }
 0x848   : > { %9350 = vmatmul.msk.bf16.gmra.mxu1 %vm5105_vm7, %v9270_v37  ;;  %v6816_v37 = vunpack.c.l.b16 %v5822_v49 }
 0x849   : > { %v14462_v32 = vpop.f32.mrf.mxu2 }
 0x84a   : > { %v14485_v49 = vpack.c.b16 %v6816_v37, %v6815_v50  ;;  %v10375_v37 = vld [vmem:[%s15665_s6 + $0x310] sm:$0xf0] }
 0x84b   : > { %v14476_v31 = vpop.f32.mrf.mxu3  ;;  %6916 = vmatpush.bf16.msra.mxu3 %v9694_v57  ;;  %v10466_v57 = vld [vmem:[%s15666_s7 + $0x284] sm:$0xf0]  ;;  %v9282_v50 = vor.u32 %v10375_v37, %v9281_v11  ;;  %v16069_v11 = vld [vmem:[#allocation14_spill] sm:$0xff] }
 0x84c   : > { %v9678_v34 = vor.u32 %v10466_v57, %v9677_v59  ;;  %v9853_v59 = vld [vmem:[%s15666_s7 + $0x3e0] sm:$0xf]  ;;  %v10510_v57 = vld [vmem:[%s15666_s7 + $0x3e4] sm:$0xf0] }
 0x84d   : > { %v14481_v38 = vpop.f32.mrf.mxu1  ;;  %v14483_v1 = vpop.f32.mrf.mxu0 }
 0x84e   : > { %16064 = vst [vmem:[#allocation35_spill] sm:$0xff] %v14483_v1  ;;  %v5824_v1 = vpack.c.bf16 %v5709_v60, %v5709_v60 }
 0x84f   : > { %6917 = vmatpush.bf16.msra.mxu3 %v9686_v41  ;;  %v9287_v41 = vld [vmem:[%s15665_s6 + $0x324] sm:$0xf0] }
 0x850   : > { %5571 = vmatmul.bf16.gmra.mxu3 %v9278_v13  ;;  %6948 = vmatmul.bf16.vlgmr.msrb.gmra.mxu0 %v14485_v49  ;;  %v9861_v13 = vld [vmem:[%s15666_s7 + $0x3f0] sm:$0xf]  ;;  %v6818_v60 = vunpack.c.l.b16 %v5824_v1  ;;  %v10508_v1 = vld [vmem:[%s15666_s7 + $0x3d4] sm:$0xf0] }
 0x851   : > { %7666 = vmatpush.bf16.msrb.mxu0 %v16065_v19  ;;  %v14496_v53 = vpop.f32.mrf.mxu2  ;;  %v9862_v6 = vor.u32 %v10512_v10, %v9861_v13  ;;  %v6817_v13 = vunpack.c.l.b16 %v5823_v4 }
 0x852   : > { %16066 = vst [vmem:[#allocation25_spill] sm:$0xff] %v14496_v53  ;;  %v9757_v53 = vld [vmem:[%s15666_s7 + $0x320] sm:$0xf] }
 0x853   : > { %v14511_v16 = vpop.f32.mrf.mxu3  ;;  %6918 = vmatpush.bf16.msra.mxu3 %v9678_v34  ;;  %v5525_v34 = vadd.f32 %v14404_v45, %v13842_v8  ;;  %v10494_v8 = vld [vmem:[%s15666_s7 + $0x364] sm:$0xf0] }
 0x855   : > { %7667 = vmatpush.bf16.msrb.mxu0 %v16067_v54  ;;  %v14524_v19 = vpop.f32.mrf.mxu1  ;;  %v14526_v58 = vpop.f32.mrf.mxu0  ;;  %v10376_v54 = vld [vmem:[%s15665_s6 + $0x31c] sm:$0xf]  ;;  %v5714_v45 = vadd.f32 %v14412_v61, %v5525_v34  ;;  %v10506_v61 = vld [vmem:[%s15666_s7 + $0x3c4] sm:$0xf0] }
 0x856   : > { %16068 = vst [vmem:[#allocation36_spill] sm:$0xff] %v14526_v58  ;;  %6352 = vmatmul.bf16.gmra.mxu2 %v13750_v23  ;;  %v9290_v10 = vor.u32 %v10376_v54, %v9287_v41  ;;  %v14560_v54 = vpack.c.b16 %v6818_v60, %v6817_v13  ;;  %v5523_v41 = vadd.f32 %v14372_v0, %v13817_v25  ;;  %v9293_v25 = vld [vmem:[%s15665_s6 + $0x320] sm:$0xf]  ;;  %v10378_v0 = vld [vmem:[%s15665_s6 + $0x328] sm:$0xf0] }
 0x857   : > { %7299 = vmatpush.bf16.msrb.mxu3 %v9862_v6  ;;  %v16071_v6 = vld [vmem:[#allocation15_spill] sm:$0xff]  ;;  %v9294_v34 = vor.u32 %v10378_v0, %v9293_v25 }
 0x858   : > { %9351 = vmatmul.msk.bf16.gmra.mxu1 %vm5105_vm7, %v9282_v50  ;;  %v9854_v50 = vor.u32 %v10510_v57, %v9853_v59  ;;  %v9789_v59 = vld [vmem:[%s15666_s7 + $0x360] sm:$0xf]  ;;  %v16073_v57 = vld [vmem:[#allocation16_spill] sm:$0xff] }
 0x859   : > { %7668 = vmatpush.bf16.msrb.mxu0 %v16069_v11  ;;  %v14531_v37 = vpop.f32.mrf.mxu2  ;;  %v9845_v11 = vld [vmem:[%s15666_s7 + $0x3d0] sm:$0xf]  ;;  %v9837_v13 = vld [vmem:[%s15666_s7 + $0x3c0] sm:$0xf] }
 0x85a   : > { %16070 = vst [vmem:[#allocation79_spill] sm:$0xff] %v14531_v37  ;;  %v9846_v4 = vor.u32 %v10508_v1, %v9845_v11  ;;  %v9838_v1 = vor.u32 %v10506_v61, %v9837_v13  ;;  %v10490_v61 = vld [vmem:[%s15666_s7 + $0x344] sm:$0xf0] }
 0x85b   : > { %v14545_v35 = vpop.f32.mrf.mxu3  ;;  %7300 = vmatpush.bf16.msrb.mxu3 %v9854_v50  ;;  %v9790_v50 = vor.u32 %v10494_v8, %v9789_v59  ;;  %v9781_v59 = vld [vmem:[%s15666_s7 + $0x350] sm:$0xf]  ;;  %v5826_v8 = vpack.c.bf16 %v5714_v45, %v5714_v45  ;;  %v9773_v45 = vld [vmem:[%s15666_s7 + $0x340] sm:$0xf] }
 0x85d   : > { %7669 = vmatpush.bf16.msrb.mxu0 %v16071_v6  ;;  %v14556_v58 = vpop.f32.mrf.mxu1  ;;  %v14558_v37 = vpop.f32.mrf.mxu0  ;;  %7106 = vmatpush.bf16.msra.mxu1 %v9790_v50  ;;  %v9829_v6 = vld [vmem:[%s15666_s7 + $0x3b0] sm:$0xf] }
 0x85e   : > { %16072 = vst [vmem:[#allocation39_spill] sm:$0xff] %v14558_v37  ;;  %v16077_v37 = vld [vmem:[#allocation18_spill] sm:$0xff] }
 0x85f   : > { %7301 = vmatpush.bf16.msrb.mxu3 %v9846_v4  ;;  %v10504_v4 = vld [vmem:[%s15666_s7 + $0x3b4] sm:$0xf0] }
 0x860   : > { %5576 = vmatmul.bf16.gmra.mxu3 %v9290_v10  ;;  %6953 = vmatmul.bf16.gmra.mxu0 %v14560_v54  ;;  %v5712_v10 = vadd.f32 %v14384_v39, %v5523_v41  ;;  %v10492_v41 = vld [vmem:[%s15666_s7 + $0x354] sm:$0xf0]  ;;  %v9830_v0 = vor.u32 %v10504_v4, %v9829_v6  ;;  %v9774_v6 = vor.u32 %v10490_v61, %v9773_v45  ;;  %v16079_v45 = vld [vmem:[#allocation19_spill] sm:$0xff] }
 0x861   : > { %7670 = vmatpush.bf16.msrb.mxu0 %v16073_v57  ;;  %v14573_v60 = vpop.f32.mrf.mxu2  ;;  %v16075_v57 = vld [vmem:[#allocation17_spill] sm:$0xff]  ;;  %v9782_v50 = vor.u32 %v10492_v41, %v9781_v59  ;;  %v10502_v41 = vld [vmem:[%s15666_s7 + $0x3a4] sm:$0xf0] }
 0x862   : > { %16074 = vst [vmem:[#allocation29_spill] sm:$0xff] %v14573_v60  ;;  %v5825_v13 = vpack.c.bf16 %v5712_v10, %v5712_v10  ;;  %v9299_v10 = vld [vmem:[%s15665_s6 + $0x33c] sm:$0xf0]  ;;  %v10446_v60 = vld [vmem:[%s15666_s7 + $0x1e4] sm:$0xf0] }
 0x863   : > { %v14588_v11 = vpop.f32.mrf.mxu3  ;;  %7302 = vmatpush.bf16.msrb.mxu3 %v9838_v1  ;;  %7107 = vmatpush.bf16.msra.mxu1 %v9782_v50  ;;  %v9605_v1 = vld [vmem:[%s15666_s7 + $0x1f0] sm:$0xf] }
 0x864   : > { %v6819_v4 = vunpack.c.l.b16 %v5825_v13  ;;  %v9813_v13 = vld [vmem:[%s15666_s7 + $0x390] sm:$0xf] }
 0x865   : > { %7671 = vmatpush.bf16.msrb.mxu0 %v16075_v57  ;;  %v14600_v39 = vpop.f32.mrf.mxu1  ;;  %v14605_v25 = vpop.f32.mrf.mxu0  ;;  %v6820_v57 = vunpack.c.l.b16 %v5826_v8 }
 0x866   : > { %16076 = vst [vmem:[#allocation108_spill] sm:$0xff] %v14605_v25  ;;  %6366 = vmatmul.bf16.vlgmr.msra.gmra.mxu2 %v13611_v20  ;;  %v10379_v20 = vld [vmem:[%s15665_s6 + $0x334] sm:$0xf] }
 0x867   : > { %7303 = vmatpush.bf16.msrb.mxu3 %v9830_v0  ;;  %v9302_v0 = vor.u32 %v10379_v20, %v9299_v10  ;;  %v10500_v20 = vld [vmem:[%s15666_s7 + $0x394] sm:$0xf0]  ;;  %v9765_v10 = vld [vmem:[%s15666_s7 + $0x330] sm:$0xf]  ;;  %7108 = vmatpush.bf16.msra.mxu1 %v9774_v6 }
 0x868   : > { %9352 = vmatmul.msk.bf16.gmra.mxu1 %vm5105_vm7, %v9294_v34  ;;  %v9821_v34 = vld [vmem:[%s15666_s7 + $0x3a0] sm:$0xf]  ;;  %v9589_v6 = vld [vmem:[%s15666_s7 + $0x1d0] sm:$0xf] }
 0x869   : > { %7672 = vmatpush.bf16.msrb.mxu0 %v16077_v37  ;;  %v14616_v25 = vpop.f32.mrf.mxu2  ;;  %v10448_v37 = vld [vmem:[%s15666_s7 + $0x1f4] sm:$0xf0]  ;;  %v9822_v50 = vor.u32 %v10502_v41, %v9821_v34  ;;  %v14659_v34 = vpack.c.b16 %v6820_v57, %v6819_v4  ;;  %v5530_v41 = vadd.f32 %v14476_v31, %v13898_v63  ;;  %v10486_v57 = vld [vmem:[%s15666_s7 + $0x324] sm:$0xf0] }
 0x86a   : > { %16078 = vst [vmem:[#allocation85_spill] sm:$0xff] %v14616_v25  ;;  %v9606_v8 = vor.u32 %v10448_v37, %v9605_v1  ;;  %v9597_v25 = vld [vmem:[%s15666_s7 + $0x1e0] sm:$0xf]  ;;  %v10488_v37 = vld [vmem:[%s15666_s7 + $0x334] sm:$0xf0] }
 0x86b   : > { %v14633_v59 = vpop.f32.mrf.mxu3  ;;  %v9598_v1 = vor.u32 %v10446_v60, %v9597_v25  ;;  %7304 = vmatpush.bf16.msrb.mxu3 %v9822_v50  ;;  %v9766_v60 = vor.u32 %v10488_v37, %v9765_v10  ;;  %v9305_v31 = vld [vmem:[%s15665_s6 + $0x338] sm:$0xf] }
 0x86c   : > { %6523 = vmatpush.bf16.msrb.mxu2 %v9606_v8  ;;  %v9814_v8 = vor.u32 %v10500_v20, %v9813_v13  ;;  %v10444_v4 = vld [vmem:[%s15666_s7 + $0x1d4] sm:$0xf0] }
 0x86d   : > { %7673 = vmatpush.bf16.msrb.mxu0 %v16079_v45  ;;  %v14648_v61 = vpop.f32.mrf.mxu1  ;;  %v14663_v25 = vpop.f32.mrf.mxu0  ;;  %v5528_v45 = vadd.f32 %v14438_v52, %v13873_v51  ;;  %v10381_v51 = vld [vmem:[%s15665_s6 + $0x340] sm:$0xf0]  ;;  %v5719_v52 = vadd.f32 %v14481_v38, %v5530_v41  ;;  %7109 = vmatpush.bf16.msra.mxu1 %v9766_v60  ;;  %v9590_v13 = vor.u32 %v10444_v4, %v9589_v6  ;;  %v10498_v38 = vld [vmem:[%s15666_s7 + $0x384] sm:$0xf0]  ;;  %v9581_v41 = vld [vmem:[%s15666_s7 + $0x1c0] sm:$0xf] }
 0x86e   : > { %v9306_v10 = vor.u32 %v10381_v51, %v9305_v31  ;;  %v9749_v60 = vld [vmem:[%s15666_s7 + $0x310] sm:$0xf]  ;;  %v9741_v51 = vld [vmem:[%s15666_s7 + $0x300] sm:$0xf]  ;;  %v10482_v4 = vld [vmem:[%s15666_s7 + $0x304] sm:$0xf0] }
 0x86f   : > { %7305 = vmatpush.bf16.msrb.mxu3 %v9814_v8  ;;  %v5717_v20 = vadd.f32 %v14450_v48, %v5528_v45  ;;  %v10442_v8 = vld [vmem:[%s15666_s7 + $0x1c4] sm:$0xf0]  ;;  %v10484_v48 = vld [vmem:[%s15666_s7 + $0x314] sm:$0xf0]  ;;  %v5828_v45 = vpack.c.bf16 %v5719_v52, %v5719_v52 }
 0x870   : > { %5581 = vmatmul.bf16.gmra.mxu3 %v9302_v0  ;;  %6958 = vmatmul.bf16.gmra.mxu0 %v14659_v34  ;;  %v9805_v0 = vld [vmem:[%s15666_s7 + $0x380] sm:$0xf]  ;;  %v9311_v52 = vld [vmem:[%s15665_s6 + $0x354] sm:$0xf0] }
 0x871   : > { %v14674_v63 = vpop.f32.mrf.mxu2  ;;  %6524 = vmatpush.bf16.msrb.mxu2 %v9598_v1  ;;  %v9758_v1 = vor.u32 %v10486_v57, %v9757_v53  ;;  %v9806_v37 = vor.u32 %v10498_v38, %v9805_v0  ;;  %v9582_v53 = vor.u32 %v10442_v8, %v9581_v41  ;;  %v9750_v57 = vor.u32 %v10484_v48, %v9749_v60  ;;  %v10438_v48 = vld [vmem:[%s15666_s7 + $0x1a4] sm:$0xf0] }
 0x872   : > { %v5827_v31 = vpack.c.bf16 %v5717_v20, %v5717_v20  ;;  %v6822_v38 = vunpack.c.l.b16 %v5828_v45  ;;  %v10440_v20 = vld [vmem:[%s15666_s7 + $0x1b4] sm:$0xf0]  ;;  %v9742_v41 = vor.u32 %v10482_v4, %v9741_v51  ;;  %v10384_v51 = vld [vmem:[%s15665_s6 + $0x358] sm:$0xf0]  ;;  %v9557_v4 = vld [vmem:[%s15666_s7 + $0x190] sm:$0xf] }
 0x873   : > { %v14692_v50 = vpop.f32.mrf.mxu3  ;;  %7306 = vmatpush.bf16.msrb.mxu3 %v9806_v37  ;;  %7110 = vmatpush.bf16.msra.mxu1 %v9758_v1  ;;  %v9573_v1 = vld [vmem:[%s15666_s7 + $0x1b0] sm:$0xf] }
 0x874   : > { %v9574_v37 = vor.u32 %v10440_v20, %v9573_v1  ;;  %v6821_v8 = vunpack.c.l.b16 %v5827_v31  ;;  %v9317_v31 = vld [vmem:[%s15665_s6 + $0x350] sm:$0xf] }
 0x875   : > { %v14707_v6 = vpop.f32.mrf.mxu1  ;;  %6525 = vmatpush.bf16.msrb.mxu2 %v9590_v13  ;;  %v14720_v0 = vpop.f32.mrf.mxu0  ;;  %v9318_v20 = vor.u32 %v10384_v51, %v9317_v31 }
 0x876   : > { %6371 = vmatmul.bf16.gmra.mxu2 %v13664_v44  ;;  %16080 = vst [vmem:[#allocation43_spill] sm:$0xff] %v14720_v0  ;;  %v10382_v44 = vld [vmem:[%s15665_s6 + $0x34c] sm:$0xf] }
 0x877   : > { %7111 = vmatpush.bf16.msra.mxu1 %v9750_v57  ;;  %v9314_v60 = vor.u32 %v10382_v44, %v9311_v52  ;;  %v10436_v44 = vld [vmem:[%s15666_s7 + $0x194] sm:$0xf0] }
 0x878   : > { %9353 = vmatmul.msk.bf16.gmra.mxu1 %vm5105_vm7, %v9306_v10  ;;  %v9558_v1 = vor.u32 %v10436_v44, %v9557_v4 }
 0x879   : > { %v14722_v13 = vpop.f32.mrf.mxu2  ;;  %6526 = vmatpush.bf16.msrb.mxu2 %v9582_v53  ;;  %v9565_v53 = vld [vmem:[%s15666_s7 + $0x1a0] sm:$0xf] }
 0x87a   : > { %16081 = vst [vmem:[#allocation33_spill] sm:$0xff] %v14722_v13  ;;  %v9566_v0 = vor.u32 %v10438_v48, %v9565_v53  ;;  %v14746_v13 = vpack.c.b16 %v6822_v38, %v6821_v8  ;;  %v5533_v53 = vadd.f32 %v14511_v16, %v13917_v21  ;;  %v16082_v21 = vld [vmem:[#allocation8_spill] sm:$0xff] }
 0x87b   : > { %v14736_v10 = vpop.f32.mrf.mxu3  ;;  %7112 = vmatpush.bf16.msra.mxu1 %v9742_v41 }
 0x87c   : > { %v5722_v4 = vadd.f32 %v14524_v19, %v5533_v53  ;;  %v5540_v19 = vadd.f32 %v14633_v59, %v13993_v42  ;;  %v5538_v53 = vadd.f32 %v14588_v11, %v13967_v15 }
 0x87d   : > { %v14744_v45 = vpop.f32.mrf.mxu1  ;;  %6527 = vmatpush.bf16.msrb.mxu2 %v9574_v37  ;;  %v14763_v52 = vpop.f32.mrf.mxu0  ;;  %v9549_v37 = vld [vmem:[%s15666_s7 + $0x180] sm:$0xf] }
 0x87e   : > { %v5727_v42 = vadd.f32 %v14600_v39, %v5538_v53 }
 0x880   : > { %5586 = vmatmul.bf16.gmra.mxu3 %v9314_v60  ;;  %6963 = vmatmul.bf16.gmra.mxu0 %v14746_v13  ;;  %v5535_v60 = vadd.f32 %v14545_v35, %v13933_v27  ;;  %v5831_v11 = vpack.c.bf16 %v5727_v42, %v5727_v42 }
 0x881   : > { %v14749_v57 = vpop.f32.mrf.mxu2  ;;  %6528 = vmatpush.bf16.msrb.mxu2 %v9566_v0  ;;  %v10434_v0 = vld [vmem:[%s15666_s7 + $0x184] sm:$0xf0] }
 0x882   : > { %v9550_v8 = vor.u32 %v10434_v0, %v9549_v37  ;;  %v5724_v31 = vadd.f32 %v14556_v58, %v5535_v60  ;;  %v16083_v58 = vld [vmem:[#allocation9_spill] sm:$0xff] }
 0x883   : > { %v14765_v38 = vpop.f32.mrf.mxu3 }
 0x884   : > { %v5830_v27 = vpack.c.bf16 %v5724_v31, %v5724_v31  ;;  %v16084_v31 = vld [vmem:[#allocation10_spill] sm:$0xff] }
 0x885   : > { %v14773_v41 = vpop.f32.mrf.mxu1  ;;  %6529 = vmatpush.bf16.msrb.mxu2 %v9558_v1  ;;  %v14787_v44 = vpop.f32.mrf.mxu0 }
 0x886   : > { %6376 = vmatmul.bf16.gmra.mxu2 %v13716_v28  ;;  %v5829_v28 = vpack.c.bf16 %v5722_v4, %v5722_v4  ;;  %v7010_v35 = vunpack.c.l.b16 %v5830_v27  ;;  %v5729_v27 = vadd.f32 %v14648_v61, %v5540_v19 }
 0x888   : > { %9354 = vmatmul.msk.bf16.gmra.mxu1 %vm5105_vm7, %v9318_v20  ;;  %v7009_v37 = vunpack.c.l.b16 %v5829_v28 }
 0x889   : > { %v14781_v48 = vpop.f32.mrf.mxu2  ;;  %6530 = vmatpush.bf16.msrb.mxu2 %v9550_v8 }
 0x88a   : > { %v14796_v8 = vpack.c.b16 %v7010_v35, %v7009_v37  ;;  %v5832_v35 = vpack.c.bf16 %v5729_v27, %v5729_v27  ;;  %v5545_v27 = vadd.f32 %v14736_v10, %v14071_v40  ;;  %v16088_v10 = vld [vmem:[#allocation5_spill] sm:$0xff] }
 0x88b   : > { %v14784_v51 = vpop.f32.mrf.mxu3 }
 0x88c   : > { %v5734_v40 = vadd.f32 %v14744_v45, %v5545_v27 }
 0x88d   : > { %v14789_v1 = vpop.f32.mrf.mxu1 }
 0x890   : > { %6919 = vmatmul.bf16.vlgmr.msra.gmra.mxu3 %v14485_v49  ;;  %v14802_v49 = vpop.f32.mrf.mxu0 }
 0x891   : > { %7637 = vmatpush.bf16.msra.mxu3 %v16082_v21  ;;  %v14793_v16 = vpop.f32.mrf.mxu2 }
 0x893   : > { %v5552_v20 = vpop.f32.mrf.mxu3 }
 0x894   : > { %v5553_v60 = vadd.f32 %v5552_v20, %v14189_v5 }
 0x895   : > { %7638 = vmatpush.bf16.msra.mxu3 %v16083_v58  ;;  %v5741_v0 = vpop.f32.mrf.mxu1 }
 0x896   : > { %6381 = vmatmul.bf16.gmra.mxu2 %v13750_v23  ;;  %v5742_v28 = vadd.f32 %v5741_v0, %v5553_v60  ;;  %v16085_v23 = vld [vmem:[#allocation11_spill] sm:$0xff]  ;;  %v7012_v0 = vunpack.c.l.b16 %v5832_v35  ;;  %v7011_v60 = vunpack.c.l.b16 %v5831_v11  ;;  %v10528_v11 = vld [vmem:[%s15666_s7 + $0x474] sm:$0xf0] }
 0x898   : > { %7113 = vmatmul.bf16.vlgmr.msra.gmra.mxu1 %v14796_v8  ;;  %v5837_v20 = vpack.c.bf16 %v5742_v28, %v5742_v28  ;;  %v14815_v58 = vpop.f32.mrf.mxu0  ;;  %v16087_v28 = vld [vmem:[#allocation6_spill] sm:$0xff]  ;;  %v14827_v42 = vpack.c.b16 %v7012_v0, %v7011_v60  ;;  %v10445_v0 = vld [vmem:[%s15666_s7 + $0x1e4] sm:$0xf] }
 0x899   : > { %7639 = vmatpush.bf16.msra.mxu3 %v16084_v31  ;;  %v14808_v4 = vpop.f32.mrf.mxu2  ;;  %v16086_v31 = vld [vmem:[#allocation7_spill] sm:$0xff] }
 0x89a   : > { %v7203_v39 = vunpack.c.l.b16 %v5837_v20  ;;  %v10447_v20 = vld [vmem:[%s15666_s7 + $0x1f4] sm:$0xf] }
 0x89b   : > { %v5554_v21 = vpop.f32.mrf.mxu3 }
 0x89c   : > { %v5555_v5 = vadd.f32 %v5554_v21, %v14230_v14 }
 0x89d   : > { %7640 = vmatpush.bf16.msra.mxu3 %v16085_v23  ;;  %v5743_v59 = vpop.f32.mrf.mxu1  ;;  %v6161_v23 = vadd.f32 %v14309_v56, %v13793_v55  ;;  %v9925_v55 = vld [vmem:[%s15666_s7 + $0x470] sm:$0xf] }
 0x89e   : > { %v5744_v15 = vadd.f32 %v5743_v59, %v5555_v5  ;;  %v5543_v5 = vadd.f32 %v14692_v50, %v14039_v17  ;;  %v9607_v17 = vld [vmem:[%s15666_s7 + $0x1f8] sm:$0xf0] }
 0x8a0   : > { %v5838_v37 = vpack.c.bf16 %v5744_v15, %v5744_v15  ;;  %6924 = vmatmul.bf16.gmra.mxu3 %v14560_v54  ;;  %v14848_v56 = vpop.f32.mrf.mxu0  ;;  %v5732_v50 = vadd.f32 %v14707_v6, %v5543_v5  ;;  %v9610_v15 = vor.u32 %v10447_v20, %v9607_v17  ;;  %v9917_v6 = vld [vmem:[%s15666_s7 + $0x460] sm:$0xf] }
 0x8a1   : > { %7641 = vmatpush.bf16.msra.mxu3 %v16086_v31  ;;  %v14818_v61 = vpop.f32.mrf.mxu2  ;;  %v9926_v31 = vor.u32 %v10528_v11, %v9925_v55 }
 0x8a2   : > { %v7204_v19 = vunpack.c.l.b16 %v5838_v37  ;;  %6552 = vmatpush.bf16.msra.mxu2 %v9610_v15  ;;  %v5833_v5 = vpack.c.bf16 %v5732_v50, %v5732_v50  ;;  %v9591_v50 = vld [vmem:[%s15666_s7 + $0x1d8] sm:$0xf0]  ;;  %v10524_v15 = vld [vmem:[%s15666_s7 + $0x454] sm:$0xf0] }
 0x8a3   : > { %v5557_v14 = vpop.f32.mrf.mxu3  ;;  %7493 = vmatpush.bf16.msrb.mxu1 %v9926_v31  ;;  %v9583_v31 = vld [vmem:[%s15666_s7 + $0x1c8] sm:$0xf0] }
 0x8a4   : > { %v14820_v53 = vpack.c.b16 %v7204_v19, %v7203_v39  ;;  %v5558_v54 = vadd.f32 %v5557_v14, %v14258_v18  ;;  %v9599_v39 = vld [vmem:[%s15666_s7 + $0x1e8] sm:$0xf0]  ;;  %v5834_v19 = vpack.c.bf16 %v5734_v40, %v5734_v40 }
 0x8a5   : > { %7642 = vmatpush.bf16.msra.mxu3 %v16087_v28  ;;  %v5746_v21 = vpop.f32.mrf.mxu1  ;;  %v16089_v14 = vld [vmem:[#allocation4_spill] sm:$0xff]  ;;  %v9602_v27 = vor.u32 %v10445_v0, %v9599_v39  ;;  %v9901_v0 = vld [vmem:[%s15666_s7 + $0x440] sm:$0xf] }
 0x8a6   : > { %6531 = vmatmul.bf16.vlgmr.msrb.gmra.mxu2 %v13783_v7  ;;  %7336 = vmatmul.bf16.vlgmr.msra.gmra.mxu0 %v14820_v53  ;;  %v5747_v18 = vadd.f32 %v5746_v21, %v5558_v54  ;;  %v7014_v40 = vunpack.c.l.b16 %v5834_v19 }
 0x8a7   : > { %6553 = vmatpush.bf16.msra.mxu2 %v9602_v27  ;;  %v10522_v27 = vld [vmem:[%s15666_s7 + $0x444] sm:$0xf0] }
 0x8a8   : > { %7118 = vmatmul.bf16.gmra.mxu1 %v14827_v42  ;;  %v5839_v28 = vpack.c.bf16 %v5747_v18, %v5747_v18  ;;  %v10443_v18 = vld [vmem:[%s15666_s7 + $0x1d4] sm:$0xf] }
 0x8a9   : > { %7643 = vmatpush.bf16.msra.mxu3 %v16088_v10  ;;  %v6338_v59 = vpop.f32.mrf.mxu2 }
 0x8aa   : > { %v14837_v35 = vadd.f32 %v6338_v59, %v6161_v23  ;;  %v6163_v23 = vadd.f32 %v14354_v30, %v13819_v9  ;;  %v7205_v20 = vunpack.c.l.b16 %v5839_v28  ;;  %v9909_v9 = vld [vmem:[%s15666_s7 + $0x450] sm:$0xf]  ;;  %v7013_v30 = vunpack.c.l.b16 %v5833_v5 }
 0x8ab   : > { %v5559_v45 = vpop.f32.mrf.mxu3  ;;  %v9910_v11 = vor.u32 %v10524_v15, %v9909_v9  ;;  %v5548_v5 = vadd.f32 %v14765_v38, %v14117_v29  ;;  %v9893_v29 = vld [vmem:[%s15666_s7 + $0x430] sm:$0xf] }
 0x8ac   : > { %v5560_v37 = vadd.f32 %v5559_v45, %v14305_v22  ;;  %v10526_v22 = vld [vmem:[%s15666_s7 + $0x464] sm:$0xf0]  ;;  %v9594_v45 = vor.u32 %v10443_v18, %v9591_v50  ;;  %v9567_v18 = vld [vmem:[%s15666_s7 + $0x1a8] sm:$0xf0]  ;;  %v9885_v50 = vld [vmem:[%s15666_s7 + $0x420] sm:$0xf] }
 0x8ad   : > { %7644 = vmatpush.bf16.msra.mxu3 %v16089_v14  ;;  %v5748_v60 = vpop.f32.mrf.mxu1  ;;  %v9918_v54 = vor.u32 %v10526_v22, %v9917_v6  ;;  %v14896_v6 = vpop.f32.mrf.mxu0  ;;  %v14898_v14 = vpack.c.b16 %v7014_v40, %v7013_v30  ;;  %v5550_v22 = vadd.f32 %v14784_v51, %v14161_v24  ;;  %v5737_v40 = vadd.f32 %v14773_v41, %v5548_v5  ;;  %v10516_v5 = vld [vmem:[%s15666_s7 + $0x414] sm:$0xf0] }
 0x8ae   : > { %v5749_v21 = vadd.f32 %v5748_v60, %v5560_v37  ;;  %v10441_v37 = vld [vmem:[%s15666_s7 + $0x1c4] sm:$0xf]  ;;  %6554 = vmatpush.bf16.msra.mxu2 %v9594_v45 }
 0x8af   : > { %7494 = vmatpush.bf16.msrb.mxu1 %v9918_v54  ;;  %v9586_v60 = vor.u32 %v10441_v37, %v9583_v31  ;;  %v6166_v54 = vadd.f32 %v14390_v12, %v13849_v33  ;;  %v5739_v24 = vadd.f32 %v14789_v1, %v5550_v22  ;;  %v9575_v33 = vld [vmem:[%s15666_s7 + $0x1b8] sm:$0xf0]  ;;  %v10520_v1 = vld [vmem:[%s15666_s7 + $0x434] sm:$0xf0]  ;;  %v6168_v37 = vadd.f32 %v14423_v26, %v13875_v47  ;;  %v9877_v26 = vld [vmem:[%s15666_s7 + $0x410] sm:$0xf] }
 0x8b0   : > { %v5840_v10 = vpack.c.bf16 %v5749_v21, %v5749_v21  ;;  %6929 = vmatmul.bf16.gmra.mxu3 %v14659_v34  ;;  %v9902_v21 = vor.u32 %v10522_v27, %v9901_v0  ;;  %v5835_v31 = vpack.c.bf16 %v5737_v40, %v5737_v40  ;;  %v9559_v47 = vld [vmem:[%s15666_s7 + $0x198] sm:$0xf0] }
 0x8b1   : > { %v6340_v59 = vpop.f32.mrf.mxu2  ;;  %v5836_v41 = vpack.c.bf16 %v5739_v24, %v5739_v24  ;;  %v9878_v24 = vor.u32 %v10516_v5, %v9877_v26  ;;  %v16094_v5 = vld [vmem:[#allocation56_spill] sm:$0xff] }
 0x8b2   : > { %v7206_v17 = vunpack.c.l.b16 %v5840_v10  ;;  %v14871_v55 = vadd.f32 %v6340_v59, %v6163_v23  ;;  %6555 = vmatpush.bf16.msra.mxu2 %v9586_v60  ;;  %v10439_v10 = vld [vmem:[%s15666_s7 + $0x1b4] sm:$0xf] }
 0x8b3   : > { %v5562_v34 = vpop.f32.mrf.mxu3  ;;  %7495 = vmatpush.bf16.msrb.mxu1 %v9910_v11  ;;  %v9578_v38 = vor.u32 %v10439_v10, %v9575_v33  ;;  %v7016_v60 = vunpack.c.l.b16 %v5836_v41  ;;  %v9551_v10 = vld [vmem:[%s15666_s7 + $0x188] sm:$0xf0]  ;;  %v9869_v33 = vld [vmem:[%s15666_s7 + $0x400] sm:$0xf] }
 0x8b4   : > { %v14894_v39 = vpack.c.b16 %v7206_v17, %v7205_v20  ;;  %v5563_v28 = vadd.f32 %v5562_v34, %v14345_v46  ;;  %v9894_v20 = vor.u32 %v10520_v1, %v9893_v29  ;;  %v10437_v17 = vld [vmem:[%s15666_s7 + $0x1a4] sm:$0xf]  ;;  %v10514_v1 = vld [vmem:[%s15666_s7 + $0x404] sm:$0xf0] }
 0x8b5   : > { %v5751_v19 = vpop.f32.mrf.mxu1  ;;  %v9570_v30 = vor.u32 %v10437_v17, %v9567_v18  ;;  %v14942_v11 = vpop.f32.mrf.mxu0  ;;  %v6171_v17 = vadd.f32 %v14462_v32, %v13905_v36 }
 0x8b6   : > { %6536 = vmatmul.bf16.gmra.mxu2 %v13840_v2  ;;  %7341 = vmatmul.bf16.gmra.mxu0 %v14894_v39  ;;  %v5752_v51 = vadd.f32 %v5751_v19, %v5563_v28 }
 0x8b7   : > { %7496 = vmatpush.bf16.msrb.mxu1 %v9902_v21  ;;  %6556 = vmatpush.bf16.msra.mxu2 %v9578_v38  ;;  %v10435_v21 = vld [vmem:[%s15666_s7 + $0x194] sm:$0xf] }
 0x8b8   : > { %7123 = vmatmul.bf16.gmra.mxu1 %v14898_v14  ;;  %v5841_v34 = vpack.c.bf16 %v5752_v51, %v5752_v51  ;;  %v10433_v51 = vld [vmem:[%s15666_s7 + $0x184] sm:$0xf] }
 0x8b9   : > { %v6343_v23 = vpop.f32.mrf.mxu2  ;;  %v9554_v38 = vor.u32 %v10433_v51, %v9551_v10 }
 0x8ba   : > { %v14914_v46 = vadd.f32 %v6343_v23, %v6166_v54  ;;  %v7207_v27 = vunpack.c.l.b16 %v5841_v34  ;;  %v9562_v54 = vor.u32 %v10435_v21, %v9559_v47  ;;  %v7015_v23 = vunpack.c.l.b16 %v5835_v31  ;;  %v16092_v31 = vld [vmem:[#allocation25_spill] sm:$0xff] }
 0x8bb   : > { %v5564_v12 = vpop.f32.mrf.mxu3  ;;  %7497 = vmatpush.bf16.msrb.mxu1 %v9894_v20  ;;  %6557 = vmatpush.bf16.msra.mxu2 %v9570_v30  ;;  %v9870_v20 = vor.u32 %v10514_v1, %v9869_v33 }
 0x8bc   : > { %v5565_v59 = vadd.f32 %v5564_v12, %v14386_v62  ;;  %v10518_v62 = vld [vmem:[%s15666_s7 + $0x424] sm:$0xf0] }
 0x8bd   : > { %v5753_v9 = vpop.f32.mrf.mxu1  ;;  %v9886_v15 = vor.u32 %v10518_v62, %v9885_v50  ;;  %v14983_v18 = vpop.f32.mrf.mxu0  ;;  %v16090_v62 = vld [vmem:[#allocation73_spill] sm:$0xff] }
 0x8be   : > { %v5754_v45 = vadd.f32 %v5753_v9, %v5565_v59  ;;  %v14977_v59 = vpack.c.b16 %v7016_v60, %v7015_v23  ;;  %v16095_v23 = vld [vmem:[#allocation24_spill] sm:$0xff] }
 0x8bf   : > { %7498 = vmatpush.bf16.msrb.mxu1 %v9886_v15  ;;  %6558 = vmatpush.bf16.msra.mxu2 %v9562_v54 }
 0x8c0   : > { %v5842_v0 = vpack.c.bf16 %v5754_v45, %v5754_v45  ;;  %6934 = vmatmul.bf16.gmra.mxu3 %v14746_v13 }
 0x8c1   : > { %v6345_v19 = vpop.f32.mrf.mxu2 }
 0x8c2   : > { %v7208_v22 = vunpack.c.l.b16 %v5842_v0  ;;  %v14947_v28 = vadd.f32 %v6345_v19, %v6168_v37  ;;  %v16091_v37 = vld [vmem:[#allocation51_spill] sm:$0xff] }
 0x8c3   : > { %v5567_v13 = vpop.f32.mrf.mxu3  ;;  %7499 = vmatpush.bf16.msrb.mxu1 %v9878_v24  ;;  %6559 = vmatpush.bf16.msra.mxu2 %v9554_v38  ;;  %v6173_v0 = vadd.f32 %v16092_v31, %v16091_v37  ;;  %v16096_v24 = vld [vmem:[#allocation79_spill] sm:$0xff]  ;;  %v16097_v38 = vld [vmem:[#allocation36_spill] sm:$0xff] }
 0x8c4   : > { %v14970_v29 = vpack.c.b16 %v7208_v22, %v7207_v27  ;;  %v5568_v40 = vadd.f32 %v5567_v13, %v14414_v3  ;;  %v16093_v13 = vld [vmem:[#allocation35_spill] sm:$0xff] }
 0x8c5   : > { %v5756_v12 = vpop.f32.mrf.mxu1  ;;  %v14993_v22 = vpop.f32.mrf.mxu0 }
 0x8c6   : > { %6541 = vmatmul.bf16.gmra.mxu2 %v13896_v43  ;;  %7346 = vmatmul.bf16.gmra.mxu0 %v14970_v29  ;;  %v5757_v9 = vadd.f32 %v5756_v12, %v5568_v40 }
 0x8c7   : > { %7500 = vmatpush.bf16.msrb.mxu1 %v9870_v20 }
 0x8c8   : > { %7128 = vmatmul.bf16.gmra.mxu1 %v14977_v59  ;;  %v5843_v45 = vpack.c.bf16 %v5757_v9, %v5757_v9  ;;  %v16098_v9 = vld [vmem:[#allocation101_spill] sm:$0xff] }
 0x8c9   : > { %v6348_v50 = vpop.f32.mrf.mxu2 }
 0x8ca   : > { %v14985_v30 = vadd.f32 %v6348_v50, %v6171_v17  ;;  %v7209_v19 = vunpack.c.l.b16 %v5843_v45 }
 0x8cb   : > { %v5569_v3 = vpop.f32.mrf.mxu3 }
 0x8cc   : > { %v5570_v41 = vadd.f32 %v5569_v3, %v16090_v62  ;;  %v16099_v3 = vld [vmem:[#allocation29_spill] sm:$0xff] }
 0x8cd   : > { %v5758_v34 = vpop.f32.mrf.mxu1  ;;  %v15005_v40 = vpop.f32.mrf.mxu0  ;;  %v6178_v62 = vadd.f32 %v16099_v3, %v16098_v9  ;;  %v16104_v3 = vld [vmem:[#allocation103_spill] sm:$0xff] }
 0x8ce   : > { %v5759_v15 = vadd.f32 %v5758_v34, %v5570_v41 }
 0x8d0   : > { %v5844_v36 = vpack.c.bf16 %v5759_v15, %v5759_v15  ;;  %7307 = vmatmul.bf16.vlgmr.msrb.gmra.mxu3 %v14820_v53  ;;  %v6176_v53 = vadd.f32 %v16096_v24, %v16095_v23  ;;  %v10463_v24 = vld [vmem:[%s15666_s7 + $0x274] sm:$0xf] }
 0x8d1   : > { %v6350_v32 = vpop.f32.mrf.mxu2 }
 0x8d2   : > { %v7210_v60 = vunpack.c.l.b16 %v5844_v36  ;;  %v14991_v27 = vadd.f32 %v6350_v32, %v6173_v0  ;;  %v16100_v32 = vld [vmem:[#allocation39_spill] sm:$0xff] }
 0x8d3   : > { %v5572_v21 = vpop.f32.mrf.mxu3 }
 0x8d4   : > { %v14995_v47 = vpack.c.b16 %v7210_v60, %v7209_v19  ;;  %v5573_v54 = vadd.f32 %v5572_v21, %v16093_v13  ;;  %v16101_v21 = vld [vmem:[#allocation22_spill] sm:$0xff] }
 0x8d5   : > { %v5761_v26 = vpop.f32.mrf.mxu1  ;;  %v15017_v60 = vpop.f32.mrf.mxu0 }
 0x8d6   : > { %6546 = vmatmul.bf16.gmra.mxu2 %v16094_v5  ;;  %7351 = vmatmul.bf16.gmra.mxu0 %v14995_v47  ;;  %v5762_v10 = vadd.f32 %v5761_v26, %v5573_v54  ;;  %v16102_v26 = vld [vmem:[#allocation85_spill] sm:$0xff] }
 0x8d8   : > { %v5845_v17 = vpack.c.bf16 %v5762_v10, %v5762_v10  ;;  %v16103_v10 = vld [vmem:[#allocation108_spill] sm:$0xff] }
 0x8d9   : > { %v6353_v51 = vpop.f32.mrf.mxu2 }
 0x8da   : > { %v15002_v33 = vadd.f32 %v6353_v51, %v6176_v53  ;;  %v7397_v45 = vunpack.c.l.b16 %v5845_v17  ;;  %v9671_v53 = vld [vmem:[%s15666_s7 + $0x278] sm:$0xf0] }
 0x8db   : > { %v5574_v12 = vpop.f32.mrf.mxu3  ;;  %v9674_v51 = vor.u32 %v10463_v24, %v9671_v53  ;;  %v10529_v53 = vld [vmem:[%s15668_s9 + $0x4] sm:$0xf] }
 0x8dc   : > { %v5575_v1 = vadd.f32 %v5574_v12, %v16097_v38  ;;  %v10461_v38 = vld [vmem:[%s15666_s7 + $0x264] sm:$0xf] }
 0x8dd   : > { %v5763_v20 = vpop.f32.mrf.mxu1  ;;  %6746 = vmatpush.bf16.msrb.mxu2 %v9674_v51  ;;  %v10455_v51 = vld [vmem:[%s15666_s7 + $0x234] sm:$0xf] }
 0x8de   : > { %v5764_v50 = vadd.f32 %v5763_v20, %v5575_v1  ;;  %v9663_v1 = vld [vmem:[%s15666_s7 + $0x268] sm:$0xf0] }
 0x8df   : > { %v9666_v17 = vor.u32 %v10461_v38, %v9663_v1 }
 0x8e0   : > { %v5846_v41 = vpack.c.bf16 %v5764_v50, %v5764_v50  ;;  %7312 = vmatmul.bf16.gmra.mxu3 %v14894_v39  ;;  %v6190_v39 = vadd.f32 %v16102_v26, %v16101_v21  ;;  %v9647_v26 = vld [vmem:[%s15666_s7 + $0x248] sm:$0xf0] }
 0x8e1   : > { %v6355_v34 = vpop.f32.mrf.mxu2  ;;  %6747 = vmatpush.bf16.msrb.mxu2 %v9666_v17 }
 0x8e2   : > { %v7398_v15 = vunpack.c.l.b16 %v5846_v41  ;;  %v15010_v37 = vadd.f32 %v6355_v34, %v6178_v62  ;;  %v6192_v62 = vadd.f32 %v14674_v63, %v16104_v3  ;;  %v15039_v34 = vpop.f32.mrf.mxu0  ;;  %v9631_v3 = vld [vmem:[%s15666_s7 + $0x228] sm:$0xf0] }
 0x8e3   : > { %v5577_v31 = vpop.f32.mrf.mxu3 }
 0x8e4   : > { %v15012_v0 = vpack.c.b16 %v7398_v15, %v7397_v45  ;;  %v5578_v19 = vadd.f32 %v5577_v31, %v16100_v32  ;;  %v10459_v32 = vld [vmem:[%s15666_s7 + $0x254] sm:$0xf] }
 0x8e5   : > { %v5766_v36 = vpop.f32.mrf.mxu1 }
 0x8e6   : > { %6560 = vmatmul.bf16.vlgmr.msra.gmra.mxu2 %v13783_v7  ;;  %7501 = vmatmul.bf16.vlgmr.msrb.gmra.mxu1 %v15012_v0  ;;  %v5767_v54 = vadd.f32 %v5766_v36, %v5578_v19  ;;  %v9655_v19 = vld [vmem:[%s15666_s7 + $0x258] sm:$0xf0] }
 0x8e7   : > { %v9658_v21 = vor.u32 %v10459_v32, %v9655_v19 }
 0x8e8   : > { %v5847_v50 = vpack.c.bf16 %v5767_v54, %v5767_v54 }
 0x8e9   : > { %v6367_v13 = vpop.f32.mrf.mxu2  ;;  %6748 = vmatpush.bf16.msrb.mxu2 %v9658_v21  ;;  %v10451_v21 = vld [vmem:[%s15666_s7 + $0x214] sm:$0xf] }
 0x8ea   : > { %v15021_v23 = vadd.f32 %v6367_v13, %v6190_v39  ;;  %v7399_v15 = vunpack.c.l.b16 %v5847_v50 }
 0x8eb   : > { %v5579_v7 = vpop.f32.mrf.mxu3 }
 0x8ec   : > { %v5580_v12 = vadd.f32 %v5579_v7, %v16103_v10  ;;  %v9935_v7 = vld [vmem:[%s15668_s9 + $0x8] sm:$0xf0] }
 0x8ed   : > { %v5768_v20 = vpop.f32.mrf.mxu1  ;;  %v9938_v10 = vor.u32 %v10529_v53, %v9935_v7 }
 0x8ee   : > { %v5769_v9 = vadd.f32 %v5768_v20, %v5580_v12  ;;  %v16106_v12 = vld [vmem:[#allocation33_spill] sm:$0xff] }
 0x8ef   : > { %7674 = vmatmul.bf16.vlgmr.msrb.gmra.mxu0 %v9938_v10 }
 0x8f0   : > { %v5848_v41 = vpack.c.bf16 %v5769_v9, %v5769_v9  ;;  %7317 = vmatmul.bf16.gmra.mxu3 %v14970_v29  ;;  %v10457_v29 = vld [vmem:[%s15666_s7 + $0x244] sm:$0xf] }
 0x8f1   : > { %v6369_v45 = vpop.f32.mrf.mxu2  ;;  %v9650_v54 = vor.u32 %v10457_v29, %v9647_v26  ;;  %v10453_v9 = vld [vmem:[%s15666_s7 + $0x224] sm:$0xf]  ;;  %v9623_v29 = vld [vmem:[%s15666_s7 + $0x218] sm:$0xf0] }
 0x8f2   : > { %v7400_v31 = vunpack.c.l.b16 %v5848_v41  ;;  %v15041_v36 = vadd.f32 %v6369_v45, %v6192_v62  ;;  %v15082_v62 = vpop.f32.mrf.mxu0  ;;  %v16107_v45 = vld [vmem:[#allocation43_spill] sm:$0xff]  ;;  %v9634_v32 = vor.u32 %v10453_v9, %v9631_v3  ;;  %v9626_v53 = vor.u32 %v10451_v21, %v9623_v29 }
 0x8f3   : > { %v5582_v63 = vpop.f32.mrf.mxu3  ;;  %6749 = vmatpush.bf16.msrb.mxu2 %v9650_v54  ;;  %v16108_v26 = vld [vmem:[#allocation27_spill] sm:$0xff] }
 0x8f4   : > { %v15055_v39 = vpack.c.b16 %v7400_v31, %v7399_v15  ;;  %v5583_v24 = vadd.f32 %v5582_v63, %v14663_v25  ;;  %v9639_v25 = vld [vmem:[%s15666_s7 + $0x238] sm:$0xf0] }
 0x8f5   : > { %v5771_v13 = vpop.f32.mrf.mxu1  ;;  %v9642_v20 = vor.u32 %v10455_v51, %v9639_v25  ;;  %v10449_v25 = vld [vmem:[%s15666_s7 + $0x204] sm:$0xf]  ;;  %v9943_v9 = vld [vmem:[%s15668_s9 + $0x18] sm:$0xf0] }
 0x8f6   : > { %6565 = vmatmul.bf16.gmra.mxu2 %v13840_v2  ;;  %7506 = vmatmul.bf16.gmra.mxu1 %v15055_v39  ;;  %v16105_v2 = vld [vmem:[#allocation62_spill] sm:$0xff]  ;;  %v5772_v17 = vadd.f32 %v5771_v13, %v5583_v24  ;;  %v6197_v13 = vadd.f32 %v14749_v57, %v16108_v26 }
 0x8f7   : > { %v6195_v38 = vadd.f32 %v16106_v12, %v16105_v2  ;;  %6750 = vmatpush.bf16.msrb.mxu2 %v9642_v20  ;;  %v9615_v2 = vld [vmem:[%s15666_s7 + $0x208] sm:$0xf0] }
 0x8f8   : > { %v5849_v19 = vpack.c.bf16 %v5772_v17, %v5772_v17  ;;  %v10531_v17 = vld [vmem:[%s15668_s9 + $0x14] sm:$0xf] }
 0x8f9   : > { %v6372_v1 = vpop.f32.mrf.mxu2  ;;  %v9946_v3 = vor.u32 %v10531_v17, %v9943_v9  ;;  %v16111_v17 = vld [vmem:[#allocation68_spill] sm:$0xff] }
 0x8fa   : > { %v15074_v50 = vadd.f32 %v6372_v1, %v6195_v38  ;;  %v7401_v7 = vunpack.c.l.b16 %v5849_v19  ;;  %v15104_v38 = vpop.f32.mrf.mxu0  ;;  %v9618_v1 = vor.u32 %v10449_v25, %v9615_v2  ;;  %v6205_v9 = vadd.f32 %v14808_v4, %v16111_v17 }
 0x8fb   : > { %v5584_v41 = vpop.f32.mrf.mxu3  ;;  %6751 = vmatpush.bf16.msrb.mxu2 %v9634_v32 }
 0x8fc   : > { %v5585_v15 = vadd.f32 %v5584_v41, %v16107_v45  ;;  %v16109_v41 = vld [vmem:[#allocation20_spill] sm:$0xff] }
 0x8fd   : > { %v5773_v31 = vpop.f32.mrf.mxu1  ;;  %v6200_v45 = vadd.f32 %v14781_v48, %v16109_v41 }
 0x8fe   : > { %v5774_v63 = vadd.f32 %v5773_v31, %v5585_v15 }
 0x8ff   : > { %6752 = vmatpush.bf16.msrb.mxu2 %v9626_v53  ;;  %7679 = vmatmul.bf16.gmra.mxu0 %v9946_v3 }
 0x900   : > { %v5850_v54 = vpack.c.bf16 %v5774_v63, %v5774_v63  ;;  %7322 = vmatmul.bf16.gmra.mxu3 %v14995_v47 }
 0x901   : > { %v6374_v24 = vpop.f32.mrf.mxu2 }
 0x902   : > { %v7402_v51 = vunpack.c.l.b16 %v5850_v54  ;;  %v15094_v10 = vadd.f32 %v6374_v24, %v6197_v13  ;;  %v15126_v13 = vpop.f32.mrf.mxu0  ;;  %v16110_v54 = vld [vmem:[#allocation28_spill] sm:$0xff] }
 0x903   : > { %v5587_v12 = vpop.f32.mrf.mxu3  ;;  %6753 = vmatpush.bf16.msrb.mxu2 %v9618_v1  ;;  %v6202_v24 = vadd.f32 %v14793_v16, %v16110_v54  ;;  %v10533_v1 = vld [vmem:[%s15668_s9 + $0x24] sm:$0xf]  ;;  %v9951_v16 = vld [vmem:[%s15668_s9 + $0x28] sm:$0xf0]  ;;  %v10535_v54 = vld [vmem:[%s15668_s9 + $0x34] sm:$0xf] }
 0x904   : > { %v15102_v57 = vpack.c.b16 %v7402_v51, %v7401_v7  ;;  %v5588_v20 = vadd.f32 %v5587_v12, %v14763_v52  ;;  %v9933_v52 = vld [vmem:[%s15668_s9] sm:$0xf] }
 0x905   : > { %v5776_v47 = vpop.f32.mrf.mxu1 }
 0x906   : > { %6570 = vmatmul.bf16.gmra.mxu2 %v13896_v43  ;;  %7511 = vmatmul.bf16.gmra.mxu1 %v15102_v57  ;;  %v10530_v43 = vld [vmem:[%s15668_s9 + $0x4] sm:$0xf0]  ;;  %v5777_v31 = vadd.f32 %v5776_v47, %v5588_v20  ;;  %v9954_v20 = vor.u32 %v10533_v1, %v9951_v16  ;;  %v9949_v1 = vld [vmem:[%s15668_s9 + $0x20] sm:$0xf] }
 0x907   : > { %v9934_v21 = vor.u32 %v10530_v43, %v9933_v52  ;;  %v10534_v16 = vld [vmem:[%s15668_s9 + $0x24] sm:$0xf0] }
 0x908   : > { %v5851_v48 = vpack.c.bf16 %v5777_v31, %v5777_v31 }
 0x909   : > { %v6377_v15 = vpop.f32.mrf.mxu2 }
 0x90a   : > { %v15123_v32 = vadd.f32 %v6377_v15, %v6200_v45  ;;  %v7403_v51 = vunpack.c.l.b16 %v5851_v48  ;;  %v15144_v3 = vpop.f32.mrf.mxu0  ;;  %v10532_v45 = vld [vmem:[%s15668_s9 + $0x14] sm:$0xf0] }
 0x90b   : > { %v5589_v19 = vpop.f32.mrf.mxu3 }
 0x90c   : > { %v5590_v63 = vadd.f32 %v5589_v19, %v14787_v44  ;;  %v16112_v19 = vld [vmem:[#allocation104_spill] sm:$0xff] }
 0x90d   : > { %v5778_v29 = vpop.f32.mrf.mxu1  ;;  %v6207_v4 = vadd.f32 %v14818_v61, %v16112_v19  ;;  %v10495_v61 = vld [vmem:[%s15666_s7 + $0x374] sm:$0xf]  ;;  %v9791_v19 = vld [vmem:[%s15666_s7 + $0x368] sm:$0xf0] }
 0x90e   : > { %v5779_v26 = vadd.f32 %v5778_v29, %v5590_v63 }
 0x90f   : > { %7684 = vmatmul.bf16.gmra.mxu0 %v9954_v20 }
 0x910   : > { %v5852_v53 = vpack.c.bf16 %v5779_v26, %v5779_v26  ;;  %7645 = vmatmul.bf16.vlgmr.msra.gmra.mxu3 %v9934_v21  ;;  %v16113_v26 = vld [vmem:[#allocation106_spill] sm:$0xff] }
 0x911   : > { %v6379_v7 = vpop.f32.mrf.mxu2 }
 0x912   : > { %v7404_v25 = vunpack.c.l.b16 %v5852_v53  ;;  %v15130_v2 = vadd.f32 %v6379_v7, %v6202_v24  ;;  %v15158_v29 = vpop.f32.mrf.mxu0  ;;  %v9959_v24 = vld [vmem:[%s15668_s9 + $0x38] sm:$0xf0] }
 0x913   : > { %v6920_v12 = vpop.f32.mrf.mxu3  ;;  %v9962_v53 = vor.u32 %v10535_v54, %v9959_v24  ;;  %v9799_v7 = vld [vmem:[%s15666_s7 + $0x378] sm:$0xf0] }
 0x914   : > { %v15132_v47 = vpack.c.b16 %v7404_v25, %v7403_v51  ;;  %v9802_v51 = vor.u32 %v10495_v61, %v9799_v7 }
 0x915   : > { %v7114_v44 = vpop.f32.mrf.mxu1 }
 0x916   : > { %6575 = vmatmul.bf16.gmra.mxu2 %v16094_v5  ;;  %7516 = vmatmul.bf16.gmra.mxu1 %v15132_v47  ;;  %v9941_v5 = vld [vmem:[%s15668_s9 + $0x10] sm:$0xf] }
 0x917   : > { %v9942_v43 = vor.u32 %v10532_v45, %v9941_v5  ;;  %7134 = vmatpush.bf16.msra.mxu2 %v9802_v51  ;;  %v9950_v5 = vor.u32 %v10534_v16, %v9949_v1  ;;  %v16114_v16 = vld [vmem:[#allocation31_spill] sm:$0xff] }
 0x919   : > { %v6382_v41 = vpop.f32.mrf.mxu2 }
 0x91a   : > { %v15152_v15 = vadd.f32 %v6382_v41, %v6205_v9  ;;  %v15181_v45 = vpop.f32.mrf.mxu0 }
 0x91b   : > { %v6922_v52 = vpop.f32.mrf.mxu3 }
 0x91d   : > { %v7116_v31 = vpop.f32.mrf.mxu1 }
 0x91f   : > { %7689 = vmatmul.bf16.gmra.mxu0 %v9962_v53 }
 0x920   : > { %7650 = vmatmul.bf16.gmra.mxu3 %v9942_v43  ;;  %v10493_v43 = vld [vmem:[%s15666_s7 + $0x364] sm:$0xf] }
 0x921   : > { %v6384_v63 = vpop.f32.mrf.mxu2 }
 0x922   : > { %v15156_v21 = vadd.f32 %v6384_v63, %v6207_v4  ;;  %v10491_v4 = vld [vmem:[%s15666_s7 + $0x354] sm:$0xf] }
 0x923   : > { %v6925_v48 = vpop.f32.mrf.mxu3  ;;  %v15205_v1 = vpop.f32.mrf.mxu0 }
 0x925   : > { %v7119_v20 = vpop.f32.mrf.mxu1 }
 0x926   : > { %6754 = vmatmul.bf16.vlgmr.msrb.gmra.mxu2 %v16113_v26 }
 0x929   : > { %v6532_v25 = vpop.f32.mrf.mxu2 }
 0x92a   : > { %v6581_v17 = vadd.f32 %v6532_v25, %v14837_v35  ;;  %v9794_v35 = vor.u32 %v10493_v43, %v9791_v19  ;;  %v10489_v25 = vld [vmem:[%s15666_s7 + $0x344] sm:$0xf]  ;;  %v9957_v19 = vld [vmem:[%s15668_s9 + $0x30] sm:$0xf] }
 0x92b   : > { %v6927_v9 = vpop.f32.mrf.mxu3 }
 0x92c   : > { %v6775_v41 = vadd.f32 %v14802_v49, %v6581_v17  ;;  %v9783_v49 = vld [vmem:[%s15666_s7 + $0x358] sm:$0xf0]  ;;  %7135 = vmatpush.bf16.msra.mxu2 %v9794_v35 }
 0x92d   : > { %v9786_v26 = vor.u32 %v10491_v4, %v9783_v49  ;;  %v7121_v7 = vpop.f32.mrf.mxu1  ;;  %v10536_v4 = vld [vmem:[%s15668_s9 + $0x34] sm:$0xf0] }
 0x92e   : > { %v6969_v63 = vadd.f32 %v6920_v12, %v6775_v41  ;;  %v9775_v12 = vld [vmem:[%s15666_s7 + $0x348] sm:$0xf0] }
 0x930   : > { %7655 = vmatmul.bf16.gmra.mxu3 %v9950_v5  ;;  %v15195_v54 = vadd.f32 %v7114_v44, %v6969_v63  ;;  %7136 = vmatpush.bf16.msra.mxu2 %v9786_v26  ;;  %v9778_v44 = vor.u32 %v10489_v25, %v9775_v12  ;;  %v9958_v26 = vor.u32 %v10536_v4, %v9957_v19  ;;  %v16115_v19 = vld [vmem:[#allocation40_spill] sm:$0xff] }
 0x931   : > { %v6534_v24 = vpop.f32.mrf.mxu2 }
 0x932   : > { %v6583_v61 = vadd.f32 %v6534_v24, %v14871_v55  ;;  %v10487_v55 = vld [vmem:[%s15666_s7 + $0x334] sm:$0xf] }
 0x933   : > { %v6930_v53 = vpop.f32.mrf.mxu3  ;;  %v10483_v24 = vld [vmem:[%s15666_s7 + $0x314] sm:$0xf] }
 0x934   : > { %v6777_v51 = vadd.f32 %v14815_v58, %v6583_v61  ;;  %v9767_v58 = vld [vmem:[%s15666_s7 + $0x338] sm:$0xf0]  ;;  %7137 = vmatpush.bf16.msra.mxu2 %v9778_v44 }
 0x935   : > { %v9770_v41 = vor.u32 %v10487_v55, %v9767_v58  ;;  %v7124_v61 = vpop.f32.mrf.mxu1 }
 0x936   : > { %6759 = vmatmul.bf16.gmra.mxu2 %v16114_v16  ;;  %v6971_v17 = vadd.f32 %v6922_v52, %v6777_v51  ;;  %v10485_v52 = vld [vmem:[%s15666_s7 + $0x324] sm:$0xf] }
 0x938   : > { %v7165_v5 = vadd.f32 %v7116_v31, %v6971_v17  ;;  %7138 = vmatpush.bf16.msra.mxu2 %v9770_v41  ;;  %v9759_v31 = vld [vmem:[%s15666_s7 + $0x328] sm:$0xf0]  ;;  %v10481_v41 = vld [vmem:[%s15666_s7 + $0x304] sm:$0xf] }
 0x939   : > { %v6537_v43 = vpop.f32.mrf.mxu2  ;;  %v9762_v51 = vor.u32 %v10485_v52, %v9759_v31 }
 0x93a   : > { %v6585_v35 = vadd.f32 %v6537_v43, %v14914_v46  ;;  %v9751_v46 = vld [vmem:[%s15666_s7 + $0x318] sm:$0xf0]  ;;  %v9743_v43 = vld [vmem:[%s15666_s7 + $0x308] sm:$0xf0] }
 0x93b   : > { %v6932_v49 = vpop.f32.mrf.mxu3  ;;  %v9754_v12 = vor.u32 %v10483_v24, %v9751_v46 }
 0x93c   : > { %v6779_v63 = vadd.f32 %v14848_v56, %v6585_v35  ;;  %v15234_v56 = vpop.f32.mrf.mxu0  ;;  %7139 = vmatpush.bf16.msra.mxu2 %v9762_v51 }
 0x93e   : > { %v6973_v25 = vadd.f32 %v6925_v48, %v6779_v63  ;;  %v9746_v48 = vor.u32 %v10481_v41, %v9743_v43 }
 0x940   : > { %7660 = vmatmul.bf16.gmra.mxu3 %v9958_v26  ;;  %v7167_v44 = vadd.f32 %v7119_v20, %v6973_v25  ;;  %7140 = vmatpush.bf16.msra.mxu2 %v9754_v12  ;;  %v7126_v20 = vpop.f32.mrf.mxu1 }
 0x941   : > { %v6539_v16 = vpop.f32.mrf.mxu2 }
 0x942   : > { %v6587_v55 = vadd.f32 %v6539_v16, %v14947_v28 }
 0x943   : > { %v6935_v58 = vpop.f32.mrf.mxu3 }
 0x944   : > { %v6781_v17 = vadd.f32 %v14896_v6, %v6587_v55  ;;  %7141 = vmatpush.bf16.msra.mxu2 %v9746_v48  ;;  %v15245_v35 = vpop.f32.mrf.mxu0  ;;  %v16116_v55 = vld [vmem:[#allocation32_spill] sm:$0xff] }
 0x946   : > { %6764 = vmatmul.bf16.gmra.mxu2 %v16115_v19  ;;  %v6975_v4 = vadd.f32 %v6927_v9, %v6781_v17 }
 0x948   : > { %v7169_v28 = vadd.f32 %v7121_v7, %v6975_v4  ;;  %v7129_v46 = vpop.f32.mrf.mxu1 }
 0x949   : > { %v6542_v63 = vpop.f32.mrf.mxu2 }
 0x94a   : > { %v6589_v6 = vadd.f32 %v6542_v63, %v14985_v30 }
 0x94b   : > { %v6937_v26 = vpop.f32.mrf.mxu3 }
 0x94c   : > { %v6783_v52 = vadd.f32 %v14942_v11, %v6589_v6  ;;  %v15252_v12 = vpop.f32.mrf.mxu0 }
 0x94e   : > { %v6977_v31 = vadd.f32 %v6930_v53, %v6783_v52  ;;  %v10013_v52 = vld [vmem:[%s15669_s10 + $0x60] sm:$0xf] }
 0x950   : > { %v15249_v24 = vadd.f32 %v7124_v61, %v6977_v31  ;;  %v7131_v61 = vpop.f32.mrf.mxu1  ;;  %v10550_v31 = vld [vmem:[%s15669_s10 + $0x64] sm:$0xf0] }
 0x951   : > { %v6544_v51 = vpop.f32.mrf.mxu2 }
 0x952   : > { %v6591_v25 = vadd.f32 %v6544_v51, %v14991_v27  ;;  %v10014_v51 = vor.u32 %v10550_v31, %v10013_v52 }
 0x953   : > { %v7308_v9 = vpop.f32.mrf.mxu3 }
 0x954   : > { %v6785_v16 = vadd.f32 %v14983_v18, %v6591_v25  ;;  %v7357_v7 = vadd.f32 %v7308_v9, %v15195_v54  ;;  %v15261_v48 = vpop.f32.mrf.mxu0 }
 0x956   : > { %6769 = vmatmul.bf16.gmra.mxu2 %v16116_v55  ;;  %v6979_v30 = vadd.f32 %v6932_v49, %v6785_v16  ;;  %v10021_v49 = vld [vmem:[%s15669_s10 + $0x70] sm:$0xf] }
 0x958   : > { %v15257_v17 = vadd.f32 %v7126_v20, %v6979_v30 }
 0x959   : > { %v6547_v11 = vpop.f32.mrf.mxu2 }
 0x95a   : > { %v6593_v53 = vadd.f32 %v6547_v11, %v15002_v33  ;;  %v10552_v33 = vld [vmem:[%s15669_s10 + $0x74] sm:$0xf0] }
 0x95b   : > { %v7310_v41 = vpop.f32.mrf.mxu3 }
 0x95c   : > { %v6787_v43 = vadd.f32 %v14993_v22, %v6593_v53  ;;  %v7359_v27 = vadd.f32 %v7310_v41, %v7165_v5  ;;  %v10022_v22 = vor.u32 %v10552_v33, %v10021_v49  ;;  %v9919_v41 = vld [vmem:[%s15666_s7 + $0x468] sm:$0xf0] }
 0x95e   : > { %v6981_v19 = vadd.f32 %v6935_v58, %v6787_v43  ;;  %7801 = vmatpush.bf16.msra.mxu1 %v10022_v22  ;;  %v9997_v43 = vld [vmem:[%s15669_s10 + $0x40] sm:$0xf]  ;;  %v9989_v22 = vld [vmem:[%s15669_s10 + $0x30] sm:$0xf] }
 0x960   : > { %v15263_v4 = vadd.f32 %v7129_v46, %v6981_v19 }
 0x961   : > { %v6549_v18 = vpop.f32.mrf.mxu2 }
 0x962   : > { %v6595_v54 = vadd.f32 %v6549_v18, %v15010_v37  ;;  %v15276_v37 = vpop.f32.mrf.mxu0  ;;  %7802 = vmatpush.bf16.msra.mxu1 %v10014_v51  ;;  %v9911_v18 = vld [vmem:[%s15666_s7 + $0x458] sm:$0xf0] }
 0x963   : > { %v7313_v20 = vpop.f32.mrf.mxu3  ;;  %v7502_v63 = vpop.f32.mrf.mxu1 }
 0x964   : > { %v6789_v5 = vadd.f32 %v15005_v40, %v6595_v54  ;;  %v7361_v6 = vadd.f32 %v7313_v20, %v7167_v44  ;;  %v15273_v58 = vadd.f32 %v7502_v63, %v7357_v7  ;;  %v10527_v40 = vld [vmem:[%s15666_s7 + $0x474] sm:$0xf]  ;;  %v10005_v7 = vld [vmem:[%s15669_s10 + $0x50] sm:$0xf] }
 0x966   : > { %7142 = vmatmul.bf16.vlgmr.msra.gmra.mxu2 %v14796_v8  ;;  %v6983_v44 = vadd.f32 %v6937_v26, %v6789_v5  ;;  %v9927_v8 = vld [vmem:[%s15666_s7 + $0x478] sm:$0xf0]  ;;  %v10548_v26 = vld [vmem:[%s15669_s10 + $0x54] sm:$0xf0] }
 0x967   : > { %v9930_v46 = vor.u32 %v10527_v40, %v9927_v8  ;;  %v10006_v11 = vor.u32 %v10548_v26, %v10005_v7  ;;  %v10544_v5 = vld [vmem:[%s15669_s10 + $0x34] sm:$0xf0]  ;;  %v9903_v8 = vld [vmem:[%s15666_s7 + $0x448] sm:$0xf0] }
 0x968   : > { %v15290_v25 = vadd.f32 %v7131_v61, %v6983_v44  ;;  %v9990_v40 = vor.u32 %v10544_v5, %v9989_v22  ;;  %v9879_v22 = vld [vmem:[%s15666_s7 + $0x418] sm:$0xf0] }
 0x969   : > { %v6561_v9 = vpop.f32.mrf.mxu2  ;;  %7522 = vmatpush.bf16.msrb.mxu2 %v9930_v46  ;;  %7803 = vmatpush.bf16.msra.mxu1 %v10006_v11  ;;  %v9981_v46 = vld [vmem:[%s15669_s10 + $0x20] sm:$0xf] }
 0x96a   : > { %v15293_v16 = vadd.f32 %v6561_v9, %v15021_v23  ;;  %v10525_v23 = vld [vmem:[%s15666_s7 + $0x464] sm:$0xf]  ;;  %v15321_v54 = vpop.f32.mrf.mxu0 }
 0x96b   : > { %v7315_v55 = vpop.f32.mrf.mxu3  ;;  %v7504_v30 = vpop.f32.mrf.mxu1  ;;  %v9922_v19 = vor.u32 %v10525_v23, %v9919_v41  ;;  %v9973_v23 = vld [vmem:[%s15669_s10 + $0x10] sm:$0xf]  ;;  %v10540_v41 = vld [vmem:[%s15669_s10 + $0x14] sm:$0xf0] }
 0x96c   : > { %v7363_v53 = vadd.f32 %v7315_v55, %v7169_v28  ;;  %v15301_v61 = vadd.f32 %v7504_v30, %v7359_v27  ;;  %v10546_v28 = vld [vmem:[%s15669_s10 + $0x44] sm:$0xf0]  ;;  %v10523_v27 = vld [vmem:[%s15666_s7 + $0x454] sm:$0xf] }
 0x96d   : > { %v9998_v49 = vor.u32 %v10546_v28, %v9997_v43  ;;  %7523 = vmatpush.bf16.msrb.mxu2 %v9922_v19  ;;  %v9914_v20 = vor.u32 %v10523_v27, %v9911_v18  ;;  %v9974_v28 = vor.u32 %v10540_v41, %v9973_v23 }
 0x96f   : > { %7804 = vmatpush.bf16.msra.mxu1 %v9998_v49  ;;  %v9887_v49 = vld [vmem:[%s15666_s7 + $0x428] sm:$0xf0] }
 0x971   : > { %v6563_v33 = vpop.f32.mrf.mxu2  ;;  %7524 = vmatpush.bf16.msrb.mxu2 %v9914_v20 }
 0x972   : > { %v15324_v63 = vadd.f32 %v6563_v33, %v15041_v36  ;;  %v10521_v36 = vld [vmem:[%s15666_s7 + $0x444] sm:$0xf]  ;;  %v15357_v11 = vpop.f32.mrf.mxu0  ;;  %v9965_v33 = vld [vmem:[%s15669_s10] sm:$0xf] }
 0x973   : > { %v7318_v52 = vpop.f32.mrf.mxu3  ;;  %v7507_v31 = vpop.f32.mrf.mxu1  ;;  %7805 = vmatpush.bf16.msra.mxu1 %v9990_v40  ;;  %v9906_v9 = vor.u32 %v10521_v36, %v9903_v8  ;;  %v10513_v8 = vld [vmem:[%s15666_s7 + $0x404] sm:$0xf] }
 0x974   : > { %v7365_v44 = vadd.f32 %v7318_v52, %v15249_v24  ;;  %v15333_v51 = vadd.f32 %v7507_v31, %v7361_v6  ;;  %v10542_v24 = vld [vmem:[%s15669_s10 + $0x24] sm:$0xf0]  ;;  %v9895_v6 = vld [vmem:[%s15666_s7 + $0x438] sm:$0xf0] }
 0x975   : > { %v9982_v7 = vor.u32 %v10542_v24, %v9981_v46  ;;  %7525 = vmatpush.bf16.msrb.mxu2 %v9906_v9  ;;  %v9871_v46 = vld [vmem:[%s15666_s7 + $0x408] sm:$0xf0] }
 0x976   : > { %7147 = vmatmul.bf16.gmra.mxu2 %v14827_v42  ;;  %v10519_v42 = vld [vmem:[%s15666_s7 + $0x434] sm:$0xf] }
 0x977   : > { %v9898_v55 = vor.u32 %v10519_v42, %v9895_v6  ;;  %7806 = vmatpush.bf16.msra.mxu1 %v9982_v7  ;;  %v9874_v7 = vor.u32 %v10513_v8, %v9871_v46 }
 0x979   : > { %v6566_v26 = vpop.f32.mrf.mxu2  ;;  %7526 = vmatpush.bf16.msrb.mxu2 %v9898_v55 }
 0x97a   : > { %v15355_v30 = vadd.f32 %v6566_v26, %v15074_v50  ;;  %v10517_v50 = vld [vmem:[%s15666_s7 + $0x424] sm:$0xf]  ;;  %v7675_v36 = vpop.f32.mrf.mxu0 }
 0x97b   : > { %v7320_v43 = vpop.f32.mrf.mxu3  ;;  %v7509_v19 = vpop.f32.mrf.mxu1  ;;  %7807 = vmatpush.bf16.msra.mxu1 %v9974_v28  ;;  %v9890_v20 = vor.u32 %v10517_v50, %v9887_v49 }
 0x97c   : > { %v7367_v27 = vadd.f32 %v7320_v43, %v15257_v17  ;;  %v15366_v18 = vadd.f32 %v7509_v19, %v7363_v53  ;;  %v10538_v17 = vld [vmem:[%s15669_s10 + $0x4] sm:$0xf0]  ;;  %v10515_v53 = vld [vmem:[%s15666_s7 + $0x414] sm:$0xf] }
 0x97d   : > { %v9966_v5 = vor.u32 %v10538_v17, %v9965_v33  ;;  %7527 = vmatpush.bf16.msrb.mxu2 %v9890_v20  ;;  %v9882_v31 = vor.u32 %v10515_v53, %v9879_v22 }
 0x97f   : > { %7808 = vmatpush.bf16.msra.mxu1 %v9966_v5 }
 0x981   : > { %v6568_v52 = vpop.f32.mrf.mxu2  ;;  %7528 = vmatpush.bf16.msrb.mxu2 %v9882_v31 }
 0x982   : > { %v15387_v40 = vadd.f32 %v6568_v52, %v15094_v10  ;;  %v7677_v19 = vpop.f32.mrf.mxu0 }
 0x983   : > { %v7323_v9 = vpop.f32.mrf.mxu3  ;;  %v7512_v24 = vpop.f32.mrf.mxu1 }
 0x984   : > { %v7369_v42 = vadd.f32 %v7323_v9, %v15263_v4  ;;  %v15396_v6 = vadd.f32 %v7512_v24, %v7365_v44 }
 0x985   : > { %7529 = vmatpush.bf16.msrb.mxu2 %v9874_v7  ;;  %v10547_v7 = vld [vmem:[%s15669_s10 + $0x54] sm:$0xf] }
 0x986   : > { %7152 = vmatmul.bf16.gmra.mxu2 %v14898_v14 }
 0x989   : > { %v6571_v10 = vpop.f32.mrf.mxu2 }
 0x98a   : > { %v15400_v26 = vadd.f32 %v6571_v10, %v15123_v32  ;;  %v7680_v32 = vpop.f32.mrf.mxu0 }
 0x98b   : > { %v7325_v55 = vpop.f32.mrf.mxu3  ;;  %v7514_v23 = vpop.f32.mrf.mxu1 }
 0x98c   : > { %v15403_v41 = vadd.f32 %v7325_v55, %v15290_v25  ;;  %v15405_v43 = vadd.f32 %v7514_v23, %v7367_v27 }
 0x991   : > { %v6573_v4 = vpop.f32.mrf.mxu2 }
 0x992   : > { %v15408_v44 = vadd.f32 %v6573_v4, %v15130_v2  ;;  %v7682_v53 = vpop.f32.mrf.mxu0  ;;  %v10545_v4 = vld [vmem:[%s15669_s10 + $0x44] sm:$0xf] }
 0x993   : > { %v7517_v28 = vpop.f32.mrf.mxu1  ;;  %v7646_v50 = vpop.f32.mrf.mxu3 }
 0x994   : > { %v15410_v14 = vadd.f32 %v7517_v28, %v7369_v42  ;;  %v7676_v33 = vadd.f32 %v7675_v36, %v7646_v50  ;;  %v10015_v42 = vld [vmem:[%s15669_s10 + $0x68] sm:$0xf0] }
 0x995   : > { %v9999_v28 = vld [vmem:[%s15669_s10 + $0x48] sm:$0xf0] }
 0x996   : > { %7157 = vmatmul.bf16.gmra.mxu2 %v14977_v59  ;;  %v10551_v59 = vld [vmem:[%s15669_s10 + $0x74] sm:$0xf] }
 0x999   : > { %v6576_v49 = vpop.f32.mrf.mxu2 }
 0x99a   : > { %v15414_v20 = vadd.f32 %v6576_v49, %v15152_v15  ;;  %v10023_v15 = vld [vmem:[%s15669_s10 + $0x78] sm:$0xf0]  ;;  %v7685_v46 = vpop.f32.mrf.mxu0  ;;  %v10002_v49 = vor.u32 %v10545_v4, %v9999_v28 }
 0x99b   : > { %v7648_v25 = vpop.f32.mrf.mxu3  ;;  %v10026_v52 = vor.u32 %v10551_v59, %v10023_v15 }
 0x99c   : > { %v7678_v27 = vadd.f32 %v7677_v19, %v7648_v25 }
 0x99d   : > { %7830 = vmatpush.bf16.msra.mxu2 %v10026_v52 }
 0x99e   : > { %v15416_v17 = vpack.c.bf16 %v7678_v27, %v7676_v33  ;;  %v10543_v33 = vld [vmem:[%s15669_s10 + $0x34] sm:$0xf] }
 0x9a0   : > { %7809 = vmatmul.bf16.vlgmr.msra.gmra.mxu1 %v15416_v17 }
 0x9a1   : > { %v6578_v2 = vpop.f32.mrf.mxu2 }
 0x9a2   : > { %v15420_v22 = vadd.f32 %v6578_v2, %v15156_v21 }
 0x9a3   : > { %v7651_v5 = vpop.f32.mrf.mxu3 }
 0x9a4   : > { %v7681_v36 = vadd.f32 %v7680_v32, %v7651_v5  ;;  %v7687_v32 = vpop.f32.mrf.mxu0  ;;  %v10541_v5 = vld [vmem:[%s15669_s10 + $0x24] sm:$0xf] }
 0x9a6   : > { %7530 = vmatmul.bf16.vlgmr.msrb.gmra.mxu2 %v15012_v0  ;;  %v10549_v0 = vld [vmem:[%s15669_s10 + $0x64] sm:$0xf] }
 0x9a7   : > { %v10018_v10 = vor.u32 %v10549_v0, %v10015_v42  ;;  %v10537_v42 = vld [vmem:[%s15669_s10 + $0x4] sm:$0xf] }
 0x9a9   : > { %v6755_v31 = vpop.f32.mrf.mxu2  ;;  %7831 = vmatpush.bf16.msra.mxu2 %v10018_v10 }
 0x9aa   : > { %v15430_v8 = vadd.f32 %v6755_v31, %v15293_v16  ;;  %v10007_v16 = vld [vmem:[%s15669_s10 + $0x58] sm:$0xf0] }
 0x9ab   : > { %v7653_v21 = vpop.f32.mrf.mxu3  ;;  %v10010_v23 = vor.u32 %v10547_v7, %v10007_v16  ;;  %v9967_v7 = vld [vmem:[%s15669_s10 + $0x8] sm:$0xf0] }
 0x9ac   : > { %v7683_v9 = vadd.f32 %v7682_v53, %v7653_v21  ;;  %v7690_v21 = vpop.f32.mrf.mxu0  ;;  %v9970_v16 = vor.u32 %v10537_v42, %v9967_v7 }
 0x9ad   : > { %7832 = vmatpush.bf16.msra.mxu2 %v10010_v23 }
 0x9ae   : > { %v15432_v24 = vpack.c.bf16 %v7683_v9, %v7681_v36  ;;  %v10539_v36 = vld [vmem:[%s15669_s10 + $0x14] sm:$0xf] }
 0x9b0   : > { %7814 = vmatmul.bf16.gmra.mxu1 %v15432_v24 }
 0x9b1   : > { %v6757_v55 = vpop.f32.mrf.mxu2  ;;  %7833 = vmatpush.bf16.msra.mxu2 %v10002_v49 }
 0x9b2   : > { %v6778_v19 = vadd.f32 %v6757_v55, %v15324_v63  ;;  %v9991_v63 = vld [vmem:[%s15669_s10 + $0x38] sm:$0xf0] }
 0x9b3   : > { %v7656_v50 = vpop.f32.mrf.mxu3  ;;  %v9994_v27 = vor.u32 %v10543_v33, %v9991_v63 }
 0x9b4   : > { %v7686_v2 = vadd.f32 %v7685_v46, %v7656_v50  ;;  %v7692_v23 = vpop.f32.mrf.mxu0 }
 0x9b5   : > { %7834 = vmatpush.bf16.msra.mxu2 %v9994_v27 }
 0x9b6   : > { %7535 = vmatmul.bf16.gmra.mxu2 %v15055_v39  ;;  %v9983_v39 = vld [vmem:[%s15669_s10 + $0x28] sm:$0xf0] }
 0x9b7   : > { %v9986_v52 = vor.u32 %v10541_v5, %v9983_v39  ;;  %v6972_v39 = vadd.f32 %v15039_v34, %v6778_v19 }
 0x9b9   : > { %v6760_v25 = vpop.f32.mrf.mxu2  ;;  %7835 = vmatpush.bf16.msra.mxu2 %v9986_v52 }
 0x9ba   : > { %v6780_v53 = vadd.f32 %v6760_v25, %v15355_v30  ;;  %v9975_v30 = vld [vmem:[%s15669_s10 + $0x18] sm:$0xf0] }
 0x9bb   : > { %v7658_v59 = vpop.f32.mrf.mxu3  ;;  %v9978_v9 = vor.u32 %v10539_v36, %v9975_v30 }
 0x9bc   : > { %v7688_v15 = vadd.f32 %v7687_v32, %v7658_v59 }
 0x9bd   : > { %7836 = vmatpush.bf16.msra.mxu2 %v9978_v9 }
 0x9be   : > { %v7697_v31 = vpack.c.bf16 %v7688_v15, %v7686_v2 }
 0x9c0   : > { %7819 = vmatmul.bf16.gmra.mxu1 %v7697_v31 }
 0x9c1   : > { %v6762_v46 = vpop.f32.mrf.mxu2  ;;  %7837 = vmatpush.bf16.msra.mxu2 %v9970_v16 }
 0x9c2   : > { %v6782_v0 = vadd.f32 %v6762_v46, %v15387_v40 }
 0x9c3   : > { %v7661_v10 = vpop.f32.mrf.mxu3 }
 0x9c4   : > { %v7691_v4 = vadd.f32 %v7690_v21, %v7661_v10  ;;  %v6976_v52 = vadd.f32 %v15104_v38, %v6782_v0 }
 0x9c6   : > { %7540 = vmatmul.bf16.gmra.mxu2 %v15102_v57 }
 0x9c9   : > { %v6765_v55 = vpop.f32.mrf.mxu2 }
 0x9ca   : > { %v6784_v28 = vadd.f32 %v6765_v55, %v15400_v26  ;;  %v6970_v26 = vadd.f32 %v15017_v60, %v15430_v8 }
 0x9cb   : > { %v7663_v40 = vpop.f32.mrf.mxu3 }
 0x9cc   : > { %v7693_v50 = vadd.f32 %v7692_v23, %v7663_v40  ;;  %v6978_v60 = vadd.f32 %v15126_v13, %v6784_v28  ;;  %v15510_v13 = vld [vmem:[%s15670_s11] sm:$0x3] }
 0x9cd   : > { %v15518_v21 = vperm.slane %v15510_v13, 0 }
 0x9ce   : > { %v7698_v32 = vpack.c.bf16 %v7693_v50, %v7691_v4 }
 0x9d0   : > { %7824 = vmatmul.bf16.gmra.mxu1 %v7698_v32 }
 0x9d1   : > { %v6767_v49 = vpop.f32.mrf.mxu2 }
 0x9d2   : > { %v6786_v33 = vadd.f32 %v6767_v49, %v15408_v44 }
 0x9d4   : > { %v6980_v34 = vadd.f32 %v15144_v3, %v6786_v33  ;;  %v15515_v3 = vld [vmem:[%s15667_s8] sm:$0x3] }
 0x9d5   : > { %v15521_v46 = vperm.slane %v15515_v3, 0 }
 0x9d6   : > { %7545 = vmatmul.bf16.gmra.mxu2 %v15132_v47  ;;  %v6974_v47 = vadd.f32 %v15082_v62, %v6780_v53 }
 0x9d7   : > { %v7573_v7 = vadd.f32 %v15521_v46, %v15273_v58  ;;  %v7575_v16 = vadd.f32 %v15521_v46, %v15301_v61  ;;  %v7577_v58 = vadd.f32 %v15521_v46, %v15333_v51  ;;  %v10559_v51 = vld [vmem:[%s15671_s12 + $0x30] sm:$0xff] }
 0x9d9   : > { %v6770_v63 = vpop.f32.mrf.mxu2 }
 0x9da   : > { %v6788_v25 = vadd.f32 %v6770_v63, %v15414_v20 }
 0x9dc   : > { %v6982_v62 = vadd.f32 %v15158_v29, %v6788_v25 }
 0x9e1   : > { %v6772_v27 = vpop.f32.mrf.mxu2 }
 0x9e2   : > { %v6790_v57 = vadd.f32 %v6772_v27, %v15420_v22 }
 0x9e4   : > { %v6984_v29 = vadd.f32 %v15181_v45, %v6790_v57 }
 0x9e6   : > { %7838 = vmatmul.bf16.vlgmr.msra.gmra.mxu2 %v15416_v17 }
 0x9e9   : > { %v7143_v2 = vpop.f32.mrf.mxu2 }
 0x9ea   : > { %v7164_v5 = vadd.f32 %v7143_v2, %v6970_v26 }
 0x9ec   : > { %v7358_v28 = vadd.f32 %v15205_v1, %v7164_v5  ;;  %v10560_v1 = vld [vmem:[%s15671_s12 + $0x38] sm:$0xff] }
 0x9ed   : > { %8057 = vmatpush.bf16.msrb.mxu3 %v10560_v1 }
 0x9f1   : > { %v7145_v59 = vpop.f32.mrf.mxu2  ;;  %8058 = vmatpush.bf16.msrb.mxu3 %v10559_v51 }
 0x9f2   : > { %v7166_v15 = vadd.f32 %v7145_v59, %v6972_v39  ;;  %v7579_v39 = vadd.f32 %v15521_v46, %v15366_v18  ;;  %v7581_v18 = vadd.f32 %v15521_v46, %v15396_v6 }
 0x9f4   : > { %v7360_v61 = vadd.f32 %v15234_v56, %v7166_v15 }
 0x9f6   : > { %7843 = vmatmul.bf16.gmra.mxu2 %v15432_v24  ;;  %v15502_v24 = vpop.f32.mrf.mxu1 }
 0x9f9   : > { %v7148_v44 = vpop.f32.mrf.mxu2 }
 0x9fa   : > { %v7168_v20 = vadd.f32 %v7148_v44, %v6974_v47 }
 0x9fc   : > { %v7362_v15 = vadd.f32 %v15245_v35, %v7168_v20  ;;  %v10557_v35 = vld [vmem:[%s15671_s12 + $0x20] sm:$0xff] }
 0xa01   : > { %v7150_v22 = vpop.f32.mrf.mxu2 }
 0xa02   : > { %v15494_v36 = vadd.f32 %v7150_v22, %v6976_v52  ;;  %v10558_v22 = vld [vmem:[%s15671_s12 + $0x28] sm:$0xff] }
 0xa03   : > { %8059 = vmatpush.bf16.msrb.mxu3 %v10558_v22 }
 0xa06   : > { %7848 = vmatmul.bf16.gmra.mxu2 %v7697_v31 }
 0xa07   : > { %8060 = vmatpush.bf16.msrb.mxu3 %v10557_v35 }
 0xa09   : > { %v7153_v17 = vpop.f32.mrf.mxu2 }
 0xa0a   : > { %v15497_v8 = vadd.f32 %v7153_v17, %v6978_v60 }
 0xa11   : > { %v7155_v19 = vpop.f32.mrf.mxu2 }
 0xa12   : > { %v15500_v30 = vadd.f32 %v7155_v19, %v6980_v34  ;;  %v7364_v19 = vadd.f32 %v15252_v12, %v15494_v36  ;;  %v10555_v12 = vld [vmem:[%s15671_s12 + $0x10] sm:$0xff] }
 0xa16   : > { %7853 = vmatmul.bf16.gmra.mxu2 %v7698_v32 }
 0xa19   : > { %v7158_v38 = vpop.f32.mrf.mxu2 }
 0xa1a   : > { %v15505_v53 = vadd.f32 %v7158_v38, %v6982_v62 }
 0xa1d   : > { %v7810_v31 = vpop.f32.mrf.mxu1 }
 0xa1e   : > { %v7811_v0 = vadd.f32 %v7810_v31, %v15518_v21 }
 0xa20   : > { %v7859_v55 = vadd.f32 %v7811_v0, %v7573_v7  ;;  %v7583_v0 = vadd.f32 %v15521_v46, %v15405_v43 }
 0xa21   : > { %v7160_v9 = vpop.f32.mrf.mxu2 }
 0xa22   : > { %v15525_v42 = vadd.f32 %v7160_v9, %v6984_v29  ;;  %v7875_v45 = vmax.f32 %v7859_v55, 0.0  ;;  %v10556_v29 = vld [vmem:[%s15671_s12 + $0x18] sm:$0xff]  ;;  %v10554_v55 = vld [vmem:[%s15671_s12 + $0x8] sm:$0xff] }
 0xa23   : > { %8061 = vmatpush.bf16.msrb.mxu3 %v10556_v29 }
 0xa25   : > { %v7812_v10 = vpop.f32.mrf.mxu1 }
 0xa26   : > { %v7813_v23 = vadd.f32 %v7812_v10, %v15518_v21  ;;  %v7366_v10 = vadd.f32 %v15261_v48, %v15497_v8  ;;  %v10553_v48 = vld [vmem:[%s15671_s12] sm:$0xff]  ;;  %v10730_v8 = vmov 64.0  }
 0xa27   : > { %8062 = vmatpush.bf16.msrb.mxu3 %v10555_v12  ;;  %10706 = vrcp.f32 %v10730_v8 }
 0xa28   : > { %v7861_v4 = vadd.f32 %v7813_v23, %v7575_v16 }
 0xa29   : > { %v7531_v40 = vpop.f32.mrf.mxu2 }
 0xa2a   : > { %v7877_v50 = vmax.f32 %v7861_v4, 0.0  ;;  %v15533_v32 = vadd.f32 %v7531_v40, %v7358_v28  ;;  %v7585_v40 = vadd.f32 %v15521_v46, %v15410_v14 }
 0xa2b   : > { %8063 = vmatpush.bf16.msrb.mxu3 %v10554_v55 }
 0xa2c   : > { %v7891_v49 = vadd.f32 %v7877_v50, %v7875_v45 }
 0xa2d   : > { %v7815_v33 = vpop.f32.mrf.mxu1  ;;  %v10707_v14 = vpop.eup %10706 }
 0xa2e   : > { %v7816_v63 = vadd.f32 %v7815_v33, %v15518_v21  ;;  %vm7922_vm8 = vweird.f32 %v10707_v14 }
 0xa2f   : > { %8064 = vmatpush.bf16.msrb.mxu3 %v10553_v48 }
 0xa30   : > { %v7863_v25 = vadd.f32 %v7816_v63, %v7577_v58  ;;  %v7565_v58 = vadd.f32 %v15502_v24, %v15403_v41 }
 0xa31   : > { %v7533_v27 = vpop.f32.mrf.mxu2 }
 0xa32   : > { %v7879_v57 = vmax.f32 %v7863_v25, 0.0  ;;  %v15539_v26 = vadd.f32 %v7533_v27, %v7360_v61 }
 0xa34   : > { %v7892_v2 = vadd.f32 %v7891_v49, %v7879_v57  ;;  %v7368_v49 = vadd.f32 %v15276_v37, %v15500_v30  ;;  %v7587_v57 = vadd.f32 %v15521_v46, %v7565_v58  ;;  %v7370_v37 = vadd.f32 %v15321_v54, %v15505_v53 }
 0xa35   : > { %v7817_v5 = vpop.f32.mrf.mxu1  ;;  %v15605_v53 = vperm.slane %v15510_v13, 1 }
 0xa36   : > { %v7818_v56 = vadd.f32 %v7817_v5, %v15518_v21 }
 0xa38   : > { %v7865_v59 = vadd.f32 %v7818_v56, %v7579_v39 }
 0xa39   : > { %v7536_v47 = vpop.f32.mrf.mxu2 }
 0xa3a   : > { %v7881_v44 = vmax.f32 %v7865_v59, 0.0  ;;  %v15551_v52 = vadd.f32 %v7536_v47, %v7362_v15 }
 0xa3c   : > { %v7893_v60 = vadd.f32 %v7892_v2, %v7881_v44  ;;  %v7918_v2 = vmul.f32 64.0, %v10707_v14 }
 0xa3d   : > { %v7820_v17 = vpop.f32.mrf.mxu1 }
 0xa3e   : > { %v7821_v34 = vadd.f32 %v7820_v17, %v15518_v21  ;;  %v7919_v41 = vsub.f32 1.0, %v7918_v2  ;;  %v10562_v2 = vld [vmem:[%s15671_s12 + $0x48] sm:$0xff] }
 0xa40   : > { %v7867_v20 = vadd.f32 %v7821_v34, %v7581_v18  ;;  %v7920_v59 = vmul.f32 %v10707_v14, %v7919_v41  ;;  %v7570_v34 = vperm.slane %v15515_v3, 1 }
 0xa41   : > { %v7538_v62 = vpop.f32.mrf.mxu2 }
 0xa42   : > { %v7883_v38 = vmax.f32 %v7867_v20, 0.0  ;;  %v15564_v31 = vadd.f32 %v7538_v62, %v7364_v19  ;;  %v7921_v46 = vadd.f32 %v10707_v14, %v7920_v59  ;;  %v7574_v19 = vadd.f32 %v7570_v34, %v15533_v32  ;;  %v10568_v32 = vld [vmem:[%s15671_s12 + $0x78] sm:$0xff] }
 0xa43   : > { %8070 = vmatpush.bf16.msra.mxu0 %v10568_v32 }
 0xa44   : > { %v7894_v6 = vadd.f32 %v7893_v60, %v7883_v38  ;;  %v15602_v60 = vsel %vm7922_vm8, %v10707_v14, %v7921_v46  ;;  %v7576_v38 = vadd.f32 %v7570_v34, %v15539_v26 }
 0xa45   : > { %v7822_v9 = vpop.f32.mrf.mxu1 }
 0xa46   : > { %v7823_v7 = vadd.f32 %v7822_v9, %v15518_v21 }
 0xa48   : > { %v7869_v36 = vadd.f32 %v7823_v7, %v7583_v0 }
 0xa49   : > { %v7541_v16 = vpop.f32.mrf.mxu2 }
 0xa4a   : > { %v7885_v23 = vmax.f32 %v7869_v36, 0.0  ;;  %v15580_v4 = vadd.f32 %v7541_v16, %v7366_v10  ;;  %v7578_v36 = vadd.f32 %v7570_v34, %v15551_v52 }
 0xa4c   : > { %v7895_v43 = vadd.f32 %v7894_v6, %v7885_v23  ;;  %v10567_v23 = vld [vmem:[%s15671_s12 + $0x70] sm:$0xff] }
 0xa4d   : > { %v7825_v28 = vpop.f32.mrf.mxu1  ;;  %8071 = vmatpush.bf16.msra.mxu0 %v10567_v23 }
 0xa4e   : > { %v7826_v45 = vadd.f32 %v7825_v28, %v15518_v21 }
 0xa50   : > { %v7871_v50 = vadd.f32 %v7826_v45, %v7585_v40  ;;  %v10566_v45 = vld [vmem:[%s15671_s12 + $0x68] sm:$0xff] }
 0xa51   : > { %v7543_v33 = vpop.f32.mrf.mxu2  ;;  %8072 = vmatpush.bf16.msra.mxu0 %v10566_v45 }
 0xa52   : > { %v7887_v63 = vmax.f32 %v7871_v50, 0.0  ;;  %v15592_v25 = vadd.f32 %v7543_v33, %v7368_v49  ;;  %v7582_v50 = vadd.f32 %v7570_v34, %v15580_v4 }
 0xa54   : > { %v7896_v61 = vadd.f32 %v7895_v43, %v7887_v63  ;;  %v7580_v43 = vadd.f32 %v7570_v34, %v15564_v31  ;;  %v10565_v31 = vld [vmem:[%s15671_s12 + $0x60] sm:$0xff]  ;;  %v10564_v63 = vld [vmem:[%s15671_s12 + $0x58] sm:$0xff] }
 0xa55   : > { %v7827_v27 = vpop.f32.mrf.mxu1  ;;  %8073 = vmatpush.bf16.msra.mxu0 %v10565_v31 }
 0xa56   : > { %v7828_v1 = vadd.f32 %v7827_v27, %v15518_v21  ;;  %v7584_v27 = vadd.f32 %v7570_v34, %v15592_v25  ;;  %v10561_v25 = vld [vmem:[%s15671_s12 + $0x40] sm:$0xff] }
 0xa58   : > { %v7873_v5 = vadd.f32 %v7828_v1, %v7587_v57  ;;  %v10563_v57 = vld [vmem:[%s15671_s12 + $0x50] sm:$0xff] }
 0xa59   : > { %v7546_v30 = vpop.f32.mrf.mxu2  ;;  %8074 = vmatpush.bf16.msra.mxu0 %v10564_v63 }
 0xa5a   : > { %v7889_v51 = vmax.f32 %v7873_v5, 0.0  ;;  %v15598_v39 = vadd.f32 %v7546_v30, %v7370_v37 }
 0xa5c   : > { %v7897_v24 = vadd.f32 %v7896_v61, %v7889_v51  ;;  %v7586_v51 = vadd.f32 %v7570_v34, %v15598_v39 }
 0xa5d   : > { %8075 = vmatpush.bf16.msra.mxu0 %v10563_v57 }
 0xa5e   : > { %v7898_v56 = vrot.slane %v7897_v24, 4 }
 0xa60   : > { %v7899_v15 = vadd.f32 %v7898_v56, %v7897_v24  ;;  %v7372_v24 = vadd.f32 %v15357_v11, %v15525_v42 }
 0xa61   : > { %v15600_v47 = vpop.f32.mrf.mxu2  ;;  %8076 = vmatpush.bf16.msra.mxu0 %v10562_v2 }
 0xa62   : > { %v7900_v44 = vrot.slane %v7899_v15, 2  ;;  %v7566_v59 = vadd.f32 %v15600_v47, %v7372_v24 }
 0xa64   : > { %v7901_v22 = vadd.f32 %v7900_v44, %v7899_v15 }
 0xa65   : > { %8077 = vmatpush.bf16.msra.mxu0 %v10561_v25 }
 0xa66   : > { %v7902_v21 = vrot.slane %v7901_v22, 1 }
 0xa68   : > { %v7903_v17 = vadd.f32 %v7902_v21, %v7901_v22  ;;  %v7588_v22 = vadd.f32 %v7570_v34, %v7566_v59 }
 0xa69   : > { %v7839_v54 = vpop.f32.mrf.mxu2 }
 0xa6a   : > { %v7924_v18 = vmul.f32 %v15602_v60, %v7903_v17  ;;  %v7840_v20 = vadd.f32 %v7839_v54, %v15605_v53 }
 0xa6c   : > { %v7926_v35 = vpack.c.bf16 %v7924_v18, %v7924_v18  ;;  %v7860_v29 = vadd.f32 %v7840_v20, %v7574_v19 }
 0xa6e   : > { %8065 = vmatmul.bf16.vlgmr.msrb.gmra.mxu3 %v7926_v35  ;;  %v7876_v0 = vmax.f32 %v7860_v29, 0.0 }
 0xa71   : > { %v7841_v62 = vpop.f32.mrf.mxu2 }
 0xa72   : > { %v7842_v6 = vadd.f32 %v7841_v62, %v15605_v53 }
 0xa74   : > { %v7862_v9 = vadd.f32 %v7842_v6, %v7576_v38  ;;  %v7960_v6 = vld [vmem:[#allocation3] sm:$0x1] }
 0xa76   : > { %v7878_v13 = vmax.f32 %v7862_v9, 0.0 }
 0xa78   : > { %v7904_v7 = vadd.f32 %v7878_v13, %v7876_v0 }
 0xa79   : > { %v7844_v12 = vpop.f32.mrf.mxu2 }
 0xa7a   : > { %v7845_v3 = vadd.f32 %v7844_v12, %v15605_v53 }
 0xa7c   : > { %v7864_v10 = vadd.f32 %v7845_v3, %v7578_v36 }
 0xa7e   : > { %v7880_v16 = vmax.f32 %v7864_v10, 0.0 }
 0xa80   : > { %v7905_v55 = vadd.f32 %v7904_v7, %v7880_v16 }
 0xa81   : > { %v7846_v26 = vpop.f32.mrf.mxu2 }
 0xa82   : > { %v7847_v28 = vadd.f32 %v7846_v26, %v15605_v53 }
 0xa84   : > { %v7866_v52 = vadd.f32 %v7847_v28, %v7580_v43 }
 0xa86   : > { %v7882_v40 = vmax.f32 %v7866_v52, 0.0 }
 0xa88   : > { %v7906_v48 = vadd.f32 %v7905_v55, %v7882_v40 }
 0xa89   : > { %v7849_v8 = vpop.f32.mrf.mxu2 }
 0xa8a   : > { %v7850_v49 = vadd.f32 %v7849_v8, %v15605_v53 }
 0xa8c   : > { %v7868_v33 = vadd.f32 %v7850_v49, %v7582_v50 }
 0xa8e   : > { %v7884_v58 = vmax.f32 %v7868_v33, 0.0 }
 0xa90   : > { %v7907_v14 = vadd.f32 %v7906_v48, %v7884_v58 }
 0xa91   : > { %v7851_v61 = vpop.f32.mrf.mxu2 }
 0xa92   : > { %v7852_v4 = vadd.f32 %v7851_v61, %v15605_v53 }
 0xa94   : > { %v7870_v1 = vadd.f32 %v7852_v4, %v7584_v27 }
 0xa96   : > { %v7886_v5 = vmax.f32 %v7870_v1, 0.0 }
 0xa98   : > { %v7908_v37 = vadd.f32 %v7907_v14, %v7886_v5 }
 0xa99   : > { %v7854_v30 = vpop.f32.mrf.mxu2 }
 0xa9a   : > { %v7855_v41 = vadd.f32 %v7854_v30, %v15605_v53 }
 0xa9c   : > { %v7872_v56 = vadd.f32 %v7855_v41, %v7586_v51 }
 0xa9e   : > { %v7888_v15 = vmax.f32 %v7872_v56, 0.0 }
 0xaa0   : > { %v7909_v44 = vadd.f32 %v7908_v37, %v7888_v15 }
 0xaa1   : > { %v7856_v46 = vpop.f32.mrf.mxu2 }
 0xaa2   : > { %v7857_v21 = vadd.f32 %v7856_v46, %v15605_v53 }
 0xaa4   : > { %v7874_v17 = vadd.f32 %v7857_v21, %v7588_v22 }
 0xaa6   : > { %v7890_v54 = vmax.f32 %v7874_v17, 0.0 }
 0xaa8   : > { %v7910_v18 = vadd.f32 %v7909_v44, %v7890_v54 }
 0xaaa   : > { %v7911_v39 = vrot.slane %v7910_v18, 4 }
 0xaac   : > { %v7912_v35 = vadd.f32 %v7911_v39, %v7910_v18 }
 0xaae   : > { %v7913_v20 = vrot.slane %v7912_v35, 2 }
 0xab0   : > { %v7914_v19 = vadd.f32 %v7913_v20, %v7912_v35 }
 0xab2   : > { %v7915_v62 = vrot.slane %v7914_v19, 1 }
 0xab4   : > { %v7916_v11 = vadd.f32 %v7915_v62, %v7914_v19 }
 0xab6   : > { %v7925_v42 = vmul.f32 %v15602_v60, %v7916_v11 }
 0xab8   : > { %v7927_v38 = vpack.c.bf16 %v7925_v42, %v7925_v42 }
 0xaba   : > { %8078 = vmatmul.bf16.vlgmr.msra.gmra.mxu0 %v7927_v38 }
 0xaf1   : > { %v8066_v47 = vpop.f32.mrf.mxu3 }
 0xaf2   : > { %v8067_v34 = vadd.f32 %v8066_v47, %v7960_v6 }
 0xaf9   : > { %v8068_v29 = vpop.f32.mrf.mxu3 }
 0xb37   : > { %v8079_v53 = vpop.f32.mrf.mxu0 }
 0xb38   : > { %v8080_v9 = vadd.f32 %v8079_v53, %v8067_v34 }
 0xb3a   : > { %8084 = vst.msk [vmem:[%s465_s25] sm:$0x1] %vm8083_vm9, %v8080_v9 }
 0xb3f   : > { %v8081_v0 = vpop.f32.mrf.mxu0 }
 0xb40 PF: > { %s26_s15 = sadd.s32 1, %s10728_s15  }
 0xb41   : > { %p23_p4 = scmp.ge.s32.totalorder %s26_s15, 4  }
 0xb43   :  { %25 = sbr.rel (!%p23_p4) target bundleno = 3 (0x3), region = 106 }

</bundles_post_ra>
